<compile_context>
chip_gen: v7x
topology: tpu7x:2x2x1
jax: 0.10.0
libtpu: 0.0.40
codegen_flags: <defaults>
</compile_context>

<pallas_src>
import jax
import jax.numpy as jnp
from jax import lax
from jax.experimental import pallas as pl
from jax.experimental.pallas import tpu as pltpu


# Plain Python floats -> become jaxpr literals inside the kernel (no captured consts).
NEG_FILL = float(-2.0 ** 32 + 1)
HARD = 0.03


# ----------------------------------------------------------------------------
# Fused kernel builder: LSTM stack + attention + classifier, grid=(1,).
# ----------------------------------------------------------------------------
def make_fused_kernel(n_layer, B, T, Din, H, C):
    del Din, C  # shapes come from the refs

    def kernel(*refs):
        x_ref = refs[0]                                      # (T*B, Din), time-major
        layer_refs = [refs[1 + 3 * l: 4 + 3 * l] for l in range(n_layer)]
        k = 1 + 3 * n_layer
        wd_ref = refs[k]                                     # (H, H)
        bd_ref = refs[k + 1]                                 # (1, H)
        wl_ref = refs[k + 2]                                 # (T, H, C)
        bl_ref = refs[k + 3]                                 # (1, C)
        out_ref = refs[k + 4]                                # (B, C)
        proj_ref = refs[k + 5]                               # VMEM (T*B, 4H) f32
        seq_ref = refs[k + 6]                                # VMEM (T*B, H)  f32

        # ------------------------- stacked LSTM layers -------------------------
        for layer, (wih_ref, whh_ref, b_ref) in enumerate(layer_refs):
            # bf16 MXU operands, f32 accumulation / state / bias / nonlinearities.
            wih = wih_ref[...].astype(jnp.bfloat16)          # (Din_l, 4H)
            whh = whh_ref[...].astype(jnp.bfloat16)          # (H, 4H)
            bias = b_ref[...]                                # (1, 4H) f32

            # Input projection for ALL T*B rows in one matmul (no per-b loop).
            # Layer 1 reads the full layer-0 hidden sequence BEFORE the loop
            # below overwrites seq_ref (ordering is load-before-store).
            x_in = x_ref[...] if layer == 0 else seq_ref[...]
            proj_ref[...] = (
                jnp.dot(x_in.astype(jnp.bfloat16), wih,
                        preferred_element_type=jnp.float32) + bias)

            def step(t, carry):
                h, c = carry                                 # f32 (B, H)
                row = t * B
                gates = proj_ref[pl.ds(row, B), :] + jnp.dot(
                    h.astype(jnp.bfloat16), whh,
                    preferred_element_type=jnp.float32)      # (B, 4H) f32
                # Two full-vreg EUP passes; torch gate order i, f, g, o.
                sig = jax.nn.sigmoid(gates)
                tg = jnp.tanh(gates)
                i_g = sig[:, 0 * H:1 * H]
                f_g = sig[:, 1 * H:2 * H]
                g_g = tg[:, 2 * H:3 * H]
                o_g = sig[:, 3 * H:4 * H]
                c_new = f_g * c + i_g * g_g
                h_new = o_g * jnp.tanh(c_new)
                seq_ref[pl.ds(row, B), :] = h_new            # dense (B,H) slab store
                return h_new, c_new

            zeros = jnp.zeros((B, H), jnp.float32)
            lax.fori_loop(0, T, step, (zeros, zeros), unroll=True)

        # -------------- attention over time + classifier (batched) --------------
        feats2d = seq_ref[...]                               # (T*B, H) f32
        w2d = jnp.tanh(
            jnp.dot(feats2d.astype(jnp.bfloat16),
                    wd_ref[...].astype(jnp.bfloat16),
                    preferred_element_type=jnp.float32) + bd_ref[...])
        mask = jnp.sum(jnp.abs(feats2d), axis=-1, keepdims=True)    # (T*B, 1)
        w2d = jnp.where(mask > 0.0, w2d, NEG_FILL)

        w = w2d.reshape(T, B, H)
        feats = feats2d.reshape(T, B, H)
        # softmax over time (torch: transpose -> softmax(dim=2) -> transpose)
        w_max = jnp.max(w, axis=0, keepdims=True)
        w_exp = jnp.exp(w - w_max)
        w = w_exp / jnp.sum(w_exp, axis=0, keepdims=True)
        w = jnp.where(w > HARD, w, 0.0)                      # hard = 0.03
        att = w * feats                                      # (T, B, H)

        # out[b,c] = sum_{t,h} att[t,b,h] * wl[t,h,c]
        # batched (over T) matmul reduces the lane (H) axis first, then sum over T.
        partial = lax.dot_general(
            att.astype(jnp.bfloat16),
            wl_ref[...].astype(jnp.bfloat16),
            dimension_numbers=(((2,), (1,)), ((0,), (0,))),
            preferred_element_type=jnp.float32)              # (T, B, C)
        out_ref[...] = jnp.sum(partial, axis=0) + bl_ref[...]

    return kernel


# ----------------------------------------------------------------------------
# Wrapper: one fused pallas_call, everything resident in VMEM.
# ----------------------------------------------------------------------------
def my_lstm_net_forward(x, params):
    B, T, Din = x.shape
    wd_t = params["wd_t"]
    H = wd_t.shape[0]
    C = params["bl"].shape[1]
    n_layer = len(params["lstm"])
    G = 4 * H

    # time-major flat input: row index = t*B + b  (tiny host-side transpose)
    x2d = jnp.transpose(x, (1, 0, 2)).reshape(T * B, Din)
    # classifier weight as (T, H, C): wl_thc[t, h, c] == wl[c, t*H + h]
    wl_thc = jnp.transpose(params["wl"].reshape(C, T, H), (1, 2, 0))

    kernel = make_fused_kernel(n_layer, B, T, Din, H, C)

    inputs = [x2d]
    in_specs = [pl.BlockSpec((T * B, Din), lambda i: (0, 0))]
    for (wih_t, whh_t, bias) in params["lstm"]:
        inputs += [wih_t, whh_t, bias]
        in_specs += [
            pl.BlockSpec(wih_t.shape, lambda i: (0, 0)),
            pl.BlockSpec(whh_t.shape, lambda i: (0, 0)),
            pl.BlockSpec(bias.shape, lambda i: (0, 0)),
        ]
    inputs += [wd_t, params["bd"], wl_thc, params["bl"]]
    in_specs += [
        pl.BlockSpec(wd_t.shape, lambda i: (0, 0)),
        pl.BlockSpec(params["bd"].shape, lambda i: (0, 0)),
        pl.BlockSpec(wl_thc.shape, lambda i: (0, 0, 0)),
        pl.BlockSpec(params["bl"].shape, lambda i: (0, 0)),
    ]

    # advisory cost estimate for the XLA scheduler
    flops = 0
    d_in = Din
    for _ in range(n_layer):
        flops += 2 * T * B * d_in * G        # input projection
        flops += 2 * T * B * H * G           # recurrent matmul
        d_in = H
    flops += 2 * T * B * H * H               # attention dense
    flops += 2 * T * B * H * C               # classifier contraction
    transcendentals = n_layer * T * (2 * B * G + B * H) + 2 * T * B * H
    bytes_accessed = 4 * (
        x2d.size
        + sum(int(w.size) for lay in params["lstm"] for w in lay)
        + wd_t.size + params["bd"].size + wl_thc.size + params["bl"].size
        + B * C)

    return pl.pallas_call(
        kernel,
        out_shape=jax.ShapeDtypeStruct((B, C), jnp.float32),
        grid_spec=pltpu.PrefetchScalarGridSpec(
            num_scalar_prefetch=0,
            grid=(1,),
            in_specs=in_specs,
            out_specs=pl.BlockSpec((B, C), lambda i: (0, 0)),
            scratch_shapes=[
                pltpu.VMEM((T * B, G), jnp.float32),   # input projections (flat)
                pltpu.VMEM((T * B, H), jnp.float32),   # hidden sequence (flat)
            ],
        ),
        compiler_params=pltpu.CompilerParams(
            dimension_semantics=("arbitrary",)),
        cost_estimate=pl.CostEstimate(
            flops=int(flops),
            transcendentals=int(transcendentals),
            bytes_accessed=int(bytes_accessed)),
    )(*inputs)


# ----------------------------------------------------------------------------
# Pure-JAX f32 reference (same math as the torch module), correctness check only.
# ----------------------------------------------------------------------------
def reference_forward(x, params):
    h = x
    for (wih_t, whh_t, bias) in params["lstm"]:
        B, T, _ = h.shape
        H = whh_t.shape[0]
        ht = jnp.zeros((B, H), jnp.float32)
        ct = jnp.zeros((B, H), jnp.float32)
        outs = []
        for t in range(T):
            gates = h[:, t] @ wih_t + ht @ whh_t + bias
            i_g = jax.nn.sigmoid(gates[:, 0:H])
            f_g = jax.nn.sigmoid(gates[:, H:2 * H])
            g_g = jnp.tanh(gates[:, 2 * H:3 * H])
            o_g = jax.nn.sigmoid(gates[:, 3 * H:4 * H])
            ct = f_g * ct + i_g * g_g
            ht = o_g * jnp.tanh(ct)
            outs.append(ht)
        h = jnp.stack(outs, axis=1)
    feats = h
    w = jnp.tanh(feats @ params["wd_t"] + params["bd"])
    mask = jnp.sign(jnp.sum(jnp.abs(feats), axis=-1, keepdims=True))
    w = jnp.where(mask == 1.0, w, jnp.float32(-2.0 ** 32 + 1))
    w = jax.nn.softmax(w, axis=1)
    w = jnp.where(w > 0.03, w, 0.0)
    att = w * feats
    flat = att.reshape(feats.shape[0], -1)
    return flat @ params["wl"].T + params["bl"]


# ----------------------------------------------------------------------------
# Deterministic parameter initialization (same shapes as the torch module).
# ----------------------------------------------------------------------------
def init_params(key, in_dim, hidden_dim, n_layer, n_class, T):
    keys = jax.random.split(key, 4 * n_layer + 4)
    k = 0
    bound = hidden_dim ** -0.5
    lstm = []
    for layer in range(n_layer):
        d_in = in_dim if layer == 0 else hidden_dim
        w_ih = jax.random.uniform(keys[k], (4 * hidden_dim, d_in),
                                  jnp.float32, -bound, bound); k += 1
        w_hh = jax.random.uniform(keys[k], (4 * hidden_dim, hidden_dim),
                                  jnp.float32, -bound, bound); k += 1
        b_ih = jax.random.uniform(keys[k], (4 * hidden_dim,),
                                  jnp.float32, -bound, bound); k += 1
        b_hh = jax.random.uniform(keys[k], (4 * hidden_dim,),
                                  jnp.float32, -bound, bound); k += 1
        lstm.append((w_ih.T, w_hh.T, (b_ih + b_hh).reshape(1, -1)))

    w_d = jax.random.uniform(keys[k], (hidden_dim, hidden_dim),
                             jnp.float32, -bound, bound); k += 1
    b_d = jax.random.uniform(keys[k], (hidden_dim,),
                             jnp.float32, -bound, bound); k += 1

    fan_in = hidden_dim * T
    bl_bound = fan_in ** -0.5
    w_l = jax.random.uniform(keys[k], (n_class, fan_in),
                             jnp.float32, -bl_bound, bl_bound); k += 1
    b_l = jax.random.uniform(keys[k], (n_class,),
                             jnp.float32, -bl_bound, bl_bound); k += 1

    return {
        "lstm": lstm,
        "wd_t": w_d.T,
        "bd": b_d.reshape(1, -1),
        "wl": w_l,                       # torch layout (n_class, hidden*T)
        "bl": b_l.reshape(1, -1),
    }


if __name__ == "__main__":
    # T must be 28 because the classifier is Linear(hidden_dim * 28, n_class).
    B, T, IN_DIM, HIDDEN, N_LAYER, N_CLASS = 2, 28, 28, 32, 2, 10

    key = jax.random.PRNGKey(0)
    k_x, k_p = jax.random.split(key)
    x = jax.random.normal(k_x, (B, T, IN_DIM), jnp.float32)
    params = init_params(k_p, IN_DIM, HIDDEN, N_LAYER, N_CLASS, T)

    out = jax.block_until_ready(my_lstm_net_forward(x, params))
    ref = jax.block_until_ready(reference_forward(x, params))

    assert out.shape == (B, N_CLASS)
    err = float(jnp.max(jnp.abs(out - ref)))
    # tolerance covers bf16 MXU operands (state/accum stay f32)
    assert jnp.allclose(out, ref, atol=2e-2, rtol=2e-2), f"mismatch vs reference, max abs err={err}"

    print("KERNEL_OK")
</pallas_src>

<mosaic_0001>
module attributes {stable_mosaic.version = 11 : i64} {
  func.func @kernel(%arg0: i32, %arg1: memref<56x28xf32, #tpu.memory_space<vmem>>, %arg2: memref<28x128xf32, #tpu.memory_space<vmem>>, %arg3: memref<32x128xf32, #tpu.memory_space<vmem>>, %arg4: memref<1x128xf32, #tpu.memory_space<vmem>>, %arg5: memref<32x128xf32, #tpu.memory_space<vmem>>, %arg6: memref<32x128xf32, #tpu.memory_space<vmem>>, %arg7: memref<1x128xf32, #tpu.memory_space<vmem>>, %arg8: memref<32x32xf32, #tpu.memory_space<vmem>>, %arg9: memref<1x32xf32, #tpu.memory_space<vmem>>, %arg10: memref<28x32x10xf32, #tpu.memory_space<vmem>>, %arg11: memref<1x10xf32, #tpu.memory_space<vmem>>, %arg12: memref<2x10xf32, #tpu.memory_space<vmem>>, %arg13: memref<56x128xf32, #tpu.memory_space<vmem>>, %arg14: memref<56x32xf32, #tpu.memory_space<vmem>>) attributes {dimension_semantics = [#tpu.dimension_semantics<arbitrary>], iteration_bounds = array<i64: 1>, scalar_prefetch = 0 : i64, scratch_operands = 2 : i64, tpu.core_type = #tpu.core_type<tc>, window_params = [{pipeline_mode = #tpu.pipeline_mode<synchronous>, transform_indices = @transform_0, window_bounds = array<i64: 56, 28>}, {pipeline_mode = #tpu.pipeline_mode<synchronous>, transform_indices = @transform_1, window_bounds = array<i64: 28, 128>}, {pipeline_mode = #tpu.pipeline_mode<synchronous>, transform_indices = @transform_2, window_bounds = array<i64: 32, 128>}, {pipeline_mode = #tpu.pipeline_mode<synchronous>, transform_indices = @transform_3, window_bounds = array<i64: 1, 128>}, {pipeline_mode = #tpu.pipeline_mode<synchronous>, transform_indices = @transform_4, window_bounds = array<i64: 32, 128>}, {pipeline_mode = #tpu.pipeline_mode<synchronous>, transform_indices = @transform_5, window_bounds = array<i64: 32, 128>}, {pipeline_mode = #tpu.pipeline_mode<synchronous>, transform_indices = @transform_6, window_bounds = array<i64: 1, 128>}, {pipeline_mode = #tpu.pipeline_mode<synchronous>, transform_indices = @transform_7, window_bounds = array<i64: 32, 32>}, {pipeline_mode = #tpu.pipeline_mode<synchronous>, transform_indices = @transform_8, window_bounds = array<i64: 1, 32>}, {pipeline_mode = #tpu.pipeline_mode<synchronous>, transform_indices = @transform_9, window_bounds = array<i64: 28, 32, 10>}, {pipeline_mode = #tpu.pipeline_mode<synchronous>, transform_indices = @transform_10, window_bounds = array<i64: 1, 10>}, {pipeline_mode = #tpu.pipeline_mode<synchronous>, transform_indices = @transform_11, window_bounds = array<i64: 2, 10>}]} {
    %c0 = arith.constant 0 : index
    %c0_0 = arith.constant 0 : index
    %0 = vector.load %arg2[%c0, %c0_0] : memref<28x128xf32, #tpu.memory_space<vmem>>, vector<28x128xf32>
    %1 = arith.truncf %0 : vector<28x128xf32> to vector<28x128xbf16>
    %c0_1 = arith.constant 0 : index
    %c0_2 = arith.constant 0 : index
    %2 = vector.load %arg3[%c0_1, %c0_2] : memref<32x128xf32, #tpu.memory_space<vmem>>, vector<32x128xf32>
    %3 = arith.truncf %2 : vector<32x128xf32> to vector<32x128xbf16>
    %c0_3 = arith.constant 0 : index
    %c0_4 = arith.constant 0 : index
    %4 = vector.load %arg4[%c0_3, %c0_4] : memref<1x128xf32, #tpu.memory_space<vmem>>, vector<1x128xf32>
    %c0_5 = arith.constant 0 : index
    %c0_6 = arith.constant 0 : index
    %5 = vector.load %arg1[%c0_5, %c0_6] : memref<56x28xf32, #tpu.memory_space<vmem>>, vector<56x28xf32>
    %6 = arith.truncf %5 : vector<56x28xf32> to vector<56x28xbf16>
    %cst = arith.constant dense<0.000000e+00> : vector<56x128xf32>
    %7 = tpu.matmul %6, %1, %cst {dimension_numbers = #tpu.dot_dimension_numbers<[1], [0], [0], [1], [0, 0, 1, 1], [], []>} : vector<56x28xbf16>, vector<28x128xbf16>, vector<56x128xf32> -> vector<56x128xf32>
    %8 = vector.broadcast %4 : vector<1x128xf32> to vector<56x128xf32>
    %9 = arith.addf %7, %8 : vector<56x128xf32>
    %c0_7 = arith.constant 0 : index
    %c0_8 = arith.constant 0 : index
    %10 = vector.load %arg13[%c0_7, %c0_8] : memref<56x128xf32, #tpu.memory_space<vmem>>, vector<56x128xf32>
    tpu.vector_store %arg13[%c0_7, %c0_8], %9 {strides = array<i32>} : memref<56x128xf32, #tpu.memory_space<vmem>>, vector<56x128xf32>,
    %cst_9 = arith.constant 0.000000e+00 : f32
    %11 = vector.broadcast %cst_9 : f32 to vector<2x32xf32>
    %c0_i32 = arith.constant 0 : i32
    %c2_i32 = arith.constant 2 : i32
    %12 = arith.muli %c0_i32, %c2_i32 : i32
    %13 = arith.index_cast %12 : i32 to index
    %c0_10 = arith.constant 0 : index
    %14 = vector.load %arg13[%13, %c0_10] : memref<56x128xf32, #tpu.memory_space<vmem>>, vector<2x128xf32>
    %15 = arith.truncf %11 : vector<2x32xf32> to vector<2x32xbf16>
    %cst_11 = arith.constant dense<0.000000e+00> : vector<2x128xf32>
    %16 = tpu.matmul %15, %3, %cst_11 {dimension_numbers = #tpu.dot_dimension_numbers<[1], [0], [0], [1], [0, 0, 1, 1], [], []>} : vector<2x32xbf16>, vector<32x128xbf16>, vector<2x128xf32> -> vector<2x128xf32>
    %17 = arith.addf %14, %16 : vector<2x128xf32>
    %18 = arith.negf %17 : vector<2x128xf32>
    %19 = math.exp %18 : vector<2x128xf32>
    %cst_12 = arith.constant 1.000000e+00 : f32
    %20 = vector.broadcast %cst_12 : f32 to vector<2x128xf32>
    %21 = arith.addf %20, %19 : vector<2x128xf32>
    %22 = arith.divf %20, %21 : vector<2x128xf32>
    %23 = math.tanh %17 : vector<2x128xf32>
    %24 = vector.extract_strided_slice %22 {offsets = [0, 0], sizes = [2, 32], strides = [1, 1]} : vector<2x128xf32> to vector<2x32xf32>
    %25 = vector.extract_strided_slice %22 {offsets = [0, 32], sizes = [2, 32], strides = [1, 1]} : vector<2x128xf32> to vector<2x32xf32>
    %26 = vector.extract_strided_slice %23 {offsets = [0, 64], sizes = [2, 32], strides = [1, 1]} : vector<2x128xf32> to vector<2x32xf32>
    %27 = vector.extract_strided_slice %22 {offsets = [0, 96], sizes = [2, 32], strides = [1, 1]} : vector<2x128xf32> to vector<2x32xf32>
    %28 = arith.mulf %25, %11 : vector<2x32xf32>
    %29 = arith.mulf %24, %26 : vector<2x32xf32>
    %30 = arith.addf %28, %29 : vector<2x32xf32>
    %31 = math.tanh %30 : vector<2x32xf32>
    %32 = arith.mulf %27, %31 : vector<2x32xf32>
    %33 = arith.index_cast %12 : i32 to index
    %c0_13 = arith.constant 0 : index
    %34 = vector.load %arg14[%33, %c0_13] : memref<56x32xf32, #tpu.memory_space<vmem>>, vector<2x32xf32>
    tpu.vector_store %arg14[%33, %c0_13], %32 {strides = array<i32>} : memref<56x32xf32, #tpu.memory_space<vmem>>, vector<2x32xf32>,
    %c1_i32 = arith.constant 1 : i32
    %c2_i32_14 = arith.constant 2 : i32
    %35 = arith.muli %c1_i32, %c2_i32_14 : i32
    %36 = arith.index_cast %35 : i32 to index
    %c0_15 = arith.constant 0 : index
    %37 = vector.load %arg13[%36, %c0_15] : memref<56x128xf32, #tpu.memory_space<vmem>>, vector<2x128xf32>
    %38 = arith.truncf %32 : vector<2x32xf32> to vector<2x32xbf16>
    %cst_16 = arith.constant dense<0.000000e+00> : vector<2x128xf32>
    %39 = tpu.matmul %38, %3, %cst_16 {dimension_numbers = #tpu.dot_dimension_numbers<[1], [0], [0], [1], [0, 0, 1, 1], [], []>} : vector<2x32xbf16>, vector<32x128xbf16>, vector<2x128xf32> -> vector<2x128xf32>
    %40 = arith.addf %37, %39 : vector<2x128xf32>
    %41 = arith.negf %40 : vector<2x128xf32>
    %42 = math.exp %41 : vector<2x128xf32>
    %cst_17 = arith.constant 1.000000e+00 : f32
    %43 = vector.broadcast %cst_17 : f32 to vector<2x128xf32>
    %44 = arith.addf %43, %42 : vector<2x128xf32>
    %45 = arith.divf %43, %44 : vector<2x128xf32>
    %46 = math.tanh %40 : vector<2x128xf32>
    %47 = vector.extract_strided_slice %45 {offsets = [0, 0], sizes = [2, 32], strides = [1, 1]} : vector<2x128xf32> to vector<2x32xf32>
    %48 = vector.extract_strided_slice %45 {offsets = [0, 32], sizes = [2, 32], strides = [1, 1]} : vector<2x128xf32> to vector<2x32xf32>
    %49 = vector.extract_strided_slice %46 {offsets = [0, 64], sizes = [2, 32], strides = [1, 1]} : vector<2x128xf32> to vector<2x32xf32>
    %50 = vector.extract_strided_slice %45 {offsets = [0, 96], sizes = [2, 32], strides = [1, 1]} : vector<2x128xf32> to vector<2x32xf32>
    %51 = arith.mulf %48, %30 : vector<2x32xf32>
    %52 = arith.mulf %47, %49 : vector<2x32xf32>
    %53 = arith.addf %51, %52 : vector<2x32xf32>
    %54 = math.tanh %53 : vector<2x32xf32>
    %55 = arith.mulf %50, %54 : vector<2x32xf32>
    %56 = arith.index_cast %35 : i32 to index
    %c0_18 = arith.constant 0 : index
    %57 = vector.load %arg14[%56, %c0_18] : memref<56x32xf32, #tpu.memory_space<vmem>>, vector<2x32xf32>
    tpu.vector_store %arg14[%56, %c0_18], %55 {strides = array<i32>} : memref<56x32xf32, #tpu.memory_space<vmem>>, vector<2x32xf32>,
    %c2_i32_19 = arith.constant 2 : i32
    %c2_i32_20 = arith.constant 2 : i32
    %58 = arith.muli %c2_i32_19, %c2_i32_20 : i32
    %59 = arith.index_cast %58 : i32 to index
    %c0_21 = arith.constant 0 : index
    %60 = vector.load %arg13[%59, %c0_21] : memref<56x128xf32, #tpu.memory_space<vmem>>, vector<2x128xf32>
    %61 = arith.truncf %55 : vector<2x32xf32> to vector<2x32xbf16>
    %cst_22 = arith.constant dense<0.000000e+00> : vector<2x128xf32>
    %62 = tpu.matmul %61, %3, %cst_22 {dimension_numbers = #tpu.dot_dimension_numbers<[1], [0], [0], [1], [0, 0, 1, 1], [], []>} : vector<2x32xbf16>, vector<32x128xbf16>, vector<2x128xf32> -> vector<2x128xf32>
    %63 = arith.addf %60, %62 : vector<2x128xf32>
    %64 = arith.negf %63 : vector<2x128xf32>
    %65 = math.exp %64 : vector<2x128xf32>
    %cst_23 = arith.constant 1.000000e+00 : f32
    %66 = vector.broadcast %cst_23 : f32 to vector<2x128xf32>
    %67 = arith.addf %66, %65 : vector<2x128xf32>
    %68 = arith.divf %66, %67 : vector<2x128xf32>
    %69 = math.tanh %63 : vector<2x128xf32>
    %70 = vector.extract_strided_slice %68 {offsets = [0, 0], sizes = [2, 32], strides = [1, 1]} : vector<2x128xf32> to vector<2x32xf32>
    %71 = vector.extract_strided_slice %68 {offsets = [0, 32], sizes = [2, 32], strides = [1, 1]} : vector<2x128xf32> to vector<2x32xf32>
    %72 = vector.extract_strided_slice %69 {offsets = [0, 64], sizes = [2, 32], strides = [1, 1]} : vector<2x128xf32> to vector<2x32xf32>
    %73 = vector.extract_strided_slice %68 {offsets = [0, 96], sizes = [2, 32], strides = [1, 1]} : vector<2x128xf32> to vector<2x32xf32>
    %74 = arith.mulf %71, %53 : vector<2x32xf32>
    %75 = arith.mulf %70, %72 : vector<2x32xf32>
    %76 = arith.addf %74, %75 : vector<2x32xf32>
    %77 = math.tanh %76 : vector<2x32xf32>
    %78 = arith.mulf %73, %77 : vector<2x32xf32>
    %79 = arith.index_cast %58 : i32 to index
    %c0_24 = arith.constant 0 : index
    %80 = vector.load %arg14[%79, %c0_24] : memref<56x32xf32, #tpu.memory_space<vmem>>, vector<2x32xf32>
    tpu.vector_store %arg14[%79, %c0_24], %78 {strides = array<i32>} : memref<56x32xf32, #tpu.memory_space<vmem>>, vector<2x32xf32>,
    %c3_i32 = arith.constant 3 : i32
    %c2_i32_25 = arith.constant 2 : i32
    %81 = arith.muli %c3_i32, %c2_i32_25 : i32
    %82 = arith.index_cast %81 : i32 to index
    %c0_26 = arith.constant 0 : index
    %83 = vector.load %arg13[%82, %c0_26] : memref<56x128xf32, #tpu.memory_space<vmem>>, vector<2x128xf32>
    %84 = arith.truncf %78 : vector<2x32xf32> to vector<2x32xbf16>
    %cst_27 = arith.constant dense<0.000000e+00> : vector<2x128xf32>
    %85 = tpu.matmul %84, %3, %cst_27 {dimension_numbers = #tpu.dot_dimension_numbers<[1], [0], [0], [1], [0, 0, 1, 1], [], []>} : vector<2x32xbf16>, vector<32x128xbf16>, vector<2x128xf32> -> vector<2x128xf32>
    %86 = arith.addf %83, %85 : vector<2x128xf32>
    %87 = arith.negf %86 : vector<2x128xf32>
    %88 = math.exp %87 : vector<2x128xf32>
    %cst_28 = arith.constant 1.000000e+00 : f32
    %89 = vector.broadcast %cst_28 : f32 to vector<2x128xf32>
    %90 = arith.addf %89, %88 : vector<2x128xf32>
    %91 = arith.divf %89, %90 : vector<2x128xf32>
    %92 = math.tanh %86 : vector<2x128xf32>
    %93 = vector.extract_strided_slice %91 {offsets = [0, 0], sizes = [2, 32], strides = [1, 1]} : vector<2x128xf32> to vector<2x32xf32>
    %94 = vector.extract_strided_slice %91 {offsets = [0, 32], sizes = [2, 32], strides = [1, 1]} : vector<2x128xf32> to vector<2x32xf32>
    %95 = vector.extract_strided_slice %92 {offsets = [0, 64], sizes = [2, 32], strides = [1, 1]} : vector<2x128xf32> to vector<2x32xf32>
    %96 = vector.extract_strided_slice %91 {offsets = [0, 96], sizes = [2, 32], strides = [1, 1]} : vector<2x128xf32> to vector<2x32xf32>
    %97 = arith.mulf %94, %76 : vector<2x32xf32>
    %98 = arith.mulf %93, %95 : vector<2x32xf32>
    %99 = arith.addf %97, %98 : vector<2x32xf32>
    %100 = math.tanh %99 : vector<2x32xf32>
    %101 = arith.mulf %96, %100 : vector<2x32xf32>
    %102 = arith.index_cast %81 : i32 to index
    %c0_29 = arith.constant 0 : index
    %103 = vector.load %arg14[%102, %c0_29] : memref<56x32xf32, #tpu.memory_space<vmem>>, vector<2x32xf32>
    tpu.vector_store %arg14[%102, %c0_29], %101 {strides = array<i32>} : memref<56x32xf32, #tpu.memory_space<vmem>>, vector<2x32xf32>,
    %c4_i32 = arith.constant 4 : i32
    %c2_i32_30 = arith.constant 2 : i32
    %104 = arith.muli %c4_i32, %c2_i32_30 : i32
    %105 = arith.index_cast %104 : i32 to index
    %c0_31 = arith.constant 0 : index
    %106 = vector.load %arg13[%105, %c0_31] : memref<56x128xf32, #tpu.memory_space<vmem>>, vector<2x128xf32>
    %107 = arith.truncf %101 : vector<2x32xf32> to vector<2x32xbf16>
    %cst_32 = arith.constant dense<0.000000e+00> : vector<2x128xf32>
    %108 = tpu.matmul %107, %3, %cst_32 {dimension_numbers = #tpu.dot_dimension_numbers<[1], [0], [0], [1], [0, 0, 1, 1], [], []>} : vector<2x32xbf16>, vector<32x128xbf16>, vector<2x128xf32> -> vector<2x128xf32>
    %109 = arith.addf %106, %108 : vector<2x128xf32>
    %110 = arith.negf %109 : vector<2x128xf32>
    %111 = math.exp %110 : vector<2x128xf32>
    %cst_33 = arith.constant 1.000000e+00 : f32
    %112 = vector.broadcast %cst_33 : f32 to vector<2x128xf32>
    %113 = arith.addf %112, %111 : vector<2x128xf32>
    %114 = arith.divf %112, %113 : vector<2x128xf32>
    %115 = math.tanh %109 : vector<2x128xf32>
    %116 = vector.extract_strided_slice %114 {offsets = [0, 0], sizes = [2, 32], strides = [1, 1]} : vector<2x128xf32> to vector<2x32xf32>
    %117 = vector.extract_strided_slice %114 {offsets = [0, 32], sizes = [2, 32], strides = [1, 1]} : vector<2x128xf32> to vector<2x32xf32>
    %118 = vector.extract_strided_slice %115 {offsets = [0, 64], sizes = [2, 32], strides = [1, 1]} : vector<2x128xf32> to vector<2x32xf32>
    %119 = vector.extract_strided_slice %114 {offsets = [0, 96], sizes = [2, 32], strides = [1, 1]} : vector<2x128xf32> to vector<2x32xf32>
    %120 = arith.mulf %117, %99 : vector<2x32xf32>
    %121 = arith.mulf %116, %118 : vector<2x32xf32>
    %122 = arith.addf %120, %121 : vector<2x32xf32>
    %123 = math.tanh %122 : vector<2x32xf32>
    %124 = arith.mulf %119, %123 : vector<2x32xf32>
    %125 = arith.index_cast %104 : i32 to index
    %c0_34 = arith.constant 0 : index
    %126 = vector.load %arg14[%125, %c0_34] : memref<56x32xf32, #tpu.memory_space<vmem>>, vector<2x32xf32>
    tpu.vector_store %arg14[%125, %c0_34], %124 {strides = array<i32>} : memref<56x32xf32, #tpu.memory_space<vmem>>, vector<2x32xf32>,
    %c5_i32 = arith.constant 5 : i32
    %c2_i32_35 = arith.constant 2 : i32
    %127 = arith.muli %c5_i32, %c2_i32_35 : i32
    %128 = arith.index_cast %127 : i32 to index
    %c0_36 = arith.constant 0 : index
    %129 = vector.load %arg13[%128, %c0_36] : memref<56x128xf32, #tpu.memory_space<vmem>>, vector<2x128xf32>
    %130 = arith.truncf %124 : vector<2x32xf32> to vector<2x32xbf16>
    %cst_37 = arith.constant dense<0.000000e+00> : vector<2x128xf32>
    %131 = tpu.matmul %130, %3, %cst_37 {dimension_numbers = #tpu.dot_dimension_numbers<[1], [0], [0], [1], [0, 0, 1, 1], [], []>} : vector<2x32xbf16>, vector<32x128xbf16>, vector<2x128xf32> -> vector<2x128xf32>
    %132 = arith.addf %129, %131 : vector<2x128xf32>
    %133 = arith.negf %132 : vector<2x128xf32>
    %134 = math.exp %133 : vector<2x128xf32>
    %cst_38 = arith.constant 1.000000e+00 : f32
    %135 = vector.broadcast %cst_38 : f32 to vector<2x128xf32>
    %136 = arith.addf %135, %134 : vector<2x128xf32>
    %137 = arith.divf %135, %136 : vector<2x128xf32>
    %138 = math.tanh %132 : vector<2x128xf32>
    %139 = vector.extract_strided_slice %137 {offsets = [0, 0], sizes = [2, 32], strides = [1, 1]} : vector<2x128xf32> to vector<2x32xf32>
    %140 = vector.extract_strided_slice %137 {offsets = [0, 32], sizes = [2, 32], strides = [1, 1]} : vector<2x128xf32> to vector<2x32xf32>
    %141 = vector.extract_strided_slice %138 {offsets = [0, 64], sizes = [2, 32], strides = [1, 1]} : vector<2x128xf32> to vector<2x32xf32>
    %142 = vector.extract_strided_slice %137 {offsets = [0, 96], sizes = [2, 32], strides = [1, 1]} : vector<2x128xf32> to vector<2x32xf32>
    %143 = arith.mulf %140, %122 : vector<2x32xf32>
    %144 = arith.mulf %139, %141 : vector<2x32xf32>
    %145 = arith.addf %143, %144 : vector<2x32xf32>
    %146 = math.tanh %145 : vector<2x32xf32>
    %147 = arith.mulf %142, %146 : vector<2x32xf32>
    %148 = arith.index_cast %127 : i32 to index
    %c0_39 = arith.constant 0 : index
    %149 = vector.load %arg14[%148, %c0_39] : memref<56x32xf32, #tpu.memory_space<vmem>>, vector<2x32xf32>
    tpu.vector_store %arg14[%148, %c0_39], %147 {strides = array<i32>} : memref<56x32xf32, #tpu.memory_space<vmem>>, vector<2x32xf32>,
    %c6_i32 = arith.constant 6 : i32
    %c2_i32_40 = arith.constant 2 : i32
    %150 = arith.muli %c6_i32, %c2_i32_40 : i32
    %151 = arith.index_cast %150 : i32 to index
    %c0_41 = arith.constant 0 : index
    %152 = vector.load %arg13[%151, %c0_41] : memref<56x128xf32, #tpu.memory_space<vmem>>, vector<2x128xf32>
    %153 = arith.truncf %147 : vector<2x32xf32> to vector<2x32xbf16>
    %cst_42 = arith.constant dense<0.000000e+00> : vector<2x128xf32>
    %154 = tpu.matmul %153, %3, %cst_42 {dimension_numbers = #tpu.dot_dimension_numbers<[1], [0], [0], [1], [0, 0, 1, 1], [], []>} : vector<2x32xbf16>, vector<32x128xbf16>, vector<2x128xf32> -> vector<2x128xf32>
    %155 = arith.addf %152, %154 : vector<2x128xf32>
    %156 = arith.negf %155 : vector<2x128xf32>
    %157 = math.exp %156 : vector<2x128xf32>
    %cst_43 = arith.constant 1.000000e+00 : f32
    %158 = vector.broadcast %cst_43 : f32 to vector<2x128xf32>
    %159 = arith.addf %158, %157 : vector<2x128xf32>
    %160 = arith.divf %158, %159 : vector<2x128xf32>
    %161 = math.tanh %155 : vector<2x128xf32>
    %162 = vector.extract_strided_slice %160 {offsets = [0, 0], sizes = [2, 32], strides = [1, 1]} : vector<2x128xf32> to vector<2x32xf32>
    %163 = vector.extract_strided_slice %160 {offsets = [0, 32], sizes = [2, 32], strides = [1, 1]} : vector<2x128xf32> to vector<2x32xf32>
    %164 = vector.extract_strided_slice %161 {offsets = [0, 64], sizes = [2, 32], strides = [1, 1]} : vector<2x128xf32> to vector<2x32xf32>
    %165 = vector.extract_strided_slice %160 {offsets = [0, 96], sizes = [2, 32], strides = [1, 1]} : vector<2x128xf32> to vector<2x32xf32>
    %166 = arith.mulf %163, %145 : vector<2x32xf32>
    %167 = arith.mulf %162, %164 : vector<2x32xf32>
    %168 = arith.addf %166, %167 : vector<2x32xf32>
    %169 = math.tanh %168 : vector<2x32xf32>
    %170 = arith.mulf %165, %169 : vector<2x32xf32>
    %171 = arith.index_cast %150 : i32 to index
    %c0_44 = arith.constant 0 : index
    %172 = vector.load %arg14[%171, %c0_44] : memref<56x32xf32, #tpu.memory_space<vmem>>, vector<2x32xf32>
    tpu.vector_store %arg14[%171, %c0_44], %170 {strides = array<i32>} : memref<56x32xf32, #tpu.memory_space<vmem>>, vector<2x32xf32>,
    %c7_i32 = arith.constant 7 : i32
    %c2_i32_45 = arith.constant 2 : i32
    %173 = arith.muli %c7_i32, %c2_i32_45 : i32
    %174 = arith.index_cast %173 : i32 to index
    %c0_46 = arith.constant 0 : index
    %175 = vector.load %arg13[%174, %c0_46] : memref<56x128xf32, #tpu.memory_space<vmem>>, vector<2x128xf32>
    %176 = arith.truncf %170 : vector<2x32xf32> to vector<2x32xbf16>
    %cst_47 = arith.constant dense<0.000000e+00> : vector<2x128xf32>
    %177 = tpu.matmul %176, %3, %cst_47 {dimension_numbers = #tpu.dot_dimension_numbers<[1], [0], [0], [1], [0, 0, 1, 1], [], []>} : vector<2x32xbf16>, vector<32x128xbf16>, vector<2x128xf32> -> vector<2x128xf32>
    %178 = arith.addf %175, %177 : vector<2x128xf32>
    %179 = arith.negf %178 : vector<2x128xf32>
    %180 = math.exp %179 : vector<2x128xf32>
    %cst_48 = arith.constant 1.000000e+00 : f32
    %181 = vector.broadcast %cst_48 : f32 to vector<2x128xf32>
    %182 = arith.addf %181, %180 : vector<2x128xf32>
    %183 = arith.divf %181, %182 : vector<2x128xf32>
    %184 = math.tanh %178 : vector<2x128xf32>
    %185 = vector.extract_strided_slice %183 {offsets = [0, 0], sizes = [2, 32], strides = [1, 1]} : vector<2x128xf32> to vector<2x32xf32>
    %186 = vector.extract_strided_slice %183 {offsets = [0, 32], sizes = [2, 32], strides = [1, 1]} : vector<2x128xf32> to vector<2x32xf32>
    %187 = vector.extract_strided_slice %184 {offsets = [0, 64], sizes = [2, 32], strides = [1, 1]} : vector<2x128xf32> to vector<2x32xf32>
    %188 = vector.extract_strided_slice %183 {offsets = [0, 96], sizes = [2, 32], strides = [1, 1]} : vector<2x128xf32> to vector<2x32xf32>
    %189 = arith.mulf %186, %168 : vector<2x32xf32>
    %190 = arith.mulf %185, %187 : vector<2x32xf32>
    %191 = arith.addf %189, %190 : vector<2x32xf32>
    %192 = math.tanh %191 : vector<2x32xf32>
    %193 = arith.mulf %188, %192 : vector<2x32xf32>
    %194 = arith.index_cast %173 : i32 to index
    %c0_49 = arith.constant 0 : index
    %195 = vector.load %arg14[%194, %c0_49] : memref<56x32xf32, #tpu.memory_space<vmem>>, vector<2x32xf32>
    tpu.vector_store %arg14[%194, %c0_49], %193 {strides = array<i32>} : memref<56x32xf32, #tpu.memory_space<vmem>>, vector<2x32xf32>,
    %c8_i32 = arith.constant 8 : i32
    %c2_i32_50 = arith.constant 2 : i32
    %196 = arith.muli %c8_i32, %c2_i32_50 : i32
    %197 = arith.index_cast %196 : i32 to index
    %c0_51 = arith.constant 0 : index
    %198 = vector.load %arg13[%197, %c0_51] : memref<56x128xf32, #tpu.memory_space<vmem>>, vector<2x128xf32>
    %199 = arith.truncf %193 : vector<2x32xf32> to vector<2x32xbf16>
    %cst_52 = arith.constant dense<0.000000e+00> : vector<2x128xf32>
    %200 = tpu.matmul %199, %3, %cst_52 {dimension_numbers = #tpu.dot_dimension_numbers<[1], [0], [0], [1], [0, 0, 1, 1], [], []>} : vector<2x32xbf16>, vector<32x128xbf16>, vector<2x128xf32> -> vector<2x128xf32>
    %201 = arith.addf %198, %200 : vector<2x128xf32>
    %202 = arith.negf %201 : vector<2x128xf32>
    %203 = math.exp %202 : vector<2x128xf32>
    %cst_53 = arith.constant 1.000000e+00 : f32
    %204 = vector.broadcast %cst_53 : f32 to vector<2x128xf32>
    %205 = arith.addf %204, %203 : vector<2x128xf32>
    %206 = arith.divf %204, %205 : vector<2x128xf32>
    %207 = math.tanh %201 : vector<2x128xf32>
    %208 = vector.extract_strided_slice %206 {offsets = [0, 0], sizes = [2, 32], strides = [1, 1]} : vector<2x128xf32> to vector<2x32xf32>
    %209 = vector.extract_strided_slice %206 {offsets = [0, 32], sizes = [2, 32], strides = [1, 1]} : vector<2x128xf32> to vector<2x32xf32>
    %210 = vector.extract_strided_slice %207 {offsets = [0, 64], sizes = [2, 32], strides = [1, 1]} : vector<2x128xf32> to vector<2x32xf32>
    %211 = vector.extract_strided_slice %206 {offsets = [0, 96], sizes = [2, 32], strides = [1, 1]} : vector<2x128xf32> to vector<2x32xf32>
    %212 = arith.mulf %209, %191 : vector<2x32xf32>
    %213 = arith.mulf %208, %210 : vector<2x32xf32>
    %214 = arith.addf %212, %213 : vector<2x32xf32>
    %215 = math.tanh %214 : vector<2x32xf32>
    %216 = arith.mulf %211, %215 : vector<2x32xf32>
    %217 = arith.index_cast %196 : i32 to index
    %c0_54 = arith.constant 0 : index
    %218 = vector.load %arg14[%217, %c0_54] : memref<56x32xf32, #tpu.memory_space<vmem>>, vector<2x32xf32>
    tpu.vector_store %arg14[%217, %c0_54], %216 {strides = array<i32>} : memref<56x32xf32, #tpu.memory_space<vmem>>, vector<2x32xf32>,
    %c9_i32 = arith.constant 9 : i32
    %c2_i32_55 = arith.constant 2 : i32
    %219 = arith.muli %c9_i32, %c2_i32_55 : i32
    %220 = arith.index_cast %219 : i32 to index
    %c0_56 = arith.constant 0 : index
    %221 = vector.load %arg13[%220, %c0_56] : memref<56x128xf32, #tpu.memory_space<vmem>>, vector<2x128xf32>
    %222 = arith.truncf %216 : vector<2x32xf32> to vector<2x32xbf16>
    %cst_57 = arith.constant dense<0.000000e+00> : vector<2x128xf32>
    %223 = tpu.matmul %222, %3, %cst_57 {dimension_numbers = #tpu.dot_dimension_numbers<[1], [0], [0], [1], [0, 0, 1, 1], [], []>} : vector<2x32xbf16>, vector<32x128xbf16>, vector<2x128xf32> -> vector<2x128xf32>
    %224 = arith.addf %221, %223 : vector<2x128xf32>
    %225 = arith.negf %224 : vector<2x128xf32>
    %226 = math.exp %225 : vector<2x128xf32>
    %cst_58 = arith.constant 1.000000e+00 : f32
    %227 = vector.broadcast %cst_58 : f32 to vector<2x128xf32>
    %228 = arith.addf %227, %226 : vector<2x128xf32>
    %229 = arith.divf %227, %228 : vector<2x128xf32>
    %230 = math.tanh %224 : vector<2x128xf32>
    %231 = vector.extract_strided_slice %229 {offsets = [0, 0], sizes = [2, 32], strides = [1, 1]} : vector<2x128xf32> to vector<2x32xf32>
    %232 = vector.extract_strided_slice %229 {offsets = [0, 32], sizes = [2, 32], strides = [1, 1]} : vector<2x128xf32> to vector<2x32xf32>
    %233 = vector.extract_strided_slice %230 {offsets = [0, 64], sizes = [2, 32], strides = [1, 1]} : vector<2x128xf32> to vector<2x32xf32>
    %234 = vector.extract_strided_slice %229 {offsets = [0, 96], sizes = [2, 32], strides = [1, 1]} : vector<2x128xf32> to vector<2x32xf32>
    %235 = arith.mulf %232, %214 : vector<2x32xf32>
    %236 = arith.mulf %231, %233 : vector<2x32xf32>
    %237 = arith.addf %235, %236 : vector<2x32xf32>
    %238 = math.tanh %237 : vector<2x32xf32>
    %239 = arith.mulf %234, %238 : vector<2x32xf32>
    %240 = arith.index_cast %219 : i32 to index
    %c0_59 = arith.constant 0 : index
    %241 = vector.load %arg14[%240, %c0_59] : memref<56x32xf32, #tpu.memory_space<vmem>>, vector<2x32xf32>
    tpu.vector_store %arg14[%240, %c0_59], %239 {strides = array<i32>} : memref<56x32xf32, #tpu.memory_space<vmem>>, vector<2x32xf32>,
    %c10_i32 = arith.constant 10 : i32
    %c2_i32_60 = arith.constant 2 : i32
    %242 = arith.muli %c10_i32, %c2_i32_60 : i32
    %243 = arith.index_cast %242 : i32 to index
    %c0_61 = arith.constant 0 : index
    %244 = vector.load %arg13[%243, %c0_61] : memref<56x128xf32, #tpu.memory_space<vmem>>, vector<2x128xf32>
    %245 = arith.truncf %239 : vector<2x32xf32> to vector<2x32xbf16>
    %cst_62 = arith.constant dense<0.000000e+00> : vector<2x128xf32>
    %246 = tpu.matmul %245, %3, %cst_62 {dimension_numbers = #tpu.dot_dimension_numbers<[1], [0], [0], [1], [0, 0, 1, 1], [], []>} : vector<2x32xbf16>, vector<32x128xbf16>, vector<2x128xf32> -> vector<2x128xf32>
    %247 = arith.addf %244, %246 : vector<2x128xf32>
    %248 = arith.negf %247 : vector<2x128xf32>
    %249 = math.exp %248 : vector<2x128xf32>
    %cst_63 = arith.constant 1.000000e+00 : f32
    %250 = vector.broadcast %cst_63 : f32 to vector<2x128xf32>
    %251 = arith.addf %250, %249 : vector<2x128xf32>
    %252 = arith.divf %250, %251 : vector<2x128xf32>
    %253 = math.tanh %247 : vector<2x128xf32>
    %254 = vector.extract_strided_slice %252 {offsets = [0, 0], sizes = [2, 32], strides = [1, 1]} : vector<2x128xf32> to vector<2x32xf32>
    %255 = vector.extract_strided_slice %252 {offsets = [0, 32], sizes = [2, 32], strides = [1, 1]} : vector<2x128xf32> to vector<2x32xf32>
    %256 = vector.extract_strided_slice %253 {offsets = [0, 64], sizes = [2, 32], strides = [1, 1]} : vector<2x128xf32> to vector<2x32xf32>
    %257 = vector.extract_strided_slice %252 {offsets = [0, 96], sizes = [2, 32], strides = [1, 1]} : vector<2x128xf32> to vector<2x32xf32>
    %258 = arith.mulf %255, %237 : vector<2x32xf32>
    %259 = arith.mulf %254, %256 : vector<2x32xf32>
    %260 = arith.addf %258, %259 : vector<2x32xf32>
    %261 = math.tanh %260 : vector<2x32xf32>
    %262 = arith.mulf %257, %261 : vector<2x32xf32>
    %263 = arith.index_cast %242 : i32 to index
    %c0_64 = arith.constant 0 : index
    %264 = vector.load %arg14[%263, %c0_64] : memref<56x32xf32, #tpu.memory_space<vmem>>, vector<2x32xf32>
    tpu.vector_store %arg14[%263, %c0_64], %262 {strides = array<i32>} : memref<56x32xf32, #tpu.memory_space<vmem>>, vector<2x32xf32>,
    %c11_i32 = arith.constant 11 : i32
    %c2_i32_65 = arith.constant 2 : i32
    %265 = arith.muli %c11_i32, %c2_i32_65 : i32
    %266 = arith.index_cast %265 : i32 to index
    %c0_66 = arith.constant 0 : index
    %267 = vector.load %arg13[%266, %c0_66] : memref<56x128xf32, #tpu.memory_space<vmem>>, vector<2x128xf32>
    %268 = arith.truncf %262 : vector<2x32xf32> to vector<2x32xbf16>
    %cst_67 = arith.constant dense<0.000000e+00> : vector<2x128xf32>
    %269 = tpu.matmul %268, %3, %cst_67 {dimension_numbers = #tpu.dot_dimension_numbers<[1], [0], [0], [1], [0, 0, 1, 1], [], []>} : vector<2x32xbf16>, vector<32x128xbf16>, vector<2x128xf32> -> vector<2x128xf32>
    %270 = arith.addf %267, %269 : vector<2x128xf32>
    %271 = arith.negf %270 : vector<2x128xf32>
    %272 = math.exp %271 : vector<2x128xf32>
    %cst_68 = arith.constant 1.000000e+00 : f32
    %273 = vector.broadcast %cst_68 : f32 to vector<2x128xf32>
    %274 = arith.addf %273, %272 : vector<2x128xf32>
    %275 = arith.divf %273, %274 : vector<2x128xf32>
    %276 = math.tanh %270 : vector<2x128xf32>
    %277 = vector.extract_strided_slice %275 {offsets = [0, 0], sizes = [2, 32], strides = [1, 1]} : vector<2x128xf32> to vector<2x32xf32>
    %278 = vector.extract_strided_slice %275 {offsets = [0, 32], sizes = [2, 32], strides = [1, 1]} : vector<2x128xf32> to vector<2x32xf32>
    %279 = vector.extract_strided_slice %276 {offsets = [0, 64], sizes = [2, 32], strides = [1, 1]} : vector<2x128xf32> to vector<2x32xf32>
    %280 = vector.extract_strided_slice %275 {offsets = [0, 96], sizes = [2, 32], strides = [1, 1]} : vector<2x128xf32> to vector<2x32xf32>
    %281 = arith.mulf %278, %260 : vector<2x32xf32>
    %282 = arith.mulf %277, %279 : vector<2x32xf32>
    %283 = arith.addf %281, %282 : vector<2x32xf32>
    %284 = math.tanh %283 : vector<2x32xf32>
    %285 = arith.mulf %280, %284 : vector<2x32xf32>
    %286 = arith.index_cast %265 : i32 to index
    %c0_69 = arith.constant 0 : index
    %287 = vector.load %arg14[%286, %c0_69] : memref<56x32xf32, #tpu.memory_space<vmem>>, vector<2x32xf32>
    tpu.vector_store %arg14[%286, %c0_69], %285 {strides = array<i32>} : memref<56x32xf32, #tpu.memory_space<vmem>>, vector<2x32xf32>,
    %c12_i32 = arith.constant 12 : i32
    %c2_i32_70 = arith.constant 2 : i32
    %288 = arith.muli %c12_i32, %c2_i32_70 : i32
    %289 = arith.index_cast %288 : i32 to index
    %c0_71 = arith.constant 0 : index
    %290 = vector.load %arg13[%289, %c0_71] : memref<56x128xf32, #tpu.memory_space<vmem>>, vector<2x128xf32>
    %291 = arith.truncf %285 : vector<2x32xf32> to vector<2x32xbf16>
    %cst_72 = arith.constant dense<0.000000e+00> : vector<2x128xf32>
    %292 = tpu.matmul %291, %3, %cst_72 {dimension_numbers = #tpu.dot_dimension_numbers<[1], [0], [0], [1], [0, 0, 1, 1], [], []>} : vector<2x32xbf16>, vector<32x128xbf16>, vector<2x128xf32> -> vector<2x128xf32>
    %293 = arith.addf %290, %292 : vector<2x128xf32>
    %294 = arith.negf %293 : vector<2x128xf32>
    %295 = math.exp %294 : vector<2x128xf32>
    %cst_73 = arith.constant 1.000000e+00 : f32
    %296 = vector.broadcast %cst_73 : f32 to vector<2x128xf32>
    %297 = arith.addf %296, %295 : vector<2x128xf32>
    %298 = arith.divf %296, %297 : vector<2x128xf32>
    %299 = math.tanh %293 : vector<2x128xf32>
    %300 = vector.extract_strided_slice %298 {offsets = [0, 0], sizes = [2, 32], strides = [1, 1]} : vector<2x128xf32> to vector<2x32xf32>
    %301 = vector.extract_strided_slice %298 {offsets = [0, 32], sizes = [2, 32], strides = [1, 1]} : vector<2x128xf32> to vector<2x32xf32>
    %302 = vector.extract_strided_slice %299 {offsets = [0, 64], sizes = [2, 32], strides = [1, 1]} : vector<2x128xf32> to vector<2x32xf32>
    %303 = vector.extract_strided_slice %298 {offsets = [0, 96], sizes = [2, 32], strides = [1, 1]} : vector<2x128xf32> to vector<2x32xf32>
    %304 = arith.mulf %301, %283 : vector<2x32xf32>
    %305 = arith.mulf %300, %302 : vector<2x32xf32>
    %306 = arith.addf %304, %305 : vector<2x32xf32>
    %307 = math.tanh %306 : vector<2x32xf32>
    %308 = arith.mulf %303, %307 : vector<2x32xf32>
    %309 = arith.index_cast %288 : i32 to index
    %c0_74 = arith.constant 0 : index
    %310 = vector.load %arg14[%309, %c0_74] : memref<56x32xf32, #tpu.memory_space<vmem>>, vector<2x32xf32>
    tpu.vector_store %arg14[%309, %c0_74], %308 {strides = array<i32>} : memref<56x32xf32, #tpu.memory_space<vmem>>, vector<2x32xf32>,
    %c13_i32 = arith.constant 13 : i32
    %c2_i32_75 = arith.constant 2 : i32
    %311 = arith.muli %c13_i32, %c2_i32_75 : i32
    %312 = arith.index_cast %311 : i32 to index
    %c0_76 = arith.constant 0 : index
    %313 = vector.load %arg13[%312, %c0_76] : memref<56x128xf32, #tpu.memory_space<vmem>>, vector<2x128xf32>
    %314 = arith.truncf %308 : vector<2x32xf32> to vector<2x32xbf16>
    %cst_77 = arith.constant dense<0.000000e+00> : vector<2x128xf32>
    %315 = tpu.matmul %314, %3, %cst_77 {dimension_numbers = #tpu.dot_dimension_numbers<[1], [0], [0], [1], [0, 0, 1, 1], [], []>} : vector<2x32xbf16>, vector<32x128xbf16>, vector<2x128xf32> -> vector<2x128xf32>
    %316 = arith.addf %313, %315 : vector<2x128xf32>
    %317 = arith.negf %316 : vector<2x128xf32>
    %318 = math.exp %317 : vector<2x128xf32>
    %cst_78 = arith.constant 1.000000e+00 : f32
    %319 = vector.broadcast %cst_78 : f32 to vector<2x128xf32>
    %320 = arith.addf %319, %318 : vector<2x128xf32>
    %321 = arith.divf %319, %320 : vector<2x128xf32>
    %322 = math.tanh %316 : vector<2x128xf32>
    %323 = vector.extract_strided_slice %321 {offsets = [0, 0], sizes = [2, 32], strides = [1, 1]} : vector<2x128xf32> to vector<2x32xf32>
    %324 = vector.extract_strided_slice %321 {offsets = [0, 32], sizes = [2, 32], strides = [1, 1]} : vector<2x128xf32> to vector<2x32xf32>
    %325 = vector.extract_strided_slice %322 {offsets = [0, 64], sizes = [2, 32], strides = [1, 1]} : vector<2x128xf32> to vector<2x32xf32>
    %326 = vector.extract_strided_slice %321 {offsets = [0, 96], sizes = [2, 32], strides = [1, 1]} : vector<2x128xf32> to vector<2x32xf32>
    %327 = arith.mulf %324, %306 : vector<2x32xf32>
    %328 = arith.mulf %323, %325 : vector<2x32xf32>
    %329 = arith.addf %327, %328 : vector<2x32xf32>
    %330 = math.tanh %329 : vector<2x32xf32>
    %331 = arith.mulf %326, %330 : vector<2x32xf32>
    %332 = arith.index_cast %311 : i32 to index
    %c0_79 = arith.constant 0 : index
    %333 = vector.load %arg14[%332, %c0_79] : memref<56x32xf32, #tpu.memory_space<vmem>>, vector<2x32xf32>
    tpu.vector_store %arg14[%332, %c0_79], %331 {strides = array<i32>} : memref<56x32xf32, #tpu.memory_space<vmem>>, vector<2x32xf32>,
    %c14_i32 = arith.constant 14 : i32
    %c2_i32_80 = arith.constant 2 : i32
    %334 = arith.muli %c14_i32, %c2_i32_80 : i32
    %335 = arith.index_cast %334 : i32 to index
    %c0_81 = arith.constant 0 : index
    %336 = vector.load %arg13[%335, %c0_81] : memref<56x128xf32, #tpu.memory_space<vmem>>, vector<2x128xf32>
    %337 = arith.truncf %331 : vector<2x32xf32> to vector<2x32xbf16>
    %cst_82 = arith.constant dense<0.000000e+00> : vector<2x128xf32>
    %338 = tpu.matmul %337, %3, %cst_82 {dimension_numbers = #tpu.dot_dimension_numbers<[1], [0], [0], [1], [0, 0, 1, 1], [], []>} : vector<2x32xbf16>, vector<32x128xbf16>, vector<2x128xf32> -> vector<2x128xf32>
    %339 = arith.addf %336, %338 : vector<2x128xf32>
    %340 = arith.negf %339 : vector<2x128xf32>
    %341 = math.exp %340 : vector<2x128xf32>
    %cst_83 = arith.constant 1.000000e+00 : f32
    %342 = vector.broadcast %cst_83 : f32 to vector<2x128xf32>
    %343 = arith.addf %342, %341 : vector<2x128xf32>
    %344 = arith.divf %342, %343 : vector<2x128xf32>
    %345 = math.tanh %339 : vector<2x128xf32>
    %346 = vector.extract_strided_slice %344 {offsets = [0, 0], sizes = [2, 32], strides = [1, 1]} : vector<2x128xf32> to vector<2x32xf32>
    %347 = vector.extract_strided_slice %344 {offsets = [0, 32], sizes = [2, 32], strides = [1, 1]} : vector<2x128xf32> to vector<2x32xf32>
    %348 = vector.extract_strided_slice %345 {offsets = [0, 64], sizes = [2, 32], strides = [1, 1]} : vector<2x128xf32> to vector<2x32xf32>
    %349 = vector.extract_strided_slice %344 {offsets = [0, 96], sizes = [2, 32], strides = [1, 1]} : vector<2x128xf32> to vector<2x32xf32>
    %350 = arith.mulf %347, %329 : vector<2x32xf32>
    %351 = arith.mulf %346, %348 : vector<2x32xf32>
    %352 = arith.addf %350, %351 : vector<2x32xf32>
    %353 = math.tanh %352 : vector<2x32xf32>
    %354 = arith.mulf %349, %353 : vector<2x32xf32>
    %355 = arith.index_cast %334 : i32 to index
    %c0_84 = arith.constant 0 : index
    %356 = vector.load %arg14[%355, %c0_84] : memref<56x32xf32, #tpu.memory_space<vmem>>, vector<2x32xf32>
    tpu.vector_store %arg14[%355, %c0_84], %354 {strides = array<i32>} : memref<56x32xf32, #tpu.memory_space<vmem>>, vector<2x32xf32>,
    %c15_i32 = arith.constant 15 : i32
    %c2_i32_85 = arith.constant 2 : i32
    %357 = arith.muli %c15_i32, %c2_i32_85 : i32
    %358 = arith.index_cast %357 : i32 to index
    %c0_86 = arith.constant 0 : index
    %359 = vector.load %arg13[%358, %c0_86] : memref<56x128xf32, #tpu.memory_space<vmem>>, vector<2x128xf32>
    %360 = arith.truncf %354 : vector<2x32xf32> to vector<2x32xbf16>
    %cst_87 = arith.constant dense<0.000000e+00> : vector<2x128xf32>
    %361 = tpu.matmul %360, %3, %cst_87 {dimension_numbers = #tpu.dot_dimension_numbers<[1], [0], [0], [1], [0, 0, 1, 1], [], []>} : vector<2x32xbf16>, vector<32x128xbf16>, vector<2x128xf32> -> vector<2x128xf32>
    %362 = arith.addf %359, %361 : vector<2x128xf32>
    %363 = arith.negf %362 : vector<2x128xf32>
    %364 = math.exp %363 : vector<2x128xf32>
    %cst_88 = arith.constant 1.000000e+00 : f32
    %365 = vector.broadcast %cst_88 : f32 to vector<2x128xf32>
    %366 = arith.addf %365, %364 : vector<2x128xf32>
    %367 = arith.divf %365, %366 : vector<2x128xf32>
    %368 = math.tanh %362 : vector<2x128xf32>
    %369 = vector.extract_strided_slice %367 {offsets = [0, 0], sizes = [2, 32], strides = [1, 1]} : vector<2x128xf32> to vector<2x32xf32>
    %370 = vector.extract_strided_slice %367 {offsets = [0, 32], sizes = [2, 32], strides = [1, 1]} : vector<2x128xf32> to vector<2x32xf32>
    %371 = vector.extract_strided_slice %368 {offsets = [0, 64], sizes = [2, 32], strides = [1, 1]} : vector<2x128xf32> to vector<2x32xf32>
    %372 = vector.extract_strided_slice %367 {offsets = [0, 96], sizes = [2, 32], strides = [1, 1]} : vector<2x128xf32> to vector<2x32xf32>
    %373 = arith.mulf %370, %352 : vector<2x32xf32>
    %374 = arith.mulf %369, %371 : vector<2x32xf32>
    %375 = arith.addf %373, %374 : vector<2x32xf32>
    %376 = math.tanh %375 : vector<2x32xf32>
    %377 = arith.mulf %372, %376 : vector<2x32xf32>
    %378 = arith.index_cast %357 : i32 to index
    %c0_89 = arith.constant 0 : index
    %379 = vector.load %arg14[%378, %c0_89] : memref<56x32xf32, #tpu.memory_space<vmem>>, vector<2x32xf32>
    tpu.vector_store %arg14[%378, %c0_89], %377 {strides = array<i32>} : memref<56x32xf32, #tpu.memory_space<vmem>>, vector<2x32xf32>,
    %c16_i32 = arith.constant 16 : i32
    %c2_i32_90 = arith.constant 2 : i32
    %380 = arith.muli %c16_i32, %c2_i32_90 : i32
    %381 = arith.index_cast %380 : i32 to index
    %c0_91 = arith.constant 0 : index
    %382 = vector.load %arg13[%381, %c0_91] : memref<56x128xf32, #tpu.memory_space<vmem>>, vector<2x128xf32>
    %383 = arith.truncf %377 : vector<2x32xf32> to vector<2x32xbf16>
    %cst_92 = arith.constant dense<0.000000e+00> : vector<2x128xf32>
    %384 = tpu.matmul %383, %3, %cst_92 {dimension_numbers = #tpu.dot_dimension_numbers<[1], [0], [0], [1], [0, 0, 1, 1], [], []>} : vector<2x32xbf16>, vector<32x128xbf16>, vector<2x128xf32> -> vector<2x128xf32>
    %385 = arith.addf %382, %384 : vector<2x128xf32>
    %386 = arith.negf %385 : vector<2x128xf32>
    %387 = math.exp %386 : vector<2x128xf32>
    %cst_93 = arith.constant 1.000000e+00 : f32
    %388 = vector.broadcast %cst_93 : f32 to vector<2x128xf32>
    %389 = arith.addf %388, %387 : vector<2x128xf32>
    %390 = arith.divf %388, %389 : vector<2x128xf32>
    %391 = math.tanh %385 : vector<2x128xf32>
    %392 = vector.extract_strided_slice %390 {offsets = [0, 0], sizes = [2, 32], strides = [1, 1]} : vector<2x128xf32> to vector<2x32xf32>
    %393 = vector.extract_strided_slice %390 {offsets = [0, 32], sizes = [2, 32], strides = [1, 1]} : vector<2x128xf32> to vector<2x32xf32>
    %394 = vector.extract_strided_slice %391 {offsets = [0, 64], sizes = [2, 32], strides = [1, 1]} : vector<2x128xf32> to vector<2x32xf32>
    %395 = vector.extract_strided_slice %390 {offsets = [0, 96], sizes = [2, 32], strides = [1, 1]} : vector<2x128xf32> to vector<2x32xf32>
    %396 = arith.mulf %393, %375 : vector<2x32xf32>
    %397 = arith.mulf %392, %394 : vector<2x32xf32>
    %398 = arith.addf %396, %397 : vector<2x32xf32>
    %399 = math.tanh %398 : vector<2x32xf32>
    %400 = arith.mulf %395, %399 : vector<2x32xf32>
    %401 = arith.index_cast %380 : i32 to index
    %c0_94 = arith.constant 0 : index
    %402 = vector.load %arg14[%401, %c0_94] : memref<56x32xf32, #tpu.memory_space<vmem>>, vector<2x32xf32>
    tpu.vector_store %arg14[%401, %c0_94], %400 {strides = array<i32>} : memref<56x32xf32, #tpu.memory_space<vmem>>, vector<2x32xf32>,
    %c17_i32 = arith.constant 17 : i32
    %c2_i32_95 = arith.constant 2 : i32
    %403 = arith.muli %c17_i32, %c2_i32_95 : i32
    %404 = arith.index_cast %403 : i32 to index
    %c0_96 = arith.constant 0 : index
    %405 = vector.load %arg13[%404, %c0_96] : memref<56x128xf32, #tpu.memory_space<vmem>>, vector<2x128xf32>
    %406 = arith.truncf %400 : vector<2x32xf32> to vector<2x32xbf16>
    %cst_97 = arith.constant dense<0.000000e+00> : vector<2x128xf32>
    %407 = tpu.matmul %406, %3, %cst_97 {dimension_numbers = #tpu.dot_dimension_numbers<[1], [0], [0], [1], [0, 0, 1, 1], [], []>} : vector<2x32xbf16>, vector<32x128xbf16>, vector<2x128xf32> -> vector<2x128xf32>
    %408 = arith.addf %405, %407 : vector<2x128xf32>
    %409 = arith.negf %408 : vector<2x128xf32>
    %410 = math.exp %409 : vector<2x128xf32>
    %cst_98 = arith.constant 1.000000e+00 : f32
    %411 = vector.broadcast %cst_98 : f32 to vector<2x128xf32>
    %412 = arith.addf %411, %410 : vector<2x128xf32>
    %413 = arith.divf %411, %412 : vector<2x128xf32>
    %414 = math.tanh %408 : vector<2x128xf32>
    %415 = vector.extract_strided_slice %413 {offsets = [0, 0], sizes = [2, 32], strides = [1, 1]} : vector<2x128xf32> to vector<2x32xf32>
    %416 = vector.extract_strided_slice %413 {offsets = [0, 32], sizes = [2, 32], strides = [1, 1]} : vector<2x128xf32> to vector<2x32xf32>
    %417 = vector.extract_strided_slice %414 {offsets = [0, 64], sizes = [2, 32], strides = [1, 1]} : vector<2x128xf32> to vector<2x32xf32>
    %418 = vector.extract_strided_slice %413 {offsets = [0, 96], sizes = [2, 32], strides = [1, 1]} : vector<2x128xf32> to vector<2x32xf32>
    %419 = arith.mulf %416, %398 : vector<2x32xf32>
    %420 = arith.mulf %415, %417 : vector<2x32xf32>
    %421 = arith.addf %419, %420 : vector<2x32xf32>
    %422 = math.tanh %421 : vector<2x32xf32>
    %423 = arith.mulf %418, %422 : vector<2x32xf32>
    %424 = arith.index_cast %403 : i32 to index
    %c0_99 = arith.constant 0 : index
    %425 = vector.load %arg14[%424, %c0_99] : memref<56x32xf32, #tpu.memory_space<vmem>>, vector<2x32xf32>
    tpu.vector_store %arg14[%424, %c0_99], %423 {strides = array<i32>} : memref<56x32xf32, #tpu.memory_space<vmem>>, vector<2x32xf32>,
    %c18_i32 = arith.constant 18 : i32
    %c2_i32_100 = arith.constant 2 : i32
    %426 = arith.muli %c18_i32, %c2_i32_100 : i32
    %427 = arith.index_cast %426 : i32 to index
    %c0_101 = arith.constant 0 : index
    %428 = vector.load %arg13[%427, %c0_101] : memref<56x128xf32, #tpu.memory_space<vmem>>, vector<2x128xf32>
    %429 = arith.truncf %423 : vector<2x32xf32> to vector<2x32xbf16>
    %cst_102 = arith.constant dense<0.000000e+00> : vector<2x128xf32>
    %430 = tpu.matmul %429, %3, %cst_102 {dimension_numbers = #tpu.dot_dimension_numbers<[1], [0], [0], [1], [0, 0, 1, 1], [], []>} : vector<2x32xbf16>, vector<32x128xbf16>, vector<2x128xf32> -> vector<2x128xf32>
    %431 = arith.addf %428, %430 : vector<2x128xf32>
    %432 = arith.negf %431 : vector<2x128xf32>
    %433 = math.exp %432 : vector<2x128xf32>
    %cst_103 = arith.constant 1.000000e+00 : f32
    %434 = vector.broadcast %cst_103 : f32 to vector<2x128xf32>
    %435 = arith.addf %434, %433 : vector<2x128xf32>
    %436 = arith.divf %434, %435 : vector<2x128xf32>
    %437 = math.tanh %431 : vector<2x128xf32>
    %438 = vector.extract_strided_slice %436 {offsets = [0, 0], sizes = [2, 32], strides = [1, 1]} : vector<2x128xf32> to vector<2x32xf32>
    %439 = vector.extract_strided_slice %436 {offsets = [0, 32], sizes = [2, 32], strides = [1, 1]} : vector<2x128xf32> to vector<2x32xf32>
    %440 = vector.extract_strided_slice %437 {offsets = [0, 64], sizes = [2, 32], strides = [1, 1]} : vector<2x128xf32> to vector<2x32xf32>
    %441 = vector.extract_strided_slice %436 {offsets = [0, 96], sizes = [2, 32], strides = [1, 1]} : vector<2x128xf32> to vector<2x32xf32>
    %442 = arith.mulf %439, %421 : vector<2x32xf32>
    %443 = arith.mulf %438, %440 : vector<2x32xf32>
    %444 = arith.addf %442, %443 : vector<2x32xf32>
    %445 = math.tanh %444 : vector<2x32xf32>
    %446 = arith.mulf %441, %445 : vector<2x32xf32>
    %447 = arith.index_cast %426 : i32 to index
    %c0_104 = arith.constant 0 : index
    %448 = vector.load %arg14[%447, %c0_104] : memref<56x32xf32, #tpu.memory_space<vmem>>, vector<2x32xf32>
    tpu.vector_store %arg14[%447, %c0_104], %446 {strides = array<i32>} : memref<56x32xf32, #tpu.memory_space<vmem>>, vector<2x32xf32>,
    %c19_i32 = arith.constant 19 : i32
    %c2_i32_105 = arith.constant 2 : i32
    %449 = arith.muli %c19_i32, %c2_i32_105 : i32
    %450 = arith.index_cast %449 : i32 to index
    %c0_106 = arith.constant 0 : index
    %451 = vector.load %arg13[%450, %c0_106] : memref<56x128xf32, #tpu.memory_space<vmem>>, vector<2x128xf32>
    %452 = arith.truncf %446 : vector<2x32xf32> to vector<2x32xbf16>
    %cst_107 = arith.constant dense<0.000000e+00> : vector<2x128xf32>
    %453 = tpu.matmul %452, %3, %cst_107 {dimension_numbers = #tpu.dot_dimension_numbers<[1], [0], [0], [1], [0, 0, 1, 1], [], []>} : vector<2x32xbf16>, vector<32x128xbf16>, vector<2x128xf32> -> vector<2x128xf32>
    %454 = arith.addf %451, %453 : vector<2x128xf32>
    %455 = arith.negf %454 : vector<2x128xf32>
    %456 = math.exp %455 : vector<2x128xf32>
    %cst_108 = arith.constant 1.000000e+00 : f32
    %457 = vector.broadcast %cst_108 : f32 to vector<2x128xf32>
    %458 = arith.addf %457, %456 : vector<2x128xf32>
    %459 = arith.divf %457, %458 : vector<2x128xf32>
    %460 = math.tanh %454 : vector<2x128xf32>
    %461 = vector.extract_strided_slice %459 {offsets = [0, 0], sizes = [2, 32], strides = [1, 1]} : vector<2x128xf32> to vector<2x32xf32>
    %462 = vector.extract_strided_slice %459 {offsets = [0, 32], sizes = [2, 32], strides = [1, 1]} : vector<2x128xf32> to vector<2x32xf32>
    %463 = vector.extract_strided_slice %460 {offsets = [0, 64], sizes = [2, 32], strides = [1, 1]} : vector<2x128xf32> to vector<2x32xf32>
    %464 = vector.extract_strided_slice %459 {offsets = [0, 96], sizes = [2, 32], strides = [1, 1]} : vector<2x128xf32> to vector<2x32xf32>
    %465 = arith.mulf %462, %444 : vector<2x32xf32>
    %466 = arith.mulf %461, %463 : vector<2x32xf32>
    %467 = arith.addf %465, %466 : vector<2x32xf32>
    %468 = math.tanh %467 : vector<2x32xf32>
    %469 = arith.mulf %464, %468 : vector<2x32xf32>
    %470 = arith.index_cast %449 : i32 to index
    %c0_109 = arith.constant 0 : index
    %471 = vector.load %arg14[%470, %c0_109] : memref<56x32xf32, #tpu.memory_space<vmem>>, vector<2x32xf32>
    tpu.vector_store %arg14[%470, %c0_109], %469 {strides = array<i32>} : memref<56x32xf32, #tpu.memory_space<vmem>>, vector<2x32xf32>,
    %c20_i32 = arith.constant 20 : i32
    %c2_i32_110 = arith.constant 2 : i32
    %472 = arith.muli %c20_i32, %c2_i32_110 : i32
    %473 = arith.index_cast %472 : i32 to index
    %c0_111 = arith.constant 0 : index
    %474 = vector.load %arg13[%473, %c0_111] : memref<56x128xf32, #tpu.memory_space<vmem>>, vector<2x128xf32>
    %475 = arith.truncf %469 : vector<2x32xf32> to vector<2x32xbf16>
    %cst_112 = arith.constant dense<0.000000e+00> : vector<2x128xf32>
    %476 = tpu.matmul %475, %3, %cst_112 {dimension_numbers = #tpu.dot_dimension_numbers<[1], [0], [0], [1], [0, 0, 1, 1], [], []>} : vector<2x32xbf16>, vector<32x128xbf16>, vector<2x128xf32> -> vector<2x128xf32>
    %477 = arith.addf %474, %476 : vector<2x128xf32>
    %478 = arith.negf %477 : vector<2x128xf32>
    %479 = math.exp %478 : vector<2x128xf32>
    %cst_113 = arith.constant 1.000000e+00 : f32
    %480 = vector.broadcast %cst_113 : f32 to vector<2x128xf32>
    %481 = arith.addf %480, %479 : vector<2x128xf32>
    %482 = arith.divf %480, %481 : vector<2x128xf32>
    %483 = math.tanh %477 : vector<2x128xf32>
    %484 = vector.extract_strided_slice %482 {offsets = [0, 0], sizes = [2, 32], strides = [1, 1]} : vector<2x128xf32> to vector<2x32xf32>
    %485 = vector.extract_strided_slice %482 {offsets = [0, 32], sizes = [2, 32], strides = [1, 1]} : vector<2x128xf32> to vector<2x32xf32>
    %486 = vector.extract_strided_slice %483 {offsets = [0, 64], sizes = [2, 32], strides = [1, 1]} : vector<2x128xf32> to vector<2x32xf32>
    %487 = vector.extract_strided_slice %482 {offsets = [0, 96], sizes = [2, 32], strides = [1, 1]} : vector<2x128xf32> to vector<2x32xf32>
    %488 = arith.mulf %485, %467 : vector<2x32xf32>
    %489 = arith.mulf %484, %486 : vector<2x32xf32>
    %490 = arith.addf %488, %489 : vector<2x32xf32>
    %491 = math.tanh %490 : vector<2x32xf32>
    %492 = arith.mulf %487, %491 : vector<2x32xf32>
    %493 = arith.index_cast %472 : i32 to index
    %c0_114 = arith.constant 0 : index
    %494 = vector.load %arg14[%493, %c0_114] : memref<56x32xf32, #tpu.memory_space<vmem>>, vector<2x32xf32>
    tpu.vector_store %arg14[%493, %c0_114], %492 {strides = array<i32>} : memref<56x32xf32, #tpu.memory_space<vmem>>, vector<2x32xf32>,
    %c21_i32 = arith.constant 21 : i32
    %c2_i32_115 = arith.constant 2 : i32
    %495 = arith.muli %c21_i32, %c2_i32_115 : i32
    %496 = arith.index_cast %495 : i32 to index
    %c0_116 = arith.constant 0 : index
    %497 = vector.load %arg13[%496, %c0_116] : memref<56x128xf32, #tpu.memory_space<vmem>>, vector<2x128xf32>
    %498 = arith.truncf %492 : vector<2x32xf32> to vector<2x32xbf16>
    %cst_117 = arith.constant dense<0.000000e+00> : vector<2x128xf32>
    %499 = tpu.matmul %498, %3, %cst_117 {dimension_numbers = #tpu.dot_dimension_numbers<[1], [0], [0], [1], [0, 0, 1, 1], [], []>} : vector<2x32xbf16>, vector<32x128xbf16>, vector<2x128xf32> -> vector<2x128xf32>
    %500 = arith.addf %497, %499 : vector<2x128xf32>
    %501 = arith.negf %500 : vector<2x128xf32>
    %502 = math.exp %501 : vector<2x128xf32>
    %cst_118 = arith.constant 1.000000e+00 : f32
    %503 = vector.broadcast %cst_118 : f32 to vector<2x128xf32>
    %504 = arith.addf %503, %502 : vector<2x128xf32>
    %505 = arith.divf %503, %504 : vector<2x128xf32>
    %506 = math.tanh %500 : vector<2x128xf32>
    %507 = vector.extract_strided_slice %505 {offsets = [0, 0], sizes = [2, 32], strides = [1, 1]} : vector<2x128xf32> to vector<2x32xf32>
    %508 = vector.extract_strided_slice %505 {offsets = [0, 32], sizes = [2, 32], strides = [1, 1]} : vector<2x128xf32> to vector<2x32xf32>
    %509 = vector.extract_strided_slice %506 {offsets = [0, 64], sizes = [2, 32], strides = [1, 1]} : vector<2x128xf32> to vector<2x32xf32>
    %510 = vector.extract_strided_slice %505 {offsets = [0, 96], sizes = [2, 32], strides = [1, 1]} : vector<2x128xf32> to vector<2x32xf32>
    %511 = arith.mulf %508, %490 : vector<2x32xf32>
    %512 = arith.mulf %507, %509 : vector<2x32xf32>
    %513 = arith.addf %511, %512 : vector<2x32xf32>
    %514 = math.tanh %513 : vector<2x32xf32>
    %515 = arith.mulf %510, %514 : vector<2x32xf32>
    %516 = arith.index_cast %495 : i32 to index
    %c0_119 = arith.constant 0 : index
    %517 = vector.load %arg14[%516, %c0_119] : memref<56x32xf32, #tpu.memory_space<vmem>>, vector<2x32xf32>
    tpu.vector_store %arg14[%516, %c0_119], %515 {strides = array<i32>} : memref<56x32xf32, #tpu.memory_space<vmem>>, vector<2x32xf32>,
    %c22_i32 = arith.constant 22 : i32
    %c2_i32_120 = arith.constant 2 : i32
    %518 = arith.muli %c22_i32, %c2_i32_120 : i32
    %519 = arith.index_cast %518 : i32 to index
    %c0_121 = arith.constant 0 : index
    %520 = vector.load %arg13[%519, %c0_121] : memref<56x128xf32, #tpu.memory_space<vmem>>, vector<2x128xf32>
    %521 = arith.truncf %515 : vector<2x32xf32> to vector<2x32xbf16>
    %cst_122 = arith.constant dense<0.000000e+00> : vector<2x128xf32>
    %522 = tpu.matmul %521, %3, %cst_122 {dimension_numbers = #tpu.dot_dimension_numbers<[1], [0], [0], [1], [0, 0, 1, 1], [], []>} : vector<2x32xbf16>, vector<32x128xbf16>, vector<2x128xf32> -> vector<2x128xf32>
    %523 = arith.addf %520, %522 : vector<2x128xf32>
    %524 = arith.negf %523 : vector<2x128xf32>
    %525 = math.exp %524 : vector<2x128xf32>
    %cst_123 = arith.constant 1.000000e+00 : f32
    %526 = vector.broadcast %cst_123 : f32 to vector<2x128xf32>
    %527 = arith.addf %526, %525 : vector<2x128xf32>
    %528 = arith.divf %526, %527 : vector<2x128xf32>
    %529 = math.tanh %523 : vector<2x128xf32>
    %530 = vector.extract_strided_slice %528 {offsets = [0, 0], sizes = [2, 32], strides = [1, 1]} : vector<2x128xf32> to vector<2x32xf32>
    %531 = vector.extract_strided_slice %528 {offsets = [0, 32], sizes = [2, 32], strides = [1, 1]} : vector<2x128xf32> to vector<2x32xf32>
    %532 = vector.extract_strided_slice %529 {offsets = [0, 64], sizes = [2, 32], strides = [1, 1]} : vector<2x128xf32> to vector<2x32xf32>
    %533 = vector.extract_strided_slice %528 {offsets = [0, 96], sizes = [2, 32], strides = [1, 1]} : vector<2x128xf32> to vector<2x32xf32>
    %534 = arith.mulf %531, %513 : vector<2x32xf32>
    %535 = arith.mulf %530, %532 : vector<2x32xf32>
    %536 = arith.addf %534, %535 : vector<2x32xf32>
    %537 = math.tanh %536 : vector<2x32xf32>
    %538 = arith.mulf %533, %537 : vector<2x32xf32>
    %539 = arith.index_cast %518 : i32 to index
    %c0_124 = arith.constant 0 : index
    %540 = vector.load %arg14[%539, %c0_124] : memref<56x32xf32, #tpu.memory_space<vmem>>, vector<2x32xf32>
    tpu.vector_store %arg14[%539, %c0_124], %538 {strides = array<i32>} : memref<56x32xf32, #tpu.memory_space<vmem>>, vector<2x32xf32>,
    %c23_i32 = arith.constant 23 : i32
    %c2_i32_125 = arith.constant 2 : i32
    %541 = arith.muli %c23_i32, %c2_i32_125 : i32
    %542 = arith.index_cast %541 : i32 to index
    %c0_126 = arith.constant 0 : index
    %543 = vector.load %arg13[%542, %c0_126] : memref<56x128xf32, #tpu.memory_space<vmem>>, vector<2x128xf32>
    %544 = arith.truncf %538 : vector<2x32xf32> to vector<2x32xbf16>
    %cst_127 = arith.constant dense<0.000000e+00> : vector<2x128xf32>
    %545 = tpu.matmul %544, %3, %cst_127 {dimension_numbers = #tpu.dot_dimension_numbers<[1], [0], [0], [1], [0, 0, 1, 1], [], []>} : vector<2x32xbf16>, vector<32x128xbf16>, vector<2x128xf32> -> vector<2x128xf32>
    %546 = arith.addf %543, %545 : vector<2x128xf32>
    %547 = arith.negf %546 : vector<2x128xf32>
    %548 = math.exp %547 : vector<2x128xf32>
    %cst_128 = arith.constant 1.000000e+00 : f32
    %549 = vector.broadcast %cst_128 : f32 to vector<2x128xf32>
    %550 = arith.addf %549, %548 : vector<2x128xf32>
    %551 = arith.divf %549, %550 : vector<2x128xf32>
    %552 = math.tanh %546 : vector<2x128xf32>
    %553 = vector.extract_strided_slice %551 {offsets = [0, 0], sizes = [2, 32], strides = [1, 1]} : vector<2x128xf32> to vector<2x32xf32>
    %554 = vector.extract_strided_slice %551 {offsets = [0, 32], sizes = [2, 32], strides = [1, 1]} : vector<2x128xf32> to vector<2x32xf32>
    %555 = vector.extract_strided_slice %552 {offsets = [0, 64], sizes = [2, 32], strides = [1, 1]} : vector<2x128xf32> to vector<2x32xf32>
    %556 = vector.extract_strided_slice %551 {offsets = [0, 96], sizes = [2, 32], strides = [1, 1]} : vector<2x128xf32> to vector<2x32xf32>
    %557 = arith.mulf %554, %536 : vector<2x32xf32>
    %558 = arith.mulf %553, %555 : vector<2x32xf32>
    %559 = arith.addf %557, %558 : vector<2x32xf32>
    %560 = math.tanh %559 : vector<2x32xf32>
    %561 = arith.mulf %556, %560 : vector<2x32xf32>
    %562 = arith.index_cast %541 : i32 to index
    %c0_129 = arith.constant 0 : index
    %563 = vector.load %arg14[%562, %c0_129] : memref<56x32xf32, #tpu.memory_space<vmem>>, vector<2x32xf32>
    tpu.vector_store %arg14[%562, %c0_129], %561 {strides = array<i32>} : memref<56x32xf32, #tpu.memory_space<vmem>>, vector<2x32xf32>,
    %c24_i32 = arith.constant 24 : i32
    %c2_i32_130 = arith.constant 2 : i32
    %564 = arith.muli %c24_i32, %c2_i32_130 : i32
    %565 = arith.index_cast %564 : i32 to index
    %c0_131 = arith.constant 0 : index
    %566 = vector.load %arg13[%565, %c0_131] : memref<56x128xf32, #tpu.memory_space<vmem>>, vector<2x128xf32>
    %567 = arith.truncf %561 : vector<2x32xf32> to vector<2x32xbf16>
    %cst_132 = arith.constant dense<0.000000e+00> : vector<2x128xf32>
    %568 = tpu.matmul %567, %3, %cst_132 {dimension_numbers = #tpu.dot_dimension_numbers<[1], [0], [0], [1], [0, 0, 1, 1], [], []>} : vector<2x32xbf16>, vector<32x128xbf16>, vector<2x128xf32> -> vector<2x128xf32>
    %569 = arith.addf %566, %568 : vector<2x128xf32>
    %570 = arith.negf %569 : vector<2x128xf32>
    %571 = math.exp %570 : vector<2x128xf32>
    %cst_133 = arith.constant 1.000000e+00 : f32
    %572 = vector.broadcast %cst_133 : f32 to vector<2x128xf32>
    %573 = arith.addf %572, %571 : vector<2x128xf32>
    %574 = arith.divf %572, %573 : vector<2x128xf32>
    %575 = math.tanh %569 : vector<2x128xf32>
    %576 = vector.extract_strided_slice %574 {offsets = [0, 0], sizes = [2, 32], strides = [1, 1]} : vector<2x128xf32> to vector<2x32xf32>
    %577 = vector.extract_strided_slice %574 {offsets = [0, 32], sizes = [2, 32], strides = [1, 1]} : vector<2x128xf32> to vector<2x32xf32>
    %578 = vector.extract_strided_slice %575 {offsets = [0, 64], sizes = [2, 32], strides = [1, 1]} : vector<2x128xf32> to vector<2x32xf32>
    %579 = vector.extract_strided_slice %574 {offsets = [0, 96], sizes = [2, 32], strides = [1, 1]} : vector<2x128xf32> to vector<2x32xf32>
    %580 = arith.mulf %577, %559 : vector<2x32xf32>
    %581 = arith.mulf %576, %578 : vector<2x32xf32>
    %582 = arith.addf %580, %581 : vector<2x32xf32>
    %583 = math.tanh %582 : vector<2x32xf32>
    %584 = arith.mulf %579, %583 : vector<2x32xf32>
    %585 = arith.index_cast %564 : i32 to index
    %c0_134 = arith.constant 0 : index
    %586 = vector.load %arg14[%585, %c0_134] : memref<56x32xf32, #tpu.memory_space<vmem>>, vector<2x32xf32>
    tpu.vector_store %arg14[%585, %c0_134], %584 {strides = array<i32>} : memref<56x32xf32, #tpu.memory_space<vmem>>, vector<2x32xf32>,
    %c25_i32 = arith.constant 25 : i32
    %c2_i32_135 = arith.constant 2 : i32
    %587 = arith.muli %c25_i32, %c2_i32_135 : i32
    %588 = arith.index_cast %587 : i32 to index
    %c0_136 = arith.constant 0 : index
    %589 = vector.load %arg13[%588, %c0_136] : memref<56x128xf32, #tpu.memory_space<vmem>>, vector<2x128xf32>
    %590 = arith.truncf %584 : vector<2x32xf32> to vector<2x32xbf16>
    %cst_137 = arith.constant dense<0.000000e+00> : vector<2x128xf32>
    %591 = tpu.matmul %590, %3, %cst_137 {dimension_numbers = #tpu.dot_dimension_numbers<[1], [0], [0], [1], [0, 0, 1, 1], [], []>} : vector<2x32xbf16>, vector<32x128xbf16>, vector<2x128xf32> -> vector<2x128xf32>
    %592 = arith.addf %589, %591 : vector<2x128xf32>
    %593 = arith.negf %592 : vector<2x128xf32>
    %594 = math.exp %593 : vector<2x128xf32>
    %cst_138 = arith.constant 1.000000e+00 : f32
    %595 = vector.broadcast %cst_138 : f32 to vector<2x128xf32>
    %596 = arith.addf %595, %594 : vector<2x128xf32>
    %597 = arith.divf %595, %596 : vector<2x128xf32>
    %598 = math.tanh %592 : vector<2x128xf32>
    %599 = vector.extract_strided_slice %597 {offsets = [0, 0], sizes = [2, 32], strides = [1, 1]} : vector<2x128xf32> to vector<2x32xf32>
    %600 = vector.extract_strided_slice %597 {offsets = [0, 32], sizes = [2, 32], strides = [1, 1]} : vector<2x128xf32> to vector<2x32xf32>
    %601 = vector.extract_strided_slice %598 {offsets = [0, 64], sizes = [2, 32], strides = [1, 1]} : vector<2x128xf32> to vector<2x32xf32>
    %602 = vector.extract_strided_slice %597 {offsets = [0, 96], sizes = [2, 32], strides = [1, 1]} : vector<2x128xf32> to vector<2x32xf32>
    %603 = arith.mulf %600, %582 : vector<2x32xf32>
    %604 = arith.mulf %599, %601 : vector<2x32xf32>
    %605 = arith.addf %603, %604 : vector<2x32xf32>
    %606 = math.tanh %605 : vector<2x32xf32>
    %607 = arith.mulf %602, %606 : vector<2x32xf32>
    %608 = arith.index_cast %587 : i32 to index
    %c0_139 = arith.constant 0 : index
    %609 = vector.load %arg14[%608, %c0_139] : memref<56x32xf32, #tpu.memory_space<vmem>>, vector<2x32xf32>
    tpu.vector_store %arg14[%608, %c0_139], %607 {strides = array<i32>} : memref<56x32xf32, #tpu.memory_space<vmem>>, vector<2x32xf32>,
    %c26_i32 = arith.constant 26 : i32
    %c2_i32_140 = arith.constant 2 : i32
    %610 = arith.muli %c26_i32, %c2_i32_140 : i32
    %611 = arith.index_cast %610 : i32 to index
    %c0_141 = arith.constant 0 : index
    %612 = vector.load %arg13[%611, %c0_141] : memref<56x128xf32, #tpu.memory_space<vmem>>, vector<2x128xf32>
    %613 = arith.truncf %607 : vector<2x32xf32> to vector<2x32xbf16>
    %cst_142 = arith.constant dense<0.000000e+00> : vector<2x128xf32>
    %614 = tpu.matmul %613, %3, %cst_142 {dimension_numbers = #tpu.dot_dimension_numbers<[1], [0], [0], [1], [0, 0, 1, 1], [], []>} : vector<2x32xbf16>, vector<32x128xbf16>, vector<2x128xf32> -> vector<2x128xf32>
    %615 = arith.addf %612, %614 : vector<2x128xf32>
    %616 = arith.negf %615 : vector<2x128xf32>
    %617 = math.exp %616 : vector<2x128xf32>
    %cst_143 = arith.constant 1.000000e+00 : f32
    %618 = vector.broadcast %cst_143 : f32 to vector<2x128xf32>
    %619 = arith.addf %618, %617 : vector<2x128xf32>
    %620 = arith.divf %618, %619 : vector<2x128xf32>
    %621 = math.tanh %615 : vector<2x128xf32>
    %622 = vector.extract_strided_slice %620 {offsets = [0, 0], sizes = [2, 32], strides = [1, 1]} : vector<2x128xf32> to vector<2x32xf32>
    %623 = vector.extract_strided_slice %620 {offsets = [0, 32], sizes = [2, 32], strides = [1, 1]} : vector<2x128xf32> to vector<2x32xf32>
    %624 = vector.extract_strided_slice %621 {offsets = [0, 64], sizes = [2, 32], strides = [1, 1]} : vector<2x128xf32> to vector<2x32xf32>
    %625 = vector.extract_strided_slice %620 {offsets = [0, 96], sizes = [2, 32], strides = [1, 1]} : vector<2x128xf32> to vector<2x32xf32>
    %626 = arith.mulf %623, %605 : vector<2x32xf32>
    %627 = arith.mulf %622, %624 : vector<2x32xf32>
    %628 = arith.addf %626, %627 : vector<2x32xf32>
    %629 = math.tanh %628 : vector<2x32xf32>
    %630 = arith.mulf %625, %629 : vector<2x32xf32>
    %631 = arith.index_cast %610 : i32 to index
    %c0_144 = arith.constant 0 : index
    %632 = vector.load %arg14[%631, %c0_144] : memref<56x32xf32, #tpu.memory_space<vmem>>, vector<2x32xf32>
    tpu.vector_store %arg14[%631, %c0_144], %630 {strides = array<i32>} : memref<56x32xf32, #tpu.memory_space<vmem>>, vector<2x32xf32>,
    %c27_i32 = arith.constant 27 : i32
    %c2_i32_145 = arith.constant 2 : i32
    %633 = arith.muli %c27_i32, %c2_i32_145 : i32
    %634 = arith.index_cast %633 : i32 to index
    %c0_146 = arith.constant 0 : index
    %635 = vector.load %arg13[%634, %c0_146] : memref<56x128xf32, #tpu.memory_space<vmem>>, vector<2x128xf32>
    %636 = arith.truncf %630 : vector<2x32xf32> to vector<2x32xbf16>
    %cst_147 = arith.constant dense<0.000000e+00> : vector<2x128xf32>
    %637 = tpu.matmul %636, %3, %cst_147 {dimension_numbers = #tpu.dot_dimension_numbers<[1], [0], [0], [1], [0, 0, 1, 1], [], []>} : vector<2x32xbf16>, vector<32x128xbf16>, vector<2x128xf32> -> vector<2x128xf32>
    %638 = arith.addf %635, %637 : vector<2x128xf32>
    %639 = arith.negf %638 : vector<2x128xf32>
    %640 = math.exp %639 : vector<2x128xf32>
    %cst_148 = arith.constant 1.000000e+00 : f32
    %641 = vector.broadcast %cst_148 : f32 to vector<2x128xf32>
    %642 = arith.addf %641, %640 : vector<2x128xf32>
    %643 = arith.divf %641, %642 : vector<2x128xf32>
    %644 = math.tanh %638 : vector<2x128xf32>
    %645 = vector.extract_strided_slice %643 {offsets = [0, 0], sizes = [2, 32], strides = [1, 1]} : vector<2x128xf32> to vector<2x32xf32>
    %646 = vector.extract_strided_slice %643 {offsets = [0, 32], sizes = [2, 32], strides = [1, 1]} : vector<2x128xf32> to vector<2x32xf32>
    %647 = vector.extract_strided_slice %644 {offsets = [0, 64], sizes = [2, 32], strides = [1, 1]} : vector<2x128xf32> to vector<2x32xf32>
    %648 = vector.extract_strided_slice %643 {offsets = [0, 96], sizes = [2, 32], strides = [1, 1]} : vector<2x128xf32> to vector<2x32xf32>
    %649 = arith.mulf %646, %628 : vector<2x32xf32>
    %650 = arith.mulf %645, %647 : vector<2x32xf32>
    %651 = arith.addf %649, %650 : vector<2x32xf32>
    %652 = math.tanh %651 : vector<2x32xf32>
    %653 = arith.mulf %648, %652 : vector<2x32xf32>
    %654 = arith.index_cast %633 : i32 to index
    %c0_149 = arith.constant 0 : index
    %655 = vector.load %arg14[%654, %c0_149] : memref<56x32xf32, #tpu.memory_space<vmem>>, vector<2x32xf32>
    tpu.vector_store %arg14[%654, %c0_149], %653 {strides = array<i32>} : memref<56x32xf32, #tpu.memory_space<vmem>>, vector<2x32xf32>,
    %c28_i32 = arith.constant 28 : i32
    %c0_150 = arith.constant 0 : index
    %c0_151 = arith.constant 0 : index
    %656 = vector.load %arg5[%c0_150, %c0_151] : memref<32x128xf32, #tpu.memory_space<vmem>>, vector<32x128xf32>
    %657 = arith.truncf %656 : vector<32x128xf32> to vector<32x128xbf16>
    %c0_152 = arith.constant 0 : index
    %c0_153 = arith.constant 0 : index
    %658 = vector.load %arg6[%c0_152, %c0_153] : memref<32x128xf32, #tpu.memory_space<vmem>>, vector<32x128xf32>
    %659 = arith.truncf %658 : vector<32x128xf32> to vector<32x128xbf16>
    %c0_154 = arith.constant 0 : index
    %c0_155 = arith.constant 0 : index
    %660 = vector.load %arg7[%c0_154, %c0_155] : memref<1x128xf32, #tpu.memory_space<vmem>>, vector<1x128xf32>
    %c0_156 = arith.constant 0 : index
    %c0_157 = arith.constant 0 : index
    %661 = vector.load %arg14[%c0_156, %c0_157] : memref<56x32xf32, #tpu.memory_space<vmem>>, vector<56x32xf32>
    %662 = arith.truncf %661 : vector<56x32xf32> to vector<56x32xbf16>
    %cst_158 = arith.constant dense<0.000000e+00> : vector<56x128xf32>
    %663 = tpu.matmul %662, %657, %cst_158 {dimension_numbers = #tpu.dot_dimension_numbers<[1], [0], [0], [1], [0, 0, 1, 1], [], []>} : vector<56x32xbf16>, vector<32x128xbf16>, vector<56x128xf32> -> vector<56x128xf32>
    %664 = vector.broadcast %660 : vector<1x128xf32> to vector<56x128xf32>
    %665 = arith.addf %663, %664 : vector<56x128xf32>
    %c0_159 = arith.constant 0 : index
    %c0_160 = arith.constant 0 : index
    %666 = vector.load %arg13[%c0_159, %c0_160] : memref<56x128xf32, #tpu.memory_space<vmem>>, vector<56x128xf32>
    tpu.vector_store %arg13[%c0_159, %c0_160], %665 {strides = array<i32>} : memref<56x128xf32, #tpu.memory_space<vmem>>, vector<56x128xf32>,
    %cst_161 = arith.constant 0.000000e+00 : f32
    %667 = vector.broadcast %cst_161 : f32 to vector<2x32xf32>
    %c0_i32_162 = arith.constant 0 : i32
    %c2_i32_163 = arith.constant 2 : i32
    %668 = arith.muli %c0_i32_162, %c2_i32_163 : i32
    %669 = arith.index_cast %668 : i32 to index
    %c0_164 = arith.constant 0 : index
    %670 = vector.load %arg13[%669, %c0_164] : memref<56x128xf32, #tpu.memory_space<vmem>>, vector<2x128xf32>
    %671 = arith.truncf %667 : vector<2x32xf32> to vector<2x32xbf16>
    %cst_165 = arith.constant dense<0.000000e+00> : vector<2x128xf32>
    %672 = tpu.matmul %671, %659, %cst_165 {dimension_numbers = #tpu.dot_dimension_numbers<[1], [0], [0], [1], [0, 0, 1, 1], [], []>} : vector<2x32xbf16>, vector<32x128xbf16>, vector<2x128xf32> -> vector<2x128xf32>
    %673 = arith.addf %670, %672 : vector<2x128xf32>
    %674 = arith.negf %673 : vector<2x128xf32>
    %675 = math.exp %674 : vector<2x128xf32>
    %cst_166 = arith.constant 1.000000e+00 : f32
    %676 = vector.broadcast %cst_166 : f32 to vector<2x128xf32>
    %677 = arith.addf %676, %675 : vector<2x128xf32>
    %678 = arith.divf %676, %677 : vector<2x128xf32>
    %679 = math.tanh %673 : vector<2x128xf32>
    %680 = vector.extract_strided_slice %678 {offsets = [0, 0], sizes = [2, 32], strides = [1, 1]} : vector<2x128xf32> to vector<2x32xf32>
    %681 = vector.extract_strided_slice %678 {offsets = [0, 32], sizes = [2, 32], strides = [1, 1]} : vector<2x128xf32> to vector<2x32xf32>
    %682 = vector.extract_strided_slice %679 {offsets = [0, 64], sizes = [2, 32], strides = [1, 1]} : vector<2x128xf32> to vector<2x32xf32>
    %683 = vector.extract_strided_slice %678 {offsets = [0, 96], sizes = [2, 32], strides = [1, 1]} : vector<2x128xf32> to vector<2x32xf32>
    %684 = arith.mulf %681, %667 : vector<2x32xf32>
    %685 = arith.mulf %680, %682 : vector<2x32xf32>
    %686 = arith.addf %684, %685 : vector<2x32xf32>
    %687 = math.tanh %686 : vector<2x32xf32>
    %688 = arith.mulf %683, %687 : vector<2x32xf32>
    %689 = arith.index_cast %668 : i32 to index
    %c0_167 = arith.constant 0 : index
    %690 = vector.load %arg14[%689, %c0_167] : memref<56x32xf32, #tpu.memory_space<vmem>>, vector<2x32xf32>
    tpu.vector_store %arg14[%689, %c0_167], %688 {strides = array<i32>} : memref<56x32xf32, #tpu.memory_space<vmem>>, vector<2x32xf32>,
    %c1_i32_168 = arith.constant 1 : i32
    %c2_i32_169 = arith.constant 2 : i32
    %691 = arith.muli %c1_i32_168, %c2_i32_169 : i32
    %692 = arith.index_cast %691 : i32 to index
    %c0_170 = arith.constant 0 : index
    %693 = vector.load %arg13[%692, %c0_170] : memref<56x128xf32, #tpu.memory_space<vmem>>, vector<2x128xf32>
    %694 = arith.truncf %688 : vector<2x32xf32> to vector<2x32xbf16>
    %cst_171 = arith.constant dense<0.000000e+00> : vector<2x128xf32>
    %695 = tpu.matmul %694, %659, %cst_171 {dimension_numbers = #tpu.dot_dimension_numbers<[1], [0], [0], [1], [0, 0, 1, 1], [], []>} : vector<2x32xbf16>, vector<32x128xbf16>, vector<2x128xf32> -> vector<2x128xf32>
    %696 = arith.addf %693, %695 : vector<2x128xf32>
    %697 = arith.negf %696 : vector<2x128xf32>
    %698 = math.exp %697 : vector<2x128xf32>
    %cst_172 = arith.constant 1.000000e+00 : f32
    %699 = vector.broadcast %cst_172 : f32 to vector<2x128xf32>
    %700 = arith.addf %699, %698 : vector<2x128xf32>
    %701 = arith.divf %699, %700 : vector<2x128xf32>
    %702 = math.tanh %696 : vector<2x128xf32>
    %703 = vector.extract_strided_slice %701 {offsets = [0, 0], sizes = [2, 32], strides = [1, 1]} : vector<2x128xf32> to vector<2x32xf32>
    %704 = vector.extract_strided_slice %701 {offsets = [0, 32], sizes = [2, 32], strides = [1, 1]} : vector<2x128xf32> to vector<2x32xf32>
    %705 = vector.extract_strided_slice %702 {offsets = [0, 64], sizes = [2, 32], strides = [1, 1]} : vector<2x128xf32> to vector<2x32xf32>
    %706 = vector.extract_strided_slice %701 {offsets = [0, 96], sizes = [2, 32], strides = [1, 1]} : vector<2x128xf32> to vector<2x32xf32>
    %707 = arith.mulf %704, %686 : vector<2x32xf32>
    %708 = arith.mulf %703, %705 : vector<2x32xf32>
    %709 = arith.addf %707, %708 : vector<2x32xf32>
    %710 = math.tanh %709 : vector<2x32xf32>
    %711 = arith.mulf %706, %710 : vector<2x32xf32>
    %712 = arith.index_cast %691 : i32 to index
    %c0_173 = arith.constant 0 : index
    %713 = vector.load %arg14[%712, %c0_173] : memref<56x32xf32, #tpu.memory_space<vmem>>, vector<2x32xf32>
    tpu.vector_store %arg14[%712, %c0_173], %711 {strides = array<i32>} : memref<56x32xf32, #tpu.memory_space<vmem>>, vector<2x32xf32>,
    %c2_i32_174 = arith.constant 2 : i32
    %c2_i32_175 = arith.constant 2 : i32
    %714 = arith.muli %c2_i32_174, %c2_i32_175 : i32
    %715 = arith.index_cast %714 : i32 to index
    %c0_176 = arith.constant 0 : index
    %716 = vector.load %arg13[%715, %c0_176] : memref<56x128xf32, #tpu.memory_space<vmem>>, vector<2x128xf32>
    %717 = arith.truncf %711 : vector<2x32xf32> to vector<2x32xbf16>
    %cst_177 = arith.constant dense<0.000000e+00> : vector<2x128xf32>
    %718 = tpu.matmul %717, %659, %cst_177 {dimension_numbers = #tpu.dot_dimension_numbers<[1], [0], [0], [1], [0, 0, 1, 1], [], []>} : vector<2x32xbf16>, vector<32x128xbf16>, vector<2x128xf32> -> vector<2x128xf32>
    %719 = arith.addf %716, %718 : vector<2x128xf32>
    %720 = arith.negf %719 : vector<2x128xf32>
    %721 = math.exp %720 : vector<2x128xf32>
    %cst_178 = arith.constant 1.000000e+00 : f32
    %722 = vector.broadcast %cst_178 : f32 to vector<2x128xf32>
    %723 = arith.addf %722, %721 : vector<2x128xf32>
    %724 = arith.divf %722, %723 : vector<2x128xf32>
    %725 = math.tanh %719 : vector<2x128xf32>
    %726 = vector.extract_strided_slice %724 {offsets = [0, 0], sizes = [2, 32], strides = [1, 1]} : vector<2x128xf32> to vector<2x32xf32>
    %727 = vector.extract_strided_slice %724 {offsets = [0, 32], sizes = [2, 32], strides = [1, 1]} : vector<2x128xf32> to vector<2x32xf32>
    %728 = vector.extract_strided_slice %725 {offsets = [0, 64], sizes = [2, 32], strides = [1, 1]} : vector<2x128xf32> to vector<2x32xf32>
    %729 = vector.extract_strided_slice %724 {offsets = [0, 96], sizes = [2, 32], strides = [1, 1]} : vector<2x128xf32> to vector<2x32xf32>
    %730 = arith.mulf %727, %709 : vector<2x32xf32>
    %731 = arith.mulf %726, %728 : vector<2x32xf32>
    %732 = arith.addf %730, %731 : vector<2x32xf32>
    %733 = math.tanh %732 : vector<2x32xf32>
    %734 = arith.mulf %729, %733 : vector<2x32xf32>
    %735 = arith.index_cast %714 : i32 to index
    %c0_179 = arith.constant 0 : index
    %736 = vector.load %arg14[%735, %c0_179] : memref<56x32xf32, #tpu.memory_space<vmem>>, vector<2x32xf32>
    tpu.vector_store %arg14[%735, %c0_179], %734 {strides = array<i32>} : memref<56x32xf32, #tpu.memory_space<vmem>>, vector<2x32xf32>,
    %c3_i32_180 = arith.constant 3 : i32
    %c2_i32_181 = arith.constant 2 : i32
    %737 = arith.muli %c3_i32_180, %c2_i32_181 : i32
    %738 = arith.index_cast %737 : i32 to index
    %c0_182 = arith.constant 0 : index
    %739 = vector.load %arg13[%738, %c0_182] : memref<56x128xf32, #tpu.memory_space<vmem>>, vector<2x128xf32>
    %740 = arith.truncf %734 : vector<2x32xf32> to vector<2x32xbf16>
    %cst_183 = arith.constant dense<0.000000e+00> : vector<2x128xf32>
    %741 = tpu.matmul %740, %659, %cst_183 {dimension_numbers = #tpu.dot_dimension_numbers<[1], [0], [0], [1], [0, 0, 1, 1], [], []>} : vector<2x32xbf16>, vector<32x128xbf16>, vector<2x128xf32> -> vector<2x128xf32>
    %742 = arith.addf %739, %741 : vector<2x128xf32>
    %743 = arith.negf %742 : vector<2x128xf32>
    %744 = math.exp %743 : vector<2x128xf32>
    %cst_184 = arith.constant 1.000000e+00 : f32
    %745 = vector.broadcast %cst_184 : f32 to vector<2x128xf32>
    %746 = arith.addf %745, %744 : vector<2x128xf32>
    %747 = arith.divf %745, %746 : vector<2x128xf32>
    %748 = math.tanh %742 : vector<2x128xf32>
    %749 = vector.extract_strided_slice %747 {offsets = [0, 0], sizes = [2, 32], strides = [1, 1]} : vector<2x128xf32> to vector<2x32xf32>
    %750 = vector.extract_strided_slice %747 {offsets = [0, 32], sizes = [2, 32], strides = [1, 1]} : vector<2x128xf32> to vector<2x32xf32>
    %751 = vector.extract_strided_slice %748 {offsets = [0, 64], sizes = [2, 32], strides = [1, 1]} : vector<2x128xf32> to vector<2x32xf32>
    %752 = vector.extract_strided_slice %747 {offsets = [0, 96], sizes = [2, 32], strides = [1, 1]} : vector<2x128xf32> to vector<2x32xf32>
    %753 = arith.mulf %750, %732 : vector<2x32xf32>
    %754 = arith.mulf %749, %751 : vector<2x32xf32>
    %755 = arith.addf %753, %754 : vector<2x32xf32>
    %756 = math.tanh %755 : vector<2x32xf32>
    %757 = arith.mulf %752, %756 : vector<2x32xf32>
    %758 = arith.index_cast %737 : i32 to index
    %c0_185 = arith.constant 0 : index
    %759 = vector.load %arg14[%758, %c0_185] : memref<56x32xf32, #tpu.memory_space<vmem>>, vector<2x32xf32>
    tpu.vector_store %arg14[%758, %c0_185], %757 {strides = array<i32>} : memref<56x32xf32, #tpu.memory_space<vmem>>, vector<2x32xf32>,
    %c4_i32_186 = arith.constant 4 : i32
    %c2_i32_187 = arith.constant 2 : i32
    %760 = arith.muli %c4_i32_186, %c2_i32_187 : i32
    %761 = arith.index_cast %760 : i32 to index
    %c0_188 = arith.constant 0 : index
    %762 = vector.load %arg13[%761, %c0_188] : memref<56x128xf32, #tpu.memory_space<vmem>>, vector<2x128xf32>
    %763 = arith.truncf %757 : vector<2x32xf32> to vector<2x32xbf16>
    %cst_189 = arith.constant dense<0.000000e+00> : vector<2x128xf32>
    %764 = tpu.matmul %763, %659, %cst_189 {dimension_numbers = #tpu.dot_dimension_numbers<[1], [0], [0], [1], [0, 0, 1, 1], [], []>} : vector<2x32xbf16>, vector<32x128xbf16>, vector<2x128xf32> -> vector<2x128xf32>
    %765 = arith.addf %762, %764 : vector<2x128xf32>
    %766 = arith.negf %765 : vector<2x128xf32>
    %767 = math.exp %766 : vector<2x128xf32>
    %cst_190 = arith.constant 1.000000e+00 : f32
    %768 = vector.broadcast %cst_190 : f32 to vector<2x128xf32>
    %769 = arith.addf %768, %767 : vector<2x128xf32>
    %770 = arith.divf %768, %769 : vector<2x128xf32>
    %771 = math.tanh %765 : vector<2x128xf32>
    %772 = vector.extract_strided_slice %770 {offsets = [0, 0], sizes = [2, 32], strides = [1, 1]} : vector<2x128xf32> to vector<2x32xf32>
    %773 = vector.extract_strided_slice %770 {offsets = [0, 32], sizes = [2, 32], strides = [1, 1]} : vector<2x128xf32> to vector<2x32xf32>
    %774 = vector.extract_strided_slice %771 {offsets = [0, 64], sizes = [2, 32], strides = [1, 1]} : vector<2x128xf32> to vector<2x32xf32>
    %775 = vector.extract_strided_slice %770 {offsets = [0, 96], sizes = [2, 32], strides = [1, 1]} : vector<2x128xf32> to vector<2x32xf32>
    %776 = arith.mulf %773, %755 : vector<2x32xf32>
    %777 = arith.mulf %772, %774 : vector<2x32xf32>
    %778 = arith.addf %776, %777 : vector<2x32xf32>
    %779 = math.tanh %778 : vector<2x32xf32>
    %780 = arith.mulf %775, %779 : vector<2x32xf32>
    %781 = arith.index_cast %760 : i32 to index
    %c0_191 = arith.constant 0 : index
    %782 = vector.load %arg14[%781, %c0_191] : memref<56x32xf32, #tpu.memory_space<vmem>>, vector<2x32xf32>
    tpu.vector_store %arg14[%781, %c0_191], %780 {strides = array<i32>} : memref<56x32xf32, #tpu.memory_space<vmem>>, vector<2x32xf32>,
    %c5_i32_192 = arith.constant 5 : i32
    %c2_i32_193 = arith.constant 2 : i32
    %783 = arith.muli %c5_i32_192, %c2_i32_193 : i32
    %784 = arith.index_cast %783 : i32 to index
    %c0_194 = arith.constant 0 : index
    %785 = vector.load %arg13[%784, %c0_194] : memref<56x128xf32, #tpu.memory_space<vmem>>, vector<2x128xf32>
    %786 = arith.truncf %780 : vector<2x32xf32> to vector<2x32xbf16>
    %cst_195 = arith.constant dense<0.000000e+00> : vector<2x128xf32>
    %787 = tpu.matmul %786, %659, %cst_195 {dimension_numbers = #tpu.dot_dimension_numbers<[1], [0], [0], [1], [0, 0, 1, 1], [], []>} : vector<2x32xbf16>, vector<32x128xbf16>, vector<2x128xf32> -> vector<2x128xf32>
    %788 = arith.addf %785, %787 : vector<2x128xf32>
    %789 = arith.negf %788 : vector<2x128xf32>
    %790 = math.exp %789 : vector<2x128xf32>
    %cst_196 = arith.constant 1.000000e+00 : f32
    %791 = vector.broadcast %cst_196 : f32 to vector<2x128xf32>
    %792 = arith.addf %791, %790 : vector<2x128xf32>
    %793 = arith.divf %791, %792 : vector<2x128xf32>
    %794 = math.tanh %788 : vector<2x128xf32>
    %795 = vector.extract_strided_slice %793 {offsets = [0, 0], sizes = [2, 32], strides = [1, 1]} : vector<2x128xf32> to vector<2x32xf32>
    %796 = vector.extract_strided_slice %793 {offsets = [0, 32], sizes = [2, 32], strides = [1, 1]} : vector<2x128xf32> to vector<2x32xf32>
    %797 = vector.extract_strided_slice %794 {offsets = [0, 64], sizes = [2, 32], strides = [1, 1]} : vector<2x128xf32> to vector<2x32xf32>
    %798 = vector.extract_strided_slice %793 {offsets = [0, 96], sizes = [2, 32], strides = [1, 1]} : vector<2x128xf32> to vector<2x32xf32>
    %799 = arith.mulf %796, %778 : vector<2x32xf32>
    %800 = arith.mulf %795, %797 : vector<2x32xf32>
    %801 = arith.addf %799, %800 : vector<2x32xf32>
    %802 = math.tanh %801 : vector<2x32xf32>
    %803 = arith.mulf %798, %802 : vector<2x32xf32>
    %804 = arith.index_cast %783 : i32 to index
    %c0_197 = arith.constant 0 : index
    %805 = vector.load %arg14[%804, %c0_197] : memref<56x32xf32, #tpu.memory_space<vmem>>, vector<2x32xf32>
    tpu.vector_store %arg14[%804, %c0_197], %803 {strides = array<i32>} : memref<56x32xf32, #tpu.memory_space<vmem>>, vector<2x32xf32>,
    %c6_i32_198 = arith.constant 6 : i32
    %c2_i32_199 = arith.constant 2 : i32
    %806 = arith.muli %c6_i32_198, %c2_i32_199 : i32
    %807 = arith.index_cast %806 : i32 to index
    %c0_200 = arith.constant 0 : index
    %808 = vector.load %arg13[%807, %c0_200] : memref<56x128xf32, #tpu.memory_space<vmem>>, vector<2x128xf32>
    %809 = arith.truncf %803 : vector<2x32xf32> to vector<2x32xbf16>
    %cst_201 = arith.constant dense<0.000000e+00> : vector<2x128xf32>
    %810 = tpu.matmul %809, %659, %cst_201 {dimension_numbers = #tpu.dot_dimension_numbers<[1], [0], [0], [1], [0, 0, 1, 1], [], []>} : vector<2x32xbf16>, vector<32x128xbf16>, vector<2x128xf32> -> vector<2x128xf32>
    %811 = arith.addf %808, %810 : vector<2x128xf32>
    %812 = arith.negf %811 : vector<2x128xf32>
    %813 = math.exp %812 : vector<2x128xf32>
    %cst_202 = arith.constant 1.000000e+00 : f32
    %814 = vector.broadcast %cst_202 : f32 to vector<2x128xf32>
    %815 = arith.addf %814, %813 : vector<2x128xf32>
    %816 = arith.divf %814, %815 : vector<2x128xf32>
    %817 = math.tanh %811 : vector<2x128xf32>
    %818 = vector.extract_strided_slice %816 {offsets = [0, 0], sizes = [2, 32], strides = [1, 1]} : vector<2x128xf32> to vector<2x32xf32>
    %819 = vector.extract_strided_slice %816 {offsets = [0, 32], sizes = [2, 32], strides = [1, 1]} : vector<2x128xf32> to vector<2x32xf32>
    %820 = vector.extract_strided_slice %817 {offsets = [0, 64], sizes = [2, 32], strides = [1, 1]} : vector<2x128xf32> to vector<2x32xf32>
    %821 = vector.extract_strided_slice %816 {offsets = [0, 96], sizes = [2, 32], strides = [1, 1]} : vector<2x128xf32> to vector<2x32xf32>
    %822 = arith.mulf %819, %801 : vector<2x32xf32>
    %823 = arith.mulf %818, %820 : vector<2x32xf32>
    %824 = arith.addf %822, %823 : vector<2x32xf32>
    %825 = math.tanh %824 : vector<2x32xf32>
    %826 = arith.mulf %821, %825 : vector<2x32xf32>
    %827 = arith.index_cast %806 : i32 to index
    %c0_203 = arith.constant 0 : index
    %828 = vector.load %arg14[%827, %c0_203] : memref<56x32xf32, #tpu.memory_space<vmem>>, vector<2x32xf32>
    tpu.vector_store %arg14[%827, %c0_203], %826 {strides = array<i32>} : memref<56x32xf32, #tpu.memory_space<vmem>>, vector<2x32xf32>,
    %c7_i32_204 = arith.constant 7 : i32
    %c2_i32_205 = arith.constant 2 : i32
    %829 = arith.muli %c7_i32_204, %c2_i32_205 : i32
    %830 = arith.index_cast %829 : i32 to index
    %c0_206 = arith.constant 0 : index
    %831 = vector.load %arg13[%830, %c0_206] : memref<56x128xf32, #tpu.memory_space<vmem>>, vector<2x128xf32>
    %832 = arith.truncf %826 : vector<2x32xf32> to vector<2x32xbf16>
    %cst_207 = arith.constant dense<0.000000e+00> : vector<2x128xf32>
    %833 = tpu.matmul %832, %659, %cst_207 {dimension_numbers = #tpu.dot_dimension_numbers<[1], [0], [0], [1], [0, 0, 1, 1], [], []>} : vector<2x32xbf16>, vector<32x128xbf16>, vector<2x128xf32> -> vector<2x128xf32>
    %834 = arith.addf %831, %833 : vector<2x128xf32>
    %835 = arith.negf %834 : vector<2x128xf32>
    %836 = math.exp %835 : vector<2x128xf32>
    %cst_208 = arith.constant 1.000000e+00 : f32
    %837 = vector.broadcast %cst_208 : f32 to vector<2x128xf32>
    %838 = arith.addf %837, %836 : vector<2x128xf32>
    %839 = arith.divf %837, %838 : vector<2x128xf32>
    %840 = math.tanh %834 : vector<2x128xf32>
    %841 = vector.extract_strided_slice %839 {offsets = [0, 0], sizes = [2, 32], strides = [1, 1]} : vector<2x128xf32> to vector<2x32xf32>
    %842 = vector.extract_strided_slice %839 {offsets = [0, 32], sizes = [2, 32], strides = [1, 1]} : vector<2x128xf32> to vector<2x32xf32>
    %843 = vector.extract_strided_slice %840 {offsets = [0, 64], sizes = [2, 32], strides = [1, 1]} : vector<2x128xf32> to vector<2x32xf32>
    %844 = vector.extract_strided_slice %839 {offsets = [0, 96], sizes = [2, 32], strides = [1, 1]} : vector<2x128xf32> to vector<2x32xf32>
    %845 = arith.mulf %842, %824 : vector<2x32xf32>
    %846 = arith.mulf %841, %843 : vector<2x32xf32>
    %847 = arith.addf %845, %846 : vector<2x32xf32>
    %848 = math.tanh %847 : vector<2x32xf32>
    %849 = arith.mulf %844, %848 : vector<2x32xf32>
    %850 = arith.index_cast %829 : i32 to index
    %c0_209 = arith.constant 0 : index
    %851 = vector.load %arg14[%850, %c0_209] : memref<56x32xf32, #tpu.memory_space<vmem>>, vector<2x32xf32>
    tpu.vector_store %arg14[%850, %c0_209], %849 {strides = array<i32>} : memref<56x32xf32, #tpu.memory_space<vmem>>, vector<2x32xf32>,
    %c8_i32_210 = arith.constant 8 : i32
    %c2_i32_211 = arith.constant 2 : i32
    %852 = arith.muli %c8_i32_210, %c2_i32_211 : i32
    %853 = arith.index_cast %852 : i32 to index
    %c0_212 = arith.constant 0 : index
    %854 = vector.load %arg13[%853, %c0_212] : memref<56x128xf32, #tpu.memory_space<vmem>>, vector<2x128xf32>
    %855 = arith.truncf %849 : vector<2x32xf32> to vector<2x32xbf16>
    %cst_213 = arith.constant dense<0.000000e+00> : vector<2x128xf32>
    %856 = tpu.matmul %855, %659, %cst_213 {dimension_numbers = #tpu.dot_dimension_numbers<[1], [0], [0], [1], [0, 0, 1, 1], [], []>} : vector<2x32xbf16>, vector<32x128xbf16>, vector<2x128xf32> -> vector<2x128xf32>
    %857 = arith.addf %854, %856 : vector<2x128xf32>
    %858 = arith.negf %857 : vector<2x128xf32>
    %859 = math.exp %858 : vector<2x128xf32>
    %cst_214 = arith.constant 1.000000e+00 : f32
    %860 = vector.broadcast %cst_214 : f32 to vector<2x128xf32>
    %861 = arith.addf %860, %859 : vector<2x128xf32>
    %862 = arith.divf %860, %861 : vector<2x128xf32>
    %863 = math.tanh %857 : vector<2x128xf32>
    %864 = vector.extract_strided_slice %862 {offsets = [0, 0], sizes = [2, 32], strides = [1, 1]} : vector<2x128xf32> to vector<2x32xf32>
    %865 = vector.extract_strided_slice %862 {offsets = [0, 32], sizes = [2, 32], strides = [1, 1]} : vector<2x128xf32> to vector<2x32xf32>
    %866 = vector.extract_strided_slice %863 {offsets = [0, 64], sizes = [2, 32], strides = [1, 1]} : vector<2x128xf32> to vector<2x32xf32>
    %867 = vector.extract_strided_slice %862 {offsets = [0, 96], sizes = [2, 32], strides = [1, 1]} : vector<2x128xf32> to vector<2x32xf32>
    %868 = arith.mulf %865, %847 : vector<2x32xf32>
    %869 = arith.mulf %864, %866 : vector<2x32xf32>
    %870 = arith.addf %868, %869 : vector<2x32xf32>
    %871 = math.tanh %870 : vector<2x32xf32>
    %872 = arith.mulf %867, %871 : vector<2x32xf32>
    %873 = arith.index_cast %852 : i32 to index
    %c0_215 = arith.constant 0 : index
    %874 = vector.load %arg14[%873, %c0_215] : memref<56x32xf32, #tpu.memory_space<vmem>>, vector<2x32xf32>
    tpu.vector_store %arg14[%873, %c0_215], %872 {strides = array<i32>} : memref<56x32xf32, #tpu.memory_space<vmem>>, vector<2x32xf32>,
    %c9_i32_216 = arith.constant 9 : i32
    %c2_i32_217 = arith.constant 2 : i32
    %875 = arith.muli %c9_i32_216, %c2_i32_217 : i32
    %876 = arith.index_cast %875 : i32 to index
    %c0_218 = arith.constant 0 : index
    %877 = vector.load %arg13[%876, %c0_218] : memref<56x128xf32, #tpu.memory_space<vmem>>, vector<2x128xf32>
    %878 = arith.truncf %872 : vector<2x32xf32> to vector<2x32xbf16>
    %cst_219 = arith.constant dense<0.000000e+00> : vector<2x128xf32>
    %879 = tpu.matmul %878, %659, %cst_219 {dimension_numbers = #tpu.dot_dimension_numbers<[1], [0], [0], [1], [0, 0, 1, 1], [], []>} : vector<2x32xbf16>, vector<32x128xbf16>, vector<2x128xf32> -> vector<2x128xf32>
    %880 = arith.addf %877, %879 : vector<2x128xf32>
    %881 = arith.negf %880 : vector<2x128xf32>
    %882 = math.exp %881 : vector<2x128xf32>
    %cst_220 = arith.constant 1.000000e+00 : f32
    %883 = vector.broadcast %cst_220 : f32 to vector<2x128xf32>
    %884 = arith.addf %883, %882 : vector<2x128xf32>
    %885 = arith.divf %883, %884 : vector<2x128xf32>
    %886 = math.tanh %880 : vector<2x128xf32>
    %887 = vector.extract_strided_slice %885 {offsets = [0, 0], sizes = [2, 32], strides = [1, 1]} : vector<2x128xf32> to vector<2x32xf32>
    %888 = vector.extract_strided_slice %885 {offsets = [0, 32], sizes = [2, 32], strides = [1, 1]} : vector<2x128xf32> to vector<2x32xf32>
    %889 = vector.extract_strided_slice %886 {offsets = [0, 64], sizes = [2, 32], strides = [1, 1]} : vector<2x128xf32> to vector<2x32xf32>
    %890 = vector.extract_strided_slice %885 {offsets = [0, 96], sizes = [2, 32], strides = [1, 1]} : vector<2x128xf32> to vector<2x32xf32>
    %891 = arith.mulf %888, %870 : vector<2x32xf32>
    %892 = arith.mulf %887, %889 : vector<2x32xf32>
    %893 = arith.addf %891, %892 : vector<2x32xf32>
    %894 = math.tanh %893 : vector<2x32xf32>
    %895 = arith.mulf %890, %894 : vector<2x32xf32>
    %896 = arith.index_cast %875 : i32 to index
    %c0_221 = arith.constant 0 : index
    %897 = vector.load %arg14[%896, %c0_221] : memref<56x32xf32, #tpu.memory_space<vmem>>, vector<2x32xf32>
    tpu.vector_store %arg14[%896, %c0_221], %895 {strides = array<i32>} : memref<56x32xf32, #tpu.memory_space<vmem>>, vector<2x32xf32>,
    %c10_i32_222 = arith.constant 10 : i32
    %c2_i32_223 = arith.constant 2 : i32
    %898 = arith.muli %c10_i32_222, %c2_i32_223 : i32
    %899 = arith.index_cast %898 : i32 to index
    %c0_224 = arith.constant 0 : index
    %900 = vector.load %arg13[%899, %c0_224] : memref<56x128xf32, #tpu.memory_space<vmem>>, vector<2x128xf32>
    %901 = arith.truncf %895 : vector<2x32xf32> to vector<2x32xbf16>
    %cst_225 = arith.constant dense<0.000000e+00> : vector<2x128xf32>
    %902 = tpu.matmul %901, %659, %cst_225 {dimension_numbers = #tpu.dot_dimension_numbers<[1], [0], [0], [1], [0, 0, 1, 1], [], []>} : vector<2x32xbf16>, vector<32x128xbf16>, vector<2x128xf32> -> vector<2x128xf32>
    %903 = arith.addf %900, %902 : vector<2x128xf32>
    %904 = arith.negf %903 : vector<2x128xf32>
    %905 = math.exp %904 : vector<2x128xf32>
    %cst_226 = arith.constant 1.000000e+00 : f32
    %906 = vector.broadcast %cst_226 : f32 to vector<2x128xf32>
    %907 = arith.addf %906, %905 : vector<2x128xf32>
    %908 = arith.divf %906, %907 : vector<2x128xf32>
    %909 = math.tanh %903 : vector<2x128xf32>
    %910 = vector.extract_strided_slice %908 {offsets = [0, 0], sizes = [2, 32], strides = [1, 1]} : vector<2x128xf32> to vector<2x32xf32>
    %911 = vector.extract_strided_slice %908 {offsets = [0, 32], sizes = [2, 32], strides = [1, 1]} : vector<2x128xf32> to vector<2x32xf32>
    %912 = vector.extract_strided_slice %909 {offsets = [0, 64], sizes = [2, 32], strides = [1, 1]} : vector<2x128xf32> to vector<2x32xf32>
    %913 = vector.extract_strided_slice %908 {offsets = [0, 96], sizes = [2, 32], strides = [1, 1]} : vector<2x128xf32> to vector<2x32xf32>
    %914 = arith.mulf %911, %893 : vector<2x32xf32>
    %915 = arith.mulf %910, %912 : vector<2x32xf32>
    %916 = arith.addf %914, %915 : vector<2x32xf32>
    %917 = math.tanh %916 : vector<2x32xf32>
    %918 = arith.mulf %913, %917 : vector<2x32xf32>
    %919 = arith.index_cast %898 : i32 to index
    %c0_227 = arith.constant 0 : index
    %920 = vector.load %arg14[%919, %c0_227] : memref<56x32xf32, #tpu.memory_space<vmem>>, vector<2x32xf32>
    tpu.vector_store %arg14[%919, %c0_227], %918 {strides = array<i32>} : memref<56x32xf32, #tpu.memory_space<vmem>>, vector<2x32xf32>,
    %c11_i32_228 = arith.constant 11 : i32
    %c2_i32_229 = arith.constant 2 : i32
    %921 = arith.muli %c11_i32_228, %c2_i32_229 : i32
    %922 = arith.index_cast %921 : i32 to index
    %c0_230 = arith.constant 0 : index
    %923 = vector.load %arg13[%922, %c0_230] : memref<56x128xf32, #tpu.memory_space<vmem>>, vector<2x128xf32>
    %924 = arith.truncf %918 : vector<2x32xf32> to vector<2x32xbf16>
    %cst_231 = arith.constant dense<0.000000e+00> : vector<2x128xf32>
    %925 = tpu.matmul %924, %659, %cst_231 {dimension_numbers = #tpu.dot_dimension_numbers<[1], [0], [0], [1], [0, 0, 1, 1], [], []>} : vector<2x32xbf16>, vector<32x128xbf16>, vector<2x128xf32> -> vector<2x128xf32>
    %926 = arith.addf %923, %925 : vector<2x128xf32>
    %927 = arith.negf %926 : vector<2x128xf32>
    %928 = math.exp %927 : vector<2x128xf32>
    %cst_232 = arith.constant 1.000000e+00 : f32
    %929 = vector.broadcast %cst_232 : f32 to vector<2x128xf32>
    %930 = arith.addf %929, %928 : vector<2x128xf32>
    %931 = arith.divf %929, %930 : vector<2x128xf32>
    %932 = math.tanh %926 : vector<2x128xf32>
    %933 = vector.extract_strided_slice %931 {offsets = [0, 0], sizes = [2, 32], strides = [1, 1]} : vector<2x128xf32> to vector<2x32xf32>
    %934 = vector.extract_strided_slice %931 {offsets = [0, 32], sizes = [2, 32], strides = [1, 1]} : vector<2x128xf32> to vector<2x32xf32>
    %935 = vector.extract_strided_slice %932 {offsets = [0, 64], sizes = [2, 32], strides = [1, 1]} : vector<2x128xf32> to vector<2x32xf32>
    %936 = vector.extract_strided_slice %931 {offsets = [0, 96], sizes = [2, 32], strides = [1, 1]} : vector<2x128xf32> to vector<2x32xf32>
    %937 = arith.mulf %934, %916 : vector<2x32xf32>
    %938 = arith.mulf %933, %935 : vector<2x32xf32>
    %939 = arith.addf %937, %938 : vector<2x32xf32>
    %940 = math.tanh %939 : vector<2x32xf32>
    %941 = arith.mulf %936, %940 : vector<2x32xf32>
    %942 = arith.index_cast %921 : i32 to index
    %c0_233 = arith.constant 0 : index
    %943 = vector.load %arg14[%942, %c0_233] : memref<56x32xf32, #tpu.memory_space<vmem>>, vector<2x32xf32>
    tpu.vector_store %arg14[%942, %c0_233], %941 {strides = array<i32>} : memref<56x32xf32, #tpu.memory_space<vmem>>, vector<2x32xf32>,
    %c12_i32_234 = arith.constant 12 : i32
    %c2_i32_235 = arith.constant 2 : i32
    %944 = arith.muli %c12_i32_234, %c2_i32_235 : i32
    %945 = arith.index_cast %944 : i32 to index
    %c0_236 = arith.constant 0 : index
    %946 = vector.load %arg13[%945, %c0_236] : memref<56x128xf32, #tpu.memory_space<vmem>>, vector<2x128xf32>
    %947 = arith.truncf %941 : vector<2x32xf32> to vector<2x32xbf16>
    %cst_237 = arith.constant dense<0.000000e+00> : vector<2x128xf32>
    %948 = tpu.matmul %947, %659, %cst_237 {dimension_numbers = #tpu.dot_dimension_numbers<[1], [0], [0], [1], [0, 0, 1, 1], [], []>} : vector<2x32xbf16>, vector<32x128xbf16>, vector<2x128xf32> -> vector<2x128xf32>
    %949 = arith.addf %946, %948 : vector<2x128xf32>
    %950 = arith.negf %949 : vector<2x128xf32>
    %951 = math.exp %950 : vector<2x128xf32>
    %cst_238 = arith.constant 1.000000e+00 : f32
    %952 = vector.broadcast %cst_238 : f32 to vector<2x128xf32>
    %953 = arith.addf %952, %951 : vector<2x128xf32>
    %954 = arith.divf %952, %953 : vector<2x128xf32>
    %955 = math.tanh %949 : vector<2x128xf32>
    %956 = vector.extract_strided_slice %954 {offsets = [0, 0], sizes = [2, 32], strides = [1, 1]} : vector<2x128xf32> to vector<2x32xf32>
    %957 = vector.extract_strided_slice %954 {offsets = [0, 32], sizes = [2, 32], strides = [1, 1]} : vector<2x128xf32> to vector<2x32xf32>
    %958 = vector.extract_strided_slice %955 {offsets = [0, 64], sizes = [2, 32], strides = [1, 1]} : vector<2x128xf32> to vector<2x32xf32>
    %959 = vector.extract_strided_slice %954 {offsets = [0, 96], sizes = [2, 32], strides = [1, 1]} : vector<2x128xf32> to vector<2x32xf32>
    %960 = arith.mulf %957, %939 : vector<2x32xf32>
    %961 = arith.mulf %956, %958 : vector<2x32xf32>
    %962 = arith.addf %960, %961 : vector<2x32xf32>
    %963 = math.tanh %962 : vector<2x32xf32>
    %964 = arith.mulf %959, %963 : vector<2x32xf32>
    %965 = arith.index_cast %944 : i32 to index
    %c0_239 = arith.constant 0 : index
    %966 = vector.load %arg14[%965, %c0_239] : memref<56x32xf32, #tpu.memory_space<vmem>>, vector<2x32xf32>
    tpu.vector_store %arg14[%965, %c0_239], %964 {strides = array<i32>} : memref<56x32xf32, #tpu.memory_space<vmem>>, vector<2x32xf32>,
    %c13_i32_240 = arith.constant 13 : i32
    %c2_i32_241 = arith.constant 2 : i32
    %967 = arith.muli %c13_i32_240, %c2_i32_241 : i32
    %968 = arith.index_cast %967 : i32 to index
    %c0_242 = arith.constant 0 : index
    %969 = vector.load %arg13[%968, %c0_242] : memref<56x128xf32, #tpu.memory_space<vmem>>, vector<2x128xf32>
    %970 = arith.truncf %964 : vector<2x32xf32> to vector<2x32xbf16>
    %cst_243 = arith.constant dense<0.000000e+00> : vector<2x128xf32>
    %971 = tpu.matmul %970, %659, %cst_243 {dimension_numbers = #tpu.dot_dimension_numbers<[1], [0], [0], [1], [0, 0, 1, 1], [], []>} : vector<2x32xbf16>, vector<32x128xbf16>, vector<2x128xf32> -> vector<2x128xf32>
    %972 = arith.addf %969, %971 : vector<2x128xf32>
    %973 = arith.negf %972 : vector<2x128xf32>
    %974 = math.exp %973 : vector<2x128xf32>
    %cst_244 = arith.constant 1.000000e+00 : f32
    %975 = vector.broadcast %cst_244 : f32 to vector<2x128xf32>
    %976 = arith.addf %975, %974 : vector<2x128xf32>
    %977 = arith.divf %975, %976 : vector<2x128xf32>
    %978 = math.tanh %972 : vector<2x128xf32>
    %979 = vector.extract_strided_slice %977 {offsets = [0, 0], sizes = [2, 32], strides = [1, 1]} : vector<2x128xf32> to vector<2x32xf32>
    %980 = vector.extract_strided_slice %977 {offsets = [0, 32], sizes = [2, 32], strides = [1, 1]} : vector<2x128xf32> to vector<2x32xf32>
    %981 = vector.extract_strided_slice %978 {offsets = [0, 64], sizes = [2, 32], strides = [1, 1]} : vector<2x128xf32> to vector<2x32xf32>
    %982 = vector.extract_strided_slice %977 {offsets = [0, 96], sizes = [2, 32], strides = [1, 1]} : vector<2x128xf32> to vector<2x32xf32>
    %983 = arith.mulf %980, %962 : vector<2x32xf32>
    %984 = arith.mulf %979, %981 : vector<2x32xf32>
    %985 = arith.addf %983, %984 : vector<2x32xf32>
    %986 = math.tanh %985 : vector<2x32xf32>
    %987 = arith.mulf %982, %986 : vector<2x32xf32>
    %988 = arith.index_cast %967 : i32 to index
    %c0_245 = arith.constant 0 : index
    %989 = vector.load %arg14[%988, %c0_245] : memref<56x32xf32, #tpu.memory_space<vmem>>, vector<2x32xf32>
    tpu.vector_store %arg14[%988, %c0_245], %987 {strides = array<i32>} : memref<56x32xf32, #tpu.memory_space<vmem>>, vector<2x32xf32>,
    %c14_i32_246 = arith.constant 14 : i32
    %c2_i32_247 = arith.constant 2 : i32
    %990 = arith.muli %c14_i32_246, %c2_i32_247 : i32
    %991 = arith.index_cast %990 : i32 to index
    %c0_248 = arith.constant 0 : index
    %992 = vector.load %arg13[%991, %c0_248] : memref<56x128xf32, #tpu.memory_space<vmem>>, vector<2x128xf32>
    %993 = arith.truncf %987 : vector<2x32xf32> to vector<2x32xbf16>
    %cst_249 = arith.constant dense<0.000000e+00> : vector<2x128xf32>
    %994 = tpu.matmul %993, %659, %cst_249 {dimension_numbers = #tpu.dot_dimension_numbers<[1], [0], [0], [1], [0, 0, 1, 1], [], []>} : vector<2x32xbf16>, vector<32x128xbf16>, vector<2x128xf32> -> vector<2x128xf32>
    %995 = arith.addf %992, %994 : vector<2x128xf32>
    %996 = arith.negf %995 : vector<2x128xf32>
    %997 = math.exp %996 : vector<2x128xf32>
    %cst_250 = arith.constant 1.000000e+00 : f32
    %998 = vector.broadcast %cst_250 : f32 to vector<2x128xf32>
    %999 = arith.addf %998, %997 : vector<2x128xf32>
    %1000 = arith.divf %998, %999 : vector<2x128xf32>
    %1001 = math.tanh %995 : vector<2x128xf32>
    %1002 = vector.extract_strided_slice %1000 {offsets = [0, 0], sizes = [2, 32], strides = [1, 1]} : vector<2x128xf32> to vector<2x32xf32>
    %1003 = vector.extract_strided_slice %1000 {offsets = [0, 32], sizes = [2, 32], strides = [1, 1]} : vector<2x128xf32> to vector<2x32xf32>
    %1004 = vector.extract_strided_slice %1001 {offsets = [0, 64], sizes = [2, 32], strides = [1, 1]} : vector<2x128xf32> to vector<2x32xf32>
    %1005 = vector.extract_strided_slice %1000 {offsets = [0, 96], sizes = [2, 32], strides = [1, 1]} : vector<2x128xf32> to vector<2x32xf32>
    %1006 = arith.mulf %1003, %985 : vector<2x32xf32>
    %1007 = arith.mulf %1002, %1004 : vector<2x32xf32>
    %1008 = arith.addf %1006, %1007 : vector<2x32xf32>
    %1009 = math.tanh %1008 : vector<2x32xf32>
    %1010 = arith.mulf %1005, %1009 : vector<2x32xf32>
    %1011 = arith.index_cast %990 : i32 to index
    %c0_251 = arith.constant 0 : index
    %1012 = vector.load %arg14[%1011, %c0_251] : memref<56x32xf32, #tpu.memory_space<vmem>>, vector<2x32xf32>
    tpu.vector_store %arg14[%1011, %c0_251], %1010 {strides = array<i32>} : memref<56x32xf32, #tpu.memory_space<vmem>>, vector<2x32xf32>,
    %c15_i32_252 = arith.constant 15 : i32
    %c2_i32_253 = arith.constant 2 : i32
    %1013 = arith.muli %c15_i32_252, %c2_i32_253 : i32
    %1014 = arith.index_cast %1013 : i32 to index
    %c0_254 = arith.constant 0 : index
    %1015 = vector.load %arg13[%1014, %c0_254] : memref<56x128xf32, #tpu.memory_space<vmem>>, vector<2x128xf32>
    %1016 = arith.truncf %1010 : vector<2x32xf32> to vector<2x32xbf16>
    %cst_255 = arith.constant dense<0.000000e+00> : vector<2x128xf32>
    %1017 = tpu.matmul %1016, %659, %cst_255 {dimension_numbers = #tpu.dot_dimension_numbers<[1], [0], [0], [1], [0, 0, 1, 1], [], []>} : vector<2x32xbf16>, vector<32x128xbf16>, vector<2x128xf32> -> vector<2x128xf32>
    %1018 = arith.addf %1015, %1017 : vector<2x128xf32>
    %1019 = arith.negf %1018 : vector<2x128xf32>
    %1020 = math.exp %1019 : vector<2x128xf32>
    %cst_256 = arith.constant 1.000000e+00 : f32
    %1021 = vector.broadcast %cst_256 : f32 to vector<2x128xf32>
    %1022 = arith.addf %1021, %1020 : vector<2x128xf32>
    %1023 = arith.divf %1021, %1022 : vector<2x128xf32>
    %1024 = math.tanh %1018 : vector<2x128xf32>
    %1025 = vector.extract_strided_slice %1023 {offsets = [0, 0], sizes = [2, 32], strides = [1, 1]} : vector<2x128xf32> to vector<2x32xf32>
    %1026 = vector.extract_strided_slice %1023 {offsets = [0, 32], sizes = [2, 32], strides = [1, 1]} : vector<2x128xf32> to vector<2x32xf32>
    %1027 = vector.extract_strided_slice %1024 {offsets = [0, 64], sizes = [2, 32], strides = [1, 1]} : vector<2x128xf32> to vector<2x32xf32>
    %1028 = vector.extract_strided_slice %1023 {offsets = [0, 96], sizes = [2, 32], strides = [1, 1]} : vector<2x128xf32> to vector<2x32xf32>
    %1029 = arith.mulf %1026, %1008 : vector<2x32xf32>
    %1030 = arith.mulf %1025, %1027 : vector<2x32xf32>
    %1031 = arith.addf %1029, %1030 : vector<2x32xf32>
    %1032 = math.tanh %1031 : vector<2x32xf32>
    %1033 = arith.mulf %1028, %1032 : vector<2x32xf32>
    %1034 = arith.index_cast %1013 : i32 to index
    %c0_257 = arith.constant 0 : index
    %1035 = vector.load %arg14[%1034, %c0_257] : memref<56x32xf32, #tpu.memory_space<vmem>>, vector<2x32xf32>
    tpu.vector_store %arg14[%1034, %c0_257], %1033 {strides = array<i32>} : memref<56x32xf32, #tpu.memory_space<vmem>>, vector<2x32xf32>,
    %c16_i32_258 = arith.constant 16 : i32
    %c2_i32_259 = arith.constant 2 : i32
    %1036 = arith.muli %c16_i32_258, %c2_i32_259 : i32
    %1037 = arith.index_cast %1036 : i32 to index
    %c0_260 = arith.constant 0 : index
    %1038 = vector.load %arg13[%1037, %c0_260] : memref<56x128xf32, #tpu.memory_space<vmem>>, vector<2x128xf32>
    %1039 = arith.truncf %1033 : vector<2x32xf32> to vector<2x32xbf16>
    %cst_261 = arith.constant dense<0.000000e+00> : vector<2x128xf32>
    %1040 = tpu.matmul %1039, %659, %cst_261 {dimension_numbers = #tpu.dot_dimension_numbers<[1], [0], [0], [1], [0, 0, 1, 1], [], []>} : vector<2x32xbf16>, vector<32x128xbf16>, vector<2x128xf32> -> vector<2x128xf32>
    %1041 = arith.addf %1038, %1040 : vector<2x128xf32>
    %1042 = arith.negf %1041 : vector<2x128xf32>
    %1043 = math.exp %1042 : vector<2x128xf32>
    %cst_262 = arith.constant 1.000000e+00 : f32
    %1044 = vector.broadcast %cst_262 : f32 to vector<2x128xf32>
    %1045 = arith.addf %1044, %1043 : vector<2x128xf32>
    %1046 = arith.divf %1044, %1045 : vector<2x128xf32>
    %1047 = math.tanh %1041 : vector<2x128xf32>
    %1048 = vector.extract_strided_slice %1046 {offsets = [0, 0], sizes = [2, 32], strides = [1, 1]} : vector<2x128xf32> to vector<2x32xf32>
    %1049 = vector.extract_strided_slice %1046 {offsets = [0, 32], sizes = [2, 32], strides = [1, 1]} : vector<2x128xf32> to vector<2x32xf32>
    %1050 = vector.extract_strided_slice %1047 {offsets = [0, 64], sizes = [2, 32], strides = [1, 1]} : vector<2x128xf32> to vector<2x32xf32>
    %1051 = vector.extract_strided_slice %1046 {offsets = [0, 96], sizes = [2, 32], strides = [1, 1]} : vector<2x128xf32> to vector<2x32xf32>
    %1052 = arith.mulf %1049, %1031 : vector<2x32xf32>
    %1053 = arith.mulf %1048, %1050 : vector<2x32xf32>
    %1054 = arith.addf %1052, %1053 : vector<2x32xf32>
    %1055 = math.tanh %1054 : vector<2x32xf32>
    %1056 = arith.mulf %1051, %1055 : vector<2x32xf32>
    %1057 = arith.index_cast %1036 : i32 to index
    %c0_263 = arith.constant 0 : index
    %1058 = vector.load %arg14[%1057, %c0_263] : memref<56x32xf32, #tpu.memory_space<vmem>>, vector<2x32xf32>
    tpu.vector_store %arg14[%1057, %c0_263], %1056 {strides = array<i32>} : memref<56x32xf32, #tpu.memory_space<vmem>>, vector<2x32xf32>,
    %c17_i32_264 = arith.constant 17 : i32
    %c2_i32_265 = arith.constant 2 : i32
    %1059 = arith.muli %c17_i32_264, %c2_i32_265 : i32
    %1060 = arith.index_cast %1059 : i32 to index
    %c0_266 = arith.constant 0 : index
    %1061 = vector.load %arg13[%1060, %c0_266] : memref<56x128xf32, #tpu.memory_space<vmem>>, vector<2x128xf32>
    %1062 = arith.truncf %1056 : vector<2x32xf32> to vector<2x32xbf16>
    %cst_267 = arith.constant dense<0.000000e+00> : vector<2x128xf32>
    %1063 = tpu.matmul %1062, %659, %cst_267 {dimension_numbers = #tpu.dot_dimension_numbers<[1], [0], [0], [1], [0, 0, 1, 1], [], []>} : vector<2x32xbf16>, vector<32x128xbf16>, vector<2x128xf32> -> vector<2x128xf32>
    %1064 = arith.addf %1061, %1063 : vector<2x128xf32>
    %1065 = arith.negf %1064 : vector<2x128xf32>
    %1066 = math.exp %1065 : vector<2x128xf32>
    %cst_268 = arith.constant 1.000000e+00 : f32
    %1067 = vector.broadcast %cst_268 : f32 to vector<2x128xf32>
    %1068 = arith.addf %1067, %1066 : vector<2x128xf32>
    %1069 = arith.divf %1067, %1068 : vector<2x128xf32>
    %1070 = math.tanh %1064 : vector<2x128xf32>
    %1071 = vector.extract_strided_slice %1069 {offsets = [0, 0], sizes = [2, 32], strides = [1, 1]} : vector<2x128xf32> to vector<2x32xf32>
    %1072 = vector.extract_strided_slice %1069 {offsets = [0, 32], sizes = [2, 32], strides = [1, 1]} : vector<2x128xf32> to vector<2x32xf32>
    %1073 = vector.extract_strided_slice %1070 {offsets = [0, 64], sizes = [2, 32], strides = [1, 1]} : vector<2x128xf32> to vector<2x32xf32>
    %1074 = vector.extract_strided_slice %1069 {offsets = [0, 96], sizes = [2, 32], strides = [1, 1]} : vector<2x128xf32> to vector<2x32xf32>
    %1075 = arith.mulf %1072, %1054 : vector<2x32xf32>
    %1076 = arith.mulf %1071, %1073 : vector<2x32xf32>
    %1077 = arith.addf %1075, %1076 : vector<2x32xf32>
    %1078 = math.tanh %1077 : vector<2x32xf32>
    %1079 = arith.mulf %1074, %1078 : vector<2x32xf32>
    %1080 = arith.index_cast %1059 : i32 to index
    %c0_269 = arith.constant 0 : index
    %1081 = vector.load %arg14[%1080, %c0_269] : memref<56x32xf32, #tpu.memory_space<vmem>>, vector<2x32xf32>
    tpu.vector_store %arg14[%1080, %c0_269], %1079 {strides = array<i32>} : memref<56x32xf32, #tpu.memory_space<vmem>>, vector<2x32xf32>,
    %c18_i32_270 = arith.constant 18 : i32
    %c2_i32_271 = arith.constant 2 : i32
    %1082 = arith.muli %c18_i32_270, %c2_i32_271 : i32
    %1083 = arith.index_cast %1082 : i32 to index
    %c0_272 = arith.constant 0 : index
    %1084 = vector.load %arg13[%1083, %c0_272] : memref<56x128xf32, #tpu.memory_space<vmem>>, vector<2x128xf32>
    %1085 = arith.truncf %1079 : vector<2x32xf32> to vector<2x32xbf16>
    %cst_273 = arith.constant dense<0.000000e+00> : vector<2x128xf32>
    %1086 = tpu.matmul %1085, %659, %cst_273 {dimension_numbers = #tpu.dot_dimension_numbers<[1], [0], [0], [1], [0, 0, 1, 1], [], []>} : vector<2x32xbf16>, vector<32x128xbf16>, vector<2x128xf32> -> vector<2x128xf32>
    %1087 = arith.addf %1084, %1086 : vector<2x128xf32>
    %1088 = arith.negf %1087 : vector<2x128xf32>
    %1089 = math.exp %1088 : vector<2x128xf32>
    %cst_274 = arith.constant 1.000000e+00 : f32
    %1090 = vector.broadcast %cst_274 : f32 to vector<2x128xf32>
    %1091 = arith.addf %1090, %1089 : vector<2x128xf32>
    %1092 = arith.divf %1090, %1091 : vector<2x128xf32>
    %1093 = math.tanh %1087 : vector<2x128xf32>
    %1094 = vector.extract_strided_slice %1092 {offsets = [0, 0], sizes = [2, 32], strides = [1, 1]} : vector<2x128xf32> to vector<2x32xf32>
    %1095 = vector.extract_strided_slice %1092 {offsets = [0, 32], sizes = [2, 32], strides = [1, 1]} : vector<2x128xf32> to vector<2x32xf32>
    %1096 = vector.extract_strided_slice %1093 {offsets = [0, 64], sizes = [2, 32], strides = [1, 1]} : vector<2x128xf32> to vector<2x32xf32>
    %1097 = vector.extract_strided_slice %1092 {offsets = [0, 96], sizes = [2, 32], strides = [1, 1]} : vector<2x128xf32> to vector<2x32xf32>
    %1098 = arith.mulf %1095, %1077 : vector<2x32xf32>
    %1099 = arith.mulf %1094, %1096 : vector<2x32xf32>
    %1100 = arith.addf %1098, %1099 : vector<2x32xf32>
    %1101 = math.tanh %1100 : vector<2x32xf32>
    %1102 = arith.mulf %1097, %1101 : vector<2x32xf32>
    %1103 = arith.index_cast %1082 : i32 to index
    %c0_275 = arith.constant 0 : index
    %1104 = vector.load %arg14[%1103, %c0_275] : memref<56x32xf32, #tpu.memory_space<vmem>>, vector<2x32xf32>
    tpu.vector_store %arg14[%1103, %c0_275], %1102 {strides = array<i32>} : memref<56x32xf32, #tpu.memory_space<vmem>>, vector<2x32xf32>,
    %c19_i32_276 = arith.constant 19 : i32
    %c2_i32_277 = arith.constant 2 : i32
    %1105 = arith.muli %c19_i32_276, %c2_i32_277 : i32
    %1106 = arith.index_cast %1105 : i32 to index
    %c0_278 = arith.constant 0 : index
    %1107 = vector.load %arg13[%1106, %c0_278] : memref<56x128xf32, #tpu.memory_space<vmem>>, vector<2x128xf32>
    %1108 = arith.truncf %1102 : vector<2x32xf32> to vector<2x32xbf16>
    %cst_279 = arith.constant dense<0.000000e+00> : vector<2x128xf32>
    %1109 = tpu.matmul %1108, %659, %cst_279 {dimension_numbers = #tpu.dot_dimension_numbers<[1], [0], [0], [1], [0, 0, 1, 1], [], []>} : vector<2x32xbf16>, vector<32x128xbf16>, vector<2x128xf32> -> vector<2x128xf32>
    %1110 = arith.addf %1107, %1109 : vector<2x128xf32>
    %1111 = arith.negf %1110 : vector<2x128xf32>
    %1112 = math.exp %1111 : vector<2x128xf32>
    %cst_280 = arith.constant 1.000000e+00 : f32
    %1113 = vector.broadcast %cst_280 : f32 to vector<2x128xf32>
    %1114 = arith.addf %1113, %1112 : vector<2x128xf32>
    %1115 = arith.divf %1113, %1114 : vector<2x128xf32>
    %1116 = math.tanh %1110 : vector<2x128xf32>
    %1117 = vector.extract_strided_slice %1115 {offsets = [0, 0], sizes = [2, 32], strides = [1, 1]} : vector<2x128xf32> to vector<2x32xf32>
    %1118 = vector.extract_strided_slice %1115 {offsets = [0, 32], sizes = [2, 32], strides = [1, 1]} : vector<2x128xf32> to vector<2x32xf32>
    %1119 = vector.extract_strided_slice %1116 {offsets = [0, 64], sizes = [2, 32], strides = [1, 1]} : vector<2x128xf32> to vector<2x32xf32>
    %1120 = vector.extract_strided_slice %1115 {offsets = [0, 96], sizes = [2, 32], strides = [1, 1]} : vector<2x128xf32> to vector<2x32xf32>
    %1121 = arith.mulf %1118, %1100 : vector<2x32xf32>
    %1122 = arith.mulf %1117, %1119 : vector<2x32xf32>
    %1123 = arith.addf %1121, %1122 : vector<2x32xf32>
    %1124 = math.tanh %1123 : vector<2x32xf32>
    %1125 = arith.mulf %1120, %1124 : vector<2x32xf32>
    %1126 = arith.index_cast %1105 : i32 to index
    %c0_281 = arith.constant 0 : index
    %1127 = vector.load %arg14[%1126, %c0_281] : memref<56x32xf32, #tpu.memory_space<vmem>>, vector<2x32xf32>
    tpu.vector_store %arg14[%1126, %c0_281], %1125 {strides = array<i32>} : memref<56x32xf32, #tpu.memory_space<vmem>>, vector<2x32xf32>,
    %c20_i32_282 = arith.constant 20 : i32
    %c2_i32_283 = arith.constant 2 : i32
    %1128 = arith.muli %c20_i32_282, %c2_i32_283 : i32
    %1129 = arith.index_cast %1128 : i32 to index
    %c0_284 = arith.constant 0 : index
    %1130 = vector.load %arg13[%1129, %c0_284] : memref<56x128xf32, #tpu.memory_space<vmem>>, vector<2x128xf32>
    %1131 = arith.truncf %1125 : vector<2x32xf32> to vector<2x32xbf16>
    %cst_285 = arith.constant dense<0.000000e+00> : vector<2x128xf32>
    %1132 = tpu.matmul %1131, %659, %cst_285 {dimension_numbers = #tpu.dot_dimension_numbers<[1], [0], [0], [1], [0, 0, 1, 1], [], []>} : vector<2x32xbf16>, vector<32x128xbf16>, vector<2x128xf32> -> vector<2x128xf32>
    %1133 = arith.addf %1130, %1132 : vector<2x128xf32>
    %1134 = arith.negf %1133 : vector<2x128xf32>
    %1135 = math.exp %1134 : vector<2x128xf32>
    %cst_286 = arith.constant 1.000000e+00 : f32
    %1136 = vector.broadcast %cst_286 : f32 to vector<2x128xf32>
    %1137 = arith.addf %1136, %1135 : vector<2x128xf32>
    %1138 = arith.divf %1136, %1137 : vector<2x128xf32>
    %1139 = math.tanh %1133 : vector<2x128xf32>
    %1140 = vector.extract_strided_slice %1138 {offsets = [0, 0], sizes = [2, 32], strides = [1, 1]} : vector<2x128xf32> to vector<2x32xf32>
    %1141 = vector.extract_strided_slice %1138 {offsets = [0, 32], sizes = [2, 32], strides = [1, 1]} : vector<2x128xf32> to vector<2x32xf32>
    %1142 = vector.extract_strided_slice %1139 {offsets = [0, 64], sizes = [2, 32], strides = [1, 1]} : vector<2x128xf32> to vector<2x32xf32>
    %1143 = vector.extract_strided_slice %1138 {offsets = [0, 96], sizes = [2, 32], strides = [1, 1]} : vector<2x128xf32> to vector<2x32xf32>
    %1144 = arith.mulf %1141, %1123 : vector<2x32xf32>
    %1145 = arith.mulf %1140, %1142 : vector<2x32xf32>
    %1146 = arith.addf %1144, %1145 : vector<2x32xf32>
    %1147 = math.tanh %1146 : vector<2x32xf32>
    %1148 = arith.mulf %1143, %1147 : vector<2x32xf32>
    %1149 = arith.index_cast %1128 : i32 to index
    %c0_287 = arith.constant 0 : index
    %1150 = vector.load %arg14[%1149, %c0_287] : memref<56x32xf32, #tpu.memory_space<vmem>>, vector<2x32xf32>
    tpu.vector_store %arg14[%1149, %c0_287], %1148 {strides = array<i32>} : memref<56x32xf32, #tpu.memory_space<vmem>>, vector<2x32xf32>,
    %c21_i32_288 = arith.constant 21 : i32
    %c2_i32_289 = arith.constant 2 : i32
    %1151 = arith.muli %c21_i32_288, %c2_i32_289 : i32
    %1152 = arith.index_cast %1151 : i32 to index
    %c0_290 = arith.constant 0 : index
    %1153 = vector.load %arg13[%1152, %c0_290] : memref<56x128xf32, #tpu.memory_space<vmem>>, vector<2x128xf32>
    %1154 = arith.truncf %1148 : vector<2x32xf32> to vector<2x32xbf16>
    %cst_291 = arith.constant dense<0.000000e+00> : vector<2x128xf32>
    %1155 = tpu.matmul %1154, %659, %cst_291 {dimension_numbers = #tpu.dot_dimension_numbers<[1], [0], [0], [1], [0, 0, 1, 1], [], []>} : vector<2x32xbf16>, vector<32x128xbf16>, vector<2x128xf32> -> vector<2x128xf32>
    %1156 = arith.addf %1153, %1155 : vector<2x128xf32>
    %1157 = arith.negf %1156 : vector<2x128xf32>
    %1158 = math.exp %1157 : vector<2x128xf32>
    %cst_292 = arith.constant 1.000000e+00 : f32
    %1159 = vector.broadcast %cst_292 : f32 to vector<2x128xf32>
    %1160 = arith.addf %1159, %1158 : vector<2x128xf32>
    %1161 = arith.divf %1159, %1160 : vector<2x128xf32>
    %1162 = math.tanh %1156 : vector<2x128xf32>
    %1163 = vector.extract_strided_slice %1161 {offsets = [0, 0], sizes = [2, 32], strides = [1, 1]} : vector<2x128xf32> to vector<2x32xf32>
    %1164 = vector.extract_strided_slice %1161 {offsets = [0, 32], sizes = [2, 32], strides = [1, 1]} : vector<2x128xf32> to vector<2x32xf32>
    %1165 = vector.extract_strided_slice %1162 {offsets = [0, 64], sizes = [2, 32], strides = [1, 1]} : vector<2x128xf32> to vector<2x32xf32>
    %1166 = vector.extract_strided_slice %1161 {offsets = [0, 96], sizes = [2, 32], strides = [1, 1]} : vector<2x128xf32> to vector<2x32xf32>
    %1167 = arith.mulf %1164, %1146 : vector<2x32xf32>
    %1168 = arith.mulf %1163, %1165 : vector<2x32xf32>
    %1169 = arith.addf %1167, %1168 : vector<2x32xf32>
    %1170 = math.tanh %1169 : vector<2x32xf32>
    %1171 = arith.mulf %1166, %1170 : vector<2x32xf32>
    %1172 = arith.index_cast %1151 : i32 to index
    %c0_293 = arith.constant 0 : index
    %1173 = vector.load %arg14[%1172, %c0_293] : memref<56x32xf32, #tpu.memory_space<vmem>>, vector<2x32xf32>
    tpu.vector_store %arg14[%1172, %c0_293], %1171 {strides = array<i32>} : memref<56x32xf32, #tpu.memory_space<vmem>>, vector<2x32xf32>,
    %c22_i32_294 = arith.constant 22 : i32
    %c2_i32_295 = arith.constant 2 : i32
    %1174 = arith.muli %c22_i32_294, %c2_i32_295 : i32
    %1175 = arith.index_cast %1174 : i32 to index
    %c0_296 = arith.constant 0 : index
    %1176 = vector.load %arg13[%1175, %c0_296] : memref<56x128xf32, #tpu.memory_space<vmem>>, vector<2x128xf32>
    %1177 = arith.truncf %1171 : vector<2x32xf32> to vector<2x32xbf16>
    %cst_297 = arith.constant dense<0.000000e+00> : vector<2x128xf32>
    %1178 = tpu.matmul %1177, %659, %cst_297 {dimension_numbers = #tpu.dot_dimension_numbers<[1], [0], [0], [1], [0, 0, 1, 1], [], []>} : vector<2x32xbf16>, vector<32x128xbf16>, vector<2x128xf32> -> vector<2x128xf32>
    %1179 = arith.addf %1176, %1178 : vector<2x128xf32>
    %1180 = arith.negf %1179 : vector<2x128xf32>
    %1181 = math.exp %1180 : vector<2x128xf32>
    %cst_298 = arith.constant 1.000000e+00 : f32
    %1182 = vector.broadcast %cst_298 : f32 to vector<2x128xf32>
    %1183 = arith.addf %1182, %1181 : vector<2x128xf32>
    %1184 = arith.divf %1182, %1183 : vector<2x128xf32>
    %1185 = math.tanh %1179 : vector<2x128xf32>
    %1186 = vector.extract_strided_slice %1184 {offsets = [0, 0], sizes = [2, 32], strides = [1, 1]} : vector<2x128xf32> to vector<2x32xf32>
    %1187 = vector.extract_strided_slice %1184 {offsets = [0, 32], sizes = [2, 32], strides = [1, 1]} : vector<2x128xf32> to vector<2x32xf32>
    %1188 = vector.extract_strided_slice %1185 {offsets = [0, 64], sizes = [2, 32], strides = [1, 1]} : vector<2x128xf32> to vector<2x32xf32>
    %1189 = vector.extract_strided_slice %1184 {offsets = [0, 96], sizes = [2, 32], strides = [1, 1]} : vector<2x128xf32> to vector<2x32xf32>
    %1190 = arith.mulf %1187, %1169 : vector<2x32xf32>
    %1191 = arith.mulf %1186, %1188 : vector<2x32xf32>
    %1192 = arith.addf %1190, %1191 : vector<2x32xf32>
    %1193 = math.tanh %1192 : vector<2x32xf32>
    %1194 = arith.mulf %1189, %1193 : vector<2x32xf32>
    %1195 = arith.index_cast %1174 : i32 to index
    %c0_299 = arith.constant 0 : index
    %1196 = vector.load %arg14[%1195, %c0_299] : memref<56x32xf32, #tpu.memory_space<vmem>>, vector<2x32xf32>
    tpu.vector_store %arg14[%1195, %c0_299], %1194 {strides = array<i32>} : memref<56x32xf32, #tpu.memory_space<vmem>>, vector<2x32xf32>,
    %c23_i32_300 = arith.constant 23 : i32
    %c2_i32_301 = arith.constant 2 : i32
    %1197 = arith.muli %c23_i32_300, %c2_i32_301 : i32
    %1198 = arith.index_cast %1197 : i32 to index
    %c0_302 = arith.constant 0 : index
    %1199 = vector.load %arg13[%1198, %c0_302] : memref<56x128xf32, #tpu.memory_space<vmem>>, vector<2x128xf32>
    %1200 = arith.truncf %1194 : vector<2x32xf32> to vector<2x32xbf16>
    %cst_303 = arith.constant dense<0.000000e+00> : vector<2x128xf32>
    %1201 = tpu.matmul %1200, %659, %cst_303 {dimension_numbers = #tpu.dot_dimension_numbers<[1], [0], [0], [1], [0, 0, 1, 1], [], []>} : vector<2x32xbf16>, vector<32x128xbf16>, vector<2x128xf32> -> vector<2x128xf32>
    %1202 = arith.addf %1199, %1201 : vector<2x128xf32>
    %1203 = arith.negf %1202 : vector<2x128xf32>
    %1204 = math.exp %1203 : vector<2x128xf32>
    %cst_304 = arith.constant 1.000000e+00 : f32
    %1205 = vector.broadcast %cst_304 : f32 to vector<2x128xf32>
    %1206 = arith.addf %1205, %1204 : vector<2x128xf32>
    %1207 = arith.divf %1205, %1206 : vector<2x128xf32>
    %1208 = math.tanh %1202 : vector<2x128xf32>
    %1209 = vector.extract_strided_slice %1207 {offsets = [0, 0], sizes = [2, 32], strides = [1, 1]} : vector<2x128xf32> to vector<2x32xf32>
    %1210 = vector.extract_strided_slice %1207 {offsets = [0, 32], sizes = [2, 32], strides = [1, 1]} : vector<2x128xf32> to vector<2x32xf32>
    %1211 = vector.extract_strided_slice %1208 {offsets = [0, 64], sizes = [2, 32], strides = [1, 1]} : vector<2x128xf32> to vector<2x32xf32>
    %1212 = vector.extract_strided_slice %1207 {offsets = [0, 96], sizes = [2, 32], strides = [1, 1]} : vector<2x128xf32> to vector<2x32xf32>
    %1213 = arith.mulf %1210, %1192 : vector<2x32xf32>
    %1214 = arith.mulf %1209, %1211 : vector<2x32xf32>
    %1215 = arith.addf %1213, %1214 : vector<2x32xf32>
    %1216 = math.tanh %1215 : vector<2x32xf32>
    %1217 = arith.mulf %1212, %1216 : vector<2x32xf32>
    %1218 = arith.index_cast %1197 : i32 to index
    %c0_305 = arith.constant 0 : index
    %1219 = vector.load %arg14[%1218, %c0_305] : memref<56x32xf32, #tpu.memory_space<vmem>>, vector<2x32xf32>
    tpu.vector_store %arg14[%1218, %c0_305], %1217 {strides = array<i32>} : memref<56x32xf32, #tpu.memory_space<vmem>>, vector<2x32xf32>,
    %c24_i32_306 = arith.constant 24 : i32
    %c2_i32_307 = arith.constant 2 : i32
    %1220 = arith.muli %c24_i32_306, %c2_i32_307 : i32
    %1221 = arith.index_cast %1220 : i32 to index
    %c0_308 = arith.constant 0 : index
    %1222 = vector.load %arg13[%1221, %c0_308] : memref<56x128xf32, #tpu.memory_space<vmem>>, vector<2x128xf32>
    %1223 = arith.truncf %1217 : vector<2x32xf32> to vector<2x32xbf16>
    %cst_309 = arith.constant dense<0.000000e+00> : vector<2x128xf32>
    %1224 = tpu.matmul %1223, %659, %cst_309 {dimension_numbers = #tpu.dot_dimension_numbers<[1], [0], [0], [1], [0, 0, 1, 1], [], []>} : vector<2x32xbf16>, vector<32x128xbf16>, vector<2x128xf32> -> vector<2x128xf32>
    %1225 = arith.addf %1222, %1224 : vector<2x128xf32>
    %1226 = arith.negf %1225 : vector<2x128xf32>
    %1227 = math.exp %1226 : vector<2x128xf32>
    %cst_310 = arith.constant 1.000000e+00 : f32
    %1228 = vector.broadcast %cst_310 : f32 to vector<2x128xf32>
    %1229 = arith.addf %1228, %1227 : vector<2x128xf32>
    %1230 = arith.divf %1228, %1229 : vector<2x128xf32>
    %1231 = math.tanh %1225 : vector<2x128xf32>
    %1232 = vector.extract_strided_slice %1230 {offsets = [0, 0], sizes = [2, 32], strides = [1, 1]} : vector<2x128xf32> to vector<2x32xf32>
    %1233 = vector.extract_strided_slice %1230 {offsets = [0, 32], sizes = [2, 32], strides = [1, 1]} : vector<2x128xf32> to vector<2x32xf32>
    %1234 = vector.extract_strided_slice %1231 {offsets = [0, 64], sizes = [2, 32], strides = [1, 1]} : vector<2x128xf32> to vector<2x32xf32>
    %1235 = vector.extract_strided_slice %1230 {offsets = [0, 96], sizes = [2, 32], strides = [1, 1]} : vector<2x128xf32> to vector<2x32xf32>
    %1236 = arith.mulf %1233, %1215 : vector<2x32xf32>
    %1237 = arith.mulf %1232, %1234 : vector<2x32xf32>
    %1238 = arith.addf %1236, %1237 : vector<2x32xf32>
    %1239 = math.tanh %1238 : vector<2x32xf32>
    %1240 = arith.mulf %1235, %1239 : vector<2x32xf32>
    %1241 = arith.index_cast %1220 : i32 to index
    %c0_311 = arith.constant 0 : index
    %1242 = vector.load %arg14[%1241, %c0_311] : memref<56x32xf32, #tpu.memory_space<vmem>>, vector<2x32xf32>
    tpu.vector_store %arg14[%1241, %c0_311], %1240 {strides = array<i32>} : memref<56x32xf32, #tpu.memory_space<vmem>>, vector<2x32xf32>,
    %c25_i32_312 = arith.constant 25 : i32
    %c2_i32_313 = arith.constant 2 : i32
    %1243 = arith.muli %c25_i32_312, %c2_i32_313 : i32
    %1244 = arith.index_cast %1243 : i32 to index
    %c0_314 = arith.constant 0 : index
    %1245 = vector.load %arg13[%1244, %c0_314] : memref<56x128xf32, #tpu.memory_space<vmem>>, vector<2x128xf32>
    %1246 = arith.truncf %1240 : vector<2x32xf32> to vector<2x32xbf16>
    %cst_315 = arith.constant dense<0.000000e+00> : vector<2x128xf32>
    %1247 = tpu.matmul %1246, %659, %cst_315 {dimension_numbers = #tpu.dot_dimension_numbers<[1], [0], [0], [1], [0, 0, 1, 1], [], []>} : vector<2x32xbf16>, vector<32x128xbf16>, vector<2x128xf32> -> vector<2x128xf32>
    %1248 = arith.addf %1245, %1247 : vector<2x128xf32>
    %1249 = arith.negf %1248 : vector<2x128xf32>
    %1250 = math.exp %1249 : vector<2x128xf32>
    %cst_316 = arith.constant 1.000000e+00 : f32
    %1251 = vector.broadcast %cst_316 : f32 to vector<2x128xf32>
    %1252 = arith.addf %1251, %1250 : vector<2x128xf32>
    %1253 = arith.divf %1251, %1252 : vector<2x128xf32>
    %1254 = math.tanh %1248 : vector<2x128xf32>
    %1255 = vector.extract_strided_slice %1253 {offsets = [0, 0], sizes = [2, 32], strides = [1, 1]} : vector<2x128xf32> to vector<2x32xf32>
    %1256 = vector.extract_strided_slice %1253 {offsets = [0, 32], sizes = [2, 32], strides = [1, 1]} : vector<2x128xf32> to vector<2x32xf32>
    %1257 = vector.extract_strided_slice %1254 {offsets = [0, 64], sizes = [2, 32], strides = [1, 1]} : vector<2x128xf32> to vector<2x32xf32>
    %1258 = vector.extract_strided_slice %1253 {offsets = [0, 96], sizes = [2, 32], strides = [1, 1]} : vector<2x128xf32> to vector<2x32xf32>
    %1259 = arith.mulf %1256, %1238 : vector<2x32xf32>
    %1260 = arith.mulf %1255, %1257 : vector<2x32xf32>
    %1261 = arith.addf %1259, %1260 : vector<2x32xf32>
    %1262 = math.tanh %1261 : vector<2x32xf32>
    %1263 = arith.mulf %1258, %1262 : vector<2x32xf32>
    %1264 = arith.index_cast %1243 : i32 to index
    %c0_317 = arith.constant 0 : index
    %1265 = vector.load %arg14[%1264, %c0_317] : memref<56x32xf32, #tpu.memory_space<vmem>>, vector<2x32xf32>
    tpu.vector_store %arg14[%1264, %c0_317], %1263 {strides = array<i32>} : memref<56x32xf32, #tpu.memory_space<vmem>>, vector<2x32xf32>,
    %c26_i32_318 = arith.constant 26 : i32
    %c2_i32_319 = arith.constant 2 : i32
    %1266 = arith.muli %c26_i32_318, %c2_i32_319 : i32
    %1267 = arith.index_cast %1266 : i32 to index
    %c0_320 = arith.constant 0 : index
    %1268 = vector.load %arg13[%1267, %c0_320] : memref<56x128xf32, #tpu.memory_space<vmem>>, vector<2x128xf32>
    %1269 = arith.truncf %1263 : vector<2x32xf32> to vector<2x32xbf16>
    %cst_321 = arith.constant dense<0.000000e+00> : vector<2x128xf32>
    %1270 = tpu.matmul %1269, %659, %cst_321 {dimension_numbers = #tpu.dot_dimension_numbers<[1], [0], [0], [1], [0, 0, 1, 1], [], []>} : vector<2x32xbf16>, vector<32x128xbf16>, vector<2x128xf32> -> vector<2x128xf32>
    %1271 = arith.addf %1268, %1270 : vector<2x128xf32>
    %1272 = arith.negf %1271 : vector<2x128xf32>
    %1273 = math.exp %1272 : vector<2x128xf32>
    %cst_322 = arith.constant 1.000000e+00 : f32
    %1274 = vector.broadcast %cst_322 : f32 to vector<2x128xf32>
    %1275 = arith.addf %1274, %1273 : vector<2x128xf32>
    %1276 = arith.divf %1274, %1275 : vector<2x128xf32>
    %1277 = math.tanh %1271 : vector<2x128xf32>
    %1278 = vector.extract_strided_slice %1276 {offsets = [0, 0], sizes = [2, 32], strides = [1, 1]} : vector<2x128xf32> to vector<2x32xf32>
    %1279 = vector.extract_strided_slice %1276 {offsets = [0, 32], sizes = [2, 32], strides = [1, 1]} : vector<2x128xf32> to vector<2x32xf32>
    %1280 = vector.extract_strided_slice %1277 {offsets = [0, 64], sizes = [2, 32], strides = [1, 1]} : vector<2x128xf32> to vector<2x32xf32>
    %1281 = vector.extract_strided_slice %1276 {offsets = [0, 96], sizes = [2, 32], strides = [1, 1]} : vector<2x128xf32> to vector<2x32xf32>
    %1282 = arith.mulf %1279, %1261 : vector<2x32xf32>
    %1283 = arith.mulf %1278, %1280 : vector<2x32xf32>
    %1284 = arith.addf %1282, %1283 : vector<2x32xf32>
    %1285 = math.tanh %1284 : vector<2x32xf32>
    %1286 = arith.mulf %1281, %1285 : vector<2x32xf32>
    %1287 = arith.index_cast %1266 : i32 to index
    %c0_323 = arith.constant 0 : index
    %1288 = vector.load %arg14[%1287, %c0_323] : memref<56x32xf32, #tpu.memory_space<vmem>>, vector<2x32xf32>
    tpu.vector_store %arg14[%1287, %c0_323], %1286 {strides = array<i32>} : memref<56x32xf32, #tpu.memory_space<vmem>>, vector<2x32xf32>,
    %c27_i32_324 = arith.constant 27 : i32
    %c2_i32_325 = arith.constant 2 : i32
    %1289 = arith.muli %c27_i32_324, %c2_i32_325 : i32
    %1290 = arith.index_cast %1289 : i32 to index
    %c0_326 = arith.constant 0 : index
    %1291 = vector.load %arg13[%1290, %c0_326] : memref<56x128xf32, #tpu.memory_space<vmem>>, vector<2x128xf32>
    %1292 = arith.truncf %1286 : vector<2x32xf32> to vector<2x32xbf16>
    %cst_327 = arith.constant dense<0.000000e+00> : vector<2x128xf32>
    %1293 = tpu.matmul %1292, %659, %cst_327 {dimension_numbers = #tpu.dot_dimension_numbers<[1], [0], [0], [1], [0, 0, 1, 1], [], []>} : vector<2x32xbf16>, vector<32x128xbf16>, vector<2x128xf32> -> vector<2x128xf32>
    %1294 = arith.addf %1291, %1293 : vector<2x128xf32>
    %1295 = arith.negf %1294 : vector<2x128xf32>
    %1296 = math.exp %1295 : vector<2x128xf32>
    %cst_328 = arith.constant 1.000000e+00 : f32
    %1297 = vector.broadcast %cst_328 : f32 to vector<2x128xf32>
    %1298 = arith.addf %1297, %1296 : vector<2x128xf32>
    %1299 = arith.divf %1297, %1298 : vector<2x128xf32>
    %1300 = math.tanh %1294 : vector<2x128xf32>
    %1301 = vector.extract_strided_slice %1299 {offsets = [0, 0], sizes = [2, 32], strides = [1, 1]} : vector<2x128xf32> to vector<2x32xf32>
    %1302 = vector.extract_strided_slice %1299 {offsets = [0, 32], sizes = [2, 32], strides = [1, 1]} : vector<2x128xf32> to vector<2x32xf32>
    %1303 = vector.extract_strided_slice %1300 {offsets = [0, 64], sizes = [2, 32], strides = [1, 1]} : vector<2x128xf32> to vector<2x32xf32>
    %1304 = vector.extract_strided_slice %1299 {offsets = [0, 96], sizes = [2, 32], strides = [1, 1]} : vector<2x128xf32> to vector<2x32xf32>
    %1305 = arith.mulf %1302, %1284 : vector<2x32xf32>
    %1306 = arith.mulf %1301, %1303 : vector<2x32xf32>
    %1307 = arith.addf %1305, %1306 : vector<2x32xf32>
    %1308 = math.tanh %1307 : vector<2x32xf32>
    %1309 = arith.mulf %1304, %1308 : vector<2x32xf32>
    %1310 = arith.index_cast %1289 : i32 to index
    %c0_329 = arith.constant 0 : index
    %1311 = vector.load %arg14[%1310, %c0_329] : memref<56x32xf32, #tpu.memory_space<vmem>>, vector<2x32xf32>
    tpu.vector_store %arg14[%1310, %c0_329], %1309 {strides = array<i32>} : memref<56x32xf32, #tpu.memory_space<vmem>>, vector<2x32xf32>,
    %c28_i32_330 = arith.constant 28 : i32
    %c0_331 = arith.constant 0 : index
    %c0_332 = arith.constant 0 : index
    %1312 = vector.load %arg14[%c0_331, %c0_332] : memref<56x32xf32, #tpu.memory_space<vmem>>, vector<56x32xf32>
    %1313 = arith.truncf %1312 : vector<56x32xf32> to vector<56x32xbf16>
    %c0_333 = arith.constant 0 : index
    %c0_334 = arith.constant 0 : index
    %1314 = vector.load %arg8[%c0_333, %c0_334] : memref<32x32xf32, #tpu.memory_space<vmem>>, vector<32x32xf32>
    %1315 = arith.truncf %1314 : vector<32x32xf32> to vector<32x32xbf16>
    %cst_335 = arith.constant dense<0.000000e+00> : vector<56x32xf32>
    %1316 = tpu.matmul %1313, %1315, %cst_335 {dimension_numbers = #tpu.dot_dimension_numbers<[1], [0], [0], [1], [0, 0, 1, 1], [], []>} : vector<56x32xbf16>, vector<32x32xbf16>, vector<56x32xf32> -> vector<56x32xf32>
    %c0_336 = arith.constant 0 : index
    %c0_337 = arith.constant 0 : index
    %1317 = vector.load %arg9[%c0_336, %c0_337] : memref<1x32xf32, #tpu.memory_space<vmem>>, vector<1x32xf32>
    %1318 = vector.broadcast %1317 : vector<1x32xf32> to vector<56x32xf32>
    %1319 = arith.addf %1316, %1318 : vector<56x32xf32>
    %1320 = math.tanh %1319 : vector<56x32xf32>
    %1321 = math.absf %1312 : vector<56x32xf32>
    %cst_338 = arith.constant dense<0.000000e+00> : vector<56xf32>
    %1322 = vector.multi_reduction <add>, %1321, %cst_338 [1] : vector<56x32xf32> to vector<56xf32>
    %1323 = vector.shape_cast %1322 : vector<56xf32> to vector<56x1xf32>
    %cst_339 = arith.constant 0.000000e+00 : f32
    %1324 = vector.broadcast %cst_339 : f32 to vector<56x1xf32>
    %1325 = arith.cmpf ogt, %1323, %1324 : vector<56x1xf32>
    %cst_340 = arith.constant -4.2949673E+9 : f32
    %1326 = vector.shape_cast %1325 : vector<56x1xi1> to vector<56x1xi1>
    %1327 = vector.broadcast %1326 : vector<56x1xi1> to vector<56x32xi1>
    %1328 = vector.broadcast %cst_340 : f32 to vector<56x32xf32>
    %1329 = arith.select %1327, %1320, %1328 : vector<56x32xi1>, vector<56x32xf32>
    %1330 = vector.shape_cast %1329 : vector<56x32xf32> to vector<28x2x32xf32>
    %1331 = vector.shape_cast %1312 : vector<56x32xf32> to vector<28x2x32xf32>
    %cst_341 = arith.constant dense<0xFF800000> : vector<2x32xf32>
    %1332 = vector.multi_reduction <maximumf>, %1330, %cst_341 [0] : vector<28x2x32xf32> to vector<2x32xf32>
    %1333 = vector.shape_cast %1332 : vector<2x32xf32> to vector<1x2x32xf32>
    %1334 = vector.broadcast %1333 : vector<1x2x32xf32> to vector<28x2x32xf32>
    %1335 = arith.subf %1330, %1334 : vector<28x2x32xf32>
    %1336 = math.exp %1335 : vector<28x2x32xf32>
    %cst_342 = arith.constant dense<0.000000e+00> : vector<2x32xf32>
    %1337 = vector.multi_reduction <add>, %1336, %cst_342 [0] : vector<28x2x32xf32> to vector<2x32xf32>
    %1338 = vector.shape_cast %1337 : vector<2x32xf32> to vector<1x2x32xf32>
    %1339 = vector.broadcast %1338 : vector<1x2x32xf32> to vector<28x2x32xf32>
    %1340 = arith.divf %1336, %1339 : vector<28x2x32xf32>
    %cst_343 = arith.constant 3.000000e-02 : f32
    %1341 = vector.broadcast %cst_343 : f32 to vector<28x2x32xf32>
    %1342 = arith.cmpf ogt, %1340, %1341 : vector<28x2x32xf32>
    %cst_344 = arith.constant 0.000000e+00 : f32
    %1343 = vector.broadcast %cst_344 : f32 to vector<28x2x32xf32>
    %1344 = arith.select %1342, %1340, %1343 : vector<28x2x32xi1>, vector<28x2x32xf32>
    %1345 = arith.mulf %1344, %1331 : vector<28x2x32xf32>
    %1346 = arith.truncf %1345 : vector<28x2x32xf32> to vector<28x2x32xbf16>
    %c0_345 = arith.constant 0 : index
    %c0_346 = arith.constant 0 : index
    %c0_347 = arith.constant 0 : index
    %1347 = vector.load %arg10[%c0_345, %c0_346, %c0_347] : memref<28x32x10xf32, #tpu.memory_space<vmem>>, vector<28x32x10xf32>
    %1348 = arith.truncf %1347 : vector<28x32x10xf32> to vector<28x32x10xbf16>
    %cst_348 = arith.constant dense<0.000000e+00> : vector<28x2x10xf32>
    %1349 = tpu.matmul %1346, %1348, %cst_348 {dimension_numbers = #tpu.dot_dimension_numbers<[2], [1], [1], [2], [0, 0, 0, 1, 1, 2], [0], [0]>} : vector<28x2x32xbf16>, vector<28x32x10xbf16>, vector<28x2x10xf32> -> vector<28x2x10xf32>
    %cst_349 = arith.constant dense<0.000000e+00> : vector<2x10xf32>
    %1350 = vector.multi_reduction <add>, %1349, %cst_349 [0] : vector<28x2x10xf32> to vector<2x10xf32>
    %c0_350 = arith.constant 0 : index
    %c0_351 = arith.constant 0 : index
    %1351 = vector.load %arg11[%c0_350, %c0_351] : memref<1x10xf32, #tpu.memory_space<vmem>>, vector<1x10xf32>
    %1352 = vector.broadcast %1351 : vector<1x10xf32> to vector<2x10xf32>
    %1353 = arith.addf %1350, %1352 : vector<2x10xf32>
    %c0_352 = arith.constant 0 : index
    %c0_353 = arith.constant 0 : index
    %1354 = vector.load %arg12[%c0_352, %c0_353] : memref<2x10xf32, #tpu.memory_space<vmem>>, vector<2x10xf32>
    tpu.vector_store %arg12[%c0_352, %c0_353], %1353 {strides = array<i32>} : memref<2x10xf32, #tpu.memory_space<vmem>>, vector<2x10xf32>,
    return
  }
  func.func @transform_0(%arg0: i32) -> (i32, i32) {
    %c0_i32 = arith.constant 0 : i32
    %c0_i32_0 = arith.constant 0 : i32
    %c0_i32_1 = arith.constant 0 : i32
    return %c0_i32, %c0_i32_0 : i32, i32
  }
  func.func @transform_1(%arg0: i32) -> (i32, i32) {
    %c0_i32 = arith.constant 0 : i32
    %c0_i32_0 = arith.constant 0 : i32
    %c0_i32_1 = arith.constant 0 : i32
    return %c0_i32, %c0_i32_0 : i32, i32
  }
  func.func @transform_2(%arg0: i32) -> (i32, i32) {
    %c0_i32 = arith.constant 0 : i32
    %c0_i32_0 = arith.constant 0 : i32
    %c0_i32_1 = arith.constant 0 : i32
    return %c0_i32, %c0_i32_0 : i32, i32
  }
  func.func @transform_3(%arg0: i32) -> (i32, i32) {
    %c0_i32 = arith.constant 0 : i32
    %c0_i32_0 = arith.constant 0 : i32
    %c0_i32_1 = arith.constant 0 : i32
    return %c0_i32, %c0_i32_0 : i32, i32
  }
  func.func @transform_4(%arg0: i32) -> (i32, i32) {
    %c0_i32 = arith.constant 0 : i32
    %c0_i32_0 = arith.constant 0 : i32
    %c0_i32_1 = arith.constant 0 : i32
    return %c0_i32, %c0_i32_0 : i32, i32
  }
  func.func @transform_5(%arg0: i32) -> (i32, i32) {
    %c0_i32 = arith.constant 0 : i32
    %c0_i32_0 = arith.constant 0 : i32
    %c0_i32_1 = arith.constant 0 : i32
    return %c0_i32, %c0_i32_0 : i32, i32
  }
  func.func @transform_6(%arg0: i32) -> (i32, i32) {
    %c0_i32 = arith.constant 0 : i32
    %c0_i32_0 = arith.constant 0 : i32
    %c0_i32_1 = arith.constant 0 : i32
    return %c0_i32, %c0_i32_0 : i32, i32
  }
  func.func @transform_7(%arg0: i32) -> (i32, i32) {
    %c0_i32 = arith.constant 0 : i32
    %c0_i32_0 = arith.constant 0 : i32
    %c0_i32_1 = arith.constant 0 : i32
    return %c0_i32, %c0_i32_0 : i32, i32
  }
  func.func @transform_8(%arg0: i32) -> (i32, i32) {
    %c0_i32 = arith.constant 0 : i32
    %c0_i32_0 = arith.constant 0 : i32
    %c0_i32_1 = arith.constant 0 : i32
    return %c0_i32, %c0_i32_0 : i32, i32
  }
  func.func @transform_9(%arg0: i32) -> (i32, i32, i32) {
    %c0_i32 = arith.constant 0 : i32
    %c0_i32_0 = arith.constant 0 : i32
    %c0_i32_1 = arith.constant 0 : i32
    %c0_i32_2 = arith.constant 0 : i32
    return %c0_i32, %c0_i32_0, %c0_i32_1 : i32, i32, i32
  }
  func.func @transform_10(%arg0: i32) -> (i32, i32) {
    %c0_i32 = arith.constant 0 : i32
    %c0_i32_0 = arith.constant 0 : i32
    %c0_i32_1 = arith.constant 0 : i32
    return %c0_i32, %c0_i32_0 : i32, i32
  }
  func.func @transform_11(%arg0: i32) -> (i32, i32) {
    %c0_i32 = arith.constant 0 : i32
    %c0_i32_0 = arith.constant 0 : i32
    %c0_i32_1 = arith.constant 0 : i32
    return %c0_i32, %c0_i32_0 : i32, i32
  }
}

</mosaic_0001>

<bundles_post_ra>
// kernel: tpu_custom_call.1
= control target key start
LH: loop header
LB: loop body
LE: loop exit
PB: predicated region body
PF: predicated region fallthrough
CT: control target
= control target key end

     0   :  { %vm70_vm0 = vcmask 228352   ;;  %v8577_v7 = vmov 0.0   ;;  %vm83_vm1 = vcmask 1045504   ;;  %vm8578_vm2 = vmmov 0   ;;  %s11039_s0 = inlined_call_operand.vmem [shape: f32[56,28], index: 0, kind: input, shape index: {}]   ;;  %s11040_s1 = inlined_call_operand.vmem [shape: f32[28,128], index: 1, kind: input, shape index: {}]   ;;  %s11041_s2 = inlined_call_operand.vmem [shape: f32[32,128], index: 2, kind: input, shape index: {}]   ;;  %s11042_s3 = inlined_call_operand.vmem [shape: f32[1,128], index: 3, kind: input, shape index: {}]   ;;  %s11043_s4 = inlined_call_operand.vmem [shape: f32[32,128], index: 4, kind: input, shape index: {}]   ;;  %s11044_s5 = inlined_call_operand.vmem [shape: f32[32,128], index: 5, kind: input, shape index: {}]   ;;  %s11045_s6 = inlined_call_operand.vmem [shape: f32[1,128], index: 6, kind: input, shape index: {}]   ;;  %s11046_s7 = inlined_call_operand.vmem [shape: f32[32,32], index: 7, kind: input, shape index: {}]   ;;  %s11047_s8 = inlined_call_operand.vmem [shape: f32[1,32], index: 8, kind: input, shape index: {}]   ;;  %s11048_s9 = inlined_call_operand.vmem [shape: f32[28,32,10], index: 9, kind: input, shape index: {}]   ;;  %s11049_s10 = inlined_call_operand.vmem [shape: f32[1,10], index: 10, kind: input, shape index: {}]   ;;  %s11050_s11 = inlined_call_operand.hbm [shape: f32[2,10], index: 11, kind: output, shape index: {}]  }
   0x1   :  { %v40_v0 = vld [vmem:[%s11040_s1] sm:$0xff]  ;;  %v41_v1 = vld [vmem:[%s11040_s1 + $0x8] sm:$0xff]  ;;  %v42_v2 = vld [vmem:[%s11040_s1 + $0x10] sm:$0xff]  ;;  %7323 = vmatprep.subr.bf16.mxu1 %v8577_v7  ;;  %7327 = vmatprep.mubr.msk.bf16.mxu1 %vm8578_vm2, %v8577_v7 }
   0x2   :  { %v44_v3 = vpack.c.bf16 %v41_v1, %v40_v0  ;;  %v43_v4 = vld [vmem:[%s11040_s1 + $0x18] sm:$0xf]  ;;  %v53_v5 = vld [vmem:[%s11039_s0] sm:$0xff]  ;;  %v54_v6 = vld [vmem:[%s11039_s0 + $0x8] sm:$0xff] }
   0x3   :  { %v45_v8 = vpack.c.bf16 %v43_v4, %v42_v2  ;;  %v60_v9 = vpack.c.bf16 %v54_v6, %v53_v5  ;;  %v46_v10 = vld [vmem:[%s11041_s2] sm:$0xff]  ;;  %v47_v11 = vld [vmem:[%s11041_s2 + $0x8] sm:$0xff]  ;;  %v48_v12 = vld [vmem:[%s11041_s2 + $0x10] sm:$0xff] }
   0x4   :  { %7311 = vmatprep.subr.bf16.mxu0 %v44_v3  ;;  %v49_v13 = vld [vmem:[%s11041_s2 + $0x18] sm:$0xff]  ;;  %v55_v14 = vld [vmem:[%s11039_s0 + $0x10] sm:$0xff]  ;;  %v8684_v16 = vpack.c.bf16 %v47_v11, %v46_v10 }
   0x5   :  { %7312 = vmatpush3.bf16.msra.mxu0 %v44_v3  ;;  %7315 = vmatprep.mubr.msk.bf16.mxu0 %vm70_vm0, %v60_v9  ;;  %v56_v15 = vld [vmem:[%s11039_s0 + $0x18] sm:$0xff] }
   0x6   :  { %16 = vsyncpa [#allocation5], 0  ;;  %8019 = vmatprep.subr.msk.bf16.mxu0 %vm83_vm1, %v45_v8  ;;  %v85_v17 = vsel %vm83_vm1, %v45_v8, 0  ;;  %7324 = vmatpush3.bf16.msra.mxu1 %v8684_v16  ;;  %v8689_v18 = vpack.c.bf16 %v49_v13, %v48_v12  ;;  %v61_v19 = vpack.c.bf16 %v56_v15, %v55_v14  ;;  %v8579_v20 = vmov 0   ;;  %v8710_v21 = vld [vmem:[%s11042_s3] ss:$0 sm:$0xff] }
   0x7   :  { %7325 = vmatprep.subr.bf16.mxu1 %v8577_v7  ;;  %s8580_s3 = smov 64   ;;  %s8581_s22 = smov 32   ;;  %vm159_vm3 = vcmask 261120   ;;  %v57_v3 = vld [vmem:[%s11039_s0 + $0x20] sm:$0xff]  ;;  %v58_v4 = vld [vmem:[%s11039_s0 + $0x28] sm:$0xff]  ;;  %v59_v5 = vld [vmem:[%s11039_s0 + $0x30] sm:$0xff] }
   0x8   :  { %v62_v6 = vpack.c.bf16 %v58_v4, %v57_v3  ;;  %v63_v8 = vpack.c.bf16 %v59_v5, %v59_v5  ;;  %vm232_vm4 = vcmask 254976   ;;  %s8583_s29 = smov [#allocation4]  }
   0x9   :  { %7314 = vmatpush3.bf16.msra.mxu0 %v85_v17  ;;  %s6879_s30 = sshll.u32 %s8583_s29, 4  ;;  %s6880_s30 = int_to_ptr.vmem [resolvable:$true] %s6879_s30 }
   0xa   :  { %7339 = vmatprep.subr.bf16.mxu0 %v8577_v7  ;;  %7326 = vmatpush3.bf16.msra.mxu1 %v8689_v18  ;;  %s8553_s1 = scalar_lea.vmem %s6880_s30, 32  ;;  %p8558_p1 = scmp.lt.s32.totalorder %s6880_s30, %s6880_s30 }
   0xb   :  { %7331 = vmatprep.subr.bf16.mxu1 %v8577_v7  ;;  %p8554_p0 = scmp.ne.s32.totalorder %s6880_s30, %s8553_s1  ;;  %p8559_p2 = scmp.lt.s32.totalorder %s8553_s1, %s8553_s1 }
   0xc   :  { %7316 = vmatmul.mubr.msk.bf16.vlgmr.msra.gmra.mrb[0].mxu0 %vm70_vm0, %v61_v19 }
   0xd   :  { %7340 = vmatpush3.bf16.msra.mxu0 %v8684_v16  ;;  %7328 = vmatmul.mubr.bf16.vlgmr.msra.gmra.mrb[0].mxu1 %v8579_v20  ;;  %p8560_p3 = por %p8559_p2, %p8558_p1 }
   0xe   :  { %7341 = vmatprep.subr.bf16.mxu0 %v8577_v7  ;;  %7332 = vmatpush3.bf16.msra.mxu1 %v8684_v16 }
   0xf   :  { %7335 = vmatprep.mubr.msk.bf16.mxu1 %vm8578_vm2, %v8577_v7  ;;  %7333 = vmatprep.subr.bf16.mxu1 %v8577_v7  ;;  %p8561_p4 = pnand %p8560_p3, %p8554_p0 }
  0x10   :  { %7319 = vmatprep.mubr.msk.bf16.mxu0 %vm70_vm0, %v62_v6 }
  0x11   :  { %7342 = vmatpush3.bf16.msra.mxu0 %v8689_v18 }
  0x12   :  { %7355 = vmatprep.subr.bf16.mxu0 %v8577_v7  ;;  %7334 = vmatpush3.bf16.msra.mxu1 %v8689_v18 }
  0x13   :  { %7347 = vmatprep.subr.bf16.mxu1 %v8577_v7 }
  0x14   :  { %7320 = vmatmul.mubr.msk.bf16.gmra.mrb[4].mxu0 %vm70_vm0, %v63_v8 }
  0x15   :  { %7343 = vmatprep.mubr.msk.bf16.mxu0 %vm8578_vm2, %v8577_v7 }
  0xdf   :  { %v7317_v22 = vpop.f32.mrb[0].mxu0 }
  0xe0   :  { %v130_v23 = vadd.f32 %v7317_v22, %v8710_v21  ;;  %v121_v24 = vpop.f32.mrb[1].mxu0  ;;  %v197_v27 = vpop.f32.mrb[0].mxu1 }
  0xe1   :  { %v122_v25 = vadd.f32 %v8710_v21, %v121_v24  ;;  %v7318_v26 = vpop.f32.mrb[2].mxu0  ;;  %v7329_v30 = vpop.f32.mrb[1].mxu1 }
  0xe2   :  { %153 = vst [vmem:[#allocation2 + $0x10] sm:$0xff] %v130_v23  ;;  %v133_v28 = vadd.f32 %v7318_v26, %v8710_v21  ;;  %v124_v29 = vpop.f32.mrb[3].mxu0  ;;  %v200_v32 = vpop.f32.mrb[2].mxu1 }
  0xe3   :  { %151 = vst [vmem:[#allocation2] sm:$0xff] %v122_v25  ;;  %v125_v31 = vadd.f32 %v8710_v21, %v124_v29  ;;  %v7330_v33 = vpop.f32.mrb[3].mxu1 }
  0xe4   :  { %154 = vst [vmem:[#allocation2 + $0x18] sm:$0xff] %v133_v28 }
  0xe5   :  { %152 = vst [vmem:[#allocation2 + $0x8] sm:$0xff] %v125_v31 }
  0xe7   :  { %v7321_v13 = vpop.f32.mrb[4].mxu0 }
  0xe8   :  { %v146_v14 = vadd.f32 %v7321_v13, %v8710_v21  ;;  %v137_v15 = vpop.f32.mrb[5].mxu0 }
  0xe9   :  { %v138_v17 = vadd.f32 %v8710_v21, %v137_v15  ;;  %v7322_v19 = vpop.f32.mrb[6].mxu0 }
  0xea   :  { %v158_v34 = vld [vmem:[#allocation2] sm:$0x3]  ;;  %v234_v51 = vld [vmem:[#allocation2 + $0x2] sm:$0x3]  ;;  %157 = vst [vmem:[#allocation2 + $0x30] sm:$0xff] %v146_v14  ;;  %v140_v22 = vpop.f32.mrb[7].mxu0 }
  0xeb   :  { %v203_v35 = vadd.f32 %v197_v27, %v158_v34  ;;  %155 = vst [vmem:[#allocation2 + $0x20] sm:$0xff] %v138_v17  ;;  %v141_v23 = vadd.f32 %v8710_v21, %v140_v22  ;;  %v312_v25 = vld [vmem:[#allocation2 + $0x4] sm:$0x3] }
  0xec   :  { %v468_v3 = vld [vmem:[#allocation2 + $0x8] sm:$0x3] }
  0xed   :  { %8033 = vtanh.f32 %v203_v35  ;;  %v6892_v37 = vmul.f32 -1.442695, %v203_v35  ;;  %156 = vst [vmem:[#allocation2 + $0x28] sm:$0xff] %v141_v23 }
  0xef   :  { %8035 = vpow2.f32 %v6892_v37 }
  0xf7   :  { %v8034_v36 = vpop.eup %8033 }
  0xf8   :  { %213 = vrot.lane.b32.xlu0 %v8034_v36, %s8580_s3 }
  0xf9   :  { %v8036_v38 = vpop.eup %8035 }
  0xfa   :  { %v207_v39 = vadd.f32 1.0, %v8036_v38 }
  0xfc   :  { %8037 = vrcp.f32 %v207_v39 }
 0x106   :  { %v8038_v40 = vpop.eup %8037 }
 0x107   :  { %v211_v43 = vmul.f32 0.0, %v8038_v40 }
 0x16a   :  { %v214_v41 = vpop.permute.xlu0 %213 }
 0x16b   :  { %v216_v42 = vmul.f32 %v8038_v40, %v214_v41 }
 0x16d   :  { %218 = vrot.lane.b32.xlu0 %v216_v42, %s8581_s22 }
 0x1df   :  { %v219_v44 = vpop.permute.xlu0 %218 }
 0x1e0   :  { %v221_v45 = vadd.f32 %v219_v44, %v211_v43 }
 0x1e2   :  { %8039 = vtanh.f32 %v221_v45 }
 0x1ec   :  { %v8040_v46 = vpop.eup %8039 }
 0x1ed   :  { %224 = vrot.lane.b32.xlu1 %v8040_v46, %s8580_s3 }
 0x25f   :  { %v225_v47 = vpop.permute.xlu1 %224 }
 0x260   :  { %v8719_v48 = vmul.f32 %v8038_v40, %v225_v47 }
 0x262   :  { %v235_v49 = vpack.c.bf16 %v8719_v48, %v8719_v48 }
 0x264   :  { %237 = vrot.lane.b32.xlu1 %v235_v49, %s8581_s22 }
 0x2d6   :  { %v238_v50 = vpop.permute.xlu1 %237 }
 0x2d7   :  { %7336 = vmatmul.mubr.msk.bf16.vlgmr.msra.gmra.mrb[4].mxu1 %vm159_vm3, %v238_v50 }
 0x2d8   :  { %7348 = vmatpush3.bf16.msra.mxu1 %v8684_v16  ;;  %7351 = vmatprep.mubr.msk.bf16.mxu1 %vm8578_vm2, %v8577_v7 }
 0x2d9   :  { %7349 = vmatprep.subr.bf16.mxu1 %v8577_v7 }
 0x2dc   :  { %7350 = vmatpush3.bf16.msra.mxu1 %v8689_v18 }
 0x2dd   :  { %7363 = vmatprep.subr.bf16.mxu1 %v8577_v7 }
 0x3aa   :  { %v276_v52 = vpop.f32.mrb[4].mxu1 }
 0x3ab   :  { %v282_v53 = vadd.f32 %v276_v52, %v234_v51  ;;  %v7337_v54 = vpop.f32.mrb[5].mxu1 }
 0x3ac   :  { %v279_v55 = vpop.f32.mrb[6].mxu1 }
 0x3ad   :  { %8041 = vtanh.f32 %v282_v53  ;;  %v7338_v56 = vpop.f32.mrb[7].mxu1  ;;  %v6894_v58 = vmul.f32 -1.442695, %v282_v53 }
 0x3af   :  { %8043 = vpow2.f32 %v6894_v58 }
 0x3b7   :  { %v8042_v57 = vpop.eup %8041 }
 0x3b8   :  { %292 = vrot.lane.b32.xlu0 %v8042_v57, %s8580_s3 }
 0x3b9   :  { %v8044_v59 = vpop.eup %8043 }
 0x3ba   :  { %v286_v60 = vadd.f32 1.0, %v8044_v59 }
 0x3bc   :  { %8045 = vrcp.f32 %v286_v60 }
 0x3c6   :  { %v8046_v61 = vpop.eup %8045 }
 0x3c7   :  { %v290_v0 = vmul.f32 %v8046_v61, %v221_v45  ;;  %v390_v45 = vld [vmem:[#allocation2 + $0x6] sm:$0x3] }
 0x42a   :  { %v293_v62 = vpop.permute.xlu0 %292 }
 0x42b   :  { %v295_v63 = vmul.f32 %v8046_v61, %v293_v62 }
 0x42d   :  { %297 = vrot.lane.b32.xlu1 %v295_v63, %s8581_s22 }
 0x49f   :  { %v298_v1 = vpop.permute.xlu1 %297 }
 0x4a0   :  { %v300_v2 = vadd.f32 %v298_v1, %v290_v0 }
 0x4a2   :  { %8047 = vtanh.f32 %v300_v2 }
 0x4ac   :  { %v8048_v9 = vpop.eup %8047 }
 0x4ad   :  { %303 = vrot.lane.b32.xlu0 %v8048_v9, %s8580_s3 }
 0x51f   :  { %v304_v10 = vpop.permute.xlu0 %303 }
 0x520   :  { %v8747_v11 = vmul.f32 %v8046_v61, %v304_v10 }
 0x522   :  { %v313_v12 = vpack.c.bf16 %v8747_v11, %v8747_v11 }
 0x524   :  { %315 = vrot.lane.b32.xlu1 %v313_v12, %s8581_s22 }
 0x596   :  { %v316_v24 = vpop.permute.xlu1 %315 }
 0x597   :  { %7344 = vmatmul.mubr.msk.bf16.vlgmr.msra.gmra.mrb[8].mxu0 %vm159_vm3, %v316_v24 }
 0x598   :  { %7356 = vmatpush3.bf16.msra.mxu0 %v8684_v16  ;;  %7359 = vmatprep.mubr.msk.bf16.mxu0 %vm8578_vm2, %v8577_v7 }
 0x599   :  { %7357 = vmatprep.subr.bf16.mxu0 %v8577_v7 }
 0x59c   :  { %7358 = vmatpush3.bf16.msra.mxu0 %v8689_v18 }
 0x59d   :  { %7371 = vmatprep.subr.bf16.mxu0 %v8577_v7 }
 0x66a   :  { %v354_v26 = vpop.f32.mrb[8].mxu0 }
 0x66b   :  { %v360_v27 = vadd.f32 %v354_v26, %v312_v25  ;;  %v7345_v28 = vpop.f32.mrb[9].mxu0 }
 0x66c   :  { %v357_v21 = vpop.f32.mrb[10].mxu0 }
 0x66d   :  { %8049 = vtanh.f32 %v360_v27  ;;  %v7346_v29 = vpop.f32.mrb[11].mxu0  ;;  %v6896_v31 = vmul.f32 -1.442695, %v360_v27 }
 0x66e   :  { %v546_v29 = vld [vmem:[#allocation2 + $0xa] sm:$0x3] }
 0x66f   :  { %8051 = vpow2.f32 %v6896_v31 }
 0x677   :  { %v8050_v30 = vpop.eup %8049 }
 0x678   :  { %370 = vrot.lane.b32.xlu0 %v8050_v30, %s8580_s3 }
 0x679   :  { %v8052_v32 = vpop.eup %8051 }
 0x67a   :  { %v364_v33 = vadd.f32 1.0, %v8052_v32 }
 0x67c   :  { %8053 = vrcp.f32 %v364_v33 }
 0x686   :  { %v8054_v34 = vpop.eup %8053 }
 0x687   :  { %v368_v37 = vmul.f32 %v8054_v34, %v300_v2 }
 0x6ea   :  { %v371_v35 = vpop.permute.xlu0 %370 }
 0x6eb   :  { %v373_v36 = vmul.f32 %v8054_v34, %v371_v35 }
 0x6ed   :  { %375 = vrot.lane.b32.xlu1 %v373_v36, %s8581_s22 }
 0x75f   :  { %v376_v38 = vpop.permute.xlu1 %375 }
 0x760   :  { %v378_v39 = vadd.f32 %v376_v38, %v368_v37 }
 0x762   :  { %8055 = vtanh.f32 %v378_v39 }
 0x76c   :  { %v8056_v40 = vpop.eup %8055 }
 0x76d   :  { %381 = vrot.lane.b32.xlu0 %v8056_v40, %s8580_s3 }
 0x7df   :  { %v382_v41 = vpop.permute.xlu0 %381 }
 0x7e0   :  { %v8765_v42 = vmul.f32 %v8054_v34, %v382_v41 }
 0x7e2   :  { %v391_v43 = vpack.c.bf16 %v8765_v42, %v8765_v42 }
 0x7e4   :  { %393 = vrot.lane.b32.xlu1 %v391_v43, %s8581_s22 }
 0x856   :  { %v394_v44 = vpop.permute.xlu1 %393 }
 0x857   :  { %7352 = vmatmul.mubr.msk.bf16.vlgmr.msra.gmra.mrb[8].mxu1 %vm159_vm3, %v394_v44 }
 0x858   :  { %7364 = vmatpush3.bf16.msra.mxu1 %v8684_v16  ;;  %7367 = vmatprep.mubr.msk.bf16.mxu1 %vm8578_vm2, %v8577_v7 }
 0x859   :  { %7365 = vmatprep.subr.bf16.mxu1 %v8577_v7 }
 0x85c   :  { %7366 = vmatpush3.bf16.msra.mxu1 %v8689_v18 }
 0x85d   :  { %7379 = vmatprep.subr.bf16.mxu1 %v8577_v7 }
 0x92a   :  { %v432_v46 = vpop.f32.mrb[8].mxu1 }
 0x92b   :  { %v438_v47 = vadd.f32 %v432_v46, %v390_v45  ;;  %v7353_v49 = vpop.f32.mrb[9].mxu1 }
 0x92c   :  { %v435_v50 = vpop.f32.mrb[10].mxu1 }
 0x92d   :  { %8057 = vtanh.f32 %v438_v47  ;;  %v7354_v51 = vpop.f32.mrb[11].mxu1  ;;  %v6898_v53 = vmul.f32 -1.442695, %v438_v47 }
 0x92f   :  { %8059 = vpow2.f32 %v6898_v53 }
 0x937   :  { %v8058_v52 = vpop.eup %8057 }
 0x938   :  { %448 = vrot.lane.b32.xlu0 %v8058_v52, %s8580_s3  ;;  %v624_v52 = vld [vmem:[#allocation2 + $0xc] sm:$0x3] }
 0x939   :  { %v8060_v54 = vpop.eup %8059 }
 0x93a   :  { %v442_v55 = vadd.f32 1.0, %v8060_v54 }
 0x93c   :  { %8061 = vrcp.f32 %v442_v55 }
 0x946   :  { %v8062_v56 = vpop.eup %8061 }
 0x947   :  { %v446_v59 = vmul.f32 %v8062_v56, %v378_v39 }
 0x9aa   :  { %v449_v57 = vpop.permute.xlu0 %448 }
 0x9ab   :  { %v451_v58 = vmul.f32 %v8062_v56, %v449_v57 }
 0x9ad   :  { %453 = vrot.lane.b32.xlu1 %v451_v58, %s8581_s22 }
 0xa1f   :  { %v454_v60 = vpop.permute.xlu1 %453 }
 0xa20   :  { %v456_v61 = vadd.f32 %v454_v60, %v446_v59 }
 0xa22   :  { %8063 = vtanh.f32 %v456_v61 }
 0xa2c   :  { %v8064_v62 = vpop.eup %8063 }
 0xa2d   :  { %459 = vrot.lane.b32.xlu0 %v8064_v62, %s8580_s3 }
 0xa9f   :  { %v460_v63 = vpop.permute.xlu0 %459 }
 0xaa0   :  { %v8780_v0 = vmul.f32 %v8062_v56, %v460_v63 }
 0xaa2   :  { %v469_v1 = vpack.c.bf16 %v8780_v0, %v8780_v0 }
 0xaa4   :  { %471 = vrot.lane.b32.xlu1 %v469_v1, %s8581_s22 }
 0xb16   :  { %v472_v2 = vpop.permute.xlu1 %471 }
 0xb17   :  { %7360 = vmatmul.mubr.msk.bf16.vlgmr.msra.gmra.mrb[12].mxu0 %vm159_vm3, %v472_v2 }
 0xb18   :  { %7372 = vmatpush3.bf16.msra.mxu0 %v8684_v16  ;;  %7375 = vmatprep.mubr.msk.bf16.mxu0 %vm8578_vm2, %v8577_v7 }
 0xb19   :  { %7373 = vmatprep.subr.bf16.mxu0 %v8577_v7 }
 0xb1c   :  { %7374 = vmatpush3.bf16.msra.mxu0 %v8689_v18 }
 0xb1d   :  { %7387 = vmatprep.subr.bf16.mxu0 %v8577_v7 }
 0xbea   :  { %v510_v4 = vpop.f32.mrb[12].mxu0 }
 0xbeb   :  { %v516_v5 = vadd.f32 %v510_v4, %v468_v3  ;;  %v7361_v6 = vpop.f32.mrb[13].mxu0 }
 0xbec   :  { %v513_v8 = vpop.f32.mrb[14].mxu0 }
 0xbed   :  { %8065 = vtanh.f32 %v516_v5  ;;  %v7362_v9 = vpop.f32.mrb[15].mxu0  ;;  %v6900_v12 = vmul.f32 -1.442695, %v516_v5 }
 0xbef   :  { %8067 = vpow2.f32 %v6900_v12  ;;  %v702_v12 = vld [vmem:[#allocation2 + $0xe] sm:$0x3] }
 0xbf7   :  { %v8066_v10 = vpop.eup %8065 }
 0xbf8   :  { %526 = vrot.lane.b32.xlu0 %v8066_v10, %s8580_s3 }
 0xbf9   :  { %v8068_v13 = vpop.eup %8067 }
 0xbfa   :  { %v520_v14 = vadd.f32 1.0, %v8068_v13 }
 0xbfc   :  { %8069 = vrcp.f32 %v520_v14 }
 0xc06   :  { %v8070_v15 = vpop.eup %8069 }
 0xc07   :  { %v524_v22 = vmul.f32 %v8070_v15, %v456_v61 }
 0xc6a   :  { %v527_v17 = vpop.permute.xlu0 %526 }
 0xc6b   :  { %v529_v19 = vmul.f32 %v8070_v15, %v527_v17 }
 0xc6d   :  { %531 = vrot.lane.b32.xlu1 %v529_v19, %s8581_s22 }
 0xcdf   :  { %v532_v23 = vpop.permute.xlu1 %531 }
 0xce0   :  { %v534_v24 = vadd.f32 %v532_v23, %v524_v22 }
 0xce2   :  { %8071 = vtanh.f32 %v534_v24 }
 0xcec   :  { %v8072_v25 = vpop.eup %8071 }
 0xced   :  { %537 = vrot.lane.b32.xlu0 %v8072_v25, %s8580_s3 }
 0xd5f   :  { %v538_v26 = vpop.permute.xlu0 %537 }
 0xd60   :  { %v8795_v27 = vmul.f32 %v8070_v15, %v538_v26 }
 0xd62   :  { %v547_v28 = vpack.c.bf16 %v8795_v27, %v8795_v27 }
 0xd64   :  { %549 = vrot.lane.b32.xlu1 %v547_v28, %s8581_s22 }
 0xdd6   :  { %v550_v21 = vpop.permute.xlu1 %549 }
 0xdd7   :  { %7368 = vmatmul.mubr.msk.bf16.vlgmr.msra.gmra.mrb[12].mxu1 %vm159_vm3, %v550_v21 }
 0xdd8   :  { %7380 = vmatpush3.bf16.msra.mxu1 %v8684_v16  ;;  %7383 = vmatprep.mubr.msk.bf16.mxu1 %vm8578_vm2, %v8577_v7 }
 0xdd9   :  { %7381 = vmatprep.subr.bf16.mxu1 %v8577_v7 }
 0xddc   :  { %7382 = vmatpush3.bf16.msra.mxu1 %v8689_v18 }
 0xddd   :  { %7395 = vmatprep.subr.bf16.mxu1 %v8577_v7 }
 0xeaa   :  { %v588_v30 = vpop.f32.mrb[12].mxu1 }
 0xeab   :  { %v594_v31 = vadd.f32 %v588_v30, %v546_v29  ;;  %v7369_v32 = vpop.f32.mrb[13].mxu1 }
 0xeac   :  { %v591_v33 = vpop.f32.mrb[14].mxu1 }
 0xead   :  { %8073 = vtanh.f32 %v594_v31  ;;  %v7370_v34 = vpop.f32.mrb[15].mxu1  ;;  %v6902_v36 = vmul.f32 -1.442695, %v594_v31 }
 0xeaf   :  { %8075 = vpow2.f32 %v6902_v36 }
 0xeb7   :  { %v8074_v35 = vpop.eup %8073 }
 0xeb8   :  { %604 = vrot.lane.b32.xlu0 %v8074_v35, %s8580_s3 }
 0xeb9   :  { %v8076_v37 = vpop.eup %8075 }
 0xeba   :  { %v598_v38 = vadd.f32 1.0, %v8076_v37  ;;  %v780_v37 = vld [vmem:[#allocation2 + $0x10] sm:$0x3] }
 0xebc   :  { %8077 = vrcp.f32 %v598_v38 }
 0xec6   :  { %v8078_v39 = vpop.eup %8077 }
 0xec7   :  { %v602_v43 = vmul.f32 %v8078_v39, %v534_v24 }
 0xf2a   :  { %v605_v40 = vpop.permute.xlu0 %604 }
 0xf2b   :  { %v607_v41 = vmul.f32 %v8078_v39, %v605_v40 }
 0xf2d   :  { %609 = vrot.lane.b32.xlu1 %v607_v41, %s8581_s22 }
 0xf9f   :  { %v610_v44 = vpop.permute.xlu1 %609 }
 0xfa0   :  { %v612_v45 = vadd.f32 %v610_v44, %v602_v43 }
 0xfa2   :  { %8079 = vtanh.f32 %v612_v45 }
 0xfac   :  { %v8080_v46 = vpop.eup %8079 }
 0xfad   :  { %615 = vrot.lane.b32.xlu0 %v8080_v46, %s8580_s3 }
0x101f   :  { %v616_v47 = vpop.permute.xlu0 %615 }
0x1020   :  { %v8810_v49 = vmul.f32 %v8078_v39, %v616_v47 }
0x1022   :  { %v625_v50 = vpack.c.bf16 %v8810_v49, %v8810_v49 }
0x1024   :  { %627 = vrot.lane.b32.xlu1 %v625_v50, %s8581_s22 }
0x1096   :  { %v628_v51 = vpop.permute.xlu1 %627 }
0x1097   :  { %7376 = vmatmul.mubr.msk.bf16.vlgmr.msra.gmra.mrb[16].mxu0 %vm159_vm3, %v628_v51 }
0x1098   :  { %7388 = vmatpush3.bf16.msra.mxu0 %v8684_v16  ;;  %7391 = vmatprep.mubr.msk.bf16.mxu0 %vm8578_vm2, %v8577_v7 }
0x1099   :  { %7389 = vmatprep.subr.bf16.mxu0 %v8577_v7 }
0x109c   :  { %7390 = vmatpush3.bf16.msra.mxu0 %v8689_v18 }
0x109d   :  { %7403 = vmatprep.subr.bf16.mxu0 %v8577_v7 }
0x116a   :  { %v666_v53 = vpop.f32.mrb[16].mxu0 }
0x116b   :  { %v672_v54 = vadd.f32 %v666_v53, %v624_v52  ;;  %v7377_v55 = vpop.f32.mrb[17].mxu0 }
0x116c   :  { %v669_v56 = vpop.f32.mrb[18].mxu0 }
0x116d   :  { %8081 = vtanh.f32 %v672_v54  ;;  %v7378_v57 = vpop.f32.mrb[19].mxu0  ;;  %v6904_v59 = vmul.f32 -1.442695, %v672_v54 }
0x116f   :  { %8083 = vpow2.f32 %v6904_v59 }
0x1177   :  { %v8082_v58 = vpop.eup %8081 }
0x1178   :  { %682 = vrot.lane.b32.xlu0 %v8082_v58, %s8580_s3 }
0x1179   :  { %v8084_v60 = vpop.eup %8083 }
0x117a   :  { %v676_v61 = vadd.f32 1.0, %v8084_v60 }
0x117c   :  { %8085 = vrcp.f32 %v676_v61  ;;  %v858_v61 = vld [vmem:[#allocation2 + $0x12] sm:$0x3] }
0x1186   :  { %v8086_v62 = vpop.eup %8085 }
0x1187   :  { %v680_v2 = vmul.f32 %v8086_v62, %v612_v45 }
0x11ea   :  { %v683_v63 = vpop.permute.xlu0 %682 }
0x11eb   :  { %v685_v1 = vmul.f32 %v8086_v62, %v683_v63 }
0x11ed   :  { %687 = vrot.lane.b32.xlu1 %v685_v1, %s8581_s22 }
0x125f   :  { %v688_v3 = vpop.permute.xlu1 %687 }
0x1260   :  { %v690_v4 = vadd.f32 %v688_v3, %v680_v2 }
0x1262   :  { %8087 = vtanh.f32 %v690_v4 }
0x126c   :  { %v8088_v5 = vpop.eup %8087 }
0x126d   :  { %693 = vrot.lane.b32.xlu0 %v8088_v5, %s8580_s3 }
0x12df   :  { %v694_v6 = vpop.permute.xlu0 %693 }
0x12e0   :  { %v8825_v8 = vmul.f32 %v8086_v62, %v694_v6 }
0x12e2   :  { %v703_v9 = vpack.c.bf16 %v8825_v8, %v8825_v8 }
0x12e4   :  { %705 = vrot.lane.b32.xlu1 %v703_v9, %s8581_s22 }
0x1356   :  { %v706_v10 = vpop.permute.xlu1 %705 }
0x1357   :  { %7384 = vmatmul.mubr.msk.bf16.vlgmr.msra.gmra.mrb[16].mxu1 %vm159_vm3, %v706_v10 }
0x1358   :  { %7396 = vmatpush3.bf16.msra.mxu1 %v8684_v16  ;;  %7399 = vmatprep.mubr.msk.bf16.mxu1 %vm8578_vm2, %v8577_v7 }
0x1359   :  { %7397 = vmatprep.subr.bf16.mxu1 %v8577_v7 }
0x135c   :  { %7398 = vmatpush3.bf16.msra.mxu1 %v8689_v18 }
0x135d   :  { %7411 = vmatprep.subr.bf16.mxu1 %v8577_v7 }
0x142a   :  { %v744_v13 = vpop.f32.mrb[16].mxu1 }
0x142b   :  { %v750_v14 = vadd.f32 %v744_v13, %v702_v12  ;;  %v7385_v15 = vpop.f32.mrb[17].mxu1 }
0x142c   :  { %v747_v17 = vpop.f32.mrb[18].mxu1 }
0x142d   :  { %8089 = vtanh.f32 %v750_v14  ;;  %v7386_v19 = vpop.f32.mrb[19].mxu1  ;;  %v6906_v23 = vmul.f32 -1.442695, %v750_v14 }
0x142f   :  { %8091 = vpow2.f32 %v6906_v23 }
0x1437   :  { %v8090_v22 = vpop.eup %8089 }
0x1438   :  { %760 = vrot.lane.b32.xlu0 %v8090_v22, %s8580_s3 }
0x1439   :  { %v8092_v24 = vpop.eup %8091 }
0x143a   :  { %v754_v25 = vadd.f32 1.0, %v8092_v24 }
0x143c   :  { %8093 = vrcp.f32 %v754_v25 }
0x1446   :  { %v8094_v26 = vpop.eup %8093 }
0x1447   :  { %v758_v29 = vmul.f32 %v8094_v26, %v690_v4 }
0x14aa   :  { %v761_v28 = vpop.permute.xlu0 %760 }
0x14ab   :  { %v763_v21 = vmul.f32 %v8094_v26, %v761_v28 }
0x14ad   :  { %765 = vrot.lane.b32.xlu1 %v763_v21, %s8581_s22 }
0x151f   :  { %v766_v30 = vpop.permute.xlu1 %765 }
0x1520   :  { %v768_v31 = vadd.f32 %v766_v30, %v758_v29 }
0x1522   :  { %8095 = vtanh.f32 %v768_v31 }
0x152c   :  { %v8096_v32 = vpop.eup %8095 }
0x152d   :  { %771 = vrot.lane.b32.xlu0 %v8096_v32, %s8580_s3 }
0x159f   :  { %v772_v33 = vpop.permute.xlu0 %771 }
0x15a0   :  { %v8840_v34 = vmul.f32 %v8094_v26, %v772_v33  ;;  %v936_v26 = vld [vmem:[#allocation2 + $0x14] sm:$0x3] }
0x15a2   :  { %v781_v35 = vpack.c.bf16 %v8840_v34, %v8840_v34 }
0x15a4   :  { %783 = vrot.lane.b32.xlu1 %v781_v35, %s8581_s22 }
0x1616   :  { %v784_v36 = vpop.permute.xlu1 %783 }
0x1617   :  { %7392 = vmatmul.mubr.msk.bf16.vlgmr.msra.gmra.mrb[20].mxu0 %vm159_vm3, %v784_v36 }
0x1618   :  { %7404 = vmatpush3.bf16.msra.mxu0 %v8684_v16  ;;  %7407 = vmatprep.mubr.msk.bf16.mxu0 %vm8578_vm2, %v8577_v7 }
0x1619   :  { %7405 = vmatprep.subr.bf16.mxu0 %v8577_v7 }
0x161c   :  { %7406 = vmatpush3.bf16.msra.mxu0 %v8689_v18 }
0x161d   :  { %7419 = vmatprep.subr.bf16.mxu0 %v8577_v7 }
0x16ea   :  { %v822_v38 = vpop.f32.mrb[20].mxu0 }
0x16eb   :  { %v828_v39 = vadd.f32 %v822_v38, %v780_v37  ;;  %v7393_v40 = vpop.f32.mrb[21].mxu0 }
0x16ec   :  { %v825_v41 = vpop.f32.mrb[22].mxu0 }
0x16ed   :  { %8097 = vtanh.f32 %v828_v39  ;;  %v7394_v43 = vpop.f32.mrb[23].mxu0  ;;  %v6908_v45 = vmul.f32 -1.442695, %v828_v39 }
0x16ef   :  { %8099 = vpow2.f32 %v6908_v45 }
0x16f7   :  { %v8098_v44 = vpop.eup %8097 }
0x16f8   :  { %838 = vrot.lane.b32.xlu0 %v8098_v44, %s8580_s3 }
0x16f9   :  { %v8100_v46 = vpop.eup %8099 }
0x16fa   :  { %v832_v47 = vadd.f32 1.0, %v8100_v46 }
0x16fc   :  { %8101 = vrcp.f32 %v832_v47 }
0x1706   :  { %v8102_v50 = vpop.eup %8101 }
0x1707   :  { %v836_v53 = vmul.f32 %v8102_v50, %v768_v31 }
0x176a   :  { %v839_v51 = vpop.permute.xlu0 %838 }
0x176b   :  { %v841_v52 = vmul.f32 %v8102_v50, %v839_v51  ;;  %v1014_v51 = vld [vmem:[#allocation2 + $0x16] sm:$0x3] }
0x176d   :  { %843 = vrot.lane.b32.xlu1 %v841_v52, %s8581_s22 }
0x17df   :  { %v844_v54 = vpop.permute.xlu1 %843 }
0x17e0   :  { %v846_v55 = vadd.f32 %v844_v54, %v836_v53 }
0x17e2   :  { %8103 = vtanh.f32 %v846_v55 }
0x17ec   :  { %v8104_v56 = vpop.eup %8103 }
0x17ed   :  { %849 = vrot.lane.b32.xlu0 %v8104_v56, %s8580_s3 }
0x185f   :  { %v850_v57 = vpop.permute.xlu0 %849 }
0x1860   :  { %v8855_v58 = vmul.f32 %v8102_v50, %v850_v57 }
0x1862   :  { %v859_v59 = vpack.c.bf16 %v8855_v58, %v8855_v58 }
0x1864   :  { %861 = vrot.lane.b32.xlu1 %v859_v59, %s8581_s22 }
0x18d6   :  { %v862_v60 = vpop.permute.xlu1 %861 }
0x18d7   :  { %7400 = vmatmul.mubr.msk.bf16.vlgmr.msra.gmra.mrb[20].mxu1 %vm159_vm3, %v862_v60 }
0x18d8   :  { %7412 = vmatpush3.bf16.msra.mxu1 %v8684_v16  ;;  %7415 = vmatprep.mubr.msk.bf16.mxu1 %vm8578_vm2, %v8577_v7 }
0x18d9   :  { %7413 = vmatprep.subr.bf16.mxu1 %v8577_v7 }
0x18dc   :  { %7414 = vmatpush3.bf16.msra.mxu1 %v8689_v18 }
0x18dd   :  { %7427 = vmatprep.subr.bf16.mxu1 %v8577_v7 }
0x19aa   :  { %v900_v62 = vpop.f32.mrb[20].mxu1 }
0x19ab   :  { %v906_v63 = vadd.f32 %v900_v62, %v858_v61  ;;  %v7401_v1 = vpop.f32.mrb[21].mxu1 }
0x19ac   :  { %v903_v2 = vpop.f32.mrb[22].mxu1 }
0x19ad   :  { %8105 = vtanh.f32 %v906_v63  ;;  %v7402_v3 = vpop.f32.mrb[23].mxu1  ;;  %v6910_v5 = vmul.f32 -1.442695, %v906_v63 }
0x19af   :  { %8107 = vpow2.f32 %v6910_v5 }
0x19b7   :  { %v8106_v4 = vpop.eup %8105 }
0x19b8   :  { %916 = vrot.lane.b32.xlu0 %v8106_v4, %s8580_s3 }
0x19b9   :  { %v8108_v6 = vpop.eup %8107 }
0x19ba   :  { %v910_v9 = vadd.f32 1.0, %v8108_v6 }
0x19bc   :  { %8109 = vrcp.f32 %v910_v9 }
0x19c6   :  { %v8110_v10 = vpop.eup %8109 }
0x19c7   :  { %v914_v14 = vmul.f32 %v8110_v10, %v846_v55 }
0x1a2a   :  { %v917_v12 = vpop.permute.xlu0 %916 }
0x1a2b   :  { %v919_v13 = vmul.f32 %v8110_v10, %v917_v12 }
0x1a2d   :  { %921 = vrot.lane.b32.xlu1 %v919_v13, %s8581_s22  ;;  %v1092_v13 = vld [vmem:[#allocation2 + $0x18] sm:$0x3] }
0x1a9f   :  { %v922_v15 = vpop.permute.xlu1 %921 }
0x1aa0   :  { %v924_v17 = vadd.f32 %v922_v15, %v914_v14 }
0x1aa2   :  { %8111 = vtanh.f32 %v924_v17 }
0x1aac   :  { %v8112_v19 = vpop.eup %8111 }
0x1aad   :  { %927 = vrot.lane.b32.xlu0 %v8112_v19, %s8580_s3 }
0x1b1f   :  { %v928_v22 = vpop.permute.xlu0 %927 }
0x1b20   :  { %v8870_v23 = vmul.f32 %v8110_v10, %v928_v22 }
0x1b22   :  { %v937_v24 = vpack.c.bf16 %v8870_v23, %v8870_v23 }
0x1b24   :  { %939 = vrot.lane.b32.xlu1 %v937_v24, %s8581_s22 }
0x1b96   :  { %v940_v25 = vpop.permute.xlu1 %939 }
0x1b97   :  { %7408 = vmatmul.mubr.msk.bf16.vlgmr.msra.gmra.mrb[24].mxu0 %vm159_vm3, %v940_v25 }
0x1b98   :  { %7420 = vmatpush3.bf16.msra.mxu0 %v8684_v16  ;;  %7423 = vmatprep.mubr.msk.bf16.mxu0 %vm8578_vm2, %v8577_v7 }
0x1b99   :  { %7421 = vmatprep.subr.bf16.mxu0 %v8577_v7 }
0x1b9c   :  { %7422 = vmatpush3.bf16.msra.mxu0 %v8689_v18 }
0x1b9d   :  { %7435 = vmatprep.subr.bf16.mxu0 %v8577_v7 }
0x1c6a   :  { %v978_v28 = vpop.f32.mrb[24].mxu0 }
0x1c6b   :  { %v984_v21 = vadd.f32 %v978_v28, %v936_v26  ;;  %v7409_v29 = vpop.f32.mrb[25].mxu0 }
0x1c6c   :  { %v981_v30 = vpop.f32.mrb[26].mxu0 }
0x1c6d   :  { %8113 = vtanh.f32 %v984_v21  ;;  %v7410_v31 = vpop.f32.mrb[27].mxu0  ;;  %v6912_v33 = vmul.f32 -1.442695, %v984_v21 }
0x1c6f   :  { %8115 = vpow2.f32 %v6912_v33 }
0x1c77   :  { %v8114_v32 = vpop.eup %8113 }
0x1c78   :  { %994 = vrot.lane.b32.xlu0 %v8114_v32, %s8580_s3 }
0x1c79   :  { %v8116_v35 = vpop.eup %8115 }
0x1c7a   :  { %v988_v36 = vadd.f32 1.0, %v8116_v35 }
0x1c7c   :  { %8117 = vrcp.f32 %v988_v36 }
0x1c86   :  { %v8118_v37 = vpop.eup %8117 }
0x1c87   :  { %v992_v40 = vmul.f32 %v8118_v37, %v924_v17 }
0x1cea   :  { %v995_v38 = vpop.permute.xlu0 %994 }
0x1ceb   :  { %v997_v39 = vmul.f32 %v8118_v37, %v995_v38 }
0x1ced   :  { %999 = vrot.lane.b32.xlu1 %v997_v39, %s8581_s22 }
0x1d5f   :  { %v1000_v41 = vpop.permute.xlu1 %999 }
0x1d60   :  { %v1002_v43 = vadd.f32 %v1000_v41, %v992_v40  ;;  %v1170_v40 = vld [vmem:[#allocation2 + $0x1a] sm:$0x3] }
0x1d62   :  { %8119 = vtanh.f32 %v1002_v43 }
0x1d6c   :  { %v8120_v44 = vpop.eup %8119 }
0x1d6d   :  { %1005 = vrot.lane.b32.xlu0 %v8120_v44, %s8580_s3 }
0x1ddf   :  { %v1006_v45 = vpop.permute.xlu0 %1005 }
0x1de0   :  { %v8885_v46 = vmul.f32 %v8118_v37, %v1006_v45 }
0x1de2   :  { %v1015_v47 = vpack.c.bf16 %v8885_v46, %v8885_v46 }
0x1de4   :  { %1017 = vrot.lane.b32.xlu1 %v1015_v47, %s8581_s22 }
0x1e56   :  { %v1018_v50 = vpop.permute.xlu1 %1017 }
0x1e57   :  { %7416 = vmatmul.mubr.msk.bf16.vlgmr.msra.gmra.mrb[24].mxu1 %vm159_vm3, %v1018_v50 }
0x1e58   :  { %7428 = vmatpush3.bf16.msra.mxu1 %v8684_v16  ;;  %7431 = vmatprep.mubr.msk.bf16.mxu1 %vm8578_vm2, %v8577_v7 }
0x1e59   :  { %7429 = vmatprep.subr.bf16.mxu1 %v8577_v7 }
0x1e5c   :  { %7430 = vmatpush3.bf16.msra.mxu1 %v8689_v18 }
0x1e5d   :  { %7443 = vmatprep.subr.bf16.mxu1 %v8577_v7 }
0x1f2a   :  { %v1056_v52 = vpop.f32.mrb[24].mxu1 }
0x1f2b   :  { %v1062_v53 = vadd.f32 %v1056_v52, %v1014_v51  ;;  %v7417_v54 = vpop.f32.mrb[25].mxu1 }
0x1f2c   :  { %v1059_v55 = vpop.f32.mrb[26].mxu1 }
0x1f2d   :  { %8121 = vtanh.f32 %v1062_v53  ;;  %v7418_v56 = vpop.f32.mrb[27].mxu1  ;;  %v6914_v59 = vmul.f32 -1.442695, %v1062_v53 }
0x1f2f   :  { %8123 = vpow2.f32 %v6914_v59 }
0x1f37   :  { %v8122_v57 = vpop.eup %8121 }
0x1f38   :  { %1072 = vrot.lane.b32.xlu0 %v8122_v57, %s8580_s3 }
0x1f39   :  { %v8124_v60 = vpop.eup %8123 }
0x1f3a   :  { %v1066_v61 = vadd.f32 1.0, %v8124_v60 }
0x1f3c   :  { %8125 = vrcp.f32 %v1066_v61 }
0x1f46   :  { %v8126_v62 = vpop.eup %8125 }
0x1f47   :  { %v1070_v2 = vmul.f32 %v8126_v62, %v1002_v43 }
0x1faa   :  { %v1073_v63 = vpop.permute.xlu0 %1072 }
0x1fab   :  { %v1075_v1 = vmul.f32 %v8126_v62, %v1073_v63 }
0x1fad   :  { %1077 = vrot.lane.b32.xlu1 %v1075_v1, %s8581_s22 }
0x201f   :  { %v1078_v3 = vpop.permute.xlu1 %1077 }
0x2020   :  { %v1080_v4 = vadd.f32 %v1078_v3, %v1070_v2  ;;  %v1248_v3 = vld [vmem:[#allocation2 + $0x1c] sm:$0x3] }
0x2022   :  { %8127 = vtanh.f32 %v1080_v4 }
0x202c   :  { %v8128_v5 = vpop.eup %8127 }
0x202d   :  { %1083 = vrot.lane.b32.xlu0 %v8128_v5, %s8580_s3 }
0x209f   :  { %v1084_v6 = vpop.permute.xlu0 %1083 }
0x20a0   :  { %v8900_v9 = vmul.f32 %v8126_v62, %v1084_v6 }
0x20a2   :  { %v1093_v10 = vpack.c.bf16 %v8900_v9, %v8900_v9 }
0x20a4   :  { %1095 = vrot.lane.b32.xlu1 %v1093_v10, %s8581_s22 }
0x2116   :  { %v1096_v12 = vpop.permute.xlu1 %1095 }
0x2117   :  { %7424 = vmatmul.mubr.msk.bf16.vlgmr.msra.gmra.mrb[28].mxu0 %vm159_vm3, %v1096_v12 }
0x2118   :  { %7436 = vmatpush3.bf16.msra.mxu0 %v8684_v16  ;;  %7439 = vmatprep.mubr.msk.bf16.mxu0 %vm8578_vm2, %v8577_v7 }
0x2119   :  { %7437 = vmatprep.subr.bf16.mxu0 %v8577_v7 }
0x211c   :  { %7438 = vmatpush3.bf16.msra.mxu0 %v8689_v18 }
0x211d   :  { %7451 = vmatprep.subr.bf16.mxu0 %v8577_v7 }
0x21ea   :  { %v1134_v14 = vpop.f32.mrb[28].mxu0 }
0x21eb   :  { %v1140_v15 = vadd.f32 %v1134_v14, %v1092_v13  ;;  %v7425_v17 = vpop.f32.mrb[29].mxu0 }
0x21ec   :  { %v1137_v19 = vpop.f32.mrb[30].mxu0 }
0x21ed   :  { %8129 = vtanh.f32 %v1140_v15  ;;  %v7426_v22 = vpop.f32.mrb[31].mxu0  ;;  %v6916_v25 = vmul.f32 -1.442695, %v1140_v15 }
0x21ef   :  { %8131 = vpow2.f32 %v6916_v25 }
0x21f7   :  { %v8130_v24 = vpop.eup %8129 }
0x21f8   :  { %1150 = vrot.lane.b32.xlu0 %v8130_v24, %s8580_s3 }
0x21f9   :  { %v8132_v26 = vpop.eup %8131 }
0x21fa   :  { %v1144_v28 = vadd.f32 1.0, %v8132_v26 }
0x21fc   :  { %8133 = vrcp.f32 %v1144_v28 }
0x2206   :  { %v8134_v21 = vpop.eup %8133 }
0x2207   :  { %v1148_v31 = vmul.f32 %v8134_v21, %v1080_v4 }
0x226a   :  { %v1151_v29 = vpop.permute.xlu0 %1150 }
0x226b   :  { %v1153_v30 = vmul.f32 %v8134_v21, %v1151_v29 }
0x226d   :  { %1155 = vrot.lane.b32.xlu1 %v1153_v30, %s8581_s22 }
0x22df   :  { %v1156_v32 = vpop.permute.xlu1 %1155 }
0x22e0   :  { %v1158_v33 = vadd.f32 %v1156_v32, %v1148_v31 }
0x22e2   :  { %8135 = vtanh.f32 %v1158_v33 }
0x22ec   :  { %v8136_v35 = vpop.eup %8135 }
0x22ed   :  { %1161 = vrot.lane.b32.xlu0 %v8136_v35, %s8580_s3 }
0x235f   :  { %v1162_v36 = vpop.permute.xlu0 %1161 }
0x2360   :  { %v8915_v37 = vmul.f32 %v8134_v21, %v1162_v36 }
0x2362   :  { %v1171_v38 = vpack.c.bf16 %v8915_v37, %v8915_v37 }
0x2364   :  { %1173 = vrot.lane.b32.xlu1 %v1171_v38, %s8581_s22 }
0x23d6   :  { %v1174_v39 = vpop.permute.xlu1 %1173 }
0x23d7   :  { %7432 = vmatmul.mubr.msk.bf16.vlgmr.msra.gmra.mrb[28].mxu1 %vm159_vm3, %v1174_v39 }
0x23d8   :  { %7444 = vmatpush3.bf16.msra.mxu1 %v8684_v16  ;;  %7447 = vmatprep.mubr.msk.bf16.mxu1 %vm8578_vm2, %v8577_v7 }
0x23d9   :  { %7445 = vmatprep.subr.bf16.mxu1 %v8577_v7 }
0x23dc   :  { %7446 = vmatpush3.bf16.msra.mxu1 %v8689_v18 }
0x23dd   :  { %7459 = vmatprep.subr.bf16.mxu1 %v8577_v7 }
0x24aa   :  { %v1212_v41 = vpop.f32.mrb[28].mxu1 }
0x24ab   :  { %v1218_v43 = vadd.f32 %v1212_v41, %v1170_v40  ;;  %v7433_v44 = vpop.f32.mrb[29].mxu1 }
0x24ac   :  { %v1215_v45 = vpop.f32.mrb[30].mxu1 }
0x24ad   :  { %8137 = vtanh.f32 %v1218_v43  ;;  %v7434_v47 = vpop.f32.mrb[31].mxu1  ;;  %v6918_v51 = vmul.f32 -1.442695, %v1218_v43 }
0x24af   :  { %8139 = vpow2.f32 %v6918_v51 }
0x24b7   :  { %v8138_v50 = vpop.eup %8137 }
0x24b8   :  { %1228 = vrot.lane.b32.xlu0 %v8138_v50, %s8580_s3 }
0x24b9   :  { %v8140_v52 = vpop.eup %8139 }
0x24ba   :  { %v1222_v53 = vadd.f32 1.0, %v8140_v52 }
0x24bc   :  { %8141 = vrcp.f32 %v1222_v53 }
0x24c6   :  { %v8142_v54 = vpop.eup %8141 }
0x24c7   :  { %v1226_v57 = vmul.f32 %v8142_v54, %v1158_v33  ;;  %v1326_v33 = vld [vmem:[#allocation2 + $0x1e] sm:$0x3] }
0x252a   :  { %v1229_v55 = vpop.permute.xlu0 %1228 }
0x252b   :  { %v1231_v56 = vmul.f32 %v8142_v54, %v1229_v55 }
0x252d   :  { %1233 = vrot.lane.b32.xlu1 %v1231_v56, %s8581_s22 }
0x259f   :  { %v1234_v59 = vpop.permute.xlu1 %1233 }
0x25a0   :  { %v1236_v60 = vadd.f32 %v1234_v59, %v1226_v57 }
0x25a2   :  { %8143 = vtanh.f32 %v1236_v60 }
0x25ac   :  { %v8144_v61 = vpop.eup %8143 }
0x25ad   :  { %1239 = vrot.lane.b32.xlu0 %v8144_v61, %s8580_s3  ;;  %v1404_v61 = vld [vmem:[#allocation2 + $0x20] sm:$0x3] }
0x261f   :  { %v1240_v62 = vpop.permute.xlu0 %1239 }
0x2620   :  { %v8930_v63 = vmul.f32 %v8142_v54, %v1240_v62 }
0x2622   :  { %v1249_v1 = vpack.c.bf16 %v8930_v63, %v8930_v63 }
0x2624   :  { %1251 = vrot.lane.b32.xlu1 %v1249_v1, %s8581_s22 }
0x2696   :  { %v1252_v2 = vpop.permute.xlu1 %1251 }
0x2697   :  { %7440 = vmatmul.mubr.msk.bf16.vlgmr.msra.gmra.mrb[32].mxu0 %vm159_vm3, %v1252_v2 }
0x2698   :  { %7452 = vmatpush3.bf16.msra.mxu0 %v8684_v16  ;;  %7455 = vmatprep.mubr.msk.bf16.mxu0 %vm8578_vm2, %v8577_v7 }
0x2699   :  { %7453 = vmatprep.subr.bf16.mxu0 %v8577_v7 }
0x269c   :  { %7454 = vmatpush3.bf16.msra.mxu0 %v8689_v18 }
0x269d   :  { %7467 = vmatprep.subr.bf16.mxu0 %v8577_v7 }
0x276a   :  { %v1290_v4 = vpop.f32.mrb[32].mxu0 }
0x276b   :  { %v1296_v5 = vadd.f32 %v1290_v4, %v1248_v3  ;;  %v7441_v6 = vpop.f32.mrb[33].mxu0 }
0x276c   :  { %v1293_v10 = vpop.f32.mrb[34].mxu0 }
0x276d   :  { %8145 = vtanh.f32 %v1296_v5  ;;  %v7442_v12 = vpop.f32.mrb[35].mxu0  ;;  %v6920_v14 = vmul.f32 -1.442695, %v1296_v5 }
0x276f   :  { %8147 = vpow2.f32 %v6920_v14 }
0x2777   :  { %v8146_v13 = vpop.eup %8145 }
0x2778   :  { %1306 = vrot.lane.b32.xlu0 %v8146_v13, %s8580_s3 }
0x2779   :  { %v8148_v15 = vpop.eup %8147 }
0x277a   :  { %v1300_v17 = vadd.f32 1.0, %v8148_v15 }
0x277c   :  { %8149 = vrcp.f32 %v1300_v17 }
0x2786   :  { %v8150_v19 = vpop.eup %8149 }
0x2787   :  { %v1304_v25 = vmul.f32 %v8150_v19, %v1236_v60 }
0x27ea   :  { %v1307_v22 = vpop.permute.xlu0 %1306 }
0x27eb   :  { %v1309_v24 = vmul.f32 %v8150_v19, %v1307_v22 }
0x27ed   :  { %1311 = vrot.lane.b32.xlu1 %v1309_v24, %s8581_s22 }
0x285f   :  { %v1312_v26 = vpop.permute.xlu1 %1311 }
0x2860   :  { %v1314_v28 = vadd.f32 %v1312_v26, %v1304_v25 }
0x2862   :  { %8151 = vtanh.f32 %v1314_v28 }
0x286c   :  { %v8152_v21 = vpop.eup %8151 }
0x286d   :  { %1317 = vrot.lane.b32.xlu0 %v8152_v21, %s8580_s3 }
0x28df   :  { %v1318_v29 = vpop.permute.xlu0 %1317 }
0x28e0   :  { %v8945_v30 = vmul.f32 %v8150_v19, %v1318_v29  ;;  %v1482_v29 = vld [vmem:[#allocation2 + $0x22] sm:$0x3] }
0x28e2   :  { %v1327_v31 = vpack.c.bf16 %v8945_v30, %v8945_v30 }
0x28e4   :  { %1329 = vrot.lane.b32.xlu1 %v1327_v31, %s8581_s22 }
0x2956   :  { %v1330_v32 = vpop.permute.xlu1 %1329 }
0x2957   :  { %7448 = vmatmul.mubr.msk.bf16.vlgmr.msra.gmra.mrb[32].mxu1 %vm159_vm3, %v1330_v32 }
0x2958   :  { %7460 = vmatpush3.bf16.msra.mxu1 %v8684_v16  ;;  %7463 = vmatprep.mubr.msk.bf16.mxu1 %vm8578_vm2, %v8577_v7 }
0x2959   :  { %7461 = vmatprep.subr.bf16.mxu1 %v8577_v7 }
0x295c   :  { %7462 = vmatpush3.bf16.msra.mxu1 %v8689_v18 }
0x295d   :  { %7475 = vmatprep.subr.bf16.mxu1 %v8577_v7 }
0x2a2a   :  { %v1368_v35 = vpop.f32.mrb[32].mxu1 }
0x2a2b   :  { %v1374_v36 = vadd.f32 %v1368_v35, %v1326_v33  ;;  %v7449_v38 = vpop.f32.mrb[33].mxu1 }
0x2a2c   :  { %v1371_v39 = vpop.f32.mrb[34].mxu1 }
0x2a2d   :  { %8153 = vtanh.f32 %v1374_v36  ;;  %v7450_v40 = vpop.f32.mrb[35].mxu1  ;;  %v6922_v43 = vmul.f32 -1.442695, %v1374_v36 }
0x2a2f   :  { %8155 = vpow2.f32 %v6922_v43 }
0x2a37   :  { %v8154_v41 = vpop.eup %8153 }
0x2a38   :  { %1384 = vrot.lane.b32.xlu0 %v8154_v41, %s8580_s3 }
0x2a39   :  { %v8156_v44 = vpop.eup %8155 }
0x2a3a   :  { %v1378_v45 = vadd.f32 1.0, %v8156_v44 }
0x2a3c   :  { %8157 = vrcp.f32 %v1378_v45 }
0x2a46   :  { %v8158_v47 = vpop.eup %8157 }
0x2a47   :  { %v1382_v52 = vmul.f32 %v8158_v47, %v1314_v28 }
0x2aaa   :  { %v1385_v50 = vpop.permute.xlu0 %1384 }
0x2aab   :  { %v1387_v51 = vmul.f32 %v8158_v47, %v1385_v50 }
0x2aad   :  { %1389 = vrot.lane.b32.xlu1 %v1387_v51, %s8581_s22 }
0x2b1f   :  { %v1390_v53 = vpop.permute.xlu1 %1389 }
0x2b20   :  { %v1392_v54 = vadd.f32 %v1390_v53, %v1382_v52 }
0x2b22   :  { %8159 = vtanh.f32 %v1392_v54 }
0x2b2c   :  { %v8160_v55 = vpop.eup %8159 }
0x2b2d   :  { %1395 = vrot.lane.b32.xlu0 %v8160_v55, %s8580_s3 }
0x2b9f   :  { %v1396_v56 = vpop.permute.xlu0 %1395 }
0x2ba0   :  { %v8960_v57 = vmul.f32 %v8158_v47, %v1396_v56 }
0x2ba2   :  { %v1405_v59 = vpack.c.bf16 %v8960_v57, %v8960_v57 }
0x2ba4   :  { %1407 = vrot.lane.b32.xlu1 %v1405_v59, %s8581_s22  ;;  %v1560_v59 = vld [vmem:[#allocation2 + $0x24] sm:$0x3] }
0x2c16   :  { %v1408_v60 = vpop.permute.xlu1 %1407 }
0x2c17   :  { %7456 = vmatmul.mubr.msk.bf16.vlgmr.msra.gmra.mrb[36].mxu0 %vm159_vm3, %v1408_v60 }
0x2c18   :  { %7468 = vmatpush3.bf16.msra.mxu0 %v8684_v16  ;;  %7471 = vmatprep.mubr.msk.bf16.mxu0 %vm8578_vm2, %v8577_v7 }
0x2c19   :  { %7469 = vmatprep.subr.bf16.mxu0 %v8577_v7 }
0x2c1c   :  { %7470 = vmatpush3.bf16.msra.mxu0 %v8689_v18 }
0x2c1d   :  { %7483 = vmatprep.subr.bf16.mxu0 %v8577_v7 }
0x2cea   :  { %v1446_v62 = vpop.f32.mrb[36].mxu0 }
0x2ceb   :  { %v1452_v1 = vadd.f32 %v1446_v62, %v1404_v61  ;;  %v7457_v2 = vpop.f32.mrb[37].mxu0 }
0x2cec   :  { %v1449_v3 = vpop.f32.mrb[38].mxu0 }
0x2ced   :  { %8161 = vtanh.f32 %v1452_v1  ;;  %v7458_v4 = vpop.f32.mrb[39].mxu0  ;;  %v6924_v6 = vmul.f32 -1.442695, %v1452_v1 }
0x2cef   :  { %8163 = vpow2.f32 %v6924_v6 }
0x2cf7   :  { %v8162_v5 = vpop.eup %8161 }
0x2cf8   :  { %1462 = vrot.lane.b32.xlu0 %v8162_v5, %s8580_s3 }
0x2cf9   :  { %v8164_v10 = vpop.eup %8163 }
0x2cfa   :  { %v1456_v12 = vadd.f32 1.0, %v8164_v10 }
0x2cfc   :  { %8165 = vrcp.f32 %v1456_v12 }
0x2d06   :  { %v8166_v13 = vpop.eup %8165 }
0x2d07   :  { %v1460_v17 = vmul.f32 %v8166_v13, %v1392_v54 }
0x2d6a   :  { %v1463_v14 = vpop.permute.xlu0 %1462 }
0x2d6b   :  { %v1465_v15 = vmul.f32 %v8166_v13, %v1463_v14 }
0x2d6d   :  { %1467 = vrot.lane.b32.xlu1 %v1465_v15, %s8581_s22 }
0x2ddf   :  { %v1468_v19 = vpop.permute.xlu1 %1467 }
0x2de0   :  { %v1470_v22 = vadd.f32 %v1468_v19, %v1460_v17 }
0x2de2   :  { %8167 = vtanh.f32 %v1470_v22 }
0x2dec   :  { %v8168_v24 = vpop.eup %8167 }
0x2ded   :  { %1473 = vrot.lane.b32.xlu0 %v8168_v24, %s8580_s3 }
0x2e5f   :  { %v1474_v25 = vpop.permute.xlu0 %1473 }
0x2e60   :  { %v8975_v26 = vmul.f32 %v8166_v13, %v1474_v25 }
0x2e62   :  { %v1483_v28 = vpack.c.bf16 %v8975_v26, %v8975_v26 }
0x2e64   :  { %1485 = vrot.lane.b32.xlu1 %v1483_v28, %s8581_s22 }
0x2ed6   :  { %v1486_v21 = vpop.permute.xlu1 %1485 }
0x2ed7   :  { %7464 = vmatmul.mubr.msk.bf16.vlgmr.msra.gmra.mrb[36].mxu1 %vm159_vm3, %v1486_v21  ;;  %v1638_v21 = vld [vmem:[#allocation2 + $0x26] sm:$0x3] }
0x2ed8   :  { %7476 = vmatpush3.bf16.msra.mxu1 %v8684_v16  ;;  %7479 = vmatprep.mubr.msk.bf16.mxu1 %vm8578_vm2, %v8577_v7 }
0x2ed9   :  { %7477 = vmatprep.subr.bf16.mxu1 %v8577_v7 }
0x2edc   :  { %7478 = vmatpush3.bf16.msra.mxu1 %v8689_v18 }
0x2edd   :  { %7491 = vmatprep.subr.bf16.mxu1 %v8577_v7 }
0x2faa   :  { %v1524_v31 = vpop.f32.mrb[36].mxu1 }
0x2fab   :  { %v1530_v32 = vadd.f32 %v1524_v31, %v1482_v29  ;;  %v7465_v33 = vpop.f32.mrb[37].mxu1 }
0x2fac   :  { %v1527_v35 = vpop.f32.mrb[38].mxu1 }
0x2fad   :  { %8169 = vtanh.f32 %v1530_v32  ;;  %v7466_v36 = vpop.f32.mrb[39].mxu1  ;;  %v6926_v39 = vmul.f32 -1.442695, %v1530_v32 }
0x2faf   :  { %8171 = vpow2.f32 %v6926_v39 }
0x2fb7   :  { %v8170_v38 = vpop.eup %8169 }
0x2fb8   :  { %1540 = vrot.lane.b32.xlu0 %v8170_v38, %s8580_s3 }
0x2fb9   :  { %v8172_v40 = vpop.eup %8171 }
0x2fba   :  { %v1534_v41 = vadd.f32 1.0, %v8172_v40 }
0x2fbc   :  { %8173 = vrcp.f32 %v1534_v41 }
0x2fc6   :  { %v8174_v43 = vpop.eup %8173 }
0x2fc7   :  { %v1538_v47 = vmul.f32 %v8174_v43, %v1470_v22 }
0x302a   :  { %v1541_v44 = vpop.permute.xlu0 %1540 }
0x302b   :  { %v1543_v45 = vmul.f32 %v8174_v43, %v1541_v44 }
0x302d   :  { %1545 = vrot.lane.b32.xlu1 %v1543_v45, %s8581_s22 }
0x309f   :  { %v1546_v50 = vpop.permute.xlu1 %1545 }
0x30a0   :  { %v1548_v51 = vadd.f32 %v1546_v50, %v1538_v47 }
0x30a2   :  { %8175 = vtanh.f32 %v1548_v51 }
0x30ac   :  { %v8176_v52 = vpop.eup %8175 }
0x30ad   :  { %1551 = vrot.lane.b32.xlu0 %v8176_v52, %s8580_s3 }
0x311f   :  { %v1552_v53 = vpop.permute.xlu0 %1551 }
0x3120   :  { %v8990_v54 = vmul.f32 %v8174_v43, %v1552_v53 }
0x3122   :  { %v1561_v55 = vpack.c.bf16 %v8990_v54, %v8990_v54 }
0x3124   :  { %1563 = vrot.lane.b32.xlu1 %v1561_v55, %s8581_s22 }
0x3196   :  { %v1564_v56 = vpop.permute.xlu1 %1563 }
0x3197   :  { %7472 = vmatmul.mubr.msk.bf16.vlgmr.msra.gmra.mrb[40].mxu0 %vm159_vm3, %v1564_v56 }
0x3198   :  { %7484 = vmatpush3.bf16.msra.mxu0 %v8684_v16  ;;  %7487 = vmatprep.mubr.msk.bf16.mxu0 %vm8578_vm2, %v8577_v7 }
0x3199   :  { %7485 = vmatprep.subr.bf16.mxu0 %v8577_v7 }
0x319c   :  { %7486 = vmatpush3.bf16.msra.mxu0 %v8689_v18 }
0x319d   :  { %7499 = vmatprep.subr.bf16.mxu0 %v8577_v7 }
0x326a   :  { %v1602_v60 = vpop.f32.mrb[40].mxu0 }
0x326b   :  { %v1608_v61 = vadd.f32 %v1602_v60, %v1560_v59  ;;  %v7473_v62 = vpop.f32.mrb[41].mxu0  ;;  %v1716_v59 = vld [vmem:[#allocation2 + $0x28] sm:$0x3] }
0x326c   :  { %v1605_v1 = vpop.f32.mrb[42].mxu0 }
0x326d   :  { %8177 = vtanh.f32 %v1608_v61  ;;  %v7474_v2 = vpop.f32.mrb[43].mxu0  ;;  %v6928_v4 = vmul.f32 -1.442695, %v1608_v61 }
0x326f   :  { %8179 = vpow2.f32 %v6928_v4 }
0x3277   :  { %v8178_v3 = vpop.eup %8177 }
0x3278   :  { %1618 = vrot.lane.b32.xlu0 %v8178_v3, %s8580_s3 }
0x3279   :  { %v8180_v5 = vpop.eup %8179 }
0x327a   :  { %v1612_v6 = vadd.f32 1.0, %v8180_v5 }
0x327c   :  { %8181 = vrcp.f32 %v1612_v6 }
0x3286   :  { %v8182_v10 = vpop.eup %8181 }
0x3287   :  { %v1616_v14 = vmul.f32 %v8182_v10, %v1548_v51 }
0x32ea   :  { %v1619_v12 = vpop.permute.xlu0 %1618 }
0x32eb   :  { %v1621_v13 = vmul.f32 %v8182_v10, %v1619_v12 }
0x32ed   :  { %1623 = vrot.lane.b32.xlu1 %v1621_v13, %s8581_s22 }
0x335f   :  { %v1624_v15 = vpop.permute.xlu1 %1623 }
0x3360   :  { %v1626_v17 = vadd.f32 %v1624_v15, %v1616_v14 }
0x3362   :  { %8183 = vtanh.f32 %v1626_v17 }
0x336c   :  { %v8184_v19 = vpop.eup %8183 }
0x336d   :  { %1629 = vrot.lane.b32.xlu0 %v8184_v19, %s8580_s3 }
0x33df   :  { %v1630_v22 = vpop.permute.xlu0 %1629 }
0x33e0   :  { %v9005_v24 = vmul.f32 %v8182_v10, %v1630_v22 }
0x33e2   :  { %v1639_v25 = vpack.c.bf16 %v9005_v24, %v9005_v24 }
0x33e4   :  { %1641 = vrot.lane.b32.xlu1 %v1639_v25, %s8581_s22 }
0x3456   :  { %v1642_v28 = vpop.permute.xlu1 %1641 }
0x3457   :  { %7480 = vmatmul.mubr.msk.bf16.vlgmr.msra.gmra.mrb[40].mxu1 %vm159_vm3, %v1642_v28 }
0x3458   :  { %7492 = vmatpush3.bf16.msra.mxu1 %v8684_v16  ;;  %7495 = vmatprep.mubr.msk.bf16.mxu1 %vm8578_vm2, %v8577_v7 }
0x3459   :  { %7493 = vmatprep.subr.bf16.mxu1 %v8577_v7 }
0x345c   :  { %7494 = vmatpush3.bf16.msra.mxu1 %v8689_v18 }
0x345d   :  { %7507 = vmatprep.subr.bf16.mxu1 %v8577_v7 }
0x352a   :  { %v1680_v29 = vpop.f32.mrb[40].mxu1 }
0x352b   :  { %v1686_v31 = vadd.f32 %v1680_v29, %v1638_v21  ;;  %v7481_v32 = vpop.f32.mrb[41].mxu1  ;;  %v1794_v29 = vld [vmem:[#allocation2 + $0x2a] sm:$0x3] }
0x352c   :  { %v1683_v33 = vpop.f32.mrb[42].mxu1 }
0x352d   :  { %8185 = vtanh.f32 %v1686_v31  ;;  %v7482_v35 = vpop.f32.mrb[43].mxu1  ;;  %v6930_v38 = vmul.f32 -1.442695, %v1686_v31 }
0x352f   :  { %8187 = vpow2.f32 %v6930_v38 }
0x3537   :  { %v8186_v36 = vpop.eup %8185 }
0x3538   :  { %1696 = vrot.lane.b32.xlu0 %v8186_v36, %s8580_s3 }
0x3539   :  { %v8188_v39 = vpop.eup %8187 }
0x353a   :  { %v1690_v40 = vadd.f32 1.0, %v8188_v39 }
0x353c   :  { %8189 = vrcp.f32 %v1690_v40 }
0x3546   :  { %v8190_v41 = vpop.eup %8189 }
0x3547   :  { %v1694_v45 = vmul.f32 %v8190_v41, %v1626_v17 }
0x35aa   :  { %v1697_v43 = vpop.permute.xlu0 %1696 }
0x35ab   :  { %v1699_v44 = vmul.f32 %v8190_v41, %v1697_v43 }
0x35ad   :  { %1701 = vrot.lane.b32.xlu1 %v1699_v44, %s8581_s22 }
0x361f   :  { %v1702_v47 = vpop.permute.xlu1 %1701 }
0x3620   :  { %v1704_v50 = vadd.f32 %v1702_v47, %v1694_v45 }
0x3622   :  { %8191 = vtanh.f32 %v1704_v50 }
0x362c   :  { %v8192_v51 = vpop.eup %8191 }
0x362d   :  { %1707 = vrot.lane.b32.xlu0 %v8192_v51, %s8580_s3 }
0x369f   :  { %v1708_v52 = vpop.permute.xlu0 %1707 }
0x36a0   :  { %v9020_v53 = vmul.f32 %v8190_v41, %v1708_v52 }
0x36a2   :  { %v1717_v55 = vpack.c.bf16 %v9020_v53, %v9020_v53 }
0x36a4   :  { %1719 = vrot.lane.b32.xlu1 %v1717_v55, %s8581_s22 }
0x3716   :  { %v1720_v56 = vpop.permute.xlu1 %1719 }
0x3717   :  { %7488 = vmatmul.mubr.msk.bf16.vlgmr.msra.gmra.mrb[44].mxu0 %vm159_vm3, %v1720_v56 }
0x3718   :  { %7500 = vmatpush3.bf16.msra.mxu0 %v8684_v16  ;;  %7503 = vmatprep.mubr.msk.bf16.mxu0 %vm8578_vm2, %v8577_v7 }
0x3719   :  { %7501 = vmatprep.subr.bf16.mxu0 %v8577_v7 }
0x371c   :  { %7502 = vmatpush3.bf16.msra.mxu0 %v8689_v18 }
0x371d   :  { %7515 = vmatprep.subr.bf16.mxu0 %v8577_v7 }
0x37ea   :  { %v1758_v60 = vpop.f32.mrb[44].mxu0 }
0x37eb   :  { %v1764_v61 = vadd.f32 %v1758_v60, %v1716_v59  ;;  %v7489_v62 = vpop.f32.mrb[45].mxu0 }
0x37ec   :  { %v1761_v1 = vpop.f32.mrb[46].mxu0 }
0x37ed   :  { %8193 = vtanh.f32 %v1764_v61  ;;  %v7490_v2 = vpop.f32.mrb[47].mxu0  ;;  %v6932_v4 = vmul.f32 -1.442695, %v1764_v61  ;;  %v1872_v61 = vld [vmem:[#allocation2 + $0x2c] sm:$0x3] }
0x37ef   :  { %8195 = vpow2.f32 %v6932_v4 }
0x37f7   :  { %v8194_v3 = vpop.eup %8193 }
0x37f8   :  { %1774 = vrot.lane.b32.xlu0 %v8194_v3, %s8580_s3 }
0x37f9   :  { %v8196_v5 = vpop.eup %8195 }
0x37fa   :  { %v1768_v6 = vadd.f32 1.0, %v8196_v5 }
0x37fc   :  { %8197 = vrcp.f32 %v1768_v6 }
0x3806   :  { %v8198_v10 = vpop.eup %8197 }
0x3807   :  { %v1772_v14 = vmul.f32 %v8198_v10, %v1704_v50 }
0x386a   :  { %v1775_v12 = vpop.permute.xlu0 %1774 }
0x386b   :  { %v1777_v13 = vmul.f32 %v8198_v10, %v1775_v12 }
0x386d   :  { %1779 = vrot.lane.b32.xlu1 %v1777_v13, %s8581_s22 }
0x38df   :  { %v1780_v15 = vpop.permute.xlu1 %1779 }
0x38e0   :  { %v1782_v17 = vadd.f32 %v1780_v15, %v1772_v14 }
0x38e2   :  { %8199 = vtanh.f32 %v1782_v17 }
0x38ec   :  { %v8200_v19 = vpop.eup %8199 }
0x38ed   :  { %1785 = vrot.lane.b32.xlu0 %v8200_v19, %s8580_s3 }
0x395f   :  { %v1786_v22 = vpop.permute.xlu0 %1785 }
0x3960   :  { %v9035_v25 = vmul.f32 %v8198_v10, %v1786_v22 }
0x3962   :  { %v1795_v28 = vpack.c.bf16 %v9035_v25, %v9035_v25 }
0x3964   :  { %1797 = vrot.lane.b32.xlu1 %v1795_v28, %s8581_s22 }
0x39d6   :  { %v1798_v21 = vpop.permute.xlu1 %1797 }
0x39d7   :  { %7496 = vmatmul.mubr.msk.bf16.vlgmr.msra.gmra.mrb[44].mxu1 %vm159_vm3, %v1798_v21 }
0x39d8   :  { %7508 = vmatpush3.bf16.msra.mxu1 %v8684_v16  ;;  %7511 = vmatprep.mubr.msk.bf16.mxu1 %vm8578_vm2, %v8577_v7 }
0x39d9   :  { %7509 = vmatprep.subr.bf16.mxu1 %v8577_v7 }
0x39dc   :  { %7510 = vmatpush3.bf16.msra.mxu1 %v8689_v18 }
0x39dd   :  { %7523 = vmatprep.subr.bf16.mxu1 %v8577_v7 }
0x3aaa   :  { %v1836_v31 = vpop.f32.mrb[44].mxu1 }
0x3aab   :  { %v1842_v32 = vadd.f32 %v1836_v31, %v1794_v29  ;;  %v7497_v33 = vpop.f32.mrb[45].mxu1 }
0x3aac   :  { %v1839_v35 = vpop.f32.mrb[46].mxu1  ;;  %v1950_v33 = vld [vmem:[#allocation2 + $0x2e] sm:$0x3] }
0x3aad   :  { %8201 = vtanh.f32 %v1842_v32  ;;  %v7498_v36 = vpop.f32.mrb[47].mxu1  ;;  %v6934_v39 = vmul.f32 -1.442695, %v1842_v32 }
0x3aaf   :  { %8203 = vpow2.f32 %v6934_v39 }
0x3ab7   :  { %v8202_v38 = vpop.eup %8201 }
0x3ab8   :  { %1852 = vrot.lane.b32.xlu0 %v8202_v38, %s8580_s3 }
0x3ab9   :  { %v8204_v40 = vpop.eup %8203 }
0x3aba   :  { %v1846_v41 = vadd.f32 1.0, %v8204_v40 }
0x3abc   :  { %8205 = vrcp.f32 %v1846_v41 }
0x3ac6   :  { %v8206_v43 = vpop.eup %8205 }
0x3ac7   :  { %v1850_v47 = vmul.f32 %v8206_v43, %v1782_v17 }
0x3b2a   :  { %v1853_v44 = vpop.permute.xlu0 %1852 }
0x3b2b   :  { %v1855_v45 = vmul.f32 %v8206_v43, %v1853_v44 }
0x3b2d   :  { %1857 = vrot.lane.b32.xlu1 %v1855_v45, %s8581_s22 }
0x3b9f   :  { %v1858_v50 = vpop.permute.xlu1 %1857 }
0x3ba0   :  { %v1860_v51 = vadd.f32 %v1858_v50, %v1850_v47 }
0x3ba2   :  { %8207 = vtanh.f32 %v1860_v51 }
0x3bac   :  { %v8208_v52 = vpop.eup %8207 }
0x3bad   :  { %1863 = vrot.lane.b32.xlu0 %v8208_v52, %s8580_s3 }
0x3c1f   :  { %v1864_v55 = vpop.permute.xlu0 %1863 }
0x3c20   :  { %v9050_v56 = vmul.f32 %v8206_v43, %v1864_v55 }
0x3c22   :  { %v1873_v59 = vpack.c.bf16 %v9050_v56, %v9050_v56 }
0x3c24   :  { %1875 = vrot.lane.b32.xlu1 %v1873_v59, %s8581_s22 }
0x3c96   :  { %v1876_v60 = vpop.permute.xlu1 %1875 }
0x3c97   :  { %7504 = vmatmul.mubr.msk.bf16.vlgmr.msra.gmra.mrb[48].mxu0 %vm159_vm3, %v1876_v60 }
0x3c98   :  { %7516 = vmatpush3.bf16.msra.mxu0 %v8684_v16  ;;  %7519 = vmatprep.mubr.msk.bf16.mxu0 %vm8578_vm2, %v8577_v7 }
0x3c99   :  { %7517 = vmatprep.subr.bf16.mxu0 %v8577_v7 }
0x3c9c   :  { %7518 = vmatpush3.bf16.msra.mxu0 %v8689_v18 }
0x3c9d   :  { %7531 = vmatprep.subr.bf16.mxu0 %v8577_v7 }
0x3d6a   :  { %v1914_v62 = vpop.f32.mrb[48].mxu0 }
0x3d6b   :  { %v1920_v1 = vadd.f32 %v1914_v62, %v1872_v61  ;;  %v7505_v2 = vpop.f32.mrb[49].mxu0 }
0x3d6c   :  { %v1917_v3 = vpop.f32.mrb[50].mxu0 }
0x3d6d   :  { %8209 = vtanh.f32 %v1920_v1  ;;  %v7506_v4 = vpop.f32.mrb[51].mxu0  ;;  %v6936_v6 = vmul.f32 -1.442695, %v1920_v1  ;;  %v2028_v3 = vld [vmem:[#allocation2 + $0x30] sm:$0x3] }
0x3d6f   :  { %8211 = vpow2.f32 %v6936_v6 }
0x3d77   :  { %v8210_v5 = vpop.eup %8209 }
0x3d78   :  { %1930 = vrot.lane.b32.xlu0 %v8210_v5, %s8580_s3 }
0x3d79   :  { %v8212_v10 = vpop.eup %8211 }
0x3d7a   :  { %v1924_v12 = vadd.f32 1.0, %v8212_v10 }
0x3d7c   :  { %8213 = vrcp.f32 %v1924_v12 }
0x3d86   :  { %v8214_v13 = vpop.eup %8213 }
0x3d87   :  { %v1928_v17 = vmul.f32 %v8214_v13, %v1860_v51 }
0x3dea   :  { %v1931_v14 = vpop.permute.xlu0 %1930 }
0x3deb   :  { %v1933_v15 = vmul.f32 %v8214_v13, %v1931_v14 }
0x3ded   :  { %1935 = vrot.lane.b32.xlu1 %v1933_v15, %s8581_s22 }
0x3e5f   :  { %v1936_v19 = vpop.permute.xlu1 %1935 }
0x3e60   :  { %v1938_v22 = vadd.f32 %v1936_v19, %v1928_v17 }
0x3e62   :  { %8215 = vtanh.f32 %v1938_v22 }
0x3e6c   :  { %v8216_v28 = vpop.eup %8215 }
0x3e6d   :  { %1941 = vrot.lane.b32.xlu0 %v8216_v28, %s8580_s3 }
0x3edf   :  { %v1942_v21 = vpop.permute.xlu0 %1941 }
0x3ee0   :  { %v9065_v29 = vmul.f32 %v8214_v13, %v1942_v21 }
0x3ee2   :  { %v1951_v31 = vpack.c.bf16 %v9065_v29, %v9065_v29 }
0x3ee4   :  { %1953 = vrot.lane.b32.xlu1 %v1951_v31, %s8581_s22 }
0x3f56   :  { %v1954_v32 = vpop.permute.xlu1 %1953 }
0x3f57   :  { %7512 = vmatmul.mubr.msk.bf16.vlgmr.msra.gmra.mrb[48].mxu1 %vm159_vm3, %v1954_v32 }
0x3f58   :  { %7524 = vmatpush3.bf16.msra.mxu1 %v8684_v16  ;;  %7527 = vmatprep.mubr.msk.bf16.mxu1 %vm8578_vm2, %v8577_v7 }
0x3f59   :  { %7525 = vmatprep.subr.bf16.mxu1 %v8577_v7 }
0x3f5c   :  { %7526 = vmatpush3.bf16.msra.mxu1 %v8689_v18 }
0x3f5d   :  { %7539 = vmatprep.subr.bf16.mxu1 %v8577_v7 }
0x402a   :  { %v1992_v35 = vpop.f32.mrb[48].mxu1 }
0x402b   :  { %v1998_v36 = vadd.f32 %v1992_v35, %v1950_v33  ;;  %v7513_v38 = vpop.f32.mrb[49].mxu1 }
0x402c   :  { %v1995_v39 = vpop.f32.mrb[50].mxu1 }
0x402d   :  { %8217 = vtanh.f32 %v1998_v36  ;;  %v7514_v40 = vpop.f32.mrb[51].mxu1  ;;  %v6938_v43 = vmul.f32 -1.442695, %v1998_v36 }
0x402e   :  { %v2106_v40 = vld [vmem:[#allocation2 + $0x32] sm:$0x3] }
0x402f   :  { %8219 = vpow2.f32 %v6938_v43 }
0x4037   :  { %v8218_v41 = vpop.eup %8217 }
0x4038   :  { %2008 = vrot.lane.b32.xlu0 %v8218_v41, %s8580_s3 }
0x4039   :  { %v8220_v44 = vpop.eup %8219 }
0x403a   :  { %v2002_v45 = vadd.f32 1.0, %v8220_v44 }
0x403c   :  { %8221 = vrcp.f32 %v2002_v45 }
0x4046   :  { %v8222_v47 = vpop.eup %8221 }
0x4047   :  { %v2006_v52 = vmul.f32 %v8222_v47, %v1938_v22 }
0x40aa   :  { %v2009_v50 = vpop.permute.xlu0 %2008 }
0x40ab   :  { %v2011_v51 = vmul.f32 %v8222_v47, %v2009_v50 }
0x40ad   :  { %2013 = vrot.lane.b32.xlu1 %v2011_v51, %s8581_s22 }
0x411f   :  { %v2014_v55 = vpop.permute.xlu1 %2013 }
0x4120   :  { %v2016_v59 = vadd.f32 %v2014_v55, %v2006_v52 }
0x4122   :  { %8223 = vtanh.f32 %v2016_v59 }
0x412c   :  { %v8224_v60 = vpop.eup %8223 }
0x412d   :  { %2019 = vrot.lane.b32.xlu0 %v8224_v60, %s8580_s3 }
0x419f   :  { %v2020_v61 = vpop.permute.xlu0 %2019 }
0x41a0   :  { %v9080_v62 = vmul.f32 %v8222_v47, %v2020_v61 }
0x41a2   :  { %v2029_v1 = vpack.c.bf16 %v9080_v62, %v9080_v62 }
0x41a4   :  { %2031 = vrot.lane.b32.xlu1 %v2029_v1, %s8581_s22 }
0x4216   :  { %v2032_v2 = vpop.permute.xlu1 %2031 }
0x4217   :  { %7520 = vmatmul.mubr.msk.bf16.vlgmr.msra.gmra.mrb[52].mxu0 %vm159_vm3, %v2032_v2 }
0x4218   :  { %7532 = vmatpush3.bf16.msra.mxu0 %v8684_v16  ;;  %7535 = vmatprep.mubr.msk.bf16.mxu0 %vm8578_vm2, %v8577_v7 }
0x4219   :  { %7533 = vmatprep.subr.bf16.mxu0 %v8577_v7 }
0x421c   :  { %7534 = vmatpush3.bf16.msra.mxu0 %v8689_v18 }
0x42ea   :  { %v2070_v4 = vpop.f32.mrb[52].mxu0 }
0x42eb   :  { %v2076_v5 = vadd.f32 %v2070_v4, %v2028_v3  ;;  %v7521_v6 = vpop.f32.mrb[53].mxu0 }
0x42ec   :  { %v2073_v10 = vpop.f32.mrb[54].mxu0 }
0x42ed   :  { %8225 = vtanh.f32 %v2076_v5  ;;  %v7522_v12 = vpop.f32.mrb[55].mxu0  ;;  %v6940_v14 = vmul.f32 -1.442695, %v2076_v5  ;;  %v2184_v10 = vld [vmem:[#allocation2 + $0x34] sm:$0x3] }
0x42ef   :  { %8227 = vpow2.f32 %v6940_v14 }
0x42f7   :  { %v8226_v13 = vpop.eup %8225 }
0x42f8   :  { %2086 = vrot.lane.b32.xlu0 %v8226_v13, %s8580_s3 }
0x42f9   :  { %v8228_v15 = vpop.eup %8227 }
0x42fa   :  { %v2080_v17 = vadd.f32 1.0, %v8228_v15 }
0x42fc   :  { %8229 = vrcp.f32 %v2080_v17 }
0x4306   :  { %v8230_v19 = vpop.eup %8229 }
0x4307   :  { %v2084_v21 = vmul.f32 %v8230_v19, %v2016_v59 }
0x436a   :  { %v2087_v22 = vpop.permute.xlu0 %2086 }
0x436b   :  { %v2089_v28 = vmul.f32 %v8230_v19, %v2087_v22 }
0x436d   :  { %2091 = vrot.lane.b32.xlu1 %v2089_v28, %s8581_s22 }
0x43df   :  { %v2092_v31 = vpop.permute.xlu1 %2091 }
0x43e0   :  { %v2094_v32 = vadd.f32 %v2092_v31, %v2084_v21 }
0x43e2   :  { %8231 = vtanh.f32 %v2094_v32 }
0x43ec   :  { %v8232_v33 = vpop.eup %8231 }
0x43ed   :  { %2097 = vrot.lane.b32.xlu0 %v8232_v33, %s8580_s3 }
0x445f   :  { %v2098_v35 = vpop.permute.xlu0 %2097 }
0x4460   :  { %v9094_v36 = vmul.f32 %v8230_v19, %v2098_v35 }
0x4462   :  { %v2107_v38 = vpack.c.bf16 %v9094_v36, %v9094_v36 }
0x4464   :  { %2109 = vrot.lane.b32.xlu1 %v2107_v38, %s8581_s22 }
0x44d6   :  { %v2110_v39 = vpop.permute.xlu1 %2109 }
0x44d7   :  { %7528 = vmatmul.mubr.msk.bf16.vlgmr.msra.gmra.mrb[52].mxu1 %vm159_vm3, %v2110_v39 }
0x44d8   :  { %7540 = vmatpush3.bf16.msra.mxu1 %v8684_v16  ;;  %7543 = vmatprep.mubr.msk.bf16.mxu1 %vm8578_vm2, %v8577_v7 }
0x44d9   :  { %7541 = vmatprep.subr.bf16.mxu1 %v8577_v7 }
0x44dc   :  { %7542 = vmatpush3.bf16.msra.mxu1 %v8689_v18 }
0x44dd   :  { %7559 = vmatprep.subr.bf16.mxu1 %v8577_v7 }
0x45aa   :  { %v2148_v41 = vpop.f32.mrb[52].mxu1 }
0x45ab   :  { %v2154_v43 = vadd.f32 %v2148_v41, %v2106_v40  ;;  %v7529_v44 = vpop.f32.mrb[53].mxu1 }
0x45ac   :  { %v2151_v45 = vpop.f32.mrb[54].mxu1 }
0x45ad   :  { %8233 = vtanh.f32 %v2154_v43  ;;  %v7530_v47 = vpop.f32.mrb[55].mxu1  ;;  %v6942_v16 = vmul.f32 -1.442695, %v2154_v43 }
0x45af   :  { %8235 = vpow2.f32 %v6942_v16 }
0x45b7   :  { %v8234_v50 = vpop.eup %8233 }
0x45b8   :  { %2164 = vrot.lane.b32.xlu0 %v8234_v50, %s8580_s3 }
0x45b9   :  { %v8236_v51 = vpop.eup %8235 }
0x45ba   :  { %v2158_v52 = vadd.f32 1.0, %v8236_v51 }
0x45bc   :  { %8237 = vrcp.f32 %v2158_v52 }
0x45c6   :  { %v8238_v55 = vpop.eup %8237 }
0x45c7   :  { %v2162_v60 = vmul.f32 %v8238_v55, %v2094_v32 }
0x462a   :  { %v2165_v59 = vpop.permute.xlu0 %2164 }
0x462b   :  { %v2167_v18 = vmul.f32 %v8238_v55, %v2165_v59 }
0x462d   :  { %2169 = vrot.lane.b32.xlu1 %v2167_v18, %s8581_s22 }
0x469f   :  { %v2170_v61 = vpop.permute.xlu1 %2169 }
0x46a0   :  { %v2172_v1 = vadd.f32 %v2170_v61, %v2162_v60  ;;  %v2346_v60 = vld [vmem:[%s11044_s5] sm:$0xff]  ;;  %v2347_v61 = vld [vmem:[%s11044_s5 + $0x8] sm:$0xff] }
0x46a2   :  { %8239 = vtanh.f32 %v2172_v1 }
0x46ac   :  { %v8240_v2 = vpop.eup %8239 }
0x46ad   :  { %2175 = vrot.lane.b32.xlu0 %v8240_v2, %s8580_s3 }
0x471f   :  { %v2176_v3 = vpop.permute.xlu0 %2175 }
0x4720   :  { %v9109_v4 = vmul.f32 %v8238_v55, %v2176_v3 }
0x4722   :  { %v2185_v5 = vpack.c.bf16 %v9109_v4, %v9109_v4 }
0x4724   :  { %2187 = vrot.lane.b32.xlu1 %v2185_v5, %s8581_s22  ;;  %v9194_v5 = vpack.c.bf16 %v2347_v61, %v2346_v60 }
0x4796   :  { %v2188_v6 = vpop.permute.xlu1 %2187 }
0x4797   :  { %7536 = vmatmul.mubr.msk.bf16.vlgmr.msra.gmra.mrb[56].mxu0 %vm159_vm3, %v2188_v6  ;;  %v2348_v6 = vld [vmem:[%s11044_s5 + $0x10] sm:$0xff] }
0x486a   :  { %v2226_v12 = vpop.f32.mrb[56].mxu0 }
0x486b   :  { %v2232_v13 = vadd.f32 %v2226_v12, %v2184_v10  ;;  %v7537_v14 = vpop.f32.mrb[57].mxu0  ;;  %v2349_v10 = vld [vmem:[%s11044_s5 + $0x18] sm:$0xff] }
0x486c   :  { %v2229_v15 = vpop.f32.mrb[58].mxu0  ;;  %v9205_v12 = vpack.c.bf16 %v2349_v10, %v2348_v6  ;;  %v9226_v14 = vld [vmem:[%s11045_s6] ss:$0 sm:$0xff] }
0x486d   :  { %8241 = vtanh.f32 %v2232_v13  ;;  %v7538_v17 = vpop.f32.mrb[59].mxu0  ;;  %v6944_v22 = vmul.f32 -1.442695, %v2232_v13 }
0x486f   :  { %8243 = vpow2.f32 %v6944_v22 }
0x4877   :  { %v8242_v19 = vpop.eup %8241 }
0x4878   :  { %2242 = vrot.lane.b32.xlu0 %v8242_v19, %s8580_s3 }
0x4879   :  { %v8244_v28 = vpop.eup %8243 }
0x487a   :  { %v2236_v21 = vadd.f32 1.0, %v8244_v28 }
0x487c   :  { %8245 = vrcp.f32 %v2236_v21 }
0x4886   :  { %v8246_v31 = vpop.eup %8245 }
0x48ea   :  { %v2243_v32 = vpop.permute.xlu0 %2242 }
0x48eb   :  { %v2245_v33 = vmul.f32 %v8246_v31, %v2243_v32 }
0x48ed   :  { %2247 = vrot.lane.b32.xlu1 %v2245_v33, %s8581_s22 }
0x48f1   :  { %229 = vrot.lane.b32.xlu1 %v8719_v48, %s8581_s22  ;;  %v2240_v48 = vmul.f32 %v8246_v31, %v2172_v1 }
0x48f5   :  { %386 = vrot.lane.b32.xlu1 %v8765_v42, %s8581_s22 }
0x48f9   :  { %542 = vrot.lane.b32.xlu1 %v8795_v27, %s8581_s22 }
0x48fd   :  { %698 = vrot.lane.b32.xlu1 %v8825_v8, %s8581_s22 }
0x4901   :  { %854 = vrot.lane.b32.xlu1 %v8855_v58, %s8581_s22 }
0x4905   :  { %1010 = vrot.lane.b32.xlu1 %v8885_v46, %s8581_s22 }
0x4909   :  { %1166 = vrot.lane.b32.xlu1 %v8915_v37, %s8581_s22 }
0x490d   :  { %1322 = vrot.lane.b32.xlu1 %v8945_v30, %s8581_s22 }
0x495f   :  { %v2248_v42 = vpop.permute.xlu1 %2247 }
0x4960   :  { %v9133_v35 = vadd.f32 %v2248_v42, %v2240_v48 }
0x4962   :  { %8247 = vtanh.f32 %v9133_v35 }
0x4963   :  { %v230_v27 = vpop.permute.xlu1 %229 }
0x4964   :  { %233 = vst.msk [vmem:[#allocation3] sm:$0x3] %vm232_vm4, %v230_v27 }
0x4967   :  { %v387_v8 = vpop.permute.xlu1 %386 }
0x4968   :  { %389 = vst.msk [vmem:[#allocation3 + $0x4] sm:$0x3] %vm232_vm4, %v387_v8 }
0x496b   :  { %v543_v58 = vpop.permute.xlu1 %542 }
0x496c   :  { %v8248_v46 = vpop.eup %8247  ;;  %545 = vst.msk [vmem:[#allocation3 + $0x8] sm:$0x3] %vm232_vm4, %v543_v58 }
0x496d   :  { %2253 = vrot.lane.b32.xlu0 %v8248_v46, %s8580_s3 }
0x496f   :  { %v699_v37 = vpop.permute.xlu1 %698 }
0x4970   :  { %701 = vst.msk [vmem:[#allocation3 + $0xc] sm:$0x3] %vm232_vm4, %v699_v37 }
0x4971   :  { %308 = vrot.lane.b32.xlu0 %v8747_v11, %s8581_s22  ;;  %v2340_v11 = vld [vmem:[%s11043_s4] sm:$0xff] }
0x4973   :  { %v855_v30 = vpop.permute.xlu1 %854 }
0x4974   :  { %857 = vst.msk [vmem:[#allocation3 + $0x10] sm:$0x3] %vm232_vm4, %v855_v30 }
0x4975   :  { %464 = vrot.lane.b32.xlu0 %v8780_v0, %s8581_s22  ;;  %v2341_v0 = vld [vmem:[%s11043_s4 + $0x8] sm:$0xff] }
0x4976   :  { %v2344_v41 = vpack.c.bf16 %v2341_v0, %v2340_v11 }
0x4977   :  { %v1011_v38 = vpop.permute.xlu1 %1010 }
0x4978   :  { %1013 = vst.msk [vmem:[#allocation3 + $0x14] sm:$0x3] %vm232_vm4, %v1011_v38  ;;  %7547 = vmatprep.subr.bf16.mxu0 %v2344_v41 }
0x4979   :  { %620 = vrot.lane.b32.xlu0 %v8810_v49, %s8581_s22  ;;  %v2342_v49 = vld [vmem:[%s11043_s4 + $0x10] sm:$0xff]  ;;  %7548 = vmatpush3.bf16.msra.mxu0 %v2344_v41 }
0x497b   :  { %v1167_v39 = vpop.permute.xlu1 %1166 }
0x497c   :  { %1169 = vst.msk [vmem:[#allocation3 + $0x18] sm:$0x3] %vm232_vm4, %v1167_v39 }
0x497d   :  { %776 = vrot.lane.b32.xlu0 %v8840_v34, %s8581_s22  ;;  %v2343_v34 = vld [vmem:[%s11043_s4 + $0x18] sm:$0xff] }
0x497e   :  { %v2345_v43 = vpack.c.bf16 %v2343_v34, %v2342_v49 }
0x497f   :  { %v1323_v40 = vpop.permute.xlu1 %1322 }
0x4980   :  { %1325 = vst.msk [vmem:[#allocation3 + $0x1c] sm:$0x3] %vm232_vm4, %v1323_v40  ;;  %7549 = vmatprep.subr.bf16.mxu0 %v2345_v43 }
0x4981   :  { %932 = vrot.lane.b32.xlu0 %v8870_v23, %s8581_s22  ;;  %7550 = vmatpush3.bf16.msra.mxu0 %v2345_v43 }
0x4982   :  { %7575 = vmatprep.subr.bf16.mxu0 %v8577_v7 }
0x4985   :  { %1088 = vrot.lane.b32.xlu0 %v8900_v9, %s8581_s22 }
0x4989   :  { %1244 = vrot.lane.b32.xlu0 %v8930_v63, %s8581_s22 }
0x498d   :  { %1400 = vrot.lane.b32.xlu0 %v8960_v57, %s8581_s22 }
0x49df   :  { %v2254_v23 = vpop.permute.xlu0 %2253 }
0x49e0   :  { %v9174_v44 = vmul.f32 %v8246_v31, %v2254_v23 }
0x49e2   :  { %v2263_v45 = vpack.c.bf16 %v9174_v44, %v9174_v44 }
0x49e3   :  { %v309_v47 = vpop.permute.xlu0 %308 }
0x49e4   :  { %311 = vst.msk [vmem:[#allocation3 + $0x2] sm:$0x3] %vm232_vm4, %v309_v47  ;;  %2265 = vrot.lane.b32.xlu1 %v2263_v45, %s8581_s22  ;;  %v2262_v45 = vld [vmem:[#allocation2 + $0x36] sm:$0x3] }
0x49e7   :  { %v465_v9 = vpop.permute.xlu0 %464 }
0x49e8   :  { %467 = vst.msk [vmem:[#allocation3 + $0x6] sm:$0x3] %vm232_vm4, %v465_v9 }
0x49eb   :  { %v621_v63 = vpop.permute.xlu0 %620 }
0x49ec   :  { %623 = vst.msk [vmem:[#allocation3 + $0xa] sm:$0x3] %vm232_vm4, %v621_v63 }
0x49ef   :  { %v777_v50 = vpop.permute.xlu0 %776  ;;  %v2353_v51 = vld [vmem:[#allocation3] sm:$0xff] }
0x49f0   :  { %779 = vst.msk [vmem:[#allocation3 + $0xe] sm:$0x3] %vm232_vm4, %v777_v50 }
0x49f3   :  { %v933_v57 = vpop.permute.xlu0 %932 }
0x49f4   :  { %935 = vst.msk [vmem:[#allocation3 + $0x12] sm:$0x3] %vm232_vm4, %v933_v57 }
0x49f7   :  { %v1089_v16 = vpop.permute.xlu0 %1088  ;;  %v2354_v52 = vld [vmem:[#allocation3 + $0x8] sm:$0xff] }
0x49f8   :  { %1091 = vst.msk [vmem:[#allocation3 + $0x16] sm:$0x3] %vm232_vm4, %v1089_v16  ;;  %v2360_v55 = vpack.c.bf16 %v2354_v52, %v2353_v51 }
0x49fa   :  { %7551 = vmatprep.mubr.msk.bf16.mxu0 %vm159_vm3, %v2360_v55 }
0x49fb   :  { %v1245_v59 = vpop.permute.xlu0 %1244 }
0x49fc   :  { %1247 = vst.msk [vmem:[#allocation3 + $0x1a] sm:$0x3] %vm232_vm4, %v1245_v59 }
0x49ff   :  { %v1401_v18 = vpop.permute.xlu0 %1400  ;;  %v2355_v1 = vld [vmem:[#allocation3 + $0x10] sm:$0xff] }
0x4a00   :  { %1403 = vst.msk [vmem:[#allocation3 + $0x1e] sm:$0x3] %vm232_vm4, %v1401_v18 }
0x4a07   :  { %v2356_v2 = vld [vmem:[#allocation3 + $0x18] sm:$0xff] }
0x4a08   :  { %v2361_v3 = vpack.c.bf16 %v2356_v2, %v2355_v1 }
0x4a0a   :  { %7552 = vmatmul.mubr.msk.bf16.vlgmr.msra.gmra.mrb[60].mxu0 %vm159_vm3, %v2361_v3 }
0x4a0b   :  { %7576 = vmatpush3.bf16.msra.mxu0 %v9194_v5 }
0x4a0c   :  { %7577 = vmatprep.subr.bf16.mxu0 %v8577_v7 }
0x4a0f   :  { %7578 = vmatpush3.bf16.msra.mxu0 %v9205_v12 }
0x4a10   :  { %7591 = vmatprep.subr.bf16.mxu0 %v8577_v7 }
0x4a56   :  { %v2266_v13 = vpop.permute.xlu1 %2265 }
0x4a57   :  { %7544 = vmatmul.mubr.msk.bf16.vlgmr.msra.gmra.mrb[56].mxu1 %vm159_vm3, %v2266_v13 }
0x4a58   :  { %7560 = vmatpush3.bf16.msra.mxu1 %v9194_v5  ;;  %7563 = vmatprep.mubr.msk.bf16.mxu1 %vm8578_vm2, %v8577_v7 }
0x4a59   :  { %7561 = vmatprep.subr.bf16.mxu1 %v8577_v7 }
0x4a5c   :  { %7562 = vmatpush3.bf16.msra.mxu1 %v9205_v12 }
0x4a5d   :  { %7567 = vmatprep.subr.bf16.mxu1 %v8577_v7 }
0x4a5f   :  { %7564 = vmatmul.mubr.bf16.vlgmr.msra.gmra.mrb[60].mxu1 %v8579_v20 }
0x4a60   :  { %7568 = vmatpush3.bf16.msra.mxu1 %v9194_v5  ;;  %7571 = vmatprep.mubr.msk.bf16.mxu1 %vm8578_vm2, %v8577_v7 }
0x4a61   :  { %7569 = vmatprep.subr.bf16.mxu1 %v8577_v7 }
0x4a64   :  { %7570 = vmatpush3.bf16.msra.mxu1 %v9205_v12 }
0x4a65   :  { %7583 = vmatprep.subr.bf16.mxu1 %v8577_v7 }
0x4add   :  { %v7553_v15 = vpop.f32.mrb[60].mxu0 }
0x4ade   :  { %v2425_v17 = vadd.f32 %v7553_v15, %v9226_v14  ;;  %v2416_v20 = vpop.f32.mrb[61].mxu0 }
0x4adf   :  { %v2417_v19 = vadd.f32 %v9226_v14, %v2416_v20  ;;  %v7554_v22 = vpop.f32.mrb[62].mxu0 }
0x4ae0   :  { %2448 = vst [vmem:[#allocation2 + $0x10] sm:$0xff] %v2425_v17  ;;  %v2428_v28 = vadd.f32 %v7554_v22, %v9226_v14  ;;  %v2419_v21 = vpop.f32.mrb[63].mxu0 }
0x4ae1   :  { %2446 = vst [vmem:[#allocation2] sm:$0xff] %v2417_v19  ;;  %v2420_v31 = vadd.f32 %v9226_v14, %v2419_v21 }
0x4ae2   :  { %2449 = vst [vmem:[#allocation2 + $0x18] sm:$0xff] %v2428_v28 }
0x4ae3   :  { %2447 = vst [vmem:[#allocation2 + $0x8] sm:$0xff] %v2420_v31 }
0x4ae8   :  { %v2453_v27 = vld [vmem:[#allocation2] sm:$0x3] }
0x4b2a   :  { %v2304_v32 = vpop.f32.mrb[56].mxu1 }
0x4b2b   :  { %v7545_v33 = vpop.f32.mrb[57].mxu1  ;;  %v2310_v47 = vadd.f32 %v2304_v32, %v2262_v45 }
0x4b2c   :  { %v2307_v48 = vpop.f32.mrb[58].mxu1 }
0x4b2d   :  { %v7546_v42 = vpop.f32.mrb[59].mxu1  ;;  %v6946_v50 = vmul.f32 -1.442695, %v2310_v47 }
0x4b32   :  { %v2488_v8 = vpop.f32.mrb[60].mxu1 }
0x4b33   :  { %v2494_v58 = vadd.f32 %v2488_v8, %v2453_v27  ;;  %v7565_v46 = vpop.f32.mrb[61].mxu1 }
0x4b34   :  { %v2491_v37 = vpop.f32.mrb[62].mxu1 }
0x4b35   :  { %8249 = vtanh.f32 %v2494_v58  ;;  %v7566_v30 = vpop.f32.mrb[63].mxu1  ;;  %v6952_v39 = vmul.f32 -1.442695, %v2494_v58 }
0x4b37   :  { %8251 = vpow2.f32 %v6952_v39 }
0x4b3f   :  { %v8250_v38 = vpop.eup %8249 }
0x4b40   :  { %2504 = vrot.lane.b32.xlu0 %v8250_v38, %s8580_s3 }
0x4b41   :  { %v8252_v40 = vpop.eup %8251 }
0x4b42   :  { %v2498_v11 = vadd.f32 1.0, %v8252_v40 }
0x4b44   :  { %8253 = vrcp.f32 %v2498_v11 }
0x4b4e   :  { %v8254_v0 = vpop.eup %8253 }
0x4b4f   :  { %v2502_v34 = vmul.f32 0.0, %v8254_v0 }
0x4bb2   :  { %v2505_v49 = vpop.permute.xlu0 %2504 }
0x4bb3   :  { %v2507_v41 = vmul.f32 %v8254_v0, %v2505_v49 }
0x4bb5   :  { %2509 = vrot.lane.b32.xlu1 %v2507_v41, %s8581_s22 }
0x4c27   :  { %v2510_v43 = vpop.permute.xlu1 %2509 }
0x4c28   :  { %v9234_v23 = vadd.f32 %v2510_v43, %v2502_v34 }
0x4c2a   :  { %8255 = vtanh.f32 %v9234_v23 }
0x4c2b   :  { %8257 = vtanh.f32 %v2310_v47 }
0x4c2c   :  { %8259 = vpow2.f32 %v6946_v50 }
0x4c34   :  { %v8256_v9 = vpop.eup %8255 }
0x4c35   :  { %2515 = vrot.lane.b32.xlu0 %v8256_v9, %s8580_s3  ;;  %v8258_v63 = vpop.eup %8257 }
0x4c36   :  { %v8260_v57 = vpop.eup %8259 }
0x4c37   :  { %v2314_v16 = vadd.f32 1.0, %v8260_v57  ;;  %v2602_v57 = vld [vmem:[#allocation2 + $0x4] sm:$0x3] }
0x4c39   :  { %2320 = vrot.lane.b32.xlu0 %v8258_v63, %s8580_s3  ;;  %8261 = vrcp.f32 %v2314_v16 }
0x4c43   :  { %v9243_v59 = vpop.eup %8261 }
0x4c44   :  { %v2318_v1 = vmul.f32 %v9243_v59, %v9133_v35 }
0x4ca7   :  { %v2516_v51 = vpop.permute.xlu0 %2515 }
0x4ca8   :  { %v9239_v52 = vmul.f32 %v8254_v0, %v2516_v51 }
0x4caa   :  { %v2525_v55 = vpack.c.bf16 %v9239_v52, %v9239_v52 }
0x4cab   :  { %v2321_v18 = vpop.permute.xlu0 %2320 }
0x4cac   :  { %v2323_v60 = vmul.f32 %v9243_v59, %v2321_v18  ;;  %2527 = vrot.lane.b32.xlu1 %v2525_v55, %s8581_s22 }
0x4cae   :  { %2325 = vrot.lane.b32.xlu0 %v2323_v60, %s8581_s22 }
0x4d1e   :  { %v2528_v61 = vpop.permute.xlu1 %2527 }
0x4d1f   :  { %7572 = vmatmul.mubr.msk.bf16.vlgmr.msra.gmra.mrb[64].mxu1 %vm159_vm3, %v2528_v61 }
0x4d20   :  { %v2326_v2 = vpop.permute.xlu0 %2325  ;;  %7584 = vmatpush3.bf16.msra.mxu1 %v9194_v5  ;;  %7587 = vmatprep.mubr.msk.bf16.mxu1 %vm8578_vm2, %v8577_v7 }
0x4d21   :  { %v2328_v3 = vadd.f32 %v2326_v2, %v2318_v1  ;;  %7585 = vmatprep.subr.bf16.mxu1 %v8577_v7 }
0x4d23   :  { %8263 = vtanh.f32 %v2328_v3 }
0x4d24   :  { %7586 = vmatpush3.bf16.msra.mxu1 %v9205_v12 }
0x4d25   :  { %7599 = vmatprep.subr.bf16.mxu1 %v8577_v7 }
0x4d2d   :  { %v8264_v6 = vpop.eup %8263 }
0x4d2e   :  { %2331 = vrot.lane.b32.xlu0 %v8264_v6, %s8580_s3 }
0x4d32   :  { %1478 = vrot.lane.b32.xlu0 %v8975_v26, %s8581_s22 }
0x4d36   :  { %1634 = vrot.lane.b32.xlu0 %v9005_v24, %s8581_s22 }
0x4d3a   :  { %1790 = vrot.lane.b32.xlu0 %v9035_v25, %s8581_s22 }
0x4d3e   :  { %1946 = vrot.lane.b32.xlu0 %v9065_v29, %s8581_s22 }
0x4d42   :  { %2102 = vrot.lane.b32.xlu0 %v9094_v36, %s8581_s22 }
0x4d46   :  { %2258 = vrot.lane.b32.xlu0 %v9174_v44, %s8581_s22  ;;  %v2524_v44 = vld [vmem:[#allocation2 + $0x2] sm:$0x3] }
0x4da0   :  { %v2332_v35 = vpop.permute.xlu0 %2331 }
0x4da1   :  { %v2334_v46 = vmul.f32 %v9243_v59, %v2332_v35 }
0x4da4   :  { %v1479_v10 = vpop.permute.xlu0 %1478 }
0x4da5   :  { %1481 = vst.msk [vmem:[#allocation3 + $0x20] sm:$0x3] %vm232_vm4, %v1479_v10 }
0x4da8   :  { %v1635_v26 = vpop.permute.xlu0 %1634 }
0x4da9   :  { %1637 = vst.msk [vmem:[#allocation3 + $0x24] sm:$0x3] %vm232_vm4, %v1635_v26 }
0x4dac   :  { %v1791_v24 = vpop.permute.xlu0 %1790 }
0x4dad   :  { %1793 = vst.msk [vmem:[#allocation3 + $0x28] sm:$0x3] %vm232_vm4, %v1791_v24 }
0x4db0   :  { %v1947_v25 = vpop.permute.xlu0 %1946 }
0x4db1   :  { %1949 = vst.msk [vmem:[#allocation3 + $0x2c] sm:$0x3] %vm232_vm4, %v1947_v25 }
0x4db4   :  { %v2103_v29 = vpop.permute.xlu0 %2102 }
0x4db5   :  { %2105 = vst.msk [vmem:[#allocation3 + $0x30] sm:$0x3] %vm232_vm4, %v2103_v29 }
0x4db8   :  { %v2259_v36 = vpop.permute.xlu0 %2258 }
0x4db9   :  { %2261 = vst.msk [vmem:[#allocation3 + $0x34] sm:$0x3] %vm232_vm4, %v2259_v36 }
0x4df2   :  { %v2566_v13 = vpop.f32.mrb[64].mxu1 }
0x4df3   :  { %v2572_v15 = vadd.f32 %v2566_v13, %v2524_v44  ;;  %v7573_v17 = vpop.f32.mrb[65].mxu1  ;;  %v2680_v13 = vld [vmem:[#allocation2 + $0x6] sm:$0x3] }
0x4df4   :  { %v2569_v20 = vpop.f32.mrb[66].mxu1 }
0x4df5   :  { %8265 = vtanh.f32 %v2572_v15  ;;  %v7574_v19 = vpop.f32.mrb[67].mxu1  ;;  %v6954_v28 = vmul.f32 -1.442695, %v2572_v15 }
0x4df7   :  { %8267 = vpow2.f32 %v6954_v28 }
0x4dff   :  { %v8266_v22 = vpop.eup %8265 }
0x4e00   :  { %2582 = vrot.lane.b32.xlu1 %v8266_v22, %s8580_s3 }
0x4e01   :  { %v8268_v21 = vpop.eup %8267 }
0x4e02   :  { %v2576_v31 = vadd.f32 1.0, %v8268_v21 }
0x4e04   :  { %8269 = vrcp.f32 %v2576_v31 }
0x4e0e   :  { %v8270_v32 = vpop.eup %8269 }
0x4e0f   :  { %v2580_v42 = vmul.f32 %v8270_v32, %v9234_v23 }
0x4e72   :  { %v2583_v33 = vpop.permute.xlu1 %2582 }
0x4e73   :  { %v2585_v48 = vmul.f32 %v8270_v32, %v2583_v33 }
0x4e75   :  { %2587 = vrot.lane.b32.xlu1 %v2585_v48, %s8581_s22 }
0x4ee7   :  { %v2588_v27 = vpop.permute.xlu1 %2587 }
0x4ee8   :  { %v9279_v8 = vadd.f32 %v2588_v27, %v2580_v42 }
0x4eea   :  { %8271 = vtanh.f32 %v9279_v8 }
0x4ef4   :  { %v8272_v58 = vpop.eup %8271 }
0x4ef5   :  { %2593 = vrot.lane.b32.xlu1 %v8272_v58, %s8580_s3 }
0x4ef9   :  { %1556 = vrot.lane.b32.xlu1 %v8990_v54, %s8581_s22 }
0x4efd   :  { %1712 = vrot.lane.b32.xlu1 %v9020_v53, %s8581_s22 }
0x4f01   :  { %1868 = vrot.lane.b32.xlu1 %v9050_v56, %s8581_s22 }
0x4f05   :  { %2024 = vrot.lane.b32.xlu1 %v9080_v62, %s8581_s22 }
0x4f09   :  { %2180 = vrot.lane.b32.xlu1 %v9109_v4, %s8581_s22 }
0x4f0d   :  { %2336 = vrot.lane.b32.xlu1 %v2334_v46, %s8581_s22 }
0x4f67   :  { %v2594_v37 = vpop.permute.xlu1 %2593 }
0x4f68   :  { %v9295_v30 = vmul.f32 %v8270_v32, %v2594_v37 }
0x4f6a   :  { %v2603_v54 = vpack.c.bf16 %v9295_v30, %v9295_v30 }
0x4f6b   :  { %v1557_v53 = vpop.permute.xlu1 %1556 }
0x4f6c   :  { %1559 = vst.msk [vmem:[#allocation3 + $0x22] sm:$0x3] %vm232_vm4, %v1557_v53  ;;  %2605 = vrot.lane.b32.xlu0 %v2603_v54, %s8581_s22 }
0x4f6f   :  { %v1713_v56 = vpop.permute.xlu1 %1712 }
0x4f70   :  { %1715 = vst.msk [vmem:[#allocation3 + $0x26] sm:$0x3] %vm232_vm4, %v1713_v56 }
0x4f73   :  { %v1869_v62 = vpop.permute.xlu1 %1868 }
0x4f74   :  { %1871 = vst.msk [vmem:[#allocation3 + $0x2a] sm:$0x3] %vm232_vm4, %v1869_v62  ;;  %v2758_v62 = vld [vmem:[#allocation2 + $0x8] sm:$0x3] }
0x4f77   :  { %v2025_v4 = vpop.permute.xlu1 %2024  ;;  %v2357_v40 = vld [vmem:[#allocation3 + $0x20] sm:$0xff] }
0x4f78   :  { %2027 = vst.msk [vmem:[#allocation3 + $0x2e] sm:$0x3] %vm232_vm4, %v2025_v4 }
0x4f7b   :  { %v2181_v38 = vpop.permute.xlu1 %2180 }
0x4f7c   :  { %2183 = vst.msk [vmem:[#allocation3 + $0x32] sm:$0x3] %vm232_vm4, %v2181_v38 }
0x4f7f   :  { %v2337_v39 = vpop.permute.xlu1 %2336  ;;  %v2358_v11 = vld [vmem:[#allocation3 + $0x28] sm:$0xff] }
0x4f80   :  { %2339 = vst.msk [vmem:[#allocation3 + $0x36] sm:$0x3] %vm232_vm4, %v2337_v39  ;;  %v2362_v0 = vpack.c.bf16 %v2358_v11, %v2357_v40 }
0x4f82   :  { %7555 = vmatprep.mubr.msk.bf16.mxu0 %vm159_vm3, %v2362_v0 }
0x4f87   :  { %v2359_v49 = vld [vmem:[#allocation3 + $0x30] sm:$0xff] }
0x4f88   :  { %v2363_v41 = vpack.c.bf16 %v2359_v49, %v2359_v49 }
0x4f8a   :  { %7556 = vmatmul.mubr.msk.bf16.gmra.mrb[64].mxu0 %vm159_vm3, %v2363_v41 }
0x4f8b   :  { %7579 = vmatprep.mubr.msk.bf16.mxu0 %vm8578_vm2, %v8577_v7 }
0x4fde   :  { %v2606_v34 = vpop.permute.xlu0 %2605 }
0x4fdf   :  { %7580 = vmatmul.mubr.msk.bf16.vlgmr.msra.gmra.mrb[68].mxu0 %vm159_vm3, %v2606_v34 }
0x4fe0   :  { %7592 = vmatpush3.bf16.msra.mxu0 %v9194_v5  ;;  %7595 = vmatprep.mubr.msk.bf16.mxu0 %vm8578_vm2, %v8577_v7 }
0x4fe1   :  { %7593 = vmatprep.subr.bf16.mxu0 %v8577_v7 }
0x4fe4   :  { %7594 = vmatpush3.bf16.msra.mxu0 %v9205_v12 }
0x4fe5   :  { %7607 = vmatprep.subr.bf16.mxu0 %v8577_v7 }
0x505d   :  { %v7557_v43 = vpop.f32.mrb[64].mxu0 }
0x505e   :  { %v2441_v23 = vadd.f32 %v7557_v43, %v9226_v14  ;;  %v2432_v45 = vpop.f32.mrb[65].mxu0 }
0x505f   :  { %v2433_v47 = vadd.f32 %v9226_v14, %v2432_v45  ;;  %v7558_v9 = vpop.f32.mrb[66].mxu0 }
0x5060   :  { %2452 = vst [vmem:[#allocation2 + $0x30] sm:$0xff] %v2441_v23  ;;  %v2435_v63 = vpop.f32.mrb[67].mxu0 }
0x5061   :  { %2450 = vst [vmem:[#allocation2 + $0x20] sm:$0xff] %v2433_v47  ;;  %v2436_v50 = vadd.f32 %v9226_v14, %v2435_v63 }
0x5063   :  { %2451 = vst [vmem:[#allocation2 + $0x28] sm:$0xff] %v2436_v50 }
0x50b2   :  { %v2644_v16 = vpop.f32.mrb[68].mxu0 }
0x50b3   :  { %v2650_v51 = vadd.f32 %v2644_v16, %v2602_v57  ;;  %v7581_v55 = vpop.f32.mrb[69].mxu0 }
0x50b4   :  { %v2647_v59 = vpop.f32.mrb[70].mxu0 }
0x50b5   :  { %8273 = vtanh.f32 %v2650_v51  ;;  %v7582_v18 = vpop.f32.mrb[71].mxu0  ;;  %v6956_v61 = vmul.f32 -1.442695, %v2650_v51  ;;  %v2836_v59 = vld [vmem:[#allocation2 + $0xa] sm:$0x3] }
0x50b7   :  { %8275 = vpow2.f32 %v6956_v61 }
0x50bf   :  { %v8274_v60 = vpop.eup %8273 }
0x50c0   :  { %2660 = vrot.lane.b32.xlu1 %v8274_v60, %s8580_s3 }
0x50c1   :  { %v8276_v1 = vpop.eup %8275 }
0x50c2   :  { %v2654_v2 = vadd.f32 1.0, %v8276_v1 }
0x50c4   :  { %8277 = vrcp.f32 %v2654_v2 }
0x50ce   :  { %v8278_v3 = vpop.eup %8277 }
0x50cf   :  { %v2658_v14 = vmul.f32 %v8278_v3, %v9279_v8 }
0x5132   :  { %v2661_v6 = vpop.permute.xlu1 %2660 }
0x5133   :  { %v2663_v35 = vmul.f32 %v8278_v3, %v2661_v6 }
0x5135   :  { %2665 = vrot.lane.b32.xlu0 %v2663_v35, %s8581_s22 }
0x51a7   :  { %v2666_v10 = vpop.permute.xlu0 %2665 }
0x51a8   :  { %v2668_v26 = vadd.f32 %v2666_v10, %v2658_v14 }
0x51aa   :  { %8279 = vtanh.f32 %v2668_v26 }
0x51b4   :  { %v8280_v24 = vpop.eup %8279 }
0x51b5   :  { %2671 = vrot.lane.b32.xlu1 %v8280_v24, %s8580_s3 }
0x5227   :  { %v2672_v25 = vpop.permute.xlu1 %2671 }
0x5228   :  { %v9324_v29 = vmul.f32 %v8278_v3, %v2672_v25 }
0x522a   :  { %v2681_v36 = vpack.c.bf16 %v9324_v29, %v9324_v29 }
0x522c   :  { %2683 = vrot.lane.b32.xlu0 %v2681_v36, %s8581_s22 }
0x529e   :  { %v2684_v44 = vpop.permute.xlu0 %2683 }
0x529f   :  { %7588 = vmatmul.mubr.msk.bf16.vlgmr.msra.gmra.mrb[68].mxu1 %vm159_vm3, %v2684_v44 }
0x52a0   :  { %7600 = vmatpush3.bf16.msra.mxu1 %v9194_v5  ;;  %7603 = vmatprep.mubr.msk.bf16.mxu1 %vm8578_vm2, %v8577_v7 }
0x52a1   :  { %7601 = vmatprep.subr.bf16.mxu1 %v8577_v7 }
0x52a4   :  { %7602 = vmatpush3.bf16.msra.mxu1 %v9205_v12 }
0x52a5   :  { %7615 = vmatprep.subr.bf16.mxu1 %v8577_v7 }
0x5372   :  { %v2722_v15 = vpop.f32.mrb[68].mxu1 }
0x5373   :  { %v2728_v17 = vadd.f32 %v2722_v15, %v2680_v13  ;;  %v7589_v20 = vpop.f32.mrb[69].mxu1 }
0x5374   :  { %v2725_v19 = vpop.f32.mrb[70].mxu1 }
0x5375   :  { %8281 = vtanh.f32 %v2728_v17  ;;  %v7590_v22 = vpop.f32.mrb[71].mxu1  ;;  %v6958_v21 = vmul.f32 -1.442695, %v2728_v17 }
0x5376   :  { %v2914_v22 = vld [vmem:[#allocation2 + $0xc] sm:$0x3] }
0x5377   :  { %8283 = vpow2.f32 %v6958_v21 }
0x537f   :  { %v8282_v28 = vpop.eup %8281 }
0x5380   :  { %2738 = vrot.lane.b32.xlu1 %v8282_v28, %s8580_s3 }
0x5381   :  { %v8284_v31 = vpop.eup %8283 }
0x5382   :  { %v2732_v32 = vadd.f32 1.0, %v8284_v31 }
0x5384   :  { %8285 = vrcp.f32 %v2732_v32 }
0x538e   :  { %v8286_v33 = vpop.eup %8285 }
0x538f   :  { %v2736_v27 = vmul.f32 %v8286_v33, %v2668_v26 }
0x53f2   :  { %v2739_v48 = vpop.permute.xlu1 %2738 }
0x53f3   :  { %v2741_v42 = vmul.f32 %v8286_v33, %v2739_v48 }
0x53f5   :  { %2743 = vrot.lane.b32.xlu0 %v2741_v42, %s8581_s22 }
0x5467   :  { %v2744_v8 = vpop.permute.xlu0 %2743 }
0x5468   :  { %v2746_v58 = vadd.f32 %v2744_v8, %v2736_v27 }
0x546a   :  { %8287 = vtanh.f32 %v2746_v58 }
0x5474   :  { %v8288_v46 = vpop.eup %8287 }
0x5475   :  { %2749 = vrot.lane.b32.xlu1 %v8288_v46, %s8580_s3 }
0x54e7   :  { %v2750_v37 = vpop.permute.xlu1 %2749 }
0x54e8   :  { %v9339_v54 = vmul.f32 %v8286_v33, %v2750_v37 }
0x54ea   :  { %v2759_v53 = vpack.c.bf16 %v9339_v54, %v9339_v54 }
0x54ec   :  { %2761 = vrot.lane.b32.xlu0 %v2759_v53, %s8581_s22 }
0x555e   :  { %v2762_v56 = vpop.permute.xlu0 %2761 }
0x555f   :  { %7596 = vmatmul.mubr.msk.bf16.vlgmr.msra.gmra.mrb[72].mxu0 %vm159_vm3, %v2762_v56 }
0x5560   :  { %7608 = vmatpush3.bf16.msra.mxu0 %v9194_v5  ;;  %7611 = vmatprep.mubr.msk.bf16.mxu0 %vm8578_vm2, %v8577_v7 }
0x5561   :  { %7609 = vmatprep.subr.bf16.mxu0 %v8577_v7 }
0x5564   :  { %7610 = vmatpush3.bf16.msra.mxu0 %v9205_v12 }
0x5565   :  { %7623 = vmatprep.subr.bf16.mxu0 %v8577_v7 }
0x5632   :  { %v2800_v4 = vpop.f32.mrb[72].mxu0 }
0x5633   :  { %v2806_v38 = vadd.f32 %v2800_v4, %v2758_v62  ;;  %v7597_v39 = vpop.f32.mrb[73].mxu0 }
0x5634   :  { %v2803_v40 = vpop.f32.mrb[74].mxu0 }
0x5635   :  { %8289 = vtanh.f32 %v2806_v38  ;;  %v7598_v11 = vpop.f32.mrb[75].mxu0  ;;  %v6960_v49 = vmul.f32 -1.442695, %v2806_v38 }
0x5637   :  { %8291 = vpow2.f32 %v6960_v49 }
0x563f   :  { %v8290_v0 = vpop.eup %8289 }
0x5640   :  { %2816 = vrot.lane.b32.xlu1 %v8290_v0, %s8580_s3  ;;  %v2992_v0 = vld [vmem:[#allocation2 + $0xe] sm:$0x3] }
0x5641   :  { %v8292_v41 = vpop.eup %8291 }
0x5642   :  { %v2810_v34 = vadd.f32 1.0, %v8292_v41 }
0x5644   :  { %8293 = vrcp.f32 %v2810_v34 }
0x564e   :  { %v8294_v43 = vpop.eup %8293 }
0x564f   :  { %v2814_v47 = vmul.f32 %v8294_v43, %v2746_v58 }
0x56b2   :  { %v2817_v23 = vpop.permute.xlu1 %2816 }
0x56b3   :  { %v2819_v45 = vmul.f32 %v8294_v43, %v2817_v23 }
0x56b5   :  { %2821 = vrot.lane.b32.xlu0 %v2819_v45, %s8581_s22 }
0x5727   :  { %v2822_v9 = vpop.permute.xlu0 %2821 }
0x5728   :  { %v2824_v63 = vadd.f32 %v2822_v9, %v2814_v47 }
0x572a   :  { %8295 = vtanh.f32 %v2824_v63 }
0x5734   :  { %v8296_v50 = vpop.eup %8295 }
0x5735   :  { %2827 = vrot.lane.b32.xlu1 %v8296_v50, %s8580_s3 }
0x57a7   :  { %v2828_v57 = vpop.permute.xlu1 %2827 }
0x57a8   :  { %v9354_v16 = vmul.f32 %v8294_v43, %v2828_v57 }
0x57aa   :  { %v2837_v51 = vpack.c.bf16 %v9354_v16, %v9354_v16 }
0x57ac   :  { %2839 = vrot.lane.b32.xlu0 %v2837_v51, %s8581_s22 }
0x581e   :  { %v2840_v55 = vpop.permute.xlu0 %2839 }
0x581f   :  { %7604 = vmatmul.mubr.msk.bf16.vlgmr.msra.gmra.mrb[72].mxu1 %vm159_vm3, %v2840_v55 }
0x5820   :  { %7616 = vmatpush3.bf16.msra.mxu1 %v9194_v5  ;;  %7619 = vmatprep.mubr.msk.bf16.mxu1 %vm8578_vm2, %v8577_v7 }
0x5821   :  { %7617 = vmatprep.subr.bf16.mxu1 %v8577_v7 }
0x5824   :  { %7618 = vmatpush3.bf16.msra.mxu1 %v9205_v12 }
0x5825   :  { %7631 = vmatprep.subr.bf16.mxu1 %v8577_v7 }
0x58f2   :  { %v2878_v18 = vpop.f32.mrb[72].mxu1 }
0x58f3   :  { %v2884_v60 = vadd.f32 %v2878_v18, %v2836_v59  ;;  %v7605_v61 = vpop.f32.mrb[73].mxu1 }
0x58f4   :  { %v2881_v1 = vpop.f32.mrb[74].mxu1 }
0x58f5   :  { %8297 = vtanh.f32 %v2884_v60  ;;  %v7606_v2 = vpop.f32.mrb[75].mxu1  ;;  %v6962_v6 = vmul.f32 -1.442695, %v2884_v60 }
0x58f7   :  { %8299 = vpow2.f32 %v6962_v6  ;;  %v3070_v6 = vld [vmem:[#allocation2 + $0x10] sm:$0x3] }
0x58ff   :  { %v8298_v3 = vpop.eup %8297 }
0x5900   :  { %2894 = vrot.lane.b32.xlu1 %v8298_v3, %s8580_s3 }
0x5901   :  { %v8300_v35 = vpop.eup %8299 }
0x5902   :  { %v2888_v14 = vadd.f32 1.0, %v8300_v35 }
0x5904   :  { %8301 = vrcp.f32 %v2888_v14 }
0x590e   :  { %v8302_v10 = vpop.eup %8301 }
0x590f   :  { %v2892_v25 = vmul.f32 %v8302_v10, %v2824_v63 }
0x5972   :  { %v2895_v26 = vpop.permute.xlu1 %2894 }
0x5973   :  { %v2897_v24 = vmul.f32 %v8302_v10, %v2895_v26 }
0x5975   :  { %2899 = vrot.lane.b32.xlu0 %v2897_v24, %s8581_s22 }
0x59e7   :  { %v2900_v36 = vpop.permute.xlu0 %2899 }
0x59e8   :  { %v2902_v44 = vadd.f32 %v2900_v36, %v2892_v25 }
0x59ea   :  { %8303 = vtanh.f32 %v2902_v44 }
0x59f4   :  { %v8304_v13 = vpop.eup %8303 }
0x59f5   :  { %2905 = vrot.lane.b32.xlu1 %v8304_v13, %s8580_s3 }
0x5a67   :  { %v2906_v15 = vpop.permute.xlu1 %2905 }
0x5a68   :  { %v9369_v17 = vmul.f32 %v8302_v10, %v2906_v15 }
0x5a6a   :  { %v2915_v20 = vpack.c.bf16 %v9369_v17, %v9369_v17 }
0x5a6c   :  { %2917 = vrot.lane.b32.xlu0 %v2915_v20, %s8581_s22 }
0x5ade   :  { %v2918_v19 = vpop.permute.xlu0 %2917 }
0x5adf   :  { %7612 = vmatmul.mubr.msk.bf16.vlgmr.msra.gmra.mrb[76].mxu0 %vm159_vm3, %v2918_v19 }
0x5ae0   :  { %7624 = vmatpush3.bf16.msra.mxu0 %v9194_v5  ;;  %7627 = vmatprep.mubr.msk.bf16.mxu0 %vm8578_vm2, %v8577_v7 }
0x5ae1   :  { %7625 = vmatprep.subr.bf16.mxu0 %v8577_v7 }
0x5ae4   :  { %7626 = vmatpush3.bf16.msra.mxu0 %v9205_v12 }
0x5ae5   :  { %7639 = vmatprep.subr.bf16.mxu0 %v8577_v7 }
0x5bb2   :  { %v2956_v28 = vpop.f32.mrb[76].mxu0 }
0x5bb3   :  { %v2962_v21 = vadd.f32 %v2956_v28, %v2914_v22  ;;  %v7613_v31 = vpop.f32.mrb[77].mxu0 }
0x5bb4   :  { %v2959_v32 = vpop.f32.mrb[78].mxu0 }
0x5bb5   :  { %8305 = vtanh.f32 %v2962_v21  ;;  %v7614_v33 = vpop.f32.mrb[79].mxu0  ;;  %v6964_v42 = vmul.f32 -1.442695, %v2962_v21 }
0x5bb7   :  { %8307 = vpow2.f32 %v6964_v42 }
0x5bbf   :  { %v8306_v48 = vpop.eup %8305 }
0x5bc0   :  { %2972 = vrot.lane.b32.xlu1 %v8306_v48, %s8580_s3 }
0x5bc1   :  { %v8308_v27 = vpop.eup %8307 }
0x5bc2   :  { %v2966_v8 = vadd.f32 1.0, %v8308_v27  ;;  %v3148_v27 = vld [vmem:[#allocation2 + $0x12] sm:$0x3] }
0x5bc4   :  { %8309 = vrcp.f32 %v2966_v8 }
0x5bce   :  { %v8310_v58 = vpop.eup %8309 }
0x5bcf   :  { %v2970_v53 = vmul.f32 %v8310_v58, %v2902_v44 }
0x5c32   :  { %v2973_v46 = vpop.permute.xlu1 %2972 }
0x5c33   :  { %v2975_v37 = vmul.f32 %v8310_v58, %v2973_v46 }
0x5c35   :  { %2977 = vrot.lane.b32.xlu0 %v2975_v37, %s8581_s22 }
0x5ca7   :  { %v2978_v56 = vpop.permute.xlu0 %2977 }
0x5ca8   :  { %v2980_v62 = vadd.f32 %v2978_v56, %v2970_v53 }
0x5caa   :  { %8311 = vtanh.f32 %v2980_v62 }
0x5cb4   :  { %v8312_v4 = vpop.eup %8311 }
0x5cb5   :  { %2983 = vrot.lane.b32.xlu1 %v8312_v4, %s8580_s3 }
0x5d27   :  { %v2984_v38 = vpop.permute.xlu1 %2983 }
0x5d28   :  { %v9384_v39 = vmul.f32 %v8310_v58, %v2984_v38 }
0x5d2a   :  { %v2993_v40 = vpack.c.bf16 %v9384_v39, %v9384_v39 }
0x5d2c   :  { %2995 = vrot.lane.b32.xlu0 %v2993_v40, %s8581_s22 }
0x5d9e   :  { %v2996_v11 = vpop.permute.xlu0 %2995 }
0x5d9f   :  { %7620 = vmatmul.mubr.msk.bf16.vlgmr.msra.gmra.mrb[76].mxu1 %vm159_vm3, %v2996_v11 }
0x5da0   :  { %7632 = vmatpush3.bf16.msra.mxu1 %v9194_v5  ;;  %7635 = vmatprep.mubr.msk.bf16.mxu1 %vm8578_vm2, %v8577_v7 }
0x5da1   :  { %7633 = vmatprep.subr.bf16.mxu1 %v8577_v7 }
0x5da4   :  { %7634 = vmatpush3.bf16.msra.mxu1 %v9205_v12 }
0x5da5   :  { %7647 = vmatprep.subr.bf16.mxu1 %v8577_v7 }
0x5e72   :  { %v3034_v49 = vpop.f32.mrb[76].mxu1 }
0x5e73   :  { %v3040_v41 = vadd.f32 %v3034_v49, %v2992_v0  ;;  %v7621_v34 = vpop.f32.mrb[77].mxu1 }
0x5e74   :  { %v3037_v43 = vpop.f32.mrb[78].mxu1 }
0x5e75   :  { %8313 = vtanh.f32 %v3040_v41  ;;  %v7622_v23 = vpop.f32.mrb[79].mxu1  ;;  %v6966_v47 = vmul.f32 -1.442695, %v3040_v41 }
0x5e77   :  { %8315 = vpow2.f32 %v6966_v47 }
0x5e7f   :  { %v8314_v45 = vpop.eup %8313 }
0x5e80   :  { %3050 = vrot.lane.b32.xlu1 %v8314_v45, %s8580_s3 }
0x5e81   :  { %v8316_v9 = vpop.eup %8315 }
0x5e82   :  { %v3044_v63 = vadd.f32 1.0, %v8316_v9 }
0x5e84   :  { %8317 = vrcp.f32 %v3044_v63  ;;  %v3226_v63 = vld [vmem:[#allocation2 + $0x14] sm:$0x3] }
0x5e8e   :  { %v8318_v50 = vpop.eup %8317 }
0x5e8f   :  { %v3048_v55 = vmul.f32 %v8318_v50, %v2980_v62 }
0x5ef2   :  { %v3051_v57 = vpop.permute.xlu1 %3050 }
0x5ef3   :  { %v3053_v51 = vmul.f32 %v8318_v50, %v3051_v57 }
0x5ef5   :  { %3055 = vrot.lane.b32.xlu0 %v3053_v51, %s8581_s22 }
0x5f67   :  { %v3056_v59 = vpop.permute.xlu0 %3055 }
0x5f68   :  { %v3058_v18 = vadd.f32 %v3056_v59, %v3048_v55 }
0x5f6a   :  { %8319 = vtanh.f32 %v3058_v18 }
0x5f74   :  { %v8320_v60 = vpop.eup %8319 }
0x5f75   :  { %3061 = vrot.lane.b32.xlu1 %v8320_v60, %s8580_s3 }
0x5fe7   :  { %v3062_v61 = vpop.permute.xlu1 %3061 }
0x5fe8   :  { %v9399_v1 = vmul.f32 %v8318_v50, %v3062_v61 }
0x5fea   :  { %v3071_v2 = vpack.c.bf16 %v9399_v1, %v9399_v1 }
0x5fec   :  { %3073 = vrot.lane.b32.xlu0 %v3071_v2, %s8581_s22 }
0x605e   :  { %v3074_v3 = vpop.permute.xlu0 %3073 }
0x605f   :  { %7628 = vmatmul.mubr.msk.bf16.vlgmr.msra.gmra.mrb[80].mxu0 %vm159_vm3, %v3074_v3 }
0x6060   :  { %7640 = vmatpush3.bf16.msra.mxu0 %v9194_v5  ;;  %7643 = vmatprep.mubr.msk.bf16.mxu0 %vm8578_vm2, %v8577_v7 }
0x6061   :  { %7641 = vmatprep.subr.bf16.mxu0 %v8577_v7 }
0x6064   :  { %7642 = vmatpush3.bf16.msra.mxu0 %v9205_v12 }
0x6065   :  { %7655 = vmatprep.subr.bf16.mxu0 %v8577_v7 }
0x6132   :  { %v3112_v35 = vpop.f32.mrb[80].mxu0 }
0x6133   :  { %v3118_v14 = vadd.f32 %v3112_v35, %v3070_v6  ;;  %v7629_v10 = vpop.f32.mrb[81].mxu0 }
0x6134   :  { %v3115_v26 = vpop.f32.mrb[82].mxu0 }
0x6135   :  { %8321 = vtanh.f32 %v3118_v14  ;;  %v7630_v24 = vpop.f32.mrb[83].mxu0  ;;  %v6968_v36 = vmul.f32 -1.442695, %v3118_v14 }
0x6137   :  { %8323 = vpow2.f32 %v6968_v36 }
0x613f   :  { %v8322_v25 = vpop.eup %8321 }
0x6140   :  { %3128 = vrot.lane.b32.xlu1 %v8322_v25, %s8580_s3 }
0x6141   :  { %v8324_v44 = vpop.eup %8323 }
0x6142   :  { %v3122_v13 = vadd.f32 1.0, %v8324_v44 }
0x6144   :  { %8325 = vrcp.f32 %v3122_v13 }
0x614e   :  { %v8326_v15 = vpop.eup %8325 }
0x614f   :  { %v3126_v22 = vmul.f32 %v8326_v15, %v3058_v18 }
0x61b2   :  { %v3129_v20 = vpop.permute.xlu1 %3128 }
0x61b3   :  { %v3131_v19 = vmul.f32 %v8326_v15, %v3129_v20 }
0x61b5   :  { %3133 = vrot.lane.b32.xlu0 %v3131_v19, %s8581_s22 }
0x6227   :  { %v3134_v28 = vpop.permute.xlu0 %3133 }
0x6228   :  { %v3136_v21 = vadd.f32 %v3134_v28, %v3126_v22 }
0x622a   :  { %8327 = vtanh.f32 %v3136_v21 }
0x6234   :  { %v8328_v31 = vpop.eup %8327 }
0x6235   :  { %3139 = vrot.lane.b32.xlu1 %v8328_v31, %s8580_s3 }
0x62a7   :  { %v3140_v32 = vpop.permute.xlu1 %3139 }
0x62a8   :  { %v9414_v33 = vmul.f32 %v8326_v15, %v3140_v32  ;;  %v3304_v15 = vld [vmem:[#allocation2 + $0x16] sm:$0x3] }
0x62aa   :  { %v3149_v48 = vpack.c.bf16 %v9414_v33, %v9414_v33 }
0x62ac   :  { %3151 = vrot.lane.b32.xlu0 %v3149_v48, %s8581_s22 }
0x631e   :  { %v3152_v42 = vpop.permute.xlu0 %3151 }
0x631f   :  { %7636 = vmatmul.mubr.msk.bf16.vlgmr.msra.gmra.mrb[80].mxu1 %vm159_vm3, %v3152_v42 }
0x6320   :  { %7648 = vmatpush3.bf16.msra.mxu1 %v9194_v5  ;;  %7651 = vmatprep.mubr.msk.bf16.mxu1 %vm8578_vm2, %v8577_v7 }
0x6321   :  { %7649 = vmatprep.subr.bf16.mxu1 %v8577_v7 }
0x6324   :  { %7650 = vmatpush3.bf16.msra.mxu1 %v9205_v12 }
0x6325   :  { %7663 = vmatprep.subr.bf16.mxu1 %v8577_v7 }
0x63f2   :  { %v3190_v8 = vpop.f32.mrb[80].mxu1 }
0x63f3   :  { %v3196_v58 = vadd.f32 %v3190_v8, %v3148_v27  ;;  %v7637_v46 = vpop.f32.mrb[81].mxu1 }
0x63f4   :  { %v3193_v37 = vpop.f32.mrb[82].mxu1 }
0x63f5   :  { %8329 = vtanh.f32 %v3196_v58  ;;  %v7638_v53 = vpop.f32.mrb[83].mxu1  ;;  %v6970_v62 = vmul.f32 -1.442695, %v3196_v58 }
0x63f7   :  { %8331 = vpow2.f32 %v6970_v62 }
0x63ff   :  { %v8330_v56 = vpop.eup %8329 }
0x6400   :  { %3206 = vrot.lane.b32.xlu1 %v8330_v56, %s8580_s3 }
0x6401   :  { %v8332_v4 = vpop.eup %8331 }
0x6402   :  { %v3200_v38 = vadd.f32 1.0, %v8332_v4 }
0x6404   :  { %8333 = vrcp.f32 %v3200_v38 }
0x640e   :  { %v8334_v40 = vpop.eup %8333 }
0x640f   :  { %v3204_v49 = vmul.f32 %v8334_v40, %v3136_v21 }
0x6472   :  { %v3207_v11 = vpop.permute.xlu1 %3206 }
0x6473   :  { %v3209_v0 = vmul.f32 %v8334_v40, %v3207_v11  ;;  %v3382_v11 = vld [vmem:[#allocation2 + $0x18] sm:$0x3] }
0x6475   :  { %3211 = vrot.lane.b32.xlu0 %v3209_v0, %s8581_s22 }
0x64e7   :  { %v3212_v41 = vpop.permute.xlu0 %3211 }
0x64e8   :  { %v3214_v34 = vadd.f32 %v3212_v41, %v3204_v49 }
0x64ea   :  { %8335 = vtanh.f32 %v3214_v34 }
0x64f4   :  { %v8336_v43 = vpop.eup %8335 }
0x64f5   :  { %3217 = vrot.lane.b32.xlu1 %v8336_v43, %s8580_s3 }
0x6567   :  { %v3218_v23 = vpop.permute.xlu1 %3217 }
0x6568   :  { %v9429_v45 = vmul.f32 %v8334_v40, %v3218_v23 }
0x656a   :  { %v3227_v47 = vpack.c.bf16 %v9429_v45, %v9429_v45 }
0x656c   :  { %3229 = vrot.lane.b32.xlu0 %v3227_v47, %s8581_s22 }
0x65de   :  { %v3230_v9 = vpop.permute.xlu0 %3229 }
0x65df   :  { %7644 = vmatmul.mubr.msk.bf16.vlgmr.msra.gmra.mrb[84].mxu0 %vm159_vm3, %v3230_v9 }
0x65e0   :  { %7656 = vmatpush3.bf16.msra.mxu0 %v9194_v5  ;;  %7659 = vmatprep.mubr.msk.bf16.mxu0 %vm8578_vm2, %v8577_v7 }
0x65e1   :  { %7657 = vmatprep.subr.bf16.mxu0 %v8577_v7 }
0x65e4   :  { %7658 = vmatpush3.bf16.msra.mxu0 %v9205_v12 }
0x65e5   :  { %7671 = vmatprep.subr.bf16.mxu0 %v8577_v7 }
0x66b2   :  { %v3268_v50 = vpop.f32.mrb[84].mxu0 }
0x66b3   :  { %v3274_v57 = vadd.f32 %v3268_v50, %v3226_v63  ;;  %v7645_v51 = vpop.f32.mrb[85].mxu0 }
0x66b4   :  { %v3271_v55 = vpop.f32.mrb[86].mxu0 }
0x66b5   :  { %8337 = vtanh.f32 %v3274_v57  ;;  %v7646_v59 = vpop.f32.mrb[87].mxu0  ;;  %v6972_v60 = vmul.f32 -1.442695, %v3274_v57 }
0x66b7   :  { %8339 = vpow2.f32 %v6972_v60 }
0x66bf   :  { %v8338_v18 = vpop.eup %8337 }
0x66c0   :  { %3284 = vrot.lane.b32.xlu1 %v8338_v18, %s8580_s3 }
0x66c1   :  { %v8340_v61 = vpop.eup %8339 }
0x66c2   :  { %v3278_v2 = vadd.f32 1.0, %v8340_v61 }
0x66c4   :  { %8341 = vrcp.f32 %v3278_v2 }
0x66ce   :  { %v8342_v3 = vpop.eup %8341 }
0x66cf   :  { %v3282_v14 = vmul.f32 %v8342_v3, %v3214_v34 }
0x6732   :  { %v3285_v6 = vpop.permute.xlu1 %3284 }
0x6733   :  { %v3287_v35 = vmul.f32 %v8342_v3, %v3285_v6 }
0x6735   :  { %3289 = vrot.lane.b32.xlu0 %v3287_v35, %s8581_s22  ;;  %v3460_v35 = vld [vmem:[#allocation2 + $0x1a] sm:$0x3] }
0x67a7   :  { %v3290_v10 = vpop.permute.xlu0 %3289 }
0x67a8   :  { %v3292_v26 = vadd.f32 %v3290_v10, %v3282_v14 }
0x67aa   :  { %8343 = vtanh.f32 %v3292_v26 }
0x67b4   :  { %v8344_v24 = vpop.eup %8343 }
0x67b5   :  { %3295 = vrot.lane.b32.xlu1 %v8344_v24, %s8580_s3 }
0x6827   :  { %v3296_v25 = vpop.permute.xlu1 %3295 }
0x6828   :  { %v9444_v36 = vmul.f32 %v8342_v3, %v3296_v25 }
0x682a   :  { %v3305_v44 = vpack.c.bf16 %v9444_v36, %v9444_v36 }
0x682c   :  { %3307 = vrot.lane.b32.xlu0 %v3305_v44, %s8581_s22 }
0x689e   :  { %v3308_v13 = vpop.permute.xlu0 %3307 }
0x689f   :  { %7652 = vmatmul.mubr.msk.bf16.vlgmr.msra.gmra.mrb[84].mxu1 %vm159_vm3, %v3308_v13 }
0x68a0   :  { %7664 = vmatpush3.bf16.msra.mxu1 %v9194_v5  ;;  %7667 = vmatprep.mubr.msk.bf16.mxu1 %vm8578_vm2, %v8577_v7 }
0x68a1   :  { %7665 = vmatprep.subr.bf16.mxu1 %v8577_v7 }
0x68a4   :  { %7666 = vmatpush3.bf16.msra.mxu1 %v9205_v12 }
0x68a5   :  { %7679 = vmatprep.subr.bf16.mxu1 %v8577_v7 }
0x6972   :  { %v3346_v20 = vpop.f32.mrb[84].mxu1 }
0x6973   :  { %v3352_v19 = vadd.f32 %v3346_v20, %v3304_v15  ;;  %v7653_v22 = vpop.f32.mrb[85].mxu1 }
0x6974   :  { %v3349_v28 = vpop.f32.mrb[86].mxu1 }
0x6975   :  { %8345 = vtanh.f32 %v3352_v19  ;;  %v7654_v21 = vpop.f32.mrb[87].mxu1  ;;  %v6974_v32 = vmul.f32 -1.442695, %v3352_v19 }
0x6977   :  { %8347 = vpow2.f32 %v6974_v32 }
0x697f   :  { %v8346_v31 = vpop.eup %8345 }
0x6980   :  { %3362 = vrot.lane.b32.xlu1 %v8346_v31, %s8580_s3 }
0x6981   :  { %v8348_v48 = vpop.eup %8347 }
0x6982   :  { %v3356_v42 = vadd.f32 1.0, %v8348_v48 }
0x6984   :  { %8349 = vrcp.f32 %v3356_v42 }
0x698e   :  { %v8350_v27 = vpop.eup %8349 }
0x698f   :  { %v3360_v46 = vmul.f32 %v8350_v27, %v3292_v26 }
0x69f2   :  { %v3363_v8 = vpop.permute.xlu1 %3362 }
0x69f3   :  { %v3365_v58 = vmul.f32 %v8350_v27, %v3363_v8 }
0x69f5   :  { %3367 = vrot.lane.b32.xlu0 %v3365_v58, %s8581_s22 }
0x6a67   :  { %v3368_v37 = vpop.permute.xlu0 %3367 }
0x6a68   :  { %v3370_v53 = vadd.f32 %v3368_v37, %v3360_v46  ;;  %v3538_v46 = vld [vmem:[#allocation2 + $0x1c] sm:$0x3] }
0x6a6a   :  { %8351 = vtanh.f32 %v3370_v53 }
0x6a74   :  { %v8352_v56 = vpop.eup %8351 }
0x6a75   :  { %3373 = vrot.lane.b32.xlu1 %v8352_v56, %s8580_s3 }
0x6ae7   :  { %v3374_v62 = vpop.permute.xlu1 %3373 }
0x6ae8   :  { %v9459_v4 = vmul.f32 %v8350_v27, %v3374_v62 }
0x6aea   :  { %v3383_v38 = vpack.c.bf16 %v9459_v4, %v9459_v4 }
0x6aec   :  { %3385 = vrot.lane.b32.xlu0 %v3383_v38, %s8581_s22 }
0x6b5e   :  { %v3386_v40 = vpop.permute.xlu0 %3385 }
0x6b5f   :  { %7660 = vmatmul.mubr.msk.bf16.vlgmr.msra.gmra.mrb[88].mxu0 %vm159_vm3, %v3386_v40 }
0x6b60   :  { %7672 = vmatpush3.bf16.msra.mxu0 %v9194_v5  ;;  %7675 = vmatprep.mubr.msk.bf16.mxu0 %vm8578_vm2, %v8577_v7 }
0x6b61   :  { %7673 = vmatprep.subr.bf16.mxu0 %v8577_v7 }
0x6b64   :  { %7674 = vmatpush3.bf16.msra.mxu0 %v9205_v12 }
0x6b65   :  { %7687 = vmatprep.subr.bf16.mxu0 %v8577_v7 }
0x6c32   :  { %v3424_v0 = vpop.f32.mrb[88].mxu0 }
0x6c33   :  { %v3430_v49 = vadd.f32 %v3424_v0, %v3382_v11  ;;  %v7661_v41 = vpop.f32.mrb[89].mxu0 }
0x6c34   :  { %v3427_v34 = vpop.f32.mrb[90].mxu0 }
0x6c35   :  { %8353 = vtanh.f32 %v3430_v49  ;;  %v7662_v43 = vpop.f32.mrb[91].mxu0  ;;  %v6976_v47 = vmul.f32 -1.442695, %v3430_v49 }
0x6c37   :  { %8355 = vpow2.f32 %v6976_v47 }
0x6c3f   :  { %v8354_v23 = vpop.eup %8353 }
0x6c40   :  { %3440 = vrot.lane.b32.xlu1 %v8354_v23, %s8580_s3 }
0x6c41   :  { %v8356_v9 = vpop.eup %8355 }
0x6c42   :  { %v3434_v63 = vadd.f32 1.0, %v8356_v9 }
0x6c44   :  { %8357 = vrcp.f32 %v3434_v63 }
0x6c4e   :  { %v8358_v50 = vpop.eup %8357 }
0x6c4f   :  { %v3438_v55 = vmul.f32 %v8358_v50, %v3370_v53 }
0x6cb2   :  { %v3441_v57 = vpop.permute.xlu1 %3440 }
0x6cb3   :  { %v3443_v51 = vmul.f32 %v8358_v50, %v3441_v57 }
0x6cb5   :  { %3445 = vrot.lane.b32.xlu0 %v3443_v51, %s8581_s22 }
0x6d27   :  { %v3446_v59 = vpop.permute.xlu0 %3445 }
0x6d28   :  { %v3448_v18 = vadd.f32 %v3446_v59, %v3438_v55  ;;  %v3616_v59 = vld [vmem:[#allocation2 + $0x1e] sm:$0x3] }
0x6d2a   :  { %8359 = vtanh.f32 %v3448_v18 }
0x6d34   :  { %v8360_v60 = vpop.eup %8359 }
0x6d35   :  { %3451 = vrot.lane.b32.xlu1 %v8360_v60, %s8580_s3 }
0x6da7   :  { %v3452_v61 = vpop.permute.xlu1 %3451 }
0x6da8   :  { %v9474_v2 = vmul.f32 %v8358_v50, %v3452_v61 }
0x6daa   :  { %v3461_v3 = vpack.c.bf16 %v9474_v2, %v9474_v2 }
0x6dac   :  { %3463 = vrot.lane.b32.xlu0 %v3461_v3, %s8581_s22 }
0x6e1e   :  { %v3464_v6 = vpop.permute.xlu0 %3463 }
0x6e1f   :  { %7668 = vmatmul.mubr.msk.bf16.vlgmr.msra.gmra.mrb[88].mxu1 %vm159_vm3, %v3464_v6 }
0x6e20   :  { %7680 = vmatpush3.bf16.msra.mxu1 %v9194_v5  ;;  %7683 = vmatprep.mubr.msk.bf16.mxu1 %vm8578_vm2, %v8577_v7 }
0x6e21   :  { %7681 = vmatprep.subr.bf16.mxu1 %v8577_v7 }
0x6e24   :  { %7682 = vmatpush3.bf16.msra.mxu1 %v9205_v12 }
0x6e25   :  { %7695 = vmatprep.subr.bf16.mxu1 %v8577_v7 }
0x6ef2   :  { %v3502_v14 = vpop.f32.mrb[88].mxu1 }
0x6ef3   :  { %v3508_v10 = vadd.f32 %v3502_v14, %v3460_v35  ;;  %v7669_v26 = vpop.f32.mrb[89].mxu1 }
0x6ef4   :  { %v3505_v24 = vpop.f32.mrb[90].mxu1 }
0x6ef5   :  { %8361 = vtanh.f32 %v3508_v10  ;;  %v7670_v25 = vpop.f32.mrb[91].mxu1  ;;  %v6978_v13 = vmul.f32 -1.442695, %v3508_v10 }
0x6ef7   :  { %8363 = vpow2.f32 %v6978_v13 }
0x6eff   :  { %v8362_v44 = vpop.eup %8361 }
0x6f00   :  { %3518 = vrot.lane.b32.xlu1 %v8362_v44, %s8580_s3 }
0x6f01   :  { %v8364_v15 = vpop.eup %8363 }
0x6f02   :  { %v3512_v20 = vadd.f32 1.0, %v8364_v15 }
0x6f04   :  { %8365 = vrcp.f32 %v3512_v20 }
0x6f0e   :  { %v8366_v19 = vpop.eup %8365 }
0x6f0f   :  { %v3516_v21 = vmul.f32 %v8366_v19, %v3448_v18 }
0x6f72   :  { %v3519_v22 = vpop.permute.xlu1 %3518 }
0x6f73   :  { %v3521_v28 = vmul.f32 %v8366_v19, %v3519_v22 }
0x6f75   :  { %3523 = vrot.lane.b32.xlu0 %v3521_v28, %s8581_s22 }
0x6fe7   :  { %v3524_v31 = vpop.permute.xlu0 %3523 }
0x6fe8   :  { %v3526_v32 = vadd.f32 %v3524_v31, %v3516_v21 }
0x6fea   :  { %8367 = vtanh.f32 %v3526_v32 }
0x6ff4   :  { %v8368_v48 = vpop.eup %8367 }
0x6ff5   :  { %3529 = vrot.lane.b32.xlu1 %v8368_v48, %s8580_s3 }
0x7067   :  { %v3530_v42 = vpop.permute.xlu1 %3529 }
0x7068   :  { %v9489_v27 = vmul.f32 %v8366_v19, %v3530_v42 }
0x706a   :  { %v3539_v8 = vpack.c.bf16 %v9489_v27, %v9489_v27 }
0x706c   :  { %3541 = vrot.lane.b32.xlu0 %v3539_v8, %s8581_s22 }
0x70de   :  { %v3542_v58 = vpop.permute.xlu0 %3541 }
0x70df   :  { %7676 = vmatmul.mubr.msk.bf16.vlgmr.msra.gmra.mrb[92].mxu0 %vm159_vm3, %v3542_v58 }
0x70e0   :  { %7688 = vmatpush3.bf16.msra.mxu0 %v9194_v5  ;;  %7691 = vmatprep.mubr.msk.bf16.mxu0 %vm8578_vm2, %v8577_v7 }
0x70e1   :  { %7689 = vmatprep.subr.bf16.mxu0 %v8577_v7 }
0x70e4   :  { %7690 = vmatpush3.bf16.msra.mxu0 %v9205_v12 }
0x70e5   :  { %7703 = vmatprep.subr.bf16.mxu0 %v8577_v7 }
0x71b2   :  { %v3580_v37 = vpop.f32.mrb[92].mxu0 }
0x71b3   :  { %v3586_v53 = vadd.f32 %v3580_v37, %v3538_v46  ;;  %v7677_v56 = vpop.f32.mrb[93].mxu0 }
0x71b4   :  { %v3583_v62 = vpop.f32.mrb[94].mxu0 }
0x71b5   :  { %8369 = vtanh.f32 %v3586_v53  ;;  %v7678_v38 = vpop.f32.mrb[95].mxu0  ;;  %v6980_v11 = vmul.f32 -1.442695, %v3586_v53 }
0x71b7   :  { %8371 = vpow2.f32 %v6980_v11 }
0x71bf   :  { %v8370_v40 = vpop.eup %8369 }
0x71c0   :  { %3596 = vrot.lane.b32.xlu1 %v8370_v40, %s8580_s3 }
0x71c1   :  { %v8372_v0 = vpop.eup %8371 }
0x71c2   :  { %v3590_v49 = vadd.f32 1.0, %v8372_v0 }
0x71c4   :  { %8373 = vrcp.f32 %v3590_v49 }
0x71ce   :  { %v8374_v41 = vpop.eup %8373 }
0x71cf   :  { %v3594_v23 = vmul.f32 %v8374_v41, %v3526_v32  ;;  %v3694_v32 = vld [vmem:[#allocation2 + $0x20] sm:$0x3] }
0x7232   :  { %v3597_v34 = vpop.permute.xlu1 %3596 }
0x7233   :  { %v3599_v43 = vmul.f32 %v8374_v41, %v3597_v34 }
0x7235   :  { %3601 = vrot.lane.b32.xlu0 %v3599_v43, %s8581_s22 }
0x72a7   :  { %v3602_v47 = vpop.permute.xlu0 %3601 }
0x72a8   :  { %v3604_v9 = vadd.f32 %v3602_v47, %v3594_v23 }
0x72aa   :  { %8375 = vtanh.f32 %v3604_v9 }
0x72b4   :  { %v8376_v63 = vpop.eup %8375 }
0x72b5   :  { %3607 = vrot.lane.b32.xlu1 %v8376_v63, %s8580_s3  ;;  %v3772_v63 = vld [vmem:[#allocation2 + $0x22] sm:$0x3] }
0x7327   :  { %v3608_v50 = vpop.permute.xlu1 %3607 }
0x7328   :  { %v9504_v57 = vmul.f32 %v8374_v41, %v3608_v50 }
0x732a   :  { %v3617_v51 = vpack.c.bf16 %v9504_v57, %v9504_v57 }
0x732c   :  { %3619 = vrot.lane.b32.xlu0 %v3617_v51, %s8581_s22 }
0x739e   :  { %v3620_v55 = vpop.permute.xlu0 %3619 }
0x739f   :  { %7684 = vmatmul.mubr.msk.bf16.vlgmr.msra.gmra.mrb[92].mxu1 %vm159_vm3, %v3620_v55 }
0x73a0   :  { %7696 = vmatpush3.bf16.msra.mxu1 %v9194_v5  ;;  %7699 = vmatprep.mubr.msk.bf16.mxu1 %vm8578_vm2, %v8577_v7 }
0x73a1   :  { %7697 = vmatprep.subr.bf16.mxu1 %v8577_v7 }
0x73a4   :  { %7698 = vmatpush3.bf16.msra.mxu1 %v9205_v12 }
0x73a5   :  { %7711 = vmatprep.subr.bf16.mxu1 %v8577_v7 }
0x7472   :  { %v3658_v18 = vpop.f32.mrb[92].mxu1 }
0x7473   :  { %v3664_v60 = vadd.f32 %v3658_v18, %v3616_v59  ;;  %v7685_v61 = vpop.f32.mrb[93].mxu1 }
0x7474   :  { %v3661_v3 = vpop.f32.mrb[94].mxu1 }
0x7475   :  { %8377 = vtanh.f32 %v3664_v60  ;;  %v7686_v6 = vpop.f32.mrb[95].mxu1  ;;  %v6982_v14 = vmul.f32 -1.442695, %v3664_v60 }
0x7477   :  { %8379 = vpow2.f32 %v6982_v14 }
0x747f   :  { %v8378_v35 = vpop.eup %8377 }
0x7480   :  { %3674 = vrot.lane.b32.xlu1 %v8378_v35, %s8580_s3 }
0x7481   :  { %v8380_v10 = vpop.eup %8379 }
0x7482   :  { %v3668_v26 = vadd.f32 1.0, %v8380_v10 }
0x7484   :  { %8381 = vrcp.f32 %v3668_v26 }
0x748e   :  { %v8382_v24 = vpop.eup %8381 }
0x748f   :  { %v3672_v13 = vmul.f32 %v8382_v24, %v3604_v9 }
0x74f2   :  { %v3675_v25 = vpop.permute.xlu1 %3674 }
0x74f3   :  { %v3677_v44 = vmul.f32 %v8382_v24, %v3675_v25 }
0x74f5   :  { %3679 = vrot.lane.b32.xlu0 %v3677_v44, %s8581_s22 }
0x7567   :  { %v3680_v15 = vpop.permute.xlu0 %3679 }
0x7568   :  { %v3682_v20 = vadd.f32 %v3680_v15, %v3672_v13 }
0x756a   :  { %8383 = vtanh.f32 %v3682_v20 }
0x7574   :  { %v8384_v19 = vpop.eup %8383 }
0x7575   :  { %3685 = vrot.lane.b32.xlu1 %v8384_v19, %s8580_s3 }
0x75e7   :  { %v3686_v22 = vpop.permute.xlu1 %3685 }
0x75e8   :  { %v9519_v28 = vmul.f32 %v8382_v24, %v3686_v22  ;;  %v3850_v22 = vld [vmem:[#allocation2 + $0x24] sm:$0x3] }
0x75ea   :  { %v3695_v21 = vpack.c.bf16 %v9519_v28, %v9519_v28 }
0x75ec   :  { %3697 = vrot.lane.b32.xlu0 %v3695_v21, %s8581_s22 }
0x765e   :  { %v3698_v31 = vpop.permute.xlu0 %3697 }
0x765f   :  { %7692 = vmatmul.mubr.msk.bf16.vlgmr.msra.gmra.mrb[96].mxu0 %vm159_vm3, %v3698_v31 }
0x7660   :  { %7704 = vmatpush3.bf16.msra.mxu0 %v9194_v5  ;;  %7707 = vmatprep.mubr.msk.bf16.mxu0 %vm8578_vm2, %v8577_v7 }
0x7661   :  { %7705 = vmatprep.subr.bf16.mxu0 %v8577_v7 }
0x7664   :  { %7706 = vmatpush3.bf16.msra.mxu0 %v9205_v12 }
0x7665   :  { %7719 = vmatprep.subr.bf16.mxu0 %v8577_v7 }
0x7732   :  { %v3736_v48 = vpop.f32.mrb[96].mxu0 }
0x7733   :  { %v3742_v42 = vadd.f32 %v3736_v48, %v3694_v32  ;;  %v7693_v8 = vpop.f32.mrb[97].mxu0 }
0x7734   :  { %v3739_v58 = vpop.f32.mrb[98].mxu0 }
0x7735   :  { %8385 = vtanh.f32 %v3742_v42  ;;  %v7694_v46 = vpop.f32.mrb[99].mxu0  ;;  %v6984_v53 = vmul.f32 -1.442695, %v3742_v42 }
0x7737   :  { %8387 = vpow2.f32 %v6984_v53 }
0x773f   :  { %v8386_v37 = vpop.eup %8385 }
0x7740   :  { %3752 = vrot.lane.b32.xlu1 %v8386_v37, %s8580_s3 }
0x7741   :  { %v8388_v56 = vpop.eup %8387 }
0x7742   :  { %v3746_v62 = vadd.f32 1.0, %v8388_v56 }
0x7744   :  { %8389 = vrcp.f32 %v3746_v62 }
0x774e   :  { %v8390_v38 = vpop.eup %8389 }
0x774f   :  { %v3750_v0 = vmul.f32 %v8390_v38, %v3682_v20 }
0x77b2   :  { %v3753_v40 = vpop.permute.xlu1 %3752 }
0x77b3   :  { %v3755_v11 = vmul.f32 %v8390_v38, %v3753_v40 }
0x77b5   :  { %3757 = vrot.lane.b32.xlu0 %v3755_v11, %s8581_s22 }
0x7827   :  { %v3758_v49 = vpop.permute.xlu0 %3757 }
0x7828   :  { %v3760_v41 = vadd.f32 %v3758_v49, %v3750_v0 }
0x782a   :  { %8391 = vtanh.f32 %v3760_v41 }
0x7834   :  { %v8392_v34 = vpop.eup %8391 }
0x7835   :  { %3763 = vrot.lane.b32.xlu1 %v8392_v34, %s8580_s3 }
0x78a7   :  { %v3764_v43 = vpop.permute.xlu1 %3763 }
0x78a8   :  { %v9534_v23 = vmul.f32 %v8390_v38, %v3764_v43 }
0x78aa   :  { %v3773_v47 = vpack.c.bf16 %v9534_v23, %v9534_v23 }
0x78ac   :  { %3775 = vrot.lane.b32.xlu0 %v3773_v47, %s8581_s22  ;;  %v3928_v47 = vld [vmem:[#allocation2 + $0x26] sm:$0x3] }
0x791e   :  { %v3776_v9 = vpop.permute.xlu0 %3775 }
0x791f   :  { %7700 = vmatmul.mubr.msk.bf16.vlgmr.msra.gmra.mrb[96].mxu1 %vm159_vm3, %v3776_v9 }
0x7920   :  { %7712 = vmatpush3.bf16.msra.mxu1 %v9194_v5  ;;  %7715 = vmatprep.mubr.msk.bf16.mxu1 %vm8578_vm2, %v8577_v7 }
0x7921   :  { %7713 = vmatprep.subr.bf16.mxu1 %v8577_v7 }
0x7924   :  { %7714 = vmatpush3.bf16.msra.mxu1 %v9205_v12 }
0x7925   :  { %7727 = vmatprep.subr.bf16.mxu1 %v8577_v7 }
0x79f2   :  { %v3814_v50 = vpop.f32.mrb[96].mxu1 }
0x79f3   :  { %v3820_v51 = vadd.f32 %v3814_v50, %v3772_v63  ;;  %v7701_v55 = vpop.f32.mrb[97].mxu1 }
0x79f4   :  { %v3817_v59 = vpop.f32.mrb[98].mxu1 }
0x79f5   :  { %8393 = vtanh.f32 %v3820_v51  ;;  %v7702_v18 = vpop.f32.mrb[99].mxu1  ;;  %v6986_v61 = vmul.f32 -1.442695, %v3820_v51 }
0x79f7   :  { %8395 = vpow2.f32 %v6986_v61 }
0x79ff   :  { %v8394_v60 = vpop.eup %8393 }
0x7a00   :  { %3830 = vrot.lane.b32.xlu1 %v8394_v60, %s8580_s3 }
0x7a01   :  { %v8396_v3 = vpop.eup %8395 }
0x7a02   :  { %v3824_v6 = vadd.f32 1.0, %v8396_v3 }
0x7a04   :  { %8397 = vrcp.f32 %v3824_v6 }
0x7a0e   :  { %v8398_v35 = vpop.eup %8397 }
0x7a0f   :  { %v3828_v26 = vmul.f32 %v8398_v35, %v3760_v41 }
0x7a72   :  { %v3831_v14 = vpop.permute.xlu1 %3830 }
0x7a73   :  { %v3833_v10 = vmul.f32 %v8398_v35, %v3831_v14 }
0x7a75   :  { %3835 = vrot.lane.b32.xlu0 %v3833_v10, %s8581_s22 }
0x7ae7   :  { %v3836_v24 = vpop.permute.xlu0 %3835 }
0x7ae8   :  { %v3838_v25 = vadd.f32 %v3836_v24, %v3828_v26 }
0x7aea   :  { %8399 = vtanh.f32 %v3838_v25 }
0x7af4   :  { %v8400_v44 = vpop.eup %8399 }
0x7af5   :  { %3841 = vrot.lane.b32.xlu1 %v8400_v44, %s8580_s3 }
0x7b67   :  { %v3842_v13 = vpop.permute.xlu1 %3841 }
0x7b68   :  { %v9549_v15 = vmul.f32 %v8398_v35, %v3842_v13 }
0x7b6a   :  { %v3851_v20 = vpack.c.bf16 %v9549_v15, %v9549_v15 }
0x7b6c   :  { %3853 = vrot.lane.b32.xlu0 %v3851_v20, %s8581_s22 }
0x7bde   :  { %v3854_v19 = vpop.permute.xlu0 %3853 }
0x7bdf   :  { %7708 = vmatmul.mubr.msk.bf16.vlgmr.msra.gmra.mrb[100].mxu0 %vm159_vm3, %v3854_v19  ;;  %v4006_v19 = vld [vmem:[#allocation2 + $0x28] sm:$0x3] }
0x7be0   :  { %7720 = vmatpush3.bf16.msra.mxu0 %v9194_v5  ;;  %7723 = vmatprep.mubr.msk.bf16.mxu0 %vm8578_vm2, %v8577_v7 }
0x7be1   :  { %7721 = vmatprep.subr.bf16.mxu0 %v8577_v7 }
0x7be4   :  { %7722 = vmatpush3.bf16.msra.mxu0 %v9205_v12 }
0x7be5   :  { %7735 = vmatprep.subr.bf16.mxu0 %v8577_v7 }
0x7cb2   :  { %v3892_v21 = vpop.f32.mrb[100].mxu0 }
0x7cb3   :  { %v3898_v31 = vadd.f32 %v3892_v21, %v3850_v22  ;;  %v7709_v32 = vpop.f32.mrb[101].mxu0 }
0x7cb4   :  { %v3895_v48 = vpop.f32.mrb[102].mxu0 }
0x7cb5   :  { %8401 = vtanh.f32 %v3898_v31  ;;  %v7710_v42 = vpop.f32.mrb[103].mxu0  ;;  %v6988_v58 = vmul.f32 -1.442695, %v3898_v31 }
0x7cb7   :  { %8403 = vpow2.f32 %v6988_v58 }
0x7cbf   :  { %v8402_v8 = vpop.eup %8401 }
0x7cc0   :  { %3908 = vrot.lane.b32.xlu1 %v8402_v8, %s8580_s3 }
0x7cc1   :  { %v8404_v46 = vpop.eup %8403 }
0x7cc2   :  { %v3902_v37 = vadd.f32 1.0, %v8404_v46 }
0x7cc4   :  { %8405 = vrcp.f32 %v3902_v37 }
0x7cce   :  { %v8406_v53 = vpop.eup %8405 }
0x7ccf   :  { %v3906_v38 = vmul.f32 %v8406_v53, %v3838_v25 }
0x7d32   :  { %v3909_v56 = vpop.permute.xlu1 %3908 }
0x7d33   :  { %v3911_v62 = vmul.f32 %v8406_v53, %v3909_v56 }
0x7d35   :  { %3913 = vrot.lane.b32.xlu0 %v3911_v62, %s8581_s22 }
0x7da7   :  { %v3914_v40 = vpop.permute.xlu0 %3913 }
0x7da8   :  { %v3916_v11 = vadd.f32 %v3914_v40, %v3906_v38 }
0x7daa   :  { %8407 = vtanh.f32 %v3916_v11 }
0x7db4   :  { %v8408_v0 = vpop.eup %8407 }
0x7db5   :  { %3919 = vrot.lane.b32.xlu1 %v8408_v0, %s8580_s3 }
0x7e27   :  { %v3920_v49 = vpop.permute.xlu1 %3919 }
0x7e28   :  { %v9564_v41 = vmul.f32 %v8406_v53, %v3920_v49 }
0x7e2a   :  { %v3929_v34 = vpack.c.bf16 %v9564_v41, %v9564_v41 }
0x7e2c   :  { %3931 = vrot.lane.b32.xlu0 %v3929_v34, %s8581_s22 }
0x7e9e   :  { %v3932_v43 = vpop.permute.xlu0 %3931 }
0x7e9f   :  { %7716 = vmatmul.mubr.msk.bf16.vlgmr.msra.gmra.mrb[100].mxu1 %vm159_vm3, %v3932_v43 }
0x7ea0   :  { %7728 = vmatpush3.bf16.msra.mxu1 %v9194_v5  ;;  %7731 = vmatprep.mubr.msk.bf16.mxu1 %vm8578_vm2, %v8577_v7 }
0x7ea1   :  { %7729 = vmatprep.subr.bf16.mxu1 %v8577_v7 }
0x7ea4   :  { %7730 = vmatpush3.bf16.msra.mxu1 %v9205_v12 }
0x7ea5   :  { %7743 = vmatprep.subr.bf16.mxu1 %v8577_v7 }
0x7f72   :  { %v3970_v9 = vpop.f32.mrb[100].mxu1 }
0x7f73   :  { %v3976_v63 = vadd.f32 %v3970_v9, %v3928_v47  ;;  %v7717_v50 = vpop.f32.mrb[101].mxu1  ;;  %v4084_v47 = vld [vmem:[#allocation2 + $0x2a] sm:$0x3] }
0x7f74   :  { %v3973_v51 = vpop.f32.mrb[102].mxu1 }
0x7f75   :  { %8409 = vtanh.f32 %v3976_v63  ;;  %v7718_v55 = vpop.f32.mrb[103].mxu1  ;;  %v6990_v18 = vmul.f32 -1.442695, %v3976_v63 }
0x7f77   :  { %8411 = vpow2.f32 %v6990_v18 }
0x7f7f   :  { %v8410_v59 = vpop.eup %8409 }
0x7f80   :  { %3986 = vrot.lane.b32.xlu1 %v8410_v59, %s8580_s3 }
0x7f81   :  { %v8412_v60 = vpop.eup %8411 }
0x7f82   :  { %v3980_v61 = vadd.f32 1.0, %v8412_v60 }
0x7f84   :  { %8413 = vrcp.f32 %v3980_v61 }
0x7f8e   :  { %v8414_v3 = vpop.eup %8413 }
0x7f8f   :  { %v3984_v14 = vmul.f32 %v8414_v3, %v3916_v11 }
0x7ff2   :  { %v3987_v6 = vpop.permute.xlu1 %3986 }
0x7ff3   :  { %v3989_v35 = vmul.f32 %v8414_v3, %v3987_v6 }
0x7ff5   :  { %3991 = vrot.lane.b32.xlu0 %v3989_v35, %s8581_s22 }
0x8067   :  { %v3992_v10 = vpop.permute.xlu0 %3991 }
0x8068   :  { %v3994_v26 = vadd.f32 %v3992_v10, %v3984_v14 }
0x806a   :  { %8415 = vtanh.f32 %v3994_v26 }
0x8074   :  { %v8416_v24 = vpop.eup %8415 }
0x8075   :  { %3997 = vrot.lane.b32.xlu1 %v8416_v24, %s8580_s3 }
0x80e7   :  { %v3998_v25 = vpop.permute.xlu1 %3997 }
0x80e8   :  { %v9579_v44 = vmul.f32 %v8414_v3, %v3998_v25 }
0x80ea   :  { %v4007_v13 = vpack.c.bf16 %v9579_v44, %v9579_v44 }
0x80ec   :  { %4009 = vrot.lane.b32.xlu0 %v4007_v13, %s8581_s22 }
0x815e   :  { %v4010_v20 = vpop.permute.xlu0 %4009 }
0x815f   :  { %7724 = vmatmul.mubr.msk.bf16.vlgmr.msra.gmra.mrb[104].mxu0 %vm159_vm3, %v4010_v20 }
0x8160   :  { %7736 = vmatpush3.bf16.msra.mxu0 %v9194_v5  ;;  %7739 = vmatprep.mubr.msk.bf16.mxu0 %vm8578_vm2, %v8577_v7 }
0x8161   :  { %7737 = vmatprep.subr.bf16.mxu0 %v8577_v7 }
0x8164   :  { %7738 = vmatpush3.bf16.msra.mxu0 %v9205_v12 }
0x8165   :  { %7751 = vmatprep.subr.bf16.mxu0 %v8577_v7 }
0x8232   :  { %v4048_v22 = vpop.f32.mrb[104].mxu0 }
0x8233   :  { %v4054_v21 = vadd.f32 %v4048_v22, %v4006_v19  ;;  %v7725_v31 = vpop.f32.mrb[105].mxu0  ;;  %v4162_v22 = vld [vmem:[#allocation2 + $0x2c] sm:$0x3] }
0x8234   :  { %v4051_v32 = vpop.f32.mrb[106].mxu0 }
0x8235   :  { %8417 = vtanh.f32 %v4054_v21  ;;  %v7726_v48 = vpop.f32.mrb[107].mxu0  ;;  %v6992_v8 = vmul.f32 -1.442695, %v4054_v21 }
0x8237   :  { %8419 = vpow2.f32 %v6992_v8 }
0x823f   :  { %v8418_v42 = vpop.eup %8417 }
0x8240   :  { %4064 = vrot.lane.b32.xlu1 %v8418_v42, %s8580_s3 }
0x8241   :  { %v8420_v58 = vpop.eup %8419 }
0x8242   :  { %v4058_v46 = vadd.f32 1.0, %v8420_v58 }
0x8244   :  { %8421 = vrcp.f32 %v4058_v46 }
0x824e   :  { %v8422_v37 = vpop.eup %8421 }
0x824f   :  { %v4062_v62 = vmul.f32 %v8422_v37, %v3994_v26 }
0x82b2   :  { %v4065_v53 = vpop.permute.xlu1 %4064 }
0x82b3   :  { %v4067_v56 = vmul.f32 %v8422_v37, %v4065_v53 }
0x82b5   :  { %4069 = vrot.lane.b32.xlu0 %v4067_v56, %s8581_s22 }
0x8327   :  { %v4070_v38 = vpop.permute.xlu0 %4069 }
0x8328   :  { %v4072_v40 = vadd.f32 %v4070_v38, %v4062_v62 }
0x832a   :  { %8423 = vtanh.f32 %v4072_v40 }
0x8334   :  { %v8424_v11 = vpop.eup %8423 }
0x8335   :  { %4075 = vrot.lane.b32.xlu1 %v8424_v11, %s8580_s3 }
0x83a7   :  { %v4076_v0 = vpop.permute.xlu1 %4075 }
0x83a8   :  { %v9594_v49 = vmul.f32 %v8422_v37, %v4076_v0 }
0x83aa   :  { %v4085_v34 = vpack.c.bf16 %v9594_v49, %v9594_v49 }
0x83ac   :  { %4087 = vrot.lane.b32.xlu0 %v4085_v34, %s8581_s22 }
0x841e   :  { %v4088_v43 = vpop.permute.xlu0 %4087 }
0x841f   :  { %7732 = vmatmul.mubr.msk.bf16.vlgmr.msra.gmra.mrb[104].mxu1 %vm159_vm3, %v4088_v43 }
0x8420   :  { %7744 = vmatpush3.bf16.msra.mxu1 %v9194_v5  ;;  %7747 = vmatprep.mubr.msk.bf16.mxu1 %vm8578_vm2, %v8577_v7 }
0x8421   :  { %7745 = vmatprep.subr.bf16.mxu1 %v8577_v7 }
0x8424   :  { %7746 = vmatpush3.bf16.msra.mxu1 %v9205_v12 }
0x8425   :  { %7759 = vmatprep.subr.bf16.mxu1 %v8577_v7 }
0x84f2   :  { %v4126_v9 = vpop.f32.mrb[104].mxu1 }
0x84f3   :  { %v4132_v63 = vadd.f32 %v4126_v9, %v4084_v47  ;;  %v7733_v50 = vpop.f32.mrb[105].mxu1 }
0x84f4   :  { %v4129_v51 = vpop.f32.mrb[106].mxu1 }
0x84f5   :  { %8425 = vtanh.f32 %v4132_v63  ;;  %v7734_v55 = vpop.f32.mrb[107].mxu1  ;;  %v6994_v18 = vmul.f32 -1.442695, %v4132_v63  ;;  %v4240_v63 = vld [vmem:[#allocation2 + $0x2e] sm:$0x3] }
0x84f7   :  { %8427 = vpow2.f32 %v6994_v18 }
0x84ff   :  { %v8426_v59 = vpop.eup %8425 }
0x8500   :  { %4142 = vrot.lane.b32.xlu1 %v8426_v59, %s8580_s3 }
0x8501   :  { %v8428_v60 = vpop.eup %8427 }
0x8502   :  { %v4136_v61 = vadd.f32 1.0, %v8428_v60 }
0x8504   :  { %8429 = vrcp.f32 %v4136_v61 }
0x850e   :  { %v8430_v3 = vpop.eup %8429 }
0x850f   :  { %v4140_v14 = vmul.f32 %v8430_v3, %v4072_v40 }
0x8572   :  { %v4143_v6 = vpop.permute.xlu1 %4142 }
0x8573   :  { %v4145_v35 = vmul.f32 %v8430_v3, %v4143_v6 }
0x8575   :  { %4147 = vrot.lane.b32.xlu0 %v4145_v35, %s8581_s22 }
0x85e7   :  { %v4148_v10 = vpop.permute.xlu0 %4147 }
0x85e8   :  { %v4150_v26 = vadd.f32 %v4148_v10, %v4140_v14 }
0x85ea   :  { %8431 = vtanh.f32 %v4150_v26 }
0x85f4   :  { %v8432_v24 = vpop.eup %8431 }
0x85f5   :  { %4153 = vrot.lane.b32.xlu1 %v8432_v24, %s8580_s3 }
0x8667   :  { %v4154_v25 = vpop.permute.xlu1 %4153 }
0x8668   :  { %v9609_v13 = vmul.f32 %v8430_v3, %v4154_v25 }
0x866a   :  { %v4163_v20 = vpack.c.bf16 %v9609_v13, %v9609_v13 }
0x866c   :  { %4165 = vrot.lane.b32.xlu0 %v4163_v20, %s8581_s22 }
0x86de   :  { %v4166_v19 = vpop.permute.xlu0 %4165 }
0x86df   :  { %7740 = vmatmul.mubr.msk.bf16.vlgmr.msra.gmra.mrb[108].mxu0 %vm159_vm3, %v4166_v19 }
0x86e0   :  { %7752 = vmatpush3.bf16.msra.mxu0 %v9194_v5  ;;  %7755 = vmatprep.mubr.msk.bf16.mxu0 %vm8578_vm2, %v8577_v7 }
0x86e1   :  { %7753 = vmatprep.subr.bf16.mxu0 %v8577_v7 }
0x86e4   :  { %7754 = vmatpush3.bf16.msra.mxu0 %v9205_v12 }
0x86e5   :  { %7767 = vmatprep.subr.bf16.mxu0 %v8577_v7 }
0x87b2   :  { %v4204_v21 = vpop.f32.mrb[108].mxu0 }
0x87b3   :  { %v4210_v31 = vadd.f32 %v4204_v21, %v4162_v22  ;;  %v7741_v32 = vpop.f32.mrb[109].mxu0 }
0x87b4   :  { %v4207_v48 = vpop.f32.mrb[110].mxu0  ;;  %v4318_v32 = vld [vmem:[#allocation2 + $0x30] sm:$0x3] }
0x87b5   :  { %8433 = vtanh.f32 %v4210_v31  ;;  %v7742_v42 = vpop.f32.mrb[111].mxu0  ;;  %v6996_v58 = vmul.f32 -1.442695, %v4210_v31 }
0x87b7   :  { %8435 = vpow2.f32 %v6996_v58 }
0x87bf   :  { %v8434_v8 = vpop.eup %8433 }
0x87c0   :  { %4220 = vrot.lane.b32.xlu1 %v8434_v8, %s8580_s3 }
0x87c1   :  { %v8436_v46 = vpop.eup %8435 }
0x87c2   :  { %v4214_v37 = vadd.f32 1.0, %v8436_v46 }
0x87c4   :  { %8437 = vrcp.f32 %v4214_v37 }
0x87ce   :  { %v8438_v53 = vpop.eup %8437 }
0x87cf   :  { %v4218_v38 = vmul.f32 %v8438_v53, %v4150_v26 }
0x8832   :  { %v4221_v56 = vpop.permute.xlu1 %4220 }
0x8833   :  { %v4223_v62 = vmul.f32 %v8438_v53, %v4221_v56 }
0x8835   :  { %4225 = vrot.lane.b32.xlu0 %v4223_v62, %s8581_s22 }
0x88a7   :  { %v4226_v40 = vpop.permute.xlu0 %4225 }
0x88a8   :  { %v4228_v11 = vadd.f32 %v4226_v40, %v4218_v38 }
0x88aa   :  { %8439 = vtanh.f32 %v4228_v11 }
0x88b4   :  { %v8440_v0 = vpop.eup %8439 }
0x88b5   :  { %4231 = vrot.lane.b32.xlu1 %v8440_v0, %s8580_s3 }
0x8927   :  { %v4232_v34 = vpop.permute.xlu1 %4231 }
0x8928   :  { %v9624_v43 = vmul.f32 %v8438_v53, %v4232_v34 }
0x892a   :  { %v4241_v47 = vpack.c.bf16 %v9624_v43, %v9624_v43 }
0x892c   :  { %4243 = vrot.lane.b32.xlu0 %v4241_v47, %s8581_s22 }
0x899e   :  { %v4244_v9 = vpop.permute.xlu0 %4243 }
0x899f   :  { %7748 = vmatmul.mubr.msk.bf16.vlgmr.msra.gmra.mrb[108].mxu1 %vm159_vm3, %v4244_v9 }
0x89a0   :  { %7760 = vmatpush3.bf16.msra.mxu1 %v9194_v5  ;;  %7763 = vmatprep.mubr.msk.bf16.mxu1 %vm8578_vm2, %v8577_v7 }
0x89a1   :  { %7761 = vmatprep.subr.bf16.mxu1 %v8577_v7 }
0x89a4   :  { %7762 = vmatpush3.bf16.msra.mxu1 %v9205_v12 }
0x89a5   :  { %7775 = vmatprep.subr.bf16.mxu1 %v8577_v7 }
0x8a72   :  { %v4282_v50 = vpop.f32.mrb[108].mxu1 }
0x8a73   :  { %v4288_v51 = vadd.f32 %v4282_v50, %v4240_v63  ;;  %v7749_v55 = vpop.f32.mrb[109].mxu1 }
0x8a74   :  { %v4285_v59 = vpop.f32.mrb[110].mxu1 }
0x8a75   :  { %8441 = vtanh.f32 %v4288_v51  ;;  %v7750_v18 = vpop.f32.mrb[111].mxu1  ;;  %v6998_v61 = vmul.f32 -1.442695, %v4288_v51  ;;  %v4396_v59 = vld [vmem:[#allocation2 + $0x32] sm:$0x3] }
0x8a77   :  { %8443 = vpow2.f32 %v6998_v61 }
0x8a7f   :  { %v8442_v60 = vpop.eup %8441 }
0x8a80   :  { %4298 = vrot.lane.b32.xlu1 %v8442_v60, %s8580_s3 }
0x8a81   :  { %v8444_v3 = vpop.eup %8443 }
0x8a82   :  { %v4292_v6 = vadd.f32 1.0, %v8444_v3 }
0x8a84   :  { %8445 = vrcp.f32 %v4292_v6 }
0x8a8e   :  { %v8446_v35 = vpop.eup %8445 }
0x8a8f   :  { %v4296_v26 = vmul.f32 %v8446_v35, %v4228_v11 }
0x8af2   :  { %v4299_v14 = vpop.permute.xlu1 %4298 }
0x8af3   :  { %v4301_v10 = vmul.f32 %v8446_v35, %v4299_v14 }
0x8af5   :  { %4303 = vrot.lane.b32.xlu0 %v4301_v10, %s8581_s22 }
0x8b67   :  { %v4304_v24 = vpop.permute.xlu0 %4303 }
0x8b68   :  { %v4306_v25 = vadd.f32 %v4304_v24, %v4296_v26 }
0x8b6a   :  { %8447 = vtanh.f32 %v4306_v25 }
0x8b74   :  { %v8448_v20 = vpop.eup %8447 }
0x8b75   :  { %4309 = vrot.lane.b32.xlu1 %v8448_v20, %s8580_s3 }
0x8be7   :  { %v4310_v19 = vpop.permute.xlu1 %4309 }
0x8be8   :  { %v9639_v22 = vmul.f32 %v8446_v35, %v4310_v19 }
0x8bea   :  { %v4319_v21 = vpack.c.bf16 %v9639_v22, %v9639_v22 }
0x8bec   :  { %4321 = vrot.lane.b32.xlu0 %v4319_v21, %s8581_s22 }
0x8c5e   :  { %v4322_v31 = vpop.permute.xlu0 %4321 }
0x8c5f   :  { %7756 = vmatmul.mubr.msk.bf16.vlgmr.msra.gmra.mrb[112].mxu0 %vm159_vm3, %v4322_v31 }
0x8c60   :  { %7768 = vmatpush3.bf16.msra.mxu0 %v9194_v5  ;;  %7771 = vmatprep.mubr.msk.bf16.mxu0 %vm8578_vm2, %v8577_v7 }
0x8c61   :  { %7769 = vmatprep.subr.bf16.mxu0 %v8577_v7 }
0x8c64   :  { %7770 = vmatpush3.bf16.msra.mxu0 %v9205_v12 }
0x8d32   :  { %v4360_v48 = vpop.f32.mrb[112].mxu0 }
0x8d33   :  { %v4366_v42 = vadd.f32 %v4360_v48, %v4318_v32  ;;  %v7757_v8 = vpop.f32.mrb[113].mxu0 }
0x8d34   :  { %v4363_v58 = vpop.f32.mrb[114].mxu0  ;;  %v4474_v8 = vld [vmem:[#allocation2 + $0x34] sm:$0x3] }
0x8d35   :  { %8449 = vtanh.f32 %v4366_v42  ;;  %v7758_v46 = vpop.f32.mrb[115].mxu0  ;;  %v7000_v53 = vmul.f32 -1.442695, %v4366_v42 }
0x8d37   :  { %8451 = vpow2.f32 %v7000_v53 }
0x8d3f   :  { %v8450_v37 = vpop.eup %8449 }
0x8d40   :  { %4376 = vrot.lane.b32.xlu1 %v8450_v37, %s8580_s3 }
0x8d41   :  { %v8452_v56 = vpop.eup %8451 }
0x8d42   :  { %v4370_v62 = vadd.f32 1.0, %v8452_v56 }
0x8d44   :  { %8453 = vrcp.f32 %v4370_v62 }
0x8d4e   :  { %v8454_v38 = vpop.eup %8453 }
0x8d4f   :  { %v4374_v0 = vmul.f32 %v8454_v38, %v4306_v25 }
0x8db2   :  { %v4377_v40 = vpop.permute.xlu1 %4376 }
0x8db3   :  { %v4379_v11 = vmul.f32 %v8454_v38, %v4377_v40 }
0x8db5   :  { %4381 = vrot.lane.b32.xlu0 %v4379_v11, %s8581_s22 }
0x8e27   :  { %v4382_v34 = vpop.permute.xlu0 %4381 }
0x8e28   :  { %v4384_v47 = vadd.f32 %v4382_v34, %v4374_v0 }
0x8e2a   :  { %8455 = vtanh.f32 %v4384_v47 }
0x8e34   :  { %v8456_v9 = vpop.eup %8455 }
0x8e35   :  { %4387 = vrot.lane.b32.xlu1 %v8456_v9, %s8580_s3 }
0x8ea7   :  { %v4388_v63 = vpop.permute.xlu1 %4387 }
0x8ea8   :  { %v9653_v50 = vmul.f32 %v8454_v38, %v4388_v63 }
0x8eaa   :  { %v4397_v51 = vpack.c.bf16 %v9653_v50, %v9653_v50 }
0x8eac   :  { %4399 = vrot.lane.b32.xlu0 %v4397_v51, %s8581_s22 }
0x8f1e   :  { %v4400_v55 = vpop.permute.xlu0 %4399 }
0x8f1f   :  { %7764 = vmatmul.mubr.msk.bf16.vlgmr.msra.gmra.mrb[112].mxu1 %vm159_vm3, %v4400_v55 }
0x8f20   :  { %7776 = vmatpush3.bf16.msra.mxu1 %v9194_v5  ;;  %7779 = vmatprep.mubr.msk.bf16.mxu1 %vm8578_vm2, %v8577_v7 }
0x8f21   :  { %7777 = vmatprep.subr.bf16.mxu1 %v8577_v7 }
0x8f24   :  { %7778 = vmatpush3.bf16.msra.mxu1 %v9205_v12 }
0x8f25   :  { %7795 = vmatprep.subr.bf16.mxu1 %v8577_v7 }
0x8ff2   :  { %v4438_v18 = vpop.f32.mrb[112].mxu1 }
0x8ff3   :  { %v4444_v60 = vadd.f32 %v4438_v18, %v4396_v59  ;;  %v7765_v61 = vpop.f32.mrb[113].mxu1 }
0x8ff4   :  { %v4441_v3 = vpop.f32.mrb[114].mxu1 }
0x8ff5   :  { %8457 = vtanh.f32 %v4444_v60  ;;  %v7766_v6 = vpop.f32.mrb[115].mxu1  ;;  %v7002_v5 = vmul.f32 -1.442695, %v4444_v60  ;;  %v4552_v3 = vld [vmem:[#allocation2 + $0x36] sm:$0x3] }
0x8ff7   :  { %8459 = vpow2.f32 %v7002_v5 }
0x8fff   :  { %v8458_v35 = vpop.eup %8457 }
0x9000   :  { %4454 = vrot.lane.b32.xlu1 %v8458_v35, %s8580_s3 }
0x9001   :  { %v8460_v14 = vpop.eup %8459 }
0x9002   :  { %v4448_v10 = vadd.f32 1.0, %v8460_v14 }
0x9004   :  { %8461 = vrcp.f32 %v4448_v10 }
0x900e   :  { %v8462_v26 = vpop.eup %8461 }
0x900f   :  { %v4452_v25 = vmul.f32 %v8462_v26, %v4384_v47 }
0x9072   :  { %v4455_v24 = vpop.permute.xlu1 %4454 }
0x9073   :  { %v4457_v12 = vmul.f32 %v8462_v26, %v4455_v24 }
0x9075   :  { %4459 = vrot.lane.b32.xlu0 %v4457_v12, %s8581_s22 }
0x90e7   :  { %v4460_v20 = vpop.permute.xlu0 %4459 }
0x90e8   :  { %v4462_v19 = vadd.f32 %v4460_v20, %v4452_v25 }
0x90ea   :  { %8463 = vtanh.f32 %v4462_v19 }
0x90f4   :  { %v8464_v21 = vpop.eup %8463 }
0x90f5   :  { %4465 = vrot.lane.b32.xlu1 %v8464_v21, %s8580_s3 }
0x9167   :  { %v4466_v31 = vpop.permute.xlu1 %4465 }
0x9168   :  { %v9668_v32 = vmul.f32 %v8462_v26, %v4466_v31  ;;  %v4644_v31 = vld [vmem:[%s11046_s7 + $0x18] sm:$0xff] }
0x916a   :  { %v4475_v48 = vpack.c.bf16 %v9668_v32, %v9668_v32 }
0x916c   :  { %4477 = vrot.lane.b32.xlu0 %v4475_v48, %s8581_s22 }
0x91de   :  { %v4478_v42 = vpop.permute.xlu0 %4477 }
0x91df   :  { %7772 = vmatmul.mubr.msk.bf16.vlgmr.msra.gmra.mrb[116].mxu0 %vm159_vm3, %v4478_v42 }
0x92b2   :  { %v4516_v58 = vpop.f32.mrb[116].mxu0 }
0x92b3   :  { %v4522_v46 = vadd.f32 %v4516_v58, %v4474_v8  ;;  %v7773_v37 = vpop.f32.mrb[117].mxu0 }
0x92b4   :  { %v4519_v53 = vpop.f32.mrb[118].mxu0 }
0x92b5   :  { %8465 = vtanh.f32 %v4522_v46  ;;  %v7774_v56 = vpop.f32.mrb[119].mxu0  ;;  %v7004_v38 = vmul.f32 -1.442695, %v4522_v46 }
0x92b7   :  { %8467 = vpow2.f32 %v7004_v38 }
0x92bf   :  { %v8466_v62 = vpop.eup %8465 }
0x92c0   :  { %4532 = vrot.lane.b32.xlu1 %v8466_v62, %s8580_s3 }
0x92c1   :  { %v8468_v40 = vpop.eup %8467 }
0x92c2   :  { %v4526_v11 = vadd.f32 1.0, %v8468_v40 }
0x92c4   :  { %8469 = vrcp.f32 %v4526_v11 }
0x92ce   :  { %v8470_v0 = vpop.eup %8469 }
0x92cf   :  { %v4530_v9 = vmul.f32 %v8470_v0, %v4462_v19 }
0x9332   :  { %v4533_v34 = vpop.permute.xlu1 %4532 }
0x9333   :  { %v4535_v47 = vmul.f32 %v8470_v0, %v4533_v34 }
0x9335   :  { %4537 = vrot.lane.b32.xlu0 %v4535_v47, %s8581_s22 }
0x93a7   :  { %v4538_v63 = vpop.permute.xlu0 %4537 }
0x93a8   :  { %v4540_v51 = vadd.f32 %v4538_v63, %v4530_v9 }
0x93aa   :  { %8471 = vtanh.f32 %v4540_v51 }
0x93b4   :  { %v8472_v55 = vpop.eup %8471 }
0x93b5   :  { %4543 = vrot.lane.b32.xlu1 %v8472_v55, %s8580_s3 }
0x9427   :  { %v4544_v59 = vpop.permute.xlu1 %4543 }
0x9428   :  { %v4546_v18 = vmul.f32 %v8470_v0, %v4544_v59 }
0x942a   :  { %v4553_v60 = vpack.c.bf16 %v4546_v18, %v4546_v18 }
0x942c   :  { %4555 = vrot.lane.b32.xlu0 %v4553_v60, %s8581_s22 }
0x949e   :  { %v4556_v61 = vpop.permute.xlu0 %4555 }
0x949f   :  { %7780 = vmatmul.mubr.msk.bf16.vlgmr.msra.gmra.mrb[116].mxu1 %vm159_vm3, %v4556_v61 }
0x94a0   :  { %7799 = vmatprep.mubr.msk.bf16.mxu1 %vm8578_vm2, %v8577_v7 }
0x9572   :  { %v4594_v6 = vpop.f32.mrb[116].mxu1 }
0x9573   :  { %v4600_v35 = vadd.f32 %v4594_v6, %v4552_v3  ;;  %v7781_v5 = vpop.f32.mrb[117].mxu1 }
0x9574   :  { %v4597_v14 = vpop.f32.mrb[118].mxu1 }
0x9575   :  { %8473 = vtanh.f32 %v4600_v35  ;;  %v7782_v10 = vpop.f32.mrb[119].mxu1  ;;  %v7006_v24 = vmul.f32 -1.442695, %v4600_v35 }
0x9577   :  { %8475 = vpow2.f32 %v7006_v24 }
0x957f   :  { %v8474_v26 = vpop.eup %8473 }
0x9580   :  { %4610 = vrot.lane.b32.xlu1 %v8474_v26, %s8580_s3 }
0x9581   :  { %v8476_v12 = vpop.eup %8475 }
0x9582   :  { %v4604_v25 = vadd.f32 1.0, %v8476_v12 }
0x9584   :  { %8477 = vrcp.f32 %v4604_v25 }
0x958e   :  { %v9682_v20 = vpop.eup %8477 }
0x95f2   :  { %v4611_v19 = vpop.permute.xlu1 %4610 }
0x95f3   :  { %v4613_v21 = vmul.f32 %v9682_v20, %v4611_v19 }
0x95f5   :  { %4615 = vrot.lane.b32.xlu0 %v4613_v21, %s8581_s22 }
0x95f9   :  { %2520 = vrot.lane.b32.xlu0 %v9239_v52, %s8581_s22  ;;  %v4608_v52 = vmul.f32 %v9682_v20, %v4540_v51 }
0x95fd   :  { %2676 = vrot.lane.b32.xlu0 %v9324_v29, %s8581_s22 }
0x9601   :  { %2832 = vrot.lane.b32.xlu0 %v9354_v16, %s8581_s22 }
0x9605   :  { %2988 = vrot.lane.b32.xlu0 %v9384_v39, %s8581_s22 }
0x9609   :  { %3144 = vrot.lane.b32.xlu0 %v9414_v33, %s8581_s22 }
0x960d   :  { %3300 = vrot.lane.b32.xlu0 %v9444_v36, %s8581_s22 }
0x9611   :  { %3456 = vrot.lane.b32.xlu0 %v9474_v2, %s8581_s22 }
0x9615   :  { %3612 = vrot.lane.b32.xlu0 %v9504_v57, %s8581_s22 }
0x9619   :  { %3768 = vrot.lane.b32.xlu0 %v9534_v23, %s8581_s22 }
0x961d   :  { %3924 = vrot.lane.b32.xlu0 %v9564_v41, %s8581_s22 }
0x9621   :  { %4080 = vrot.lane.b32.xlu0 %v9594_v49, %s8581_s22 }
0x9625   :  { %4236 = vrot.lane.b32.xlu0 %v9624_v43, %s8581_s22 }
0x9629   :  { %4392 = vrot.lane.b32.xlu0 %v9653_v50, %s8581_s22 }
0x962d   :  { %4548 = vrot.lane.b32.xlu0 %v4546_v18, %s8581_s22 }
0x9667   :  { %v4616_v29 = vpop.permute.xlu0 %4615 }
0x9668   :  { %v4618_v16 = vadd.f32 %v4616_v29, %v4608_v52 }
0x966a   :  { %8479 = vtanh.f32 %v4618_v16  ;;  %v9829_v16 = vld [vmem:[%s11047_s8] ss:$0 sm:$0xff] }
0x966b   :  { %v2521_v39 = vpop.permute.xlu0 %2520 }
0x966c   :  { %2523 = vst.msk [vmem:[#allocation3] sm:$0x3] %vm232_vm4, %v2521_v39 }
0x966f   :  { %v2677_v33 = vpop.permute.xlu0 %2676 }
0x9670   :  { %2679 = vst.msk [vmem:[#allocation3 + $0x4] sm:$0x3] %vm232_vm4, %v2677_v33 }
0x9673   :  { %v2833_v36 = vpop.permute.xlu0 %2832 }
0x9674   :  { %v8480_v2 = vpop.eup %8479  ;;  %2835 = vst.msk [vmem:[#allocation3 + $0x8] sm:$0x3] %vm232_vm4, %v2833_v36 }
0x9675   :  { %4621 = vrot.lane.b32.xlu1 %v8480_v2, %s8580_s3 }
0x9677   :  { %v2989_v57 = vpop.permute.xlu0 %2988 }
0x9678   :  { %2991 = vst.msk [vmem:[#allocation3 + $0xc] sm:$0x3] %vm232_vm4, %v2989_v57 }
0x9679   :  { %2598 = vrot.lane.b32.xlu1 %v9295_v30, %s8581_s22  ;;  %v4641_v30 = vld [vmem:[%s11046_s7] sm:$0xff] }
0x967b   :  { %v3145_v23 = vpop.permute.xlu0 %3144 }
0x967c   :  { %3147 = vst.msk [vmem:[#allocation3 + $0x10] sm:$0x3] %vm232_vm4, %v3145_v23 }
0x967d   :  { %2754 = vrot.lane.b32.xlu1 %v9339_v54, %s8581_s22  ;;  %v4642_v54 = vld [vmem:[%s11046_s7 + $0x8] sm:$0xff] }
0x967f   :  { %v3301_v41 = vpop.permute.xlu0 %3300 }
0x9680   :  { %3303 = vst.msk [vmem:[#allocation3 + $0x14] sm:$0x3] %vm232_vm4, %v3301_v41 }
0x9681   :  { %2910 = vrot.lane.b32.xlu1 %v9369_v17, %s8581_s22  ;;  %v4645_v17 = vpack.c.bf16 %v4642_v54, %v4641_v30  ;;  %v8582_v30 = vmov 1983009808  }
0x9682   :  { %v4802_v54 = vunpack.c.l.s4 %v8582_v30 }
0x9683   :  { %v3457_v49 = vpop.permute.xlu0 %3456  ;;  %7783 = vmatprep.subr.bf16.mxu0 %v4645_v17 }
0x9684   :  { %3459 = vst.msk [vmem:[#allocation3 + $0x18] sm:$0x3] %vm232_vm4, %v3457_v49  ;;  %7784 = vmatpush3.bf16.msra.mxu0 %v4645_v17  ;;  %v4804_v17 = vlaneseq }
0x9685   :  { %3066 = vrot.lane.b32.xlu1 %v9399_v1, %s8581_s22  ;;  %v4643_v1 = vld [vmem:[%s11046_s7 + $0x10] sm:$0xff] }
0x9686   :  { %v4646_v42 = vpack.c.bf16 %v4644_v31, %v4643_v1  ;;  %v5436_v1 = vld [vmem:[%s11048_s9] sm:$0xff]  ;;  %v5437_v31 = vld [vmem:[%s11048_s9 + $0x8] sm:$0xff] }
0x9687   :  { %v3613_v43 = vpop.permute.xlu0 %3612 }
0x9688   :  { %3615 = vst.msk [vmem:[#allocation3 + $0x1c] sm:$0x3] %vm232_vm4, %v3613_v43  ;;  %7785 = vmatprep.subr.bf16.mxu0 %v4646_v42 }
0x9689   :  { %3222 = vrot.lane.b32.xlu1 %v9429_v45, %s8581_s22  ;;  %7786 = vmatpush3.bf16.msra.mxu0 %v4646_v42  ;;  %v5548_v42 = vpack.c.bf16 %v5437_v31, %v5436_v1 }
0x968a   :  { %7811 = vmatprep.subr.bf16.mxu0 %v8577_v7 }
0x968b   :  { %v3769_v50 = vpop.permute.xlu0 %3768  ;;  %7796 = vmatpush3.bf16.msra.mxu1 %v5548_v42 }
0x968c   :  { %3771 = vst.msk [vmem:[#allocation3 + $0x20] sm:$0x3] %vm232_vm4, %v3769_v50  ;;  %7797 = vmatprep.subr.bf16.mxu1 %v8577_v7 }
0x968d   :  { %3378 = vrot.lane.b32.xlu1 %v9459_v4, %s8581_s22 }
0x968f   :  { %v3925_v48 = vpop.permute.xlu0 %3924 }
0x9690   :  { %3927 = vst.msk [vmem:[#allocation3 + $0x24] sm:$0x3] %vm232_vm4, %v3925_v48  ;;  %v5444_v48 = vld [vmem:[%s11048_s9 + $0x40] sm:$0xff] }
0x9691   :  { %3534 = vrot.lane.b32.xlu1 %v9489_v27, %s8581_s22 }
0x9693   :  { %v4081_v45 = vpop.permute.xlu0 %4080 }
0x9694   :  { %4083 = vst.msk [vmem:[#allocation3 + $0x28] sm:$0x3] %vm232_vm4, %v4081_v45  ;;  %v5445_v45 = vld [vmem:[%s11048_s9 + $0x48] sm:$0xff] }
0x9695   :  { %3690 = vrot.lane.b32.xlu1 %v9519_v28, %s8581_s22 }
0x9697   :  { %v4237_v4 = vpop.permute.xlu0 %4236 }
0x9698   :  { %4239 = vst.msk [vmem:[#allocation3 + $0x2c] sm:$0x3] %vm232_vm4, %v4237_v4  ;;  %v5438_v4 = vld [vmem:[%s11048_s9 + $0x10] sm:$0xff] }
0x9699   :  { %3846 = vrot.lane.b32.xlu1 %v9549_v15, %s8581_s22 }
0x969b   :  { %v4393_v8 = vpop.permute.xlu0 %4392 }
0x969c   :  { %4395 = vst.msk [vmem:[#allocation3 + $0x30] sm:$0x3] %vm232_vm4, %v4393_v8  ;;  %v5439_v8 = vld [vmem:[%s11048_s9 + $0x18] sm:$0xff] }
0x969d   :  { %4002 = vrot.lane.b32.xlu1 %v9579_v44, %s8581_s22 }
0x969f   :  { %v4549_v27 = vpop.permute.xlu0 %4548 }
0x96a0   :  { %4551 = vst.msk [vmem:[#allocation3 + $0x34] sm:$0x3] %vm232_vm4, %v4549_v27  ;;  %v5552_v27 = vpack.c.bf16 %v5445_v45, %v5444_v48 }
0x96a1   :  { %4158 = vrot.lane.b32.xlu1 %v9609_v13, %s8581_s22 }
0x96a5   :  { %4314 = vrot.lane.b32.xlu1 %v9639_v22, %s8581_s22 }
0x96a9   :  { %4470 = vrot.lane.b32.xlu1 %v9668_v32, %s8581_s22 }
0x96e7   :  { %v4622_v28 = vpop.permute.xlu1 %4621 }
0x96e8   :  { %v4624_v15 = vmul.f32 %v9682_v20, %v4622_v28  ;;  %v5446_v28 = vld [vmem:[%s11048_s9 + $0x50] sm:$0xff] }
0x96ea   :  { %4626 = vrot.lane.b32.xlu1 %v4624_v15, %s8581_s22  ;;  %v5447_v15 = vld [vmem:[%s11048_s9 + $0x58] sm:$0xff] }
0x96eb   :  { %v2599_v58 = vpop.permute.xlu1 %2598 }
0x96ec   :  { %2601 = vst.msk [vmem:[#allocation3 + $0x2] sm:$0x3] %vm232_vm4, %v2599_v58  ;;  %v4803_v58 = vunpack.c.0.s8 %v4802_v54 }
0x96ef   :  { %v2755_v44 = vpop.permute.xlu1 %2754 }
0x96f0   :  { %2757 = vst.msk [vmem:[#allocation3 + $0x6] sm:$0x3] %vm232_vm4, %v2755_v44  ;;  %v4805_v44 = vshrl.u32 %v4804_v17, 7 }
0x96f3   :  { %v2911_v46 = vpop.permute.xlu1 %2910 }
0x96f4   :  { %2913 = vst.msk [vmem:[#allocation3 + $0xa] sm:$0x3] %vm232_vm4, %v2911_v46  ;;  %v5549_v46 = vpack.c.bf16 %v5439_v8, %v5438_v4 }
0x96f6   :  { %7798 = vmatpush3.bf16.msra.mxu1 %v5549_v46 }
0x96f7   :  { %v3067_v13 = vpop.permute.xlu1 %3066  ;;  %v9773_v37 = vld [vmem:[#allocation3] sm:$0xff]  ;;  %7803 = vmatprep.subr.bf16.mxu1 %v8577_v7 }
0x96f8   :  { %3069 = vst.msk [vmem:[#allocation3 + $0xe] sm:$0x3] %vm232_vm4, %v3067_v13  ;;  %v4737_v22 = vand.u32 2147483647, %v9773_v37 }
0x96fa   :  { %v4744_v32 = vsel %vm159_vm3, %v4737_v22, 0.0 }
0x96fb   :  { %4745 = vadd.xlane.f32.xlu0 %v4744_v32  ;;  %v3223_v53 = vpop.permute.xlu1 %3222  ;;  %v5553_v32 = vpack.c.bf16 %v5447_v15, %v5446_v28 }
0x96fc   :  { %3225 = vst.msk [vmem:[#allocation3 + $0x12] sm:$0x3] %vm232_vm4, %v3223_v53 }
0x96ff   :  { %v3379_v56 = vpop.permute.xlu1 %3378  ;;  %v9779_v62 = vld [vmem:[#allocation3 + $0x8] sm:$0xff] }
0x9700   :  { %3381 = vst.msk [vmem:[#allocation3 + $0x16] sm:$0x3] %vm232_vm4, %v3379_v56  ;;  %v4637_v38 = vpack.c.bf16 %v9779_v62, %v9773_v37  ;;  %v4738_v47 = vand.u32 2147483647, %v9779_v62 }
0x9702   :  { %7787 = vmatprep.mubr.msk.bf16.mxu0 %vm159_vm3, %v4637_v38  ;;  %v4747_v51 = vsel %vm159_vm3, %v4738_v47, 0.0 }
0x9703   :  { %v3535_v40 = vpop.permute.xlu1 %3534 }
0x9704   :  { %3537 = vst.msk [vmem:[#allocation3 + $0x1a] sm:$0x3] %vm232_vm4, %v3535_v40 }
0x9707   :  { %v3691_v11 = vpop.permute.xlu1 %3690  ;;  %v9786_v0 = vld [vmem:[#allocation3 + $0x10] sm:$0xff] }
0x9708   :  { %3693 = vst.msk [vmem:[#allocation3 + $0x1e] sm:$0x3] %vm232_vm4, %v3691_v11  ;;  %v4739_v34 = vand.u32 2147483647, %v9786_v0  ;;  %v9861_v11 = vsub.s32 %v4803_v58, %v4805_v44 }
0x970a   :  { %v4750_v9 = vsel %vm159_vm3, %v4739_v34, 0.0 }
0x970b   :  { %4751 = vadd.xlane.f32.xlu0 %v4750_v9  ;;  %v3847_v63 = vpop.permute.xlu1 %3846 }
0x970c   :  { %3849 = vst.msk [vmem:[#allocation3 + $0x22] sm:$0x3] %vm232_vm4, %v3847_v63 }
0x970e   :  { %4748 = vadd.xlane.f32.xlu1 %v4747_v51 }
0x970f   :  { %v9794_v55 = vld [vmem:[#allocation3 + $0x18] sm:$0xff]  ;;  %v4003_v59 = vpop.permute.xlu1 %4002 }
0x9710   :  { %v4638_v18 = vpack.c.bf16 %v9794_v55, %v9786_v0  ;;  %4005 = vst.msk [vmem:[#allocation3 + $0x26] sm:$0x3] %vm232_vm4, %v4003_v59  ;;  %v4740_v60 = vand.u32 2147483647, %v9794_v55 }
0x9712   :  { %7788 = vmatmul.mubr.msk.bf16.vlgmr.msra.gmra.mrb[120].mxu0 %vm159_vm3, %v4638_v18  ;;  %v4753_v61 = vsel %vm159_vm3, %v4740_v60, 0.0 }
0x9713   :  { %4754 = vadd.xlane.f32.xlu0 %v4753_v61  ;;  %v4159_v3 = vpop.permute.xlu1 %4158  ;;  %7812 = vmatpush3.bf16.msra.mxu0 %v5552_v27 }
0x9714   :  { %4161 = vst.msk [vmem:[#allocation3 + $0x2a] sm:$0x3] %vm232_vm4, %v4159_v3  ;;  %7813 = vmatprep.subr.bf16.mxu0 %v8577_v7 }
0x9717   :  { %v4315_v6 = vpop.permute.xlu1 %4314  ;;  %v9803_v35 = vld [vmem:[#allocation3 + $0x20] sm:$0xff]  ;;  %7814 = vmatpush3.bf16.msra.mxu0 %v5553_v32 }
0x9718   :  { %4317 = vst.msk [vmem:[#allocation3 + $0x2e] sm:$0x3] %vm232_vm4, %v4315_v6  ;;  %v4741_v5 = vand.u32 2147483647, %v9803_v35  ;;  %7827 = vmatprep.subr.bf16.mxu0 %v8577_v7 }
0x971a   :  { %v4756_v14 = vsel %vm159_vm3, %v4741_v5, 0.0 }
0x971b   :  { %4757 = vadd.xlane.f32.xlu1 %v4756_v14  ;;  %v4471_v10 = vpop.permute.xlu1 %4470 }
0x971c   :  { %4473 = vst.msk [vmem:[#allocation3 + $0x32] sm:$0x3] %vm232_vm4, %v4471_v10 }
0x971f   :  { %v9809_v26 = vld [vmem:[#allocation3 + $0x28] sm:$0xff] }
0x9720   :  { %v4639_v24 = vpack.c.bf16 %v9809_v26, %v9803_v35  ;;  %v4742_v12 = vand.u32 2147483647, %v9809_v26 }
0x9722   :  { %7791 = vmatprep.mubr.msk.bf16.mxu0 %vm159_vm3, %v4639_v24  ;;  %v4759_v25 = vsel %vm159_vm3, %v4742_v12, 0.0 }
0x9723   :  { %4760 = vadd.xlane.f32.xlu0 %v4759_v25 }
0x975c   :  { %v4627_v20 = vpop.permute.xlu1 %4626 }
0x975d   :  { %4629 = vst.msk [vmem:[#allocation3 + $0x36] sm:$0x3] %vm232_vm4, %v4627_v20 }
0x9764   :  { %v9817_v19 = vld [vmem:[#allocation3 + $0x30] sm:$0xff] }
0x9765   :  { %v4640_v21 = vpack.c.bf16 %v9817_v19, %v9817_v19  ;;  %v4743_v52 = vand.u32 2147483647, %v9817_v19 }
0x9767   :  { %7792 = vmatmul.mubr.msk.bf16.gmra.mrb[124].mxu0 %vm159_vm3, %v4640_v21  ;;  %v4762_v29 = vsel %vm159_vm3, %v4743_v52, 0.0 }
0x9768   :  { %4763 = vadd.xlane.f32.xlu1 %v4762_v29  ;;  %7815 = vmatprep.mubr.msk.bf16.mxu0 %vm8578_vm2, %v8577_v7 }
0x9788   :  { %v4746_v49 = vpop.xlane.xlu0 %4745 }
0x9789   :  { %vm4765_vm6 = vcmp.gt.f32.partialorder %v4746_v49, 0.0 }
0x9798   :  { %v4752_v50 = vpop.xlane.xlu0 %4751 }
0x9799   :  { %vm4767_vm5 = vcmp.gt.f32.partialorder %v4752_v50, 0.0 }
0x979b   :  { %v4749_v63 = vpop.xlane.xlu1 %4748 }
0x979c   :  { %vm4766_vm8 = vcmp.gt.f32.partialorder %v4749_v63, 0.0 }
0x97a0   :  { %v4755_v22 = vpop.xlane.xlu0 %4754 }
0x97a1   :  { %vm4768_vm7 = vcmp.gt.f32.partialorder %v4755_v22, 0.0 }
0x97e5   :  { %v7789_v39 = vpop.f32.mrb[120].mxu0 }
0x97e6   :  { %v4709_v33 = vadd.f32 %v7789_v39, %v9829_v16  ;;  %v4700_v36 = vpop.f32.mrb[121].mxu0 }
0x97e7   :  { %v4701_v2 = vadd.f32 %v9829_v16, %v4700_v36  ;;  %v7790_v57 = vpop.f32.mrb[122].mxu0 }
0x97e8   :  { %8481 = vtanh.f32 %v4709_v33  ;;  %v4712_v23 = vadd.f32 %v7790_v57, %v9829_v16  ;;  %v4703_v41 = vpop.f32.mrb[123].mxu0 }
0x97e9   :  { %8483 = vtanh.f32 %v4701_v2  ;;  %v4704_v43 = vadd.f32 %v9829_v16, %v4703_v41 }
0x97ea   :  { %8485 = vtanh.f32 %v4712_v23 }
0x97eb   :  { %8487 = vtanh.f32 %v4704_v43 }
0x97f2   :  { %v8482_v13 = vpop.eup %8481 }
0x97f3   :  { %v8484_v53 = vpop.eup %8483  ;;  %v4788_v56 = vsel %vm4767_vm5, %v8482_v13, -4.2949673e+09 }
0x97f4   :  { %v8486_v38 = vpop.eup %8485  ;;  %v4786_v40 = vsel %vm4765_vm6, %v8484_v53, -4.2949673e+09  ;;  %v4834_v34 = vcombine.high %v4788_v56, %v4788_v56  ;;  %v9865_v51 = vrot.slane %v4788_v56, %v9861_v11 }
0x97f5   :  { %v4800_v47 = vcombine.high %v4786_v40, %v4786_v40  ;;  %v4789_v9 = vsel %vm4768_vm7, %v8486_v38, -4.2949673e+09  ;;  %v9868_v59 = vrot.slane %v4786_v40, %v9861_v11  ;;  %v8488_v18 = vpop.eup %8487 }
0x97f6   :  { %v9872_v60 = vrot.slane %v4834_v34, %v9861_v11  ;;  %v4851_v61 = vcombine.high %v4789_v9, %v4789_v9  ;;  %v9879_v6 = vcombine.high %v9865_v51, %v9865_v51  ;;  %v4787_v14 = vsel %vm4766_vm8, %v8488_v18, -4.2949673e+09 }
0x97f7   :  { %v9875_v3 = vrot.slane %v4800_v47, %v9861_v11  ;;  %v9883_v5 = vcombine.high %v9868_v59, %v9868_v59  ;;  %v9886_v10 = vrot.slane %v4789_v9, %v9861_v11  ;;  %v4817_v24 = vcombine.high %v4787_v14, %v4787_v14 }
0x97f8   :  { %v9889_v12 = vrot.slane %v4787_v14, %v9861_v11  ;;  %v9893_v25 = vcombine.high %v9872_v60, %v9872_v60  ;;  %v5113_v20 = vsel %vm232_vm4, %v9865_v51, -inf  ;;  %v5101_v21 = vsel %vm232_vm4, %v9868_v59, -inf }
0x97f9   :  { %v9900_v52 = vrot.slane %v4851_v61, %v9861_v11  ;;  %v9904_v29 = vcombine.high %v9875_v3, %v9875_v3  ;;  %v9907_v39 = vrot.slane %v4817_v24, %v9861_v11  ;;  %v5115_v2 = vsel %vm232_vm4, %v9879_v6, -inf  ;;  %v4758_v61 = vpop.xlane.xlu1 %4757 }
0x97fa   :  { %v9911_v33 = vcombine.high %v9889_v12, %v9889_v12  ;;  %v5105_v36 = vsel %vm232_vm4, %v9889_v12, -inf  ;;  %v5102_v57 = vsel %vm232_vm4, %v9883_v5, -inf  ;;  %v5103_v23 = vsel %vm232_vm4, %v9875_v3, -inf }
0x97fb   :  { %v5106_v41 = vmax.f32 %v5101_v21, %v5105_v36  ;;  %v9923_v49 = vcombine.high %v9886_v10, %v9886_v10  ;;  %v9927_v43 = vcombine.high %v9907_v39, %v9907_v39  ;;  %v5109_v54 = vsel %vm232_vm4, %v9907_v39, -inf }
0x97fc   :  { %v5107_v30 = vsel %vm232_vm4, %v9911_v33, -inf  ;;  %v5117_v17 = vsel %vm232_vm4, %v9872_v60, -inf  ;;  %v5110_v1 = vmax.f32 %v5103_v23, %v5109_v54  ;;  %v5104_v48 = vsel %vm232_vm4, %v9904_v29, -inf }
0x97fd   :  { %v5108_v50 = vmax.f32 %v5102_v57, %v5107_v30  ;;  %v5114_v31 = vmax.f32 %v5106_v41, %v5113_v20  ;;  %v9939_v42 = vcombine.high %v9900_v52, %v9900_v52  ;;  %v5121_v45 = vsel %vm232_vm4, %v9886_v10, -inf  ;;  %v4764_v14 = vpop.xlane.xlu1 %4763  ;;  %v4761_v20 = vpop.xlane.xlu0 %4760 }
0x97fe   :  { %v5111_v4 = vsel %vm232_vm4, %v9927_v43, -inf  ;;  %v5118_v28 = vmax.f32 %v5110_v1, %v5117_v17  ;;  %v5119_v58 = vsel %vm232_vm4, %v9893_v25, -inf  ;;  %v5123_v44 = vsel %vm232_vm4, %v9923_v49, -inf }
0x97ff   :  { %v5112_v8 = vmax.f32 %v5104_v48, %v5111_v4  ;;  %v5116_v27 = vmax.f32 %v5108_v50, %v5115_v2  ;;  %v5122_v15 = vmax.f32 %v5114_v31, %v5121_v45  ;;  %v5125_v46 = vsel %vm232_vm4, %v9900_v52, -inf }
0x9800   :  { %v5126_v32 = vmax.f32 %v5118_v28, %v5125_v46  ;;  %v5127_v53 = vsel %vm232_vm4, %v9939_v42, -inf  ;;  %vm4771_vm9 = vcmp.gt.f32.partialorder %v4764_v14, 0.0  ;;  %vm4769_vm10 = vcmp.gt.f32.partialorder %v4758_v61, 0.0 }
0x9801   :  { %v5120_v13 = vmax.f32 %v5112_v8, %v5119_v58  ;;  %v5124_v22 = vmax.f32 %v5116_v27, %v5123_v44  ;;  %vm4770_vm11 = vcmp.gt.f32.partialorder %v4761_v20, 0.0 }
0x9803   :  { %v5128_v56 = vmax.f32 %v5120_v13, %v5127_v53 }
0x983a   :  { %v7793_v38 = vpop.f32.mrb[124].mxu0 }
0x983b   :  { %v4725_v40 = vadd.f32 %v7793_v38, %v9829_v16  ;;  %v4716_v34 = vpop.f32.mrb[125].mxu0 }
0x983c   :  { %v4717_v47 = vadd.f32 %v9829_v16, %v4716_v34  ;;  %v7794_v9 = vpop.f32.mrb[126].mxu0 }
0x983d   :  { %8489 = vtanh.f32 %v4725_v40  ;;  %v4719_v63 = vpop.f32.mrb[127].mxu0 }
0x983e   :  { %8491 = vtanh.f32 %v4717_v47  ;;  %v4720_v18 = vadd.f32 %v9829_v16, %v4719_v63 }
0x9840   :  { %8493 = vtanh.f32 %v4720_v18 }
0x9847   :  { %v8490_v24 = vpop.eup %8489 }
0x9848   :  { %v8492_v21 = vpop.eup %8491  ;;  %v4792_v36 = vsel %vm4771_vm9, %v8490_v24, -4.2949673e+09 }
0x9849   :  { %v4902_v2 = vcombine.high %v4792_v36, %v4792_v36  ;;  %v4790_v57 = vsel %vm4769_vm10, %v8492_v21, -4.2949673e+09  ;;  %v9960_v54 = vrot.slane %v4792_v36, %v9861_v11 }
0x984a   :  { %v8494_v23 = vpop.eup %8493  ;;  %v4868_v41 = vcombine.high %v4790_v57, %v4790_v57  ;;  %v9957_v30 = vrot.slane %v4790_v57, %v9861_v11 }
0x984b   :  { %v9963_v16 = vrot.slane %v4902_v2, %v9861_v11  ;;  %v4791_v17 = vsel %vm4770_vm11, %v8494_v23, -4.2949673e+09  ;;  %v9987_v58 = vcombine.high %v9960_v54, %v9960_v54  ;;  %v5145_v9 = vsel %vm232_vm4, %v9960_v54, -inf }
0x984c   :  { %v9966_v50 = vrot.slane %v4868_v41, %v9861_v11  ;;  %v9970_v1 = vcombine.high %v9957_v30, %v9957_v30  ;;  %v5129_v31 = vsel %vm232_vm4, %v9957_v30, -inf  ;;  %v4885_v48 = vcombine.high %v4791_v17, %v4791_v17 }
0x984d   :  { %v5130_v45 = vmax.f32 %v5122_v15, %v5129_v31  ;;  %v9983_v28 = vrot.slane %v4791_v17, %v9861_v11  ;;  %v9994_v13 = vcombine.high %v9963_v16, %v9963_v16  ;;  %v5149_v61 = vsel %vm232_vm4, %v9963_v16, -inf }
0x984e   :  { %v9976_v4 = vcombine.high %v9966_v50, %v9966_v50  ;;  %v5131_v8 = vsel %vm232_vm4, %v9970_v1, -inf  ;;  %v5133_v27 = vsel %vm232_vm4, %v9966_v50, -inf  ;;  %v9990_v15 = vrot.slane %v4885_v48, %v9861_v11 }
0x984f   :  { %v5132_v44 = vmax.f32 %v5124_v22, %v5131_v8  ;;  %v5134_v46 = vmax.f32 %v5126_v32, %v5133_v27  ;;  %v10000_v38 = vcombine.high %v9983_v28, %v9983_v28  ;;  %v5137_v40 = vsel %vm232_vm4, %v9983_v28, -inf }
0x9850   :  { %v5135_v53 = vsel %vm232_vm4, %v9976_v4, -inf  ;;  %v10006_v22 = vcombine.high %v9990_v15, %v9990_v15  ;;  %v5138_v32 = vmax.f32 %v5130_v45, %v5137_v40  ;;  %v5141_v47 = vsel %vm232_vm4, %v9990_v15, -inf }
0x9851   :  { %v5136_v34 = vmax.f32 %v5128_v56, %v5135_v53  ;;  %v5139_v63 = vsel %vm232_vm4, %v10000_v38, -inf  ;;  %v5142_v18 = vmax.f32 %v5134_v46, %v5141_v47  ;;  %v5147_v20 = vsel %vm232_vm4, %v9987_v58, -inf }
0x9852   :  { %v5140_v14 = vmax.f32 %v5132_v44, %v5139_v63  ;;  %v5143_v56 = vsel %vm232_vm4, %v10006_v22, -inf  ;;  %v5146_v24 = vmax.f32 %v5138_v32, %v5145_v9  ;;  %v5151_v2 = vsel %vm232_vm4, %v9994_v13, -inf }
0x9853   :  { %v5144_v21 = vmax.f32 %v5136_v34, %v5143_v56  ;;  %v5150_v36 = vmax.f32 %v5142_v18, %v5149_v61 }
0x9854   :  { %v5148_v57 = vmax.f32 %v5140_v14, %v5147_v20 }
0x9855   :  { %v5152_v23 = vmax.f32 %v5144_v21, %v5151_v2 }
0x9856   :  { %v5153_v41 = vmax.f32 %v5146_v24, %v5148_v57 }
0x9857   :  { %v5154_v17 = vmax.f32 %v5150_v36, %v5152_v23 }
0x9859   :  { %v10022_v31 = vmax.f32 %v5153_v41, %v5154_v17 }
0x985b   :  { %v5176_v48 = vsub.f32 %v9983_v28, %v10022_v31  ;;  %v5177_v45 = vsub.f32 %v10000_v38, %v10022_v31  ;;  %v5178_v8 = vsub.f32 %v9990_v15, %v10022_v31  ;;  %v5179_v27 = vsub.f32 %v10006_v22, %v10022_v31 }
0x985c   :  { %v5156_v44 = vsub.f32 %v9868_v59, %v10022_v31  ;;  %v5157_v46 = vsub.f32 %v9883_v5, %v10022_v31  ;;  %v5158_v53 = vsub.f32 %v9875_v3, %v10022_v31  ;;  %v5159_v40 = vsub.f32 %v9904_v29, %v10022_v31 }
0x985d   :  { %v5160_v34 = vsub.f32 %v9889_v12, %v10022_v31  ;;  %v5161_v32 = vsub.f32 %v9911_v33, %v10022_v31  ;;  %v5162_v47 = vsub.f32 %v9907_v39, %v10022_v31  ;;  %v5163_v59 = vsub.f32 %v9927_v43, %v10022_v31 }
0x985e   :  { %v5164_v5 = vsub.f32 %v9865_v51, %v10022_v31  ;;  %v5165_v3 = vsub.f32 %v9879_v6, %v10022_v31  ;;  %v5166_v29 = vsub.f32 %v9872_v60, %v10022_v31  ;;  %v5167_v12 = vsub.f32 %v9893_v25, %v10022_v31 }
0x985f   :  { %v5168_v33 = vsub.f32 %v9886_v10, %v10022_v31  ;;  %v5169_v39 = vsub.f32 %v9923_v49, %v10022_v31  ;;  %v5170_v43 = vsub.f32 %v9900_v52, %v10022_v31  ;;  %v5171_v51 = vsub.f32 %v9939_v42, %v10022_v31 }
0x9860   :  { %v5172_v6 = vsub.f32 %v9957_v30, %v10022_v31  ;;  %v5173_v60 = vsub.f32 %v9970_v1, %v10022_v31  ;;  %v5174_v25 = vsub.f32 %v9966_v50, %v10022_v31  ;;  %v5175_v10 = vsub.f32 %v9976_v4, %v10022_v31 }
0x9861   :  { %v5180_v49 = vsub.f32 %v9960_v54, %v10022_v31  ;;  %v5181_v52 = vsub.f32 %v9987_v58, %v10022_v31  ;;  %v5182_v42 = vsub.f32 %v9963_v16, %v10022_v31  ;;  %v5183_v30 = vsub.f32 %v9994_v13, %v10022_v31 }
0x9862   :  { %v5184_v9 = vmul.f32 1.442695, %v5156_v44  ;;  %v5186_v63 = vmul.f32 1.442695, %v5157_v46  ;;  %v5188_v18 = vmul.f32 1.442695, %v5158_v53 }
0x9863   :  { %v5190_v61 = vmul.f32 1.442695, %v5159_v40  ;;  %v5192_v14 = vmul.f32 1.442695, %v5160_v34  ;;  %v5194_v56 = vmul.f32 1.442695, %v5161_v32 }
0x9864   :  { %8495 = vpow2.f32 %v5184_v9  ;;  %v5196_v24 = vmul.f32 1.442695, %v5162_v47  ;;  %v5198_v20 = vmul.f32 1.442695, %v5163_v59  ;;  %v5200_v21 = vmul.f32 1.442695, %v5164_v5 }
0x9865   :  { %8497 = vpow2.f32 %v5186_v63  ;;  %v5202_v57 = vmul.f32 1.442695, %v5165_v3  ;;  %v5204_v46 = vmul.f32 1.442695, %v5166_v29  ;;  %v5206_v32 = vmul.f32 1.442695, %v5167_v12 }
0x9866   :  { %8499 = vpow2.f32 %v5188_v18  ;;  %v5208_v3 = vmul.f32 1.442695, %v5168_v33  ;;  %v5210_v18 = vmul.f32 1.442695, %v5169_v39  ;;  %v5222_v1 = vmul.f32 1.442695, %v5175_v10 }
0x9867   :  { %8501 = vpow2.f32 %v5190_v61  ;;  %v5224_v50 = vmul.f32 1.442695, %v5176_v48  ;;  %v5226_v4 = vmul.f32 1.442695, %v5177_v45  ;;  %v5228_v28 = vmul.f32 1.442695, %v5178_v8 }
0x9868   :  { %8503 = vpow2.f32 %v5192_v14  ;;  %v5230_v38 = vmul.f32 1.442695, %v5179_v27  ;;  %v5232_v15 = vmul.f32 1.442695, %v5180_v49  ;;  %v5234_v22 = vmul.f32 1.442695, %v5181_v52 }
0x9869   :  { %8505 = vpow2.f32 %v5194_v56  ;;  %v5212_v56 = vmul.f32 1.442695, %v5170_v43  ;;  %v5236_v54 = vmul.f32 1.442695, %v5182_v42  ;;  %v5238_v58 = vmul.f32 1.442695, %v5183_v30 }
0x986a   :  { %8507 = vpow2.f32 %v5196_v24 }
0x986b   :  { %8509 = vpow2.f32 %v5198_v20 }
0x986c   :  { %8511 = vpow2.f32 %v5200_v21  ;;  %v5214_v21 = vmul.f32 1.442695, %v5171_v51 }
0x986d   :  { %8513 = vpow2.f32 %v5202_v57 }
0x986e   :  { %v10080_v36 = vpop.eup %8495  ;;  %8515 = vpow2.f32 %v5204_v46 }
0x986f   :  { %v10082_v2 = vpop.eup %8497  ;;  %v5240_v23 = vsel %vm232_vm4, %v10080_v36, 0.0  ;;  %8517 = vpow2.f32 %v5206_v32 }
0x9870   :  { %v10086_v41 = vpop.eup %8499  ;;  %v5241_v17 = vsel %vm232_vm4, %v10082_v2, 0.0  ;;  %8519 = vpow2.f32 %v5208_v3 }
0x9871   :  { %v10090_v44 = vpop.eup %8501  ;;  %v5242_v53 = vadd.f32 %v5241_v17, %v5240_v23  ;;  %v5243_v40 = vsel %vm232_vm4, %v10086_v41, 0.0  ;;  %8521 = vpow2.f32 %v5210_v18  ;;  %v5216_v17 = vmul.f32 1.442695, %v5172_v6 }
0x9872   :  { %v10094_v34 = vpop.eup %8503  ;;  %v5245_v59 = vsel %vm232_vm4, %v10090_v44, 0.0  ;;  %8523 = vpow2.f32 %v5212_v56  ;;  %v5220_v6 = vmul.f32 1.442695, %v5174_v25 }
0x9873   :  { %v5244_v47 = vadd.f32 %v5243_v40, %v5242_v53  ;;  %v10098_v5 = vpop.eup %8505  ;;  %v5247_v29 = vsel %vm232_vm4, %v10094_v34, 0.0  ;;  %8525 = vpow2.f32 %v5214_v21  ;;  %v5218_v40 = vmul.f32 1.442695, %v5173_v60 }
0x9874   :  { %v10102_v63 = vpop.eup %8507  ;;  %v5249_v12 = vsel %vm232_vm4, %v10098_v5, 0.0  ;;  %8527 = vpow2.f32 %v5216_v17 }
0x9875   :  { %v5246_v9 = vadd.f32 %v5245_v59, %v5244_v47  ;;  %v10106_v14 = vpop.eup %8509  ;;  %v5251_v33 = vsel %vm232_vm4, %v10102_v63, 0.0  ;;  %8529 = vpow2.f32 %v5218_v40 }
0x9876   :  { %v10110_v20 = vpop.eup %8511  ;;  %v5253_v39 = vsel %vm232_vm4, %v10106_v14, 0.0  ;;  %8531 = vpow2.f32 %v5220_v6 }
0x9877   :  { %v5248_v61 = vadd.f32 %v5247_v29, %v5246_v9  ;;  %v10114_v23 = vpop.eup %8513  ;;  %v5255_v43 = vsel %vm232_vm4, %v10110_v20, 0.0  ;;  %8533 = vpow2.f32 %v5222_v1 }
0x9878   :  { %v10118_v53 = vpop.eup %8515  ;;  %v5257_v32 = vsel %vm232_vm4, %v10114_v23, 0.0  ;;  %8535 = vpow2.f32 %v5224_v50 }
0x9879   :  { %v5250_v24 = vadd.f32 %v5249_v12, %v5248_v61  ;;  %v10125_v47 = vpop.eup %8517  ;;  %v5259_v3 = vsel %vm232_vm4, %v10118_v53, 0.0  ;;  %8537 = vpow2.f32 %v5226_v4 }
0x987a   :  { %v10132_v9 = vpop.eup %8519  ;;  %v5261_v29 = vsel %vm232_vm4, %v10125_v47, 0.0  ;;  %8539 = vpow2.f32 %v5228_v28 }
0x987b   :  { %v5252_v57 = vadd.f32 %v5251_v33, %v5250_v24  ;;  %v10139_v18 = vpop.eup %8521  ;;  %v5263_v61 = vsel %vm232_vm4, %v10132_v9, 0.0  ;;  %8541 = vpow2.f32 %v5230_v38 }
0x987c   :  { %v10146_v12 = vpop.eup %8523  ;;  %v5265_v56 = vsel %vm232_vm4, %v10139_v18, 0.0  ;;  %8543 = vpow2.f32 %v5232_v15 }
0x987d   :  { %v5254_v46 = vadd.f32 %v5253_v39, %v5252_v57  ;;  %v10153_v24 = vpop.eup %8525  ;;  %v5267_v33 = vsel %vm232_vm4, %v10146_v12, 0.0  ;;  %8545 = vpow2.f32 %v5234_v22  ;;  %v4971_v22 = vcombine.high %v9779_v62, %v9779_v62 }
0x987e   :  { %v10160_v21 = vpop.eup %8527  ;;  %v5269_v57 = vsel %vm232_vm4, %v10153_v24, 0.0  ;;  %8547 = vpow2.f32 %v5236_v54  ;;  %v5022_v54 = vcombine.high %v9803_v35, %v9803_v35 }
0x987f   :  { %v5256_v51 = vadd.f32 %v5255_v43, %v5254_v46  ;;  %v10167_v39 = vpop.eup %8529  ;;  %v5271_v17 = vsel %vm232_vm4, %v10160_v21, 0.0  ;;  %8549 = vpow2.f32 %v5238_v58 }
0x9880   :  { %v10174_v46 = vpop.eup %8531  ;;  %v5273_v43 = vsel %vm232_vm4, %v10167_v39, 0.0 }
0x9881   :  { %v5258_v59 = vadd.f32 %v5257_v32, %v5256_v51  ;;  %v10181_v40 = vpop.eup %8533  ;;  %v5275_v51 = vsel %vm232_vm4, %v10174_v46, 0.0 }
0x9882   :  { %v10188_v32 = vpop.eup %8535  ;;  %v5277_v6 = vsel %vm232_vm4, %v10181_v40, 0.0 }
0x9883   :  { %v5260_v60 = vadd.f32 %v5259_v3, %v5258_v59  ;;  %v10195_v59 = vpop.eup %8537  ;;  %v5279_v42 = vsel %vm232_vm4, %v10188_v32, 0.0 }
0x9884   :  { %v10199_v3 = vpop.eup %8539 }
0x9885   :  { %v5262_v25 = vadd.f32 %v5261_v29, %v5260_v60  ;;  %v5281_v60 = vsel %vm232_vm4, %v10195_v59, 0.0  ;;  %v10203_v13 = vpop.eup %8541  ;;  %v5283_v30 = vsel %vm232_vm4, %v10199_v3, 0.0 }
0x9886   :  { %v10207_v29 = vpop.eup %8543 }
0x9887   :  { %v5264_v10 = vadd.f32 %v5263_v61, %v5262_v25  ;;  %v5285_v25 = vsel %vm232_vm4, %v10203_v13, 0.0  ;;  %v10211_v61 = vpop.eup %8545 }
0x9889   :  { %v5266_v48 = vadd.f32 %v5265_v56, %v5264_v10  ;;  %v5287_v10 = vsel %vm232_vm4, %v10207_v29, 0.0  ;;  %v10215_v56 = vpop.eup %8547 }
0x988b   :  { %v5268_v45 = vadd.f32 %v5267_v33, %v5266_v48  ;;  %v5289_v48 = vsel %vm232_vm4, %v10211_v61, 0.0  ;;  %v10219_v33 = vpop.eup %8549 }
0x988c   :  { %v5293_v15 = vsel %vm232_vm4, %v10219_v33, 0.0 }
0x988d   :  { %v5270_v8 = vadd.f32 %v5269_v57, %v5268_v45  ;;  %v5291_v45 = vsel %vm232_vm4, %v10215_v56, 0.0 }
0x988f   :  { %v5272_v27 = vadd.f32 %v5271_v17, %v5270_v8  ;;  %v4954_v17 = vcombine.high %v9773_v37, %v9773_v37 }
0x9891   :  { %v5274_v49 = vadd.f32 %v5273_v43, %v5272_v27  ;;  %v4988_v27 = vcombine.high %v9786_v0, %v9786_v0  ;;  %v5005_v43 = vcombine.high %v9794_v55, %v9794_v55  ;;  %v10240_v58 = vrot.slane %v4954_v17, %v9861_v11 }
0x9893   :  { %v5276_v52 = vadd.f32 %v5275_v51, %v5274_v49  ;;  %v5039_v49 = vcombine.high %v9809_v26, %v9809_v26  ;;  %v4961_v51 = vrot.slane %v9773_v37, %v9861_v11  ;;  %v10258_v37 = vrot.slane %v9794_v55, %v9861_v11  ;;  %v10280_v55 = vld [vmem:[%s11048_s9 + $0x20] sm:$0xff] }
0x9895   :  { %v5278_v16 = vadd.f32 %v5277_v6, %v5276_v52  ;;  %v10244_v52 = vrot.slane %v9779_v62, %v9861_v11  ;;  %v10247_v6 = vrot.slane %v4971_v22, %v9861_v11  ;;  %v10265_v62 = vrot.slane %v9803_v35, %v9861_v11  ;;  %v10285_v35 = vld [vmem:[%s11048_s9 + $0x28] sm:$0xff] }
0x9897   :  { %v5280_v1 = vadd.f32 %v5279_v42, %v5278_v16  ;;  %v10251_v16 = vrot.slane %v9786_v0, %v9861_v11  ;;  %v10254_v42 = vrot.slane %v4988_v27, %v9861_v11  ;;  %v10272_v0 = vrot.slane %v9809_v26, %v9861_v11  ;;  %v10295_v26 = vld [vmem:[%s11048_s9 + $0x88] sm:$0xff] }
0x9898   :  { %v5056_v27 = vcombine.high %v9817_v19, %v9817_v19 }
0x9899   :  { %v5282_v31 = vadd.f32 %v5281_v60, %v5280_v1  ;;  %v10261_v1 = vrot.slane %v5005_v43, %v9861_v11  ;;  %v10268_v60 = vrot.slane %v5022_v54, %v9861_v11  ;;  %v5550_v43 = vpack.c.bf16 %v10285_v35, %v10280_v55 }
0x989b   :  { %v5284_v50 = vadd.f32 %v5283_v30, %v5282_v31  ;;  %v10275_v31 = vrot.slane %v5039_v49, %v9861_v11  ;;  %v4969_v30 = vcombine.high %v4961_v51, %v4961_v51  ;;  %v10329_v49 = vrot.slane %v9817_v19, %v9861_v11 }
0x989d   :  { %v5286_v4 = vadd.f32 %v5285_v25, %v5284_v50  ;;  %v10290_v50 = vld [vmem:[%s11048_s9 + $0x80] sm:$0xff]  ;;  %v4970_v25 = vcombine.high %v10240_v58, %v10240_v58 }
0x989e   :  { %v5556_v54 = vpack.c.bf16 %v10295_v26, %v10290_v50 }
0x989f   :  { %v5288_v28 = vadd.f32 %v5287_v10, %v5286_v4  ;;  %v4986_v4 = vcombine.high %v10244_v52, %v10244_v52  ;;  %v4987_v10 = vcombine.high %v10247_v6, %v10247_v6 }
0x98a1   :  { %v5290_v38 = vadd.f32 %v5289_v48, %v5288_v28  ;;  %v5003_v28 = vcombine.high %v10251_v16, %v10251_v16  ;;  %v5004_v48 = vcombine.high %v10254_v42, %v10254_v42 }
0x98a3   :  { %v5292_v57 = vadd.f32 %v5291_v45, %v5290_v38  ;;  %v5020_v38 = vcombine.high %v10258_v37, %v10258_v37 }
0x98a5   :  { %v5294_v8 = vadd.f32 %v5293_v15, %v5292_v57 }
0x98a7   :  { %8551 = vrcp.f32 %v5294_v8 }
0x98b1   :  { %v10319_v22 = vpop.eup %8551 }
0x98b2   :  { %v5296_v8 = vmul.f32 %v10319_v22, %v10080_v36  ;;  %v5298_v17 = vmul.f32 %v10319_v22, %v10086_v41  ;;  %v5297_v15 = vmul.f32 %v10319_v22, %v10082_v2  ;;  %v5300_v57 = vmul.f32 %v10319_v22, %v10094_v34 }
0x98b3   :  { %v5299_v55 = vmul.f32 %v10319_v22, %v10090_v44  ;;  %v5302_v35 = vmul.f32 %v10319_v22, %v10102_v63  ;;  %v5301_v19 = vmul.f32 %v10319_v22, %v10098_v5  ;;  %v5304_v36 = vmul.f32 %v10319_v22, %v10110_v20  ;;  %v5442_v5 = vld [vmem:[%s11048_s9 + $0x30] sm:$0xff]  ;;  %v5443_v63 = vld [vmem:[%s11048_s9 + $0x38] sm:$0xff] }
0x98b4   :  { %vm5324_vm12 = vcmp.gt.f32.partialorder %v5296_v8, 0.03  ;;  %vm5326_vm13 = vcmp.gt.f32.partialorder %v5298_v17, 0.03  ;;  %vm5325_vm14 = vcmp.gt.f32.partialorder %v5297_v15, 0.03  ;;  %v5303_v2 = vmul.f32 %v10319_v22, %v10106_v14 }
0x98b5   :  { %v5352_v41 = vsel %vm5324_vm12, %v5296_v8, 0.0  ;;  %v5354_v34 = vsel %vm5326_vm13, %v5298_v17, 0.0  ;;  %v5353_v50 = vsel %vm5325_vm14, %v5297_v15, 0.0  ;;  %vm5328_vm15 = vcmp.gt.f32.partialorder %v5300_v57, 0.03  ;;  %v5455_v8 = vld [vmem:[%s11048_s9 + $0x98] sm:$0xff] }
0x98b6   :  { %v5380_v44 = vmul.f32 %v5352_v41, %v4961_v51  ;;  %v5382_v26 = vmul.f32 %v5354_v34, %v10240_v58  ;;  %v10356_v20 = vmul.f32 %v5353_v50, %v4969_v30  ;;  %v5356_v45 = vsel %vm5328_vm15, %v5300_v57, 0.0  ;;  %v5454_v58 = vld [vmem:[%s11048_s9 + $0x90] sm:$0xff]  ;;  %v10370_v30 = vld [vmem:[%s11048_s9 + $0x60] sm:$0xff]  ;;  %v10378_v17 = vld [vmem:[%s11048_s9 + $0x68] sm:$0xff] }
0x98b7   :  { %v10359_v14 = vmul.f32 %v5356_v45, %v10244_v52  ;;  %vm5327_vm0 = vcmp.gt.f32.partialorder %v5299_v55, 0.03  ;;  %vm5330_vm1 = vcmp.gt.f32.partialorder %v5302_v35, 0.03  ;;  %vm5329_vm4 = vcmp.gt.f32.partialorder %v5301_v19, 0.03 }
0x98b8   :  { %v5408_v51 = vpack.c.bf16 %v5380_v44, %v5380_v44  ;;  %v5410_v15 = vpack.c.bf16 %v5382_v26, %v5382_v26  ;;  %v5355_v52 = vsel %vm5327_vm0, %v5299_v55, 0.0  ;;  %v10373_v45 = vrot.slane %v5056_v27, %v9861_v11  ;;  %v10383_v41 = vld [vmem:[%s11048_s9 + $0xc0] sm:$0xff]  ;;  %v10388_v34 = vld [vmem:[%s11048_s9 + $0xc8] sm:$0xff] }
0x98b9   :  { %v5551_v57 = vpack.c.bf16 %v5443_v63, %v5442_v5  ;;  %v10390_v55 = vmul.f32 %v5355_v52, %v4970_v25  ;;  %v5358_v11 = vsel %vm5330_vm1, %v5302_v35, 0.0  ;;  %v5357_v27 = vsel %vm5329_vm4, %v5301_v19, 0.0  ;;  %v10461_v52 = vld [vmem:[%s11048_s9 + $0x100] sm:$0xff] }
0x98ba   :  { %7800 = vmatmul.mubr.msk.bf16.vlgmr.msra.gmra.mrb[120].mxu1 %vm159_vm3, %v5408_v51  ;;  %7816 = vmatmul.mubr.msk.bf16.vlgmr.msra.gmra.mrb[128].mxu0 %vm159_vm3, %v5410_v15  ;;  %v10395_v50 = vmul.f32 %v5358_v11, %v10247_v6  ;;  %v10397_v44 = vmul.f32 %v5357_v27, %v4986_v4  ;;  %vm5332_vm5 = vcmp.gt.f32.partialorder %v5304_v36, 0.03  ;;  %vm5331_vm6 = vcmp.gt.f32.partialorder %v5303_v2, 0.03  ;;  %v5451_v51 = vld [vmem:[%s11048_s9 + $0x78] sm:$0xff]  ;;  %v5462_v6 = vld [vmem:[%s11048_s9 + $0xd0] sm:$0xff] }
0x98bb   :  { %7804 = vmatpush3.bf16.msra.mxu1 %v5550_v43  ;;  %7828 = vmatpush3.bf16.msra.mxu0 %v5556_v54  ;;  %v5557_v26 = vpack.c.bf16 %v5455_v8, %v5454_v58  ;;  %v5360_v5 = vsel %vm5332_vm5, %v5304_v36, 0.0  ;;  %v5359_v63 = vsel %vm5331_vm6, %v5303_v2, 0.0  ;;  %v5306_v25 = vmul.f32 %v10319_v22, %v10118_v53  ;;  %v5450_v53 = vld [vmem:[%s11048_s9 + $0x70] sm:$0xff]  ;;  %v10446_v58 = vld [vmem:[%s11048_s9 + $0xa0] sm:$0xff]  ;;  %v10451_v8 = vld [vmem:[%s11048_s9 + $0xa8] sm:$0xff] }
0x98bc   :  { %7805 = vmatprep.subr.bf16.mxu1 %v8577_v7  ;;  %7829 = vmatprep.subr.bf16.mxu0 %v8577_v7  ;;  %v5554_v35 = vpack.c.bf16 %v10378_v17, %v10370_v30  ;;  %v5560_v4 = vpack.c.bf16 %v10388_v34, %v10383_v41  ;;  %v10408_v19 = vmul.f32 %v5360_v5, %v10251_v16  ;;  %v10479_v11 = vld [vmem:[%s11048_s9 + $0xb0] sm:$0xff]  ;;  %v10484_v27 = vld [vmem:[%s11048_s9 + $0xb8] sm:$0xff] }
0x98bd   :  { %7807 = vmatprep.mubr.msk.bf16.mxu1 %vm8578_vm2, %v8577_v7  ;;  %7831 = vmatprep.mubr.msk.bf16.mxu0 %vm8578_vm2, %v8577_v7  ;;  %v10420_v43 = vmul.f32 %v5359_v63, %v4987_v10  ;;  %vm5334_vm7 = vcmp.gt.f32.partialorder %v5306_v25, 0.03  ;;  %v5305_v54 = vmul.f32 %v10319_v22, %v10114_v23  ;;  %v5308_v36 = vmul.f32 %v10319_v22, %v10132_v9  ;;  %v5463_v10 = vld [vmem:[%s11048_s9 + $0xd8] sm:$0xff] }
0x98be   :  { %v5409_v2 = vpack.c.bf16 %v10356_v20, %v10356_v20  ;;  %v5362_v15 = vsel %vm5334_vm7, %v5306_v25, 0.0  ;;  %v5307_v23 = vmul.f32 %v10319_v22, %v10125_v47  ;;  %v5310_v9 = vmul.f32 %v10319_v22, %v10146_v12 }
0x98bf   :  { %7806 = vmatpush3.bf16.msra.mxu1 %v5551_v57  ;;  %7830 = vmatpush3.bf16.msra.mxu0 %v5557_v26  ;;  %v5412_v20 = vpack.c.bf16 %v10359_v14, %v10359_v14  ;;  %v10454_v47 = vmul.f32 %v5362_v15, %v10254_v42  ;;  %vm5333_vm8 = vcmp.gt.f32.partialorder %v5305_v54, 0.03  ;;  %vm5336_vm9 = vcmp.gt.f32.partialorder %v5308_v36, 0.03  ;;  %v5469_v57 = vld [vmem:[%s11048_s9 + $0x108] sm:$0xff] }
0x98c0   :  { %7819 = vmatprep.subr.bf16.mxu1 %v8577_v7  ;;  %7843 = vmatprep.subr.bf16.mxu0 %v8577_v7  ;;  %v5361_v12 = vsel %vm5333_vm8, %v5305_v54, 0.0  ;;  %v5364_v14 = vsel %vm5336_vm9, %v5308_v36, 0.0  ;;  %vm5335_vm10 = vcmp.gt.f32.partialorder %v5307_v23, 0.03  ;;  %vm5338_vm11 = vcmp.gt.f32.partialorder %v5310_v9, 0.03 }
0x98c1   :  { %v5555_v30 = vpack.c.bf16 %v5451_v51, %v5450_v53  ;;  %v10469_v17 = vmul.f32 %v5361_v12, %v5003_v28  ;;  %v10472_v41 = vmul.f32 %v5364_v14, %v10258_v37  ;;  %v5363_v34 = vsel %vm5335_vm10, %v5307_v23, 0.0 }
0x98c2   :  { %7808 = vmatmul.mubr.msk.bf16.vlgmr.msra.gmra.mrb[124].mxu1 %vm159_vm3, %v5409_v2  ;;  %7832 = vmatmul.mubr.msk.bf16.vlgmr.msra.gmra.mrb[132].mxu0 %vm159_vm3, %v5412_v20  ;;  %v10489_v16 = vmul.f32 %v5363_v34, %v5004_v48  ;;  %v5366_v28 = vsel %vm5338_vm11, %v5310_v9, 0.0  ;;  %v5309_v26 = vmul.f32 %v10319_v22, %v10139_v18  ;;  %v5312_v5 = vmul.f32 %v10319_v22, %v10160_v21  ;;  %v5470_v2 = vld [vmem:[%s11048_s9 + $0x110] sm:$0xff]  ;;  %v5476_v9 = vld [vmem:[%s11048_s9 + $0x140] sm:$0xff] }
0x98c3   :  { %7820 = vmatpush3.bf16.msra.mxu1 %v5554_v35  ;;  %7844 = vmatpush3.bf16.msra.mxu0 %v5560_v4  ;;  %v5561_v63 = vpack.c.bf16 %v5463_v10, %v5462_v6  ;;  %v5558_v25 = vpack.c.bf16 %v10451_v8, %v10446_v58  ;;  %v10498_v53 = vmul.f32 %v5366_v28, %v10261_v1  ;;  %v5464_v10 = vld [vmem:[%s11048_s9 + $0xe0] sm:$0xff] }
0x98c4   :  { %7821 = vmatprep.subr.bf16.mxu1 %v8577_v7  ;;  %7845 = vmatprep.subr.bf16.mxu0 %v8577_v7  ;;  %v5564_v42 = vpack.c.bf16 %v5469_v57, %v10461_v52  ;;  %vm5337_vm12 = vcmp.gt.f32.partialorder %v5309_v26, 0.03  ;;  %vm5340_vm13 = vcmp.gt.f32.partialorder %v5312_v5, 0.03  ;;  %v5311_v18 = vmul.f32 %v10319_v22, %v10153_v24 }
0x98c5   :  { %7823 = vmatprep.mubr.msk.bf16.mxu1 %vm8578_vm2, %v8577_v7  ;;  %7847 = vmatprep.mubr.msk.bf16.mxu0 %vm8578_vm2, %v8577_v7  ;;  %v5559_v21 = vpack.c.bf16 %v10484_v27, %v10479_v11  ;;  %v5365_v48 = vsel %vm5337_vm12, %v5309_v26, 0.0  ;;  %v5368_v35 = vsel %vm5340_vm13, %v5312_v5, 0.0  ;;  %v5314_v4 = vmul.f32 %v10319_v22, %v10174_v46  ;;  %v5471_v46 = vld [vmem:[%s11048_s9 + $0x118] sm:$0xff] }
0x98c6   :  { %v10516_v54 = vmul.f32 %v5365_v48, %v5020_v38  ;;  %v10519_v24 = vmul.f32 %v5368_v35, %v10265_v62  ;;  %vm5339_vm14 = vcmp.gt.f32.partialorder %v5311_v18, 0.03  ;;  %v5313_v36 = vmul.f32 %v10319_v22, %v10167_v39 }
0x98c7   :  { %7822 = vmatpush3.bf16.msra.mxu1 %v5555_v30  ;;  %7846 = vmatpush3.bf16.msra.mxu0 %v5561_v63  ;;  %v5367_v37 = vsel %vm5339_vm14, %v5311_v18, 0.0  ;;  %vm5342_vm15 = vcmp.gt.f32.partialorder %v5314_v4, 0.03  ;;  %v5316_v38 = vmul.f32 %v10319_v22, %v10188_v32  ;;  %v5315_v51 = vmul.f32 %v10319_v22, %v10181_v40  ;;  %v5465_v32 = vld [vmem:[%s11048_s9 + $0xe8] sm:$0xff]  ;;  %v5479_v63 = vld [vmem:[%s11048_s9 + $0x158] sm:$0xff] }
0x98c8   :  { %7835 = vmatprep.subr.bf16.mxu1 %v8577_v7  ;;  %v5411_v39 = vpack.c.bf16 %v10390_v55, %v10390_v55  ;;  %v5414_v6 = vpack.c.bf16 %v10395_v50, %v10395_v50  ;;  %7859 = vmatprep.subr.bf16.mxu0 %v8577_v7  ;;  %v11051_v40 = vcombine.high %v10261_v1, %v10261_v1  ;;  %v5370_v23 = vsel %vm5342_vm15, %v5314_v4, 0.0  ;;  %v5477_v1 = vld [vmem:[%s11048_s9 + $0x148] sm:$0xff] }
0x98c9   :  { %v10551_v55 = vmul.f32 %v5370_v23, %v10268_v60  ;;  %vm5341_vm0 = vcmp.gt.f32.partialorder %v5313_v36, 0.03  ;;  %vm5344_vm1 = vcmp.gt.f32.partialorder %v5316_v38, 0.03  ;;  %vm5343_vm4 = vcmp.gt.f32.partialorder %v5315_v51, 0.03 }
0x98ca   :  { %v10548_v15 = vmul.f32 %v5367_v37, %v11051_v40  ;;  %7824 = vmatmul.mubr.msk.bf16.vlgmr.msra.gmra.mrb[128].mxu1 %vm159_vm3, %v5411_v39  ;;  %7848 = vmatmul.mubr.msk.bf16.vlgmr.msra.gmra.mrb[136].mxu0 %vm159_vm3, %v5414_v6  ;;  %v5565_v50 = vpack.c.bf16 %v5471_v46, %v5470_v2  ;;  %v5369_v20 = vsel %vm5341_vm0, %v5313_v36, 0.0  ;;  %v5372_v58 = vsel %vm5344_vm1, %v5316_v38, 0.0  ;;  %v5485_v39 = vld [vmem:[%s11048_s9 + $0x188] sm:$0xff]  ;;  %v5474_v23 = vld [vmem:[%s11048_s9 + $0x130] sm:$0xff] }
0x98cb   :  { %v5371_v8 = vsel %vm5343_vm4, %v5315_v51, 0.0  ;;  %7836 = vmatpush3.bf16.msra.mxu1 %v5558_v25  ;;  %7860 = vmatpush3.bf16.msra.mxu0 %v5564_v42  ;;  %v5562_v12 = vpack.c.bf16 %v5465_v32, %v5464_v10  ;;  %v11052_v14 = vcombine.high %v10265_v62, %v10265_v62  ;;  %v10567_v52 = vmul.f32 %v5372_v58, %v10272_v0  ;;  %v5484_v51 = vld [vmem:[%s11048_s9 + $0x180] sm:$0xff]  ;;  %v5487_v58 = vld [vmem:[%s11048_s9 + $0x198] sm:$0xff] }
0x98cc   :  { %7837 = vmatprep.subr.bf16.mxu1 %v8577_v7  ;;  %7861 = vmatprep.subr.bf16.mxu0 %v8577_v7  ;;  %v11053_v57 = vcombine.high %v10268_v60, %v10268_v60  ;;  %v5318_v11 = vmul.f32 %v10319_v22, %v10199_v3  ;;  %v5317_v62 = vmul.f32 %v10319_v22, %v10195_v59  ;;  %v5466_v3 = vld [vmem:[%s11048_s9 + $0xf0] sm:$0xff]  ;;  %vm6808_vm12 = vcmask 74752  }
0x98cd   :  { %v10564_v30 = vmul.f32 %v5369_v20, %v11052_v14  ;;  %7839 = vmatprep.mubr.msk.bf16.mxu1 %vm8578_vm2, %v8577_v7  ;;  %7863 = vmatprep.mubr.msk.bf16.mxu0 %vm8578_vm2, %v8577_v7  ;;  %v5413_v27 = vpack.c.bf16 %v10397_v44, %v10397_v44  ;;  %v5568_v28 = vpack.c.bf16 %v5477_v1, %v5476_v9  ;;  %v5467_v44 = vld [vmem:[%s11048_s9 + $0xf8] sm:$0xff]  ;;  %v5486_v20 = vld [vmem:[%s11048_s9 + $0x190] sm:$0xff]  ;;  %v5492_v14 = vld [vmem:[%s11048_s9 + $0x1c0] sm:$0xff] }
0x98ce   :  { %v10574_v34 = vmul.f32 %v5371_v8, %v11053_v57  ;;  %v5320_v60 = vmul.f32 %v10319_v22, %v10207_v29  ;;  %v5416_v26 = vpack.c.bf16 %v10408_v19, %v10408_v19  ;;  %vm5346_vm5 = vcmp.gt.f32.partialorder %v5318_v11, 0.03  ;;  %v5475_v1 = vld [vmem:[%s11048_s9 + $0x138] sm:$0xff]  ;;  %v5480_v8 = vld [vmem:[%s11048_s9 + $0x160] sm:$0xff]  ;;  %v5493_v57 = vld [vmem:[%s11048_s9 + $0x1c8] sm:$0xff] }
0x98cf   :  { %vm5345_vm6 = vcmp.gt.f32.partialorder %v5317_v62, 0.03  ;;  %v5319_v59 = vmul.f32 %v10319_v22, %v10203_v13  ;;  %7838 = vmatpush3.bf16.msra.mxu1 %v5559_v21  ;;  %7862 = vmatpush3.bf16.msra.mxu0 %v5565_v50  ;;  %v5374_v5 = vsel %vm5346_vm5, %v5318_v11, 0.0  ;;  %v5322_v19 = vmul.f32 %v10319_v22, %v10215_v56  ;;  %v5478_v13 = vld [vmem:[%s11048_s9 + $0x150] sm:$0xff] }
0x98d0   :  { %v5373_v29 = vsel %vm5345_vm6, %v5317_v62, 0.0  ;;  %vm5348_vm7 = vcmp.gt.f32.partialorder %v5320_v60, 0.03  ;;  %7851 = vmatprep.subr.bf16.mxu1 %v8577_v7  ;;  %7875 = vmatprep.subr.bf16.mxu0 %v8577_v7  ;;  %v10609_v25 = vmul.f32 %v5374_v5, %v10275_v31  ;;  %v11054_v42 = vcombine.high %v10272_v0, %v10272_v0  ;;  %v5489_v5 = vld [vmem:[%s11048_s9 + $0x1a8] sm:$0xff] }
0x98d1   :  { %v5376_v56 = vsel %vm5348_vm7, %v5320_v60, 0.0  ;;  %vm5347_vm8 = vcmp.gt.f32.partialorder %v5319_v59, 0.03  ;;  %vm5350_vm9 = vcmp.gt.f32.partialorder %v5322_v19, 0.03  ;;  %v5321_v35 = vmul.f32 %v10319_v22, %v10211_v61  ;;  %v5472_v61 = vld [vmem:[%s11048_s9 + $0x120] sm:$0xff] }
0x98d2   :  { %v10614_v18 = vmul.f32 %v5373_v29, %v11054_v42  ;;  %v10617_v21 = vmul.f32 %v5376_v56, %v10329_v49  ;;  %v5375_v48 = vsel %vm5347_vm8, %v5319_v59, 0.0  ;;  %7840 = vmatmul.mubr.msk.bf16.vlgmr.msra.gmra.mrb[132].mxu1 %vm159_vm3, %v5413_v27  ;;  %7864 = vmatmul.mubr.msk.bf16.vlgmr.msra.gmra.mrb[140].mxu0 %vm159_vm3, %v5416_v26  ;;  %v5563_v4 = vpack.c.bf16 %v5467_v44, %v5466_v3  ;;  %v5482_v27 = vld [vmem:[%s11048_s9 + $0x170] sm:$0xff]  ;;  %v5483_v26 = vld [vmem:[%s11048_s9 + $0x178] sm:$0xff]  ;;  %v5488_v44 = vld [vmem:[%s11048_s9 + $0x1a0] sm:$0xff] }
0x98d3   :  { %v11055_v0 = vcombine.high %v10275_v31, %v10275_v31  ;;  %v5378_v2 = vsel %vm5350_vm9, %v5322_v19, 0.0  ;;  %v5071_v46 = vcombine.high %v10329_v49, %v10329_v49  ;;  %7852 = vmatpush3.bf16.msra.mxu1 %v5562_v12  ;;  %7876 = vmatpush3.bf16.msra.mxu0 %v5568_v28  ;;  %v5569_v37 = vpack.c.bf16 %v5479_v63, %v5478_v13  ;;  %v5473_v49 = vld [vmem:[%s11048_s9 + $0x128] sm:$0xff]  ;;  %v5494_v59 = vld [vmem:[%s11048_s9 + $0x1d0] sm:$0xff]  ;;  %v5495_v3 = vld [vmem:[%s11048_s9 + $0x1d8] sm:$0xff] }
0x98d4   :  { %v10634_v38 = vmul.f32 %v5378_v2, %v10373_v45  ;;  %vm5349_vm10 = vcmp.gt.f32.partialorder %v5321_v35, 0.03  ;;  %v5323_v31 = vmul.f32 %v10319_v22, %v10219_v33  ;;  %7853 = vmatprep.subr.bf16.mxu1 %v8577_v7  ;;  %7877 = vmatprep.subr.bf16.mxu0 %v8577_v7  ;;  %v5072_v22 = vcombine.high %v10373_v45, %v10373_v45  ;;  %v5481_v12 = vld [vmem:[%s11048_s9 + $0x168] sm:$0xff]  ;;  %v5500_v29 = vld [vmem:[%s11048_s9 + $0x200] sm:$0xff]  ;;  %v5490_v42 = vld [vmem:[%s11048_s9 + $0x1b0] sm:$0xff] }
0x98d5   :  { %v10626_v36 = vmul.f32 %v5375_v48, %v11055_v0  ;;  %v5377_v6 = vsel %vm5349_vm10, %v5321_v35, 0.0  ;;  %7855 = vmatprep.mubr.msk.bf16.mxu1 %vm8578_vm2, %v8577_v7  ;;  %7879 = vmatprep.mubr.msk.bf16.mxu0 %vm8578_vm2, %v8577_v7  ;;  %v5566_v32 = vpack.c.bf16 %v5473_v49, %v5472_v61  ;;  %v5572_v40 = vpack.c.bf16 %v5485_v39, %v5484_v51  ;;  %v5501_v19 = vld [vmem:[%s11048_s9 + $0x208] sm:$0xff]  ;;  %v5491_v35 = vld [vmem:[%s11048_s9 + $0x1b8] sm:$0xff]  ;;  %v5496_v2 = vld [vmem:[%s11048_s9 + $0x1e0] sm:$0xff] }
0x98d6   :  { %v10653_v33 = vmul.f32 %v5377_v6, %v5071_v46  ;;  %vm5351_vm11 = vcmp.gt.f32.partialorder %v5323_v31, 0.03  ;;  %v5415_v9 = vpack.c.bf16 %v10420_v43, %v10420_v43  ;;  %v5418_v45 = vpack.c.bf16 %v10454_v47, %v10454_v47  ;;  %v5503_v0 = vld [vmem:[%s11048_s9 + $0x218] sm:$0xff]  ;;  %v5497_v46 = vld [vmem:[%s11048_s9 + $0x1e8] sm:$0xff]  ;;  %v5498_v51 = vld [vmem:[%s11048_s9 + $0x1f0] sm:$0xff] }
0x98d7   :  { %v5379_v10 = vsel %vm5351_vm11, %v5323_v31, 0.0  ;;  %7854 = vmatpush3.bf16.msra.mxu1 %v5563_v4  ;;  %7878 = vmatpush3.bf16.msra.mxu0 %v5569_v37  ;;  %v5567_v43 = vpack.c.bf16 %v5475_v1, %v5474_v23  ;;  %v5573_v47 = vpack.c.bf16 %v5487_v58, %v5486_v20  ;;  %v5570_v11 = vpack.c.bf16 %v5481_v12, %v5480_v8  ;;  %v5502_v4 = vld [vmem:[%s11048_s9 + $0x210] sm:$0xff]  ;;  %v5508_v37 = vld [vmem:[%s11048_s9 + $0x240] sm:$0xff]  ;;  %v5509_v61 = vld [vmem:[%s11048_s9 + $0x248] sm:$0xff] }
0x98d8   :  { %v10660_v50 = vmul.f32 %v5379_v10, %v5072_v22  ;;  %7867 = vmatprep.subr.bf16.mxu1 %v8577_v7  ;;  %7891 = vmatprep.subr.bf16.mxu0 %v8577_v7  ;;  %v5576_v62 = vpack.c.bf16 %v5493_v57, %v5492_v14  ;;  %v5417_v28 = vpack.c.bf16 %v10469_v17, %v10469_v17  ;;  %v5499_v22 = vld [vmem:[%s11048_s9 + $0x1f8] sm:$0xff]  ;;  %v5510_v10 = vld [vmem:[%s11048_s9 + $0x250] sm:$0xff]  ;;  %v5505_v23 = vld [vmem:[%s11048_s9 + $0x228] sm:$0xff] }
0x98d9   :  { %v5420_v60 = vpack.c.bf16 %v10472_v41, %v10472_v41  ;;  %v5571_v17 = vpack.c.bf16 %v5483_v26, %v5482_v27  ;;  %v5577_v41 = vpack.c.bf16 %v5495_v3, %v5494_v59  ;;  %v5574_v13 = vpack.c.bf16 %v5489_v5, %v5488_v44  ;;  %v5506_v58 = vld [vmem:[%s11048_s9 + $0x230] sm:$0xff]  ;;  %v5507_v8 = vld [vmem:[%s11048_s9 + $0x238] sm:$0xff]  ;;  %v5512_v57 = vld [vmem:[%s11048_s9 + $0x260] sm:$0xff] }
0x98da   :  { %7856 = vmatmul.mubr.msk.bf16.vlgmr.msra.gmra.mrb[136].mxu1 %vm159_vm3, %v5415_v9  ;;  %7880 = vmatmul.mubr.msk.bf16.vlgmr.msra.gmra.mrb[144].mxu0 %vm159_vm3, %v5418_v45  ;;  %v5580_v63 = vpack.c.bf16 %v5501_v19, %v5500_v29  ;;  %v5419_v56 = vpack.c.bf16 %v10489_v16, %v10489_v16  ;;  %v5422_v48 = vpack.c.bf16 %v10498_v53, %v10498_v53  ;;  %v5516_v9 = vld [vmem:[%s11048_s9 + $0x280] sm:$0xff]  ;;  %v5517_v45 = vld [vmem:[%s11048_s9 + $0x288] sm:$0xff]  ;;  %v5518_v12 = vld [vmem:[%s11048_s9 + $0x290] sm:$0xff] }
0x98db   :  { %7868 = vmatpush3.bf16.msra.mxu1 %v5566_v32  ;;  %7892 = vmatpush3.bf16.msra.mxu0 %v5572_v40  ;;  %v5575_v16 = vpack.c.bf16 %v5491_v35, %v5490_v42  ;;  %v5581_v53 = vpack.c.bf16 %v5503_v0, %v5502_v4  ;;  %v5578_v31 = vpack.c.bf16 %v5497_v46, %v5496_v2  ;;  %v5511_v32 = vld [vmem:[%s11048_s9 + $0x258] sm:$0xff]  ;;  %v5504_v40 = vld [vmem:[%s11048_s9 + $0x220] sm:$0xff]  ;;  %v5525_v27 = vld [vmem:[%s11048_s9 + $0x2c8] sm:$0xff] }
0x98dc   :  { %7869 = vmatprep.subr.bf16.mxu1 %v8577_v7  ;;  %7893 = vmatprep.subr.bf16.mxu0 %v8577_v7  ;;  %v5584_v49 = vpack.c.bf16 %v5509_v61, %v5508_v37  ;;  %v5421_v39 = vpack.c.bf16 %v10516_v54, %v10516_v54  ;;  %v5424_v6 = vpack.c.bf16 %v10519_v24, %v10519_v24  ;;  %v5519_v14 = vld [vmem:[%s11048_s9 + $0x298] sm:$0xff]  ;;  %v5514_v26 = vld [vmem:[%s11048_s9 + $0x270] sm:$0xff]  ;;  %v5520_v5 = vld [vmem:[%s11048_s9 + $0x2a0] sm:$0xff] }
0x98dd   :  { %7871 = vmatprep.mubr.msk.bf16.mxu1 %vm8578_vm2, %v8577_v7  ;;  %7895 = vmatprep.mubr.msk.bf16.mxu0 %vm8578_vm2, %v8577_v7  ;;  %v5579_v54 = vpack.c.bf16 %v5499_v22, %v5498_v51  ;;  %v5585_v24 = vpack.c.bf16 %v5511_v32, %v5510_v10  ;;  %v5582_v1 = vpack.c.bf16 %v5505_v23, %v5504_v40  ;;  %v5527_v44 = vld [vmem:[%s11048_s9 + $0x2d8] sm:$0xff]  ;;  %v5521_v29 = vld [vmem:[%s11048_s9 + $0x2a8] sm:$0xff]  ;;  %v5532_v19 = vld [vmem:[%s11048_s9 + $0x300] sm:$0xff] }
0x98de   :  { %v5588_v20 = vpack.c.bf16 %v5517_v45, %v5516_v9  ;;  %v5425_v59 = vpack.c.bf16 %v10564_v30, %v10564_v30  ;;  %v5428_v3 = vpack.c.bf16 %v10567_v52, %v10567_v52  ;;  %v5430_v35 = vpack.c.bf16 %v10609_v25, %v10609_v25  ;;  %v5523_v4 = vld [vmem:[%s11048_s9 + $0x2b8] sm:$0xff]  ;;  %v5534_v0 = vld [vmem:[%s11048_s9 + $0x310] sm:$0xff]  ;;  %v5529_v2 = vld [vmem:[%s11048_s9 + $0x2e8] sm:$0xff] }
0x98df   :  { %7870 = vmatpush3.bf16.msra.mxu1 %v5567_v43  ;;  %7894 = vmatpush3.bf16.msra.mxu0 %v5573_v47  ;;  %v5423_v43 = vpack.c.bf16 %v10548_v15, %v10548_v15  ;;  %v5426_v47 = vpack.c.bf16 %v10551_v55, %v10551_v55  ;;  %v5583_v15 = vpack.c.bf16 %v5507_v8, %v5506_v58  ;;  %v5540_v46 = vld [vmem:[%s11048_s9 + $0x340] sm:$0xff]  ;;  %v5541_v37 = vld [vmem:[%s11048_s9 + $0x348] sm:$0xff]  ;;  %v5542_v22 = vld [vmem:[%s11048_s9 + $0x350] sm:$0xff] }
0x98e0   :  { %7883 = vmatprep.subr.bf16.mxu1 %v8577_v7  ;;  %7907 = vmatprep.subr.bf16.mxu0 %v8577_v7  ;;  %v5589_v55 = vpack.c.bf16 %v5519_v14, %v5518_v12  ;;  %v5429_v51 = vpack.c.bf16 %v10614_v18, %v10614_v18  ;;  %v5543_v10 = vld [vmem:[%s11048_s9 + $0x358] sm:$0xff]  ;;  %v5536_v32 = vld [vmem:[%s11048_s9 + $0x320] sm:$0xff]  ;;  %v5431_v40 = vpack.c.bf16 %v10626_v36, %v10626_v36  ;;  %v5538_v9 = vld [vmem:[%s11048_s9 + $0x330] sm:$0xff] }
0x98e1   :  { %v5434_v23 = vpack.c.bf16 %v10634_v38, %v10634_v38  ;;  %v5539_v45 = vld [vmem:[%s11048_s9 + $0x338] sm:$0xff]  ;;  %v5544_v36 = vld [vmem:[%s11048_s9 + $0x360] sm:$0xff]  ;;  %v5545_v38 = vld [vmem:[%s11048_s9 + $0x368] sm:$0xff]  ;;  %v5433_v58 = vpack.c.bf16 %v10653_v33, %v10653_v33  ;;  %v5435_v33 = vpack.c.bf16 %v10660_v50, %v10660_v50 }
0x98e2   :  { %7872 = vmatmul.mubr.msk.bf16.vlgmr.msra.gmra.mrb[140].mxu1 %vm159_vm3, %v5417_v28  ;;  %7896 = vmatmul.mubr.msk.bf16.vlgmr.msra.gmra.mrb[148].mxu0 %vm159_vm3, %v5420_v60 }
0x98e3   :  { %7884 = vmatpush3.bf16.msra.mxu1 %v5570_v11  ;;  %7908 = vmatpush3.bf16.msra.mxu0 %v5576_v62  ;;  %v5513_v11 = vld [vmem:[%s11048_s9 + $0x268] sm:$0xff]  ;;  %v5524_v62 = vld [vmem:[%s11048_s9 + $0x2c0] sm:$0xff] }
0x98e4   :  { %7885 = vmatprep.subr.bf16.mxu1 %v8577_v7  ;;  %7909 = vmatprep.subr.bf16.mxu0 %v8577_v7  ;;  %v5586_v28 = vpack.c.bf16 %v5513_v11, %v5512_v57  ;;  %v5592_v60 = vpack.c.bf16 %v5525_v27, %v5524_v62 }
0x98e5   :  { %7887 = vmatprep.mubr.msk.bf16.mxu1 %vm8578_vm2, %v8577_v7  ;;  %7911 = vmatprep.mubr.msk.bf16.mxu0 %vm8578_vm2, %v8577_v7 }
0x98e7   :  { %7886 = vmatpush3.bf16.msra.mxu1 %v5571_v17  ;;  %7910 = vmatpush3.bf16.msra.mxu0 %v5577_v41  ;;  %v5515_v17 = vld [vmem:[%s11048_s9 + $0x278] sm:$0xff]  ;;  %v5526_v41 = vld [vmem:[%s11048_s9 + $0x2d0] sm:$0xff] }
0x98e8   :  { %7899 = vmatprep.subr.bf16.mxu1 %v8577_v7  ;;  %7923 = vmatprep.subr.bf16.mxu0 %v8577_v7  ;;  %v5587_v30 = vpack.c.bf16 %v5515_v17, %v5514_v26  ;;  %v5593_v52 = vpack.c.bf16 %v5527_v44, %v5526_v41 }
0x98ea   :  { %7888 = vmatmul.mubr.msk.bf16.vlgmr.msra.gmra.mrb[144].mxu1 %vm159_vm3, %v5419_v56  ;;  %7912 = vmatmul.mubr.msk.bf16.vlgmr.msra.gmra.mrb[152].mxu0 %vm159_vm3, %v5422_v48  ;;  %v5522_v56 = vld [vmem:[%s11048_s9 + $0x2b0] sm:$0xff]  ;;  %v5427_v48 = vpack.c.bf16 %v10574_v34, %v10574_v34 }
0x98eb   :  { %7900 = vmatpush3.bf16.msra.mxu1 %v5574_v13  ;;  %7924 = vmatpush3.bf16.msra.mxu0 %v5580_v63  ;;  %v5533_v13 = vld [vmem:[%s11048_s9 + $0x308] sm:$0xff]  ;;  %v5590_v63 = vpack.c.bf16 %v5521_v29, %v5520_v5  ;;  %v5591_v34 = vpack.c.bf16 %v5523_v4, %v5522_v56 }
0x98ec   :  { %7901 = vmatprep.subr.bf16.mxu1 %v8577_v7  ;;  %7925 = vmatprep.subr.bf16.mxu0 %v8577_v7  ;;  %v5596_v42 = vpack.c.bf16 %v5533_v13, %v5532_v19 }
0x98ed   :  { %7903 = vmatprep.mubr.msk.bf16.mxu1 %vm8578_vm2, %v8577_v7  ;;  %7927 = vmatprep.mubr.msk.bf16.mxu0 %vm8578_vm2, %v8577_v7 }
0x98ef   :  { %7902 = vmatpush3.bf16.msra.mxu1 %v5575_v16  ;;  %7926 = vmatpush3.bf16.msra.mxu0 %v5581_v53  ;;  %v5535_v16 = vld [vmem:[%s11048_s9 + $0x318] sm:$0xff]  ;;  %v5528_v53 = vld [vmem:[%s11048_s9 + $0x2e0] sm:$0xff] }
0x98f0   :  { %7915 = vmatprep.subr.bf16.mxu1 %v8577_v7  ;;  %7939 = vmatprep.subr.bf16.mxu0 %v8577_v7  ;;  %v5597_v25 = vpack.c.bf16 %v5535_v16, %v5534_v0  ;;  %v5594_v61 = vpack.c.bf16 %v5529_v2, %v5528_v53 }
0x98f2   :  { %7904 = vmatmul.mubr.msk.bf16.vlgmr.msra.gmra.mrb[148].mxu1 %vm159_vm3, %v5421_v39  ;;  %7928 = vmatmul.mubr.msk.bf16.vlgmr.msra.gmra.mrb[156].mxu0 %vm159_vm3, %v5424_v6  ;;  %v5432_v39 = vpack.c.bf16 %v10617_v21, %v10617_v21  ;;  %v5531_v6 = vld [vmem:[%s11048_s9 + $0x2f8] sm:$0xff]  ;;  %v5601_v21 = vpack.c.bf16 %v5543_v10, %v5542_v22 }
0x98f3   :  { %7916 = vmatpush3.bf16.msra.mxu1 %v5578_v31  ;;  %7940 = vmatpush3.bf16.msra.mxu0 %v5584_v49  ;;  %v5600_v31 = vpack.c.bf16 %v5541_v37, %v5540_v46  ;;  %v5530_v49 = vld [vmem:[%s11048_s9 + $0x2f0] sm:$0xff] }
0x98f4   :  { %7917 = vmatprep.subr.bf16.mxu1 %v8577_v7  ;;  %7941 = vmatprep.subr.bf16.mxu0 %v8577_v7  ;;  %v5595_v18 = vpack.c.bf16 %v5531_v6, %v5530_v49 }
0x98f5   :  { %7919 = vmatprep.mubr.msk.bf16.mxu1 %vm8578_vm2, %v8577_v7  ;;  %7943 = vmatprep.mubr.msk.bf16.mxu0 %vm8578_vm2, %v8577_v7 }
0x98f7   :  { %7918 = vmatpush3.bf16.msra.mxu1 %v5579_v54  ;;  %7942 = vmatpush3.bf16.msra.mxu0 %v5585_v24  ;;  %v5537_v54 = vld [vmem:[%s11048_s9 + $0x328] sm:$0xff] }
0x98f8   :  { %7931 = vmatprep.subr.bf16.mxu1 %v8577_v7  ;;  %7955 = vmatprep.subr.bf16.mxu0 %v8577_v7  ;;  %v5598_v24 = vpack.c.bf16 %v5537_v54, %v5536_v32 }
0x98fa   :  { %7920 = vmatmul.mubr.msk.bf16.vlgmr.msra.gmra.mrb[152].mxu1 %vm159_vm3, %v5423_v43  ;;  %7944 = vmatmul.mubr.msk.bf16.vlgmr.msra.gmra.mrb[160].mxu0 %vm159_vm3, %v5426_v47  ;;  %v5546_v43 = vld [vmem:[%s11048_s9 + $0x370] sm:$0xff]  ;;  %v5547_v47 = vld [vmem:[%s11048_s9 + $0x378] sm:$0xff] }
0x98fb   :  { %7932 = vmatpush3.bf16.msra.mxu1 %v5582_v1  ;;  %7956 = vmatpush3.bf16.msra.mxu0 %v5588_v20  ;;  %v5599_v1 = vpack.c.bf16 %v5539_v45, %v5538_v9  ;;  %v5602_v20 = vpack.c.bf16 %v5545_v38, %v5544_v36  ;;  %v5603_v8 = vpack.c.bf16 %v5547_v47, %v5546_v43 }
0x98fc   :  { %7933 = vmatprep.subr.bf16.mxu1 %v8577_v7  ;;  %7957 = vmatprep.subr.bf16.mxu0 %v8577_v7 }
0x98fd   :  { %7935 = vmatprep.mubr.msk.bf16.mxu1 %vm8578_vm2, %v8577_v7  ;;  %7959 = vmatprep.mubr.msk.bf16.mxu0 %vm8578_vm2, %v8577_v7 }
0x98ff   :  { %7934 = vmatpush3.bf16.msra.mxu1 %v5583_v15  ;;  %7958 = vmatpush3.bf16.msra.mxu0 %v5589_v55 }
0x9900   :  { %7947 = vmatprep.subr.bf16.mxu1 %v8577_v7  ;;  %7971 = vmatprep.subr.bf16.mxu0 %v8577_v7 }
0x9902   :  { %7936 = vmatmul.mubr.msk.bf16.vlgmr.msra.gmra.mrb[156].mxu1 %vm159_vm3, %v5425_v59  ;;  %7960 = vmatmul.mubr.msk.bf16.vlgmr.msra.gmra.mrb[164].mxu0 %vm159_vm3, %v5428_v3 }
0x9903   :  { %7948 = vmatpush3.bf16.msra.mxu1 %v5586_v28  ;;  %7972 = vmatpush3.bf16.msra.mxu0 %v5592_v60 }
0x9904   :  { %7949 = vmatprep.subr.bf16.mxu1 %v8577_v7  ;;  %7973 = vmatprep.subr.bf16.mxu0 %v8577_v7 }
0x9905   :  { %7951 = vmatprep.mubr.msk.bf16.mxu1 %vm8578_vm2, %v8577_v7  ;;  %7975 = vmatprep.mubr.msk.bf16.mxu0 %vm8578_vm2, %v8577_v7 }
0x9907   :  { %7950 = vmatpush3.bf16.msra.mxu1 %v5587_v30  ;;  %7974 = vmatpush3.bf16.msra.mxu0 %v5593_v52 }
0x9908   :  { %7963 = vmatprep.subr.bf16.mxu1 %v8577_v7  ;;  %7987 = vmatprep.subr.bf16.mxu0 %v8577_v7 }
0x990a   :  { %7952 = vmatmul.mubr.msk.bf16.vlgmr.msra.gmra.mrb[160].mxu1 %vm159_vm3, %v5427_v48  ;;  %7976 = vmatmul.mubr.msk.bf16.vlgmr.msra.gmra.mrb[168].mxu0 %vm159_vm3, %v5430_v35 }
0x990b   :  { %7964 = vmatpush3.bf16.msra.mxu1 %v5590_v63  ;;  %7988 = vmatpush3.bf16.msra.mxu0 %v5596_v42 }
0x990c   :  { %7965 = vmatprep.subr.bf16.mxu1 %v8577_v7  ;;  %7989 = vmatprep.subr.bf16.mxu0 %v8577_v7 }
0x990d   :  { %7967 = vmatprep.mubr.msk.bf16.mxu1 %vm8578_vm2, %v8577_v7  ;;  %7991 = vmatprep.mubr.msk.bf16.mxu0 %vm8578_vm2, %v8577_v7 }
0x990f   :  { %7966 = vmatpush3.bf16.msra.mxu1 %v5591_v34  ;;  %7990 = vmatpush3.bf16.msra.mxu0 %v5597_v25 }
0x9910   :  { %7979 = vmatprep.subr.bf16.mxu1 %v8577_v7  ;;  %8003 = vmatprep.subr.bf16.mxu0 %v8577_v7 }
0x9912   :  { %7968 = vmatmul.mubr.msk.bf16.vlgmr.msra.gmra.mrb[164].mxu1 %vm159_vm3, %v5429_v51  ;;  %7992 = vmatmul.mubr.msk.bf16.vlgmr.msra.gmra.mrb[172].mxu0 %vm159_vm3, %v5432_v39 }
0x9913   :  { %7980 = vmatpush3.bf16.msra.mxu1 %v5594_v61  ;;  %8004 = vmatpush3.bf16.msra.mxu0 %v5600_v31 }
0x9914   :  { %7981 = vmatprep.subr.bf16.mxu1 %v8577_v7  ;;  %8005 = vmatprep.subr.bf16.mxu0 %v8577_v7 }
0x9915   :  { %7983 = vmatprep.mubr.msk.bf16.mxu1 %vm8578_vm2, %v8577_v7  ;;  %8007 = vmatprep.mubr.msk.bf16.mxu0 %vm8578_vm2, %v8577_v7 }
0x9917   :  { %7982 = vmatpush3.bf16.msra.mxu1 %v5595_v18  ;;  %8006 = vmatpush3.bf16.msra.mxu0 %v5601_v21 }
0x9918   :  { %7995 = vmatprep.subr.bf16.mxu1 %v8577_v7 }
0x991a   :  { %7984 = vmatmul.mubr.msk.bf16.vlgmr.msra.gmra.mrb[168].mxu1 %vm159_vm3, %v5431_v40  ;;  %8008 = vmatmul.mubr.msk.bf16.vlgmr.msra.gmra.mrb[176].mxu0 %vm159_vm3, %v5434_v23 }
0x991b   :  { %7996 = vmatpush3.bf16.msra.mxu1 %v5598_v24  ;;  %7999 = vmatprep.mubr.msk.bf16.mxu1 %vm8578_vm2, %v8577_v7 }
0x991c   :  { %7997 = vmatprep.subr.bf16.mxu1 %v8577_v7 }
0x991f   :  { %7998 = vmatpush3.bf16.msra.mxu1 %v5599_v1 }
0x9920   :  { %8011 = vmatprep.subr.bf16.mxu1 %v8577_v7 }
0x9922   :  { %8000 = vmatmul.mubr.msk.bf16.vlgmr.msra.gmra.mrb[172].mxu1 %vm159_vm3, %v5433_v58 }
0x9923   :  { %8012 = vmatpush3.bf16.msra.mxu1 %v5602_v20  ;;  %8015 = vmatprep.mubr.msk.bf16.mxu1 %vm8578_vm2, %v8577_v7 }
0x9924   :  { %8013 = vmatprep.subr.bf16.mxu1 %v8577_v7 }
0x9927   :  { %8014 = vmatpush3.bf16.msra.mxu1 %v5603_v8 }
0x992a   :  { %8016 = vmatmul.mubr.msk.bf16.vlgmr.msra.gmra.mrb[176].mxu1 %vm159_vm3, %v5435_v33 }
0x998d   :  { %v5641_v12 = vpop.f32.mrb[120].mxu1  ;;  %v5727_v14 = vpop.f32.mrb[128].mxu0 }
0x998e   :  { %v7801_v15 = vpop.f32.mrb[121].mxu1  ;;  %v7817_v55 = vpop.f32.mrb[129].mxu0  ;;  %v6809_v26 = vsel %vm6808_vm12, %v5641_v12, 0.0  ;;  %v6812_v44 = vsel %vm6808_vm12, %v5727_v14, 0.0 }
0x998f   :  { %v5644_v57 = vpop.f32.mrb[122].mxu1  ;;  %v5730_v11 = vpop.f32.mrb[130].mxu0 }
0x9990   :  { %v7802_v62 = vpop.f32.mrb[123].mxu1  ;;  %v7818_v27 = vpop.f32.mrb[131].mxu0 }
0x9995   :  { %v5684_v28 = vpop.f32.mrb[124].mxu1  ;;  %v5813_v60 = vpop.f32.mrb[132].mxu0 }
0x9996   :  { %v6810_v7 = vsel %vm6808_vm12, %v5684_v28, 0.0  ;;  %v7809_v59 = vpop.f32.mrb[125].mxu1  ;;  %v7833_v3 = vpop.f32.mrb[133].mxu0  ;;  %v6816_v4 = vsel %vm6808_vm12, %v5813_v60, 0.0 }
0x9997   :  { %v6811_v50 = vadd.f32 %v6810_v7, %v6809_v26  ;;  %v5687_v17 = vpop.f32.mrb[126].mxu1  ;;  %v5816_v41 = vpop.f32.mrb[134].mxu0 }
0x9998   :  { %v7810_v30 = vpop.f32.mrb[127].mxu1  ;;  %v7834_v52 = vpop.f32.mrb[135].mxu0 }
0x9999   :  { %v6813_v5 = vadd.f32 %v6812_v44, %v6811_v50 }
0x999d   :  { %v5770_v29 = vpop.f32.mrb[128].mxu1  ;;  %v5899_v19 = vpop.f32.mrb[136].mxu0 }
0x999e   :  { %v6814_v13 = vsel %vm6808_vm12, %v5770_v29, 0.0  ;;  %v7825_v63 = vpop.f32.mrb[129].mxu1  ;;  %v7849_v42 = vpop.f32.mrb[137].mxu0  ;;  %v6820_v51 = vsel %vm6808_vm12, %v5899_v19, 0.0 }
0x999f   :  { %v6815_v56 = vadd.f32 %v6814_v13, %v6813_v5  ;;  %v5773_v48 = vpop.f32.mrb[130].mxu1  ;;  %v5902_v35 = vpop.f32.mrb[138].mxu0 }
0x99a0   :  { %v7826_v0 = vpop.f32.mrb[131].mxu1  ;;  %v7850_v16 = vpop.f32.mrb[139].mxu0 }
0x99a1   :  { %v6817_v34 = vadd.f32 %v6816_v4, %v6815_v56 }
0x99a5   :  { %v5856_v25 = vpop.f32.mrb[132].mxu1  ;;  %v5985_v53 = vpop.f32.mrb[140].mxu0 }
0x99a6   :  { %v6818_v2 = vsel %vm6808_vm12, %v5856_v25, 0.0  ;;  %v7841_v46 = vpop.f32.mrb[133].mxu1  ;;  %v7865_v37 = vpop.f32.mrb[141].mxu0  ;;  %v6824_v9 = vsel %vm6808_vm12, %v5985_v53, 0.0 }
0x99a7   :  { %v6819_v61 = vadd.f32 %v6818_v2, %v6817_v34  ;;  %v5859_v31 = vpop.f32.mrb[134].mxu1  ;;  %v5988_v49 = vpop.f32.mrb[142].mxu0 }
0x99a8   :  { %v7842_v39 = vpop.f32.mrb[135].mxu1  ;;  %v7866_v6 = vpop.f32.mrb[143].mxu0 }
0x99a9   :  { %v6821_v22 = vadd.f32 %v6820_v51, %v6819_v61 }
0x99ad   :  { %v5942_v10 = vpop.f32.mrb[136].mxu1  ;;  %v6071_v18 = vpop.f32.mrb[144].mxu0 }
0x99ae   :  { %v6822_v21 = vsel %vm6808_vm12, %v5942_v10, 0.0  ;;  %v7857_v32 = vpop.f32.mrb[137].mxu1  ;;  %v7881_v54 = vpop.f32.mrb[145].mxu0  ;;  %v6828_v14 = vsel %vm6808_vm12, %v6071_v18, 0.0 }
0x99af   :  { %v6823_v24 = vadd.f32 %v6822_v21, %v6821_v22  ;;  %v5945_v40 = vpop.f32.mrb[138].mxu1  ;;  %v6074_v23 = vpop.f32.mrb[146].mxu0 }
0x99b0   :  { %v7858_v45 = vpop.f32.mrb[139].mxu1  ;;  %v7882_v1 = vpop.f32.mrb[147].mxu0 }
0x99b1   :  { %v6825_v36 = vadd.f32 %v6824_v9, %v6823_v24 }
0x99b5   :  { %v6028_v38 = vpop.f32.mrb[140].mxu1  ;;  %v6157_v20 = vpop.f32.mrb[148].mxu0 }
0x99b6   :  { %v6826_v58 = vsel %vm6808_vm12, %v6028_v38, 0.0  ;;  %v7873_v43 = vpop.f32.mrb[141].mxu1  ;;  %v7897_v47 = vpop.f32.mrb[149].mxu0  ;;  %v6832_v3 = vsel %vm6808_vm12, %v6157_v20, 0.0 }
0x99b7   :  { %v6827_v8 = vadd.f32 %v6826_v58, %v6825_v36  ;;  %v6031_v33 = vpop.f32.mrb[142].mxu1  ;;  %v6160_v12 = vpop.f32.mrb[150].mxu0 }
0x99b8   :  { %v7874_v15 = vpop.f32.mrb[143].mxu1  ;;  %v7898_v55 = vpop.f32.mrb[151].mxu0 }
0x99b9   :  { %v6829_v57 = vadd.f32 %v6828_v14, %v6827_v8 }
0x99bd   :  { %v6114_v11 = vpop.f32.mrb[144].mxu1  ;;  %v6243_v62 = vpop.f32.mrb[152].mxu0 }
0x99be   :  { %v6830_v27 = vsel %vm6808_vm12, %v6114_v11, 0.0  ;;  %v7889_v28 = vpop.f32.mrb[145].mxu1  ;;  %v7913_v60 = vpop.f32.mrb[153].mxu0  ;;  %v6836_v42 = vsel %vm6808_vm12, %v6243_v62, 0.0 }
0x99bf   :  { %v6831_v26 = vadd.f32 %v6830_v27, %v6829_v57  ;;  %v6117_v7 = vpop.f32.mrb[146].mxu1  ;;  %v6246_v59 = vpop.f32.mrb[154].mxu0 }
0x99c0   :  { %v7890_v50 = vpop.f32.mrb[147].mxu1  ;;  %v7914_v17 = vpop.f32.mrb[155].mxu0 }
0x99c1   :  { %v6833_v41 = vadd.f32 %v6832_v3, %v6831_v26 }
0x99c5   :  { %v6200_v44 = vpop.f32.mrb[148].mxu1  ;;  %v6329_v30 = vpop.f32.mrb[156].mxu0 }
0x99c6   :  { %v6834_v52 = vsel %vm6808_vm12, %v6200_v44, 0.0  ;;  %v7905_v5 = vpop.f32.mrb[149].mxu1  ;;  %v7929_v29 = vpop.f32.mrb[157].mxu0  ;;  %v6840_v37 = vsel %vm6808_vm12, %v6329_v30, 0.0 }
0x99c7   :  { %v6835_v19 = vadd.f32 %v6834_v52, %v6833_v41  ;;  %v6203_v13 = vpop.f32.mrb[150].mxu1  ;;  %v6332_v63 = vpop.f32.mrb[158].mxu0 }
0x99c8   :  { %v7906_v56 = vpop.f32.mrb[151].mxu1  ;;  %v7930_v48 = vpop.f32.mrb[159].mxu0 }
0x99c9   :  { %v6837_v35 = vadd.f32 %v6836_v42, %v6835_v19 }
0x99cd   :  { %v6286_v4 = vpop.f32.mrb[152].mxu1  ;;  %v6415_v0 = vpop.f32.mrb[160].mxu0 }
0x99ce   :  { %v6838_v16 = vsel %vm6808_vm12, %v6286_v4, 0.0  ;;  %v7921_v34 = vpop.f32.mrb[153].mxu1  ;;  %v7945_v25 = vpop.f32.mrb[161].mxu0  ;;  %v6844_v54 = vsel %vm6808_vm12, %v6415_v0, 0.0 }
0x99cf   :  { %v6839_v53 = vadd.f32 %v6838_v16, %v6837_v35  ;;  %v6289_v2 = vpop.f32.mrb[154].mxu1  ;;  %v6418_v46 = vpop.f32.mrb[162].mxu0 }
0x99d0   :  { %v7922_v61 = vpop.f32.mrb[155].mxu1  ;;  %v7946_v31 = vpop.f32.mrb[163].mxu0  ;;  %v7040_v2 = vld [vmem:[%s11049_s10] ss:$0 sm:$0xff] }
0x99d1   :  { %v6841_v49 = vadd.f32 %v6840_v37, %v6839_v53 }
0x99d5   :  { %v6372_v51 = vpop.f32.mrb[156].mxu1  ;;  %v6501_v39 = vpop.f32.mrb[164].mxu0 }
0x99d6   :  { %v6842_v6 = vsel %vm6808_vm12, %v6372_v51, 0.0  ;;  %v7937_v22 = vpop.f32.mrb[157].mxu1  ;;  %v7961_v10 = vpop.f32.mrb[165].mxu0  ;;  %v6848_v47 = vsel %vm6808_vm12, %v6501_v39, 0.0 }
0x99d7   :  { %v6843_v18 = vadd.f32 %v6842_v6, %v6841_v49  ;;  %v6375_v21 = vpop.f32.mrb[158].mxu1  ;;  %v6504_v32 = vpop.f32.mrb[166].mxu0 }
0x99d8   :  { %v7938_v24 = vpop.f32.mrb[159].mxu1  ;;  %v7962_v40 = vpop.f32.mrb[167].mxu0 }
0x99d9   :  { %v6845_v23 = vadd.f32 %v6844_v54, %v6843_v18 }
0x99dd   :  { %v6458_v9 = vpop.f32.mrb[160].mxu1  ;;  %v6587_v45 = vpop.f32.mrb[168].mxu0 }
0x99de   :  { %v6846_v1 = vsel %vm6808_vm12, %v6458_v9, 0.0  ;;  %v7953_v36 = vpop.f32.mrb[161].mxu1  ;;  %v7977_v38 = vpop.f32.mrb[169].mxu0  ;;  %v6852_v60 = vsel %vm6808_vm12, %v6587_v45, 0.0 }
0x99df   :  { %v6847_v20 = vadd.f32 %v6846_v1, %v6845_v23  ;;  %v6461_v58 = vpop.f32.mrb[162].mxu1  ;;  %v6590_v43 = vpop.f32.mrb[170].mxu0 }
0x99e0   :  { %v7954_v8 = vpop.f32.mrb[163].mxu1  ;;  %v7978_v33 = vpop.f32.mrb[171].mxu0 }
0x99e1   :  { %v6849_v12 = vadd.f32 %v6848_v47, %v6847_v20 }
0x99e5   :  { %v6544_v14 = vpop.f32.mrb[164].mxu1  ;;  %v6673_v15 = vpop.f32.mrb[172].mxu0 }
0x99e6   :  { %v6850_v55 = vsel %vm6808_vm12, %v6544_v14, 0.0  ;;  %v7969_v57 = vpop.f32.mrb[165].mxu1  ;;  %v7993_v11 = vpop.f32.mrb[173].mxu0  ;;  %v6856_v29 = vsel %vm6808_vm12, %v6673_v15, 0.0 }
0x99e7   :  { %v6851_v62 = vadd.f32 %v6850_v55, %v6849_v12  ;;  %v6547_v27 = vpop.f32.mrb[166].mxu1  ;;  %v6676_v28 = vpop.f32.mrb[174].mxu0 }
0x99e8   :  { %v7970_v26 = vpop.f32.mrb[167].mxu1  ;;  %v7994_v7 = vpop.f32.mrb[175].mxu0 }
0x99e9   :  { %v6853_v59 = vadd.f32 %v6852_v60, %v6851_v62 }
0x99ed   :  { %v6630_v3 = vpop.f32.mrb[168].mxu1  ;;  %v6759_v50 = vpop.f32.mrb[176].mxu0 }
0x99ee   :  { %v6854_v17 = vsel %vm6808_vm12, %v6630_v3, 0.0  ;;  %v7985_v41 = vpop.f32.mrb[169].mxu1  ;;  %v8009_v44 = vpop.f32.mrb[177].mxu0  ;;  %v6860_v0 = vsel %vm6808_vm12, %v6759_v50, 0.0 }
0x99ef   :  { %v6855_v30 = vadd.f32 %v6854_v17, %v6853_v59  ;;  %v6633_v52 = vpop.f32.mrb[170].mxu1  ;;  %v6762_v5 = vpop.f32.mrb[178].mxu0 }
0x99f0   :  { %v7986_v19 = vpop.f32.mrb[171].mxu1  ;;  %v8010_v13 = vpop.f32.mrb[179].mxu0 }
0x99f1   :  { %v6857_v63 = vadd.f32 %v6856_v29, %v6855_v30 }
0x99f5   :  { %v6716_v42 = vpop.f32.mrb[172].mxu1 }
0x99f6   :  { %v6858_v56 = vsel %vm6808_vm12, %v6716_v42, 0.0  ;;  %v8001_v48 = vpop.f32.mrb[173].mxu1 }
0x99f7   :  { %v6859_v35 = vadd.f32 %v6858_v56, %v6857_v63  ;;  %v6719_v4 = vpop.f32.mrb[174].mxu1 }
0x99f8   :  { %v8002_v16 = vpop.f32.mrb[175].mxu1 }
0x99f9   :  { %v6861_v34 = vadd.f32 %v6860_v0, %v6859_v35 }
0x99fd   :  { %v6802_v25 = vpop.f32.mrb[176].mxu1 }
0x99fe   :  { %v6862_v53 = vsel %vm6808_vm12, %v6802_v25, 0.0  ;;  %v8017_v46 = vpop.f32.mrb[177].mxu1 }
0x99ff   :  { %v6863_v37 = vadd.f32 %v6862_v53, %v6861_v34  ;;  %v6805_v61 = vpop.f32.mrb[178].mxu1 }
0x9a00   :  { %v8018_v31 = vpop.f32.mrb[179].mxu1 }
0x9a01   :  { %v6871_v49 = vadd.f32 %v7040_v2, %v6863_v37 }
0x9a03   :  { %6872 = vst.msk [vmem:[#allocation4] sm:$0x3] %vm6808_vm12, %v6871_v49 }
0x9a04   :  { %8564 = shalt.err (!%p8561_p4)
}
0x9a05   :  { %s8565_s10 = scalar_lea.hbm %s11050_s11, 32 }
0x9a06   :  { %p8566_p5 = scmp.ne.s32.totalorder %s11050_s11, %s8565_s10  ;;  %p8569_p6 = scmp.lt.u32.totalorder %s8565_s10, %s11050_s11 }
0x9a08   :  { %p8571_p7 = pnand %p8569_p6, %p8566_p5 }
0x9a0a   :  { %8574 = shalt.err (!%p8571_p7)
}
0x9a0b   :  { %6882 = dma.vmem_to_hbm [thread:$0]  %s6880_s30, 32, %s11050_s11, [#allocation5]  }
0x9a0c   :  { %8575 = dma.done.wait [#allocation5], 32  }
0x9a0d   :  { %8576 = vsyncadd [#allocation5], 4294967264 }
0x9a0e   :  { %6886 = vsyncpa [#allocation5], 1 }

</bundles_post_ra>
